<compile_context>
chip_gen: v7x
topology: tpu7x:2x2x1
jax: 0.10.0
libtpu: 0.0.40
codegen_flags: <defaults>
</compile_context>

<pallas_src>
import functools
import math

import jax
import jax.numpy as jnp
from jax.experimental import pallas as pl
from jax.experimental.pallas import tpu as pltpu

LANE = 128


def _vmem():
    return pl.BlockSpec(memory_space=pltpu.MemorySpace.VMEM)


def _sigmoid(x):
    # 1/(1+exp(-x)) == 0.5*(tanh(x/2)+1): stable, and tanh uses the EUP.
    return 0.5 * (jnp.tanh(0.5 * x) + 1.0)


# ----------------------------------------------------------------------------
# Fused forward kernel (grid=(), everything resident in VMEM)
# ----------------------------------------------------------------------------
def dnn_fused_kernel(x_ref, noise_ref,
                     wih0_ref, whh0_ref, b0_ref,
                     wih1_ref, whh1_ref, b1_ref,
                     w1f_ref, b1f_ref, w2_ref, b2_ref, wl_ref, bl_ref,
                     out_ref,
                     y0_ref, y1_ref,
                     *, S, B, alpha_sqrt, noise_scale):
    N = S * B
    Hp = whh0_ref.shape[0]          # lane-padded hidden dim (128)
    H = w2_ref.shape[1]             # true hidden dim (64)

    # ---- DF_block affine, fused (no dedicated launch) ----
    x2 = x_ref[...]                                           # (N, D_in), rows (t, b)
    noisy2 = alpha_sqrt * x2 + noise_scale * noise_ref[...]

    wih0_t = wih0_ref[...]                                    # (D_in, 4*Hp)
    whh0_t = whh0_ref[...]                                    # (Hp,   4*Hp)
    b0 = b0_ref[...]                                          # (1,    4*Hp)
    wih1_t = wih1_ref[...]
    whh1_t = whh1_ref[...]
    b1 = b1_ref[...]

    def run_layer(gates_x, whh_t, h, c, y_ref, row0):
        # gates_x: (N, 4*Hp) hoisted input projection (+bias); h, c: (B, Hp).
        # Fully unrolled (S small & static) so matmul / EUP / VPU work can
        # overlap across steps.  Gate slices are 128-lane aligned by design.
        for t in range(S):
            r = t * B
            g_all = gates_x[r:r + B, :] + jnp.dot(
                h, whh_t, preferred_element_type=jnp.float32)
            i = _sigmoid(g_all[:, 0 * Hp:1 * Hp])
            f = _sigmoid(g_all[:, 1 * Hp:2 * Hp])
            g = jnp.tanh(g_all[:, 2 * Hp:3 * Hp])
            o = _sigmoid(g_all[:, 3 * Hp:4 * Hp])
            c = f * c + i * g
            h = o * jnp.tanh(c)
            y_ref[row0 + r:row0 + r + B, :] = h
        return h, c

    # ---- layer-0 input projection: clean + noisy batched into one matmul ----
    xin = jnp.concatenate([x2, noisy2], axis=0)               # (2N, D_in)
    gx0 = jnp.dot(xin, wih0_t, preferred_element_type=jnp.float32) + b0

    zero = jnp.zeros((B, Hp), jnp.float32)

    # ---- clean branch ----
    h0c, c0c = run_layer(gx0[:N, :], whh0_t, zero, zero, y0_ref, 0)
    gx1 = jnp.dot(y0_ref[...], wih1_t, preferred_element_type=jnp.float32) + b1
    h1c, c1c = run_layer(gx1, whh1_t, zero, zero, y1_ref, 0)

    # ---- noisy branch: initial states = final states of the clean branch ----
    run_layer(gx0[N:, :], whh0_t, h0c, c0c, y0_ref, 0)        # overwrites y0
    gx1 = jnp.dot(y0_ref[...], wih1_t, preferred_element_type=jnp.float32) + b1
    h1n, _ = run_layer(gx1, whh1_t, h1c, c1c, y1_ref, N)

    # ---- head, both branches batched; fc folded into the first Linear ----
    y_all = y1_ref[...]                                       # (2N, Hp)
    t1 = jnp.tanh(jnp.dot(y_all, w1f_ref[...],
                          preferred_element_type=jnp.float32) + b1f_ref[...])
    t2 = jnp.tanh(jnp.dot(t1, w2_ref[...],
                          preferred_element_type=jnp.float32) + b2_ref[...])
    # h0[-1] broadcast over the sequence dim, per branch (rows are (t, b)).
    h_add = jnp.concatenate([h1c[:, :H]] * S + [h1n[:, :H]] * S, axis=0)
    z = jnp.dot(t2 + h_add, wl_ref[...],
                preferred_element_type=jnp.float32) + bl_ref[...]
    out_ref[...] = _sigmoid(z)


# ----------------------------------------------------------------------------
# Wrapper
# ----------------------------------------------------------------------------
def make_dnn_forward(output_dim, alpha_sqrt, noise_scale):
    @jax.jit
    def forward(x, noise, lstm_flat, head_flat):
        B, S, D_in = x.shape
        N = S * B
        Hp = lstm_flat[1].shape[0]
        # time-major rows (t, b): each LSTM step touches contiguous whole rows.
        x_tm = jnp.transpose(x, (1, 0, 2)).reshape(N, D_in)
        n_tm = jnp.transpose(noise, (1, 0, 2)).reshape(N, D_in)

        out2 = pl.pallas_call(
            functools.partial(dnn_fused_kernel, S=S, B=B,
                              alpha_sqrt=alpha_sqrt, noise_scale=noise_scale),
            in_specs=[_vmem()] * 14,
            out_specs=_vmem(),
            out_shape=jax.ShapeDtypeStruct((2 * N, output_dim), jnp.float32),
            scratch_shapes=[pltpu.VMEM((N, Hp), jnp.float32),        # layer-0 y
                            pltpu.VMEM((2 * N, Hp), jnp.float32)],   # layer-1 y
        )(x_tm, n_tm, *lstm_flat, *head_flat)

        out_orig = out2[:N].reshape(S, B, output_dim).transpose(1, 0, 2)
        out_noisy = out2[N:].reshape(S, B, output_dim).transpose(1, 0, 2)
        return out_orig, out_noisy

    return forward


# ----------------------------------------------------------------------------
# Parameters: PyTorch-layout init + one-time packing (transpose / pad / fold)
# ----------------------------------------------------------------------------
def init_params(key, input_dim, hidden_dim, layer_dim, output_dim):
    def uniform(k, shape, bound):
        return jax.random.uniform(k, shape, jnp.float32, -bound, bound)

    keys = iter(jax.random.split(key, 4 * layer_dim + 8))
    k_h = 1.0 / math.sqrt(hidden_dim)

    lstm = []
    for l in range(layer_dim):
        d_in = input_dim if l == 0 else hidden_dim
        wih = uniform(next(keys), (4 * hidden_dim, d_in), k_h)
        whh = uniform(next(keys), (4 * hidden_dim, hidden_dim), k_h)
        b_ih = uniform(next(keys), (1, 4 * hidden_dim), k_h)
        b_hh = uniform(next(keys), (1, 4 * hidden_dim), k_h)
        lstm.append((wih, whh, b_ih + b_hh))          # PyTorch gate order i,f,g,o

    def linear(k1, k2, out_f, in_f):
        bd = 1.0 / math.sqrt(in_f)
        return uniform(k1, (out_f, in_f), bd), uniform(k2, (1, out_f), bd)

    wfc, bfc = linear(next(keys), next(keys), 64, 64)           # self.fc
    w1, b1 = linear(next(keys), next(keys), 128, 64)            # self.out[0]
    w2, b2 = linear(next(keys), next(keys), 64, 128)            # self.out[3]
    wl, bl = linear(next(keys), next(keys), output_dim, 64)     # self.Linear

    return {"lstm": lstm, "head": (wfc, bfc, w1, b1, w2, b2, wl, bl)}


def prepare_params(params, input_dim, hidden_dim):
    """Pre-transpose, pad the hidden dim to 128 lanes, fold fc into out[0]."""
    assert len(params["lstm"]) == 2, "fused kernel is written for layer_dim=2"
    H = hidden_dim
    Hp = ((H + LANE - 1) // LANE) * LANE

    def pack_gate_w(w, d_in_pad):
        # PyTorch (4H, d_in) -> transposed, gate-blocked, zero-padded (d_in_pad, 4*Hp)
        d_in = w.shape[1]
        w4 = w.reshape(4, H, d_in)
        wp = jnp.zeros((4, Hp, d_in_pad), jnp.float32).at[:, :H, :d_in].set(w4)
        return jnp.transpose(wp, (2, 0, 1)).reshape(d_in_pad, 4 * Hp)

    def pack_gate_b(b):
        b4 = b.reshape(4, H)
        return jnp.zeros((4, Hp), jnp.float32).at[:, :H].set(b4).reshape(1, 4 * Hp)

    (wih0, whh0, bb0), (wih1, whh1, bb1) = params["lstm"]
    lstm_flat = (pack_gate_w(wih0, input_dim), pack_gate_w(whh0, Hp), pack_gate_b(bb0),
                 pack_gate_w(wih1, Hp),        pack_gate_w(whh1, Hp), pack_gate_b(bb1))

    wfc, bfc, w1, b1, w2, b2, wl, bl = params["head"]
    # fc -> out[0] fold: (x Wfc^T + bfc) W1^T + b1 == x (W1 Wfc)^T + (bfc W1^T + b1)
    w1f = w1 @ wfc                                            # (128, 64)
    b1f = bfc @ w1.T + b1                                     # (1, 128)
    w1f_t = jnp.zeros((Hp, w1.shape[0]), jnp.float32).at[:H, :].set(w1f.T)
    head_flat = (w1f_t, b1f, w2.T, b2, wl.T, bl)
    return lstm_flat, head_flat


# ----------------------------------------------------------------------------
if __name__ == "__main__":
    # hidden_dim must be 64 so fc(64,64) composes with the LSTM output.
    input_dim, hidden_dim, layer_dim, output_dim = 16, 64, 2, 8
    B, S = 2, 8

    key = jax.random.PRNGKey(0)
    kx, kn, kp = jax.random.split(key, 3)
    x = jax.random.normal(kx, (B, S, input_dim), jnp.float32)
    # torch.randn_like(x) replaced by a deterministic JAX normal draw.
    noise = jax.random.normal(kn, (B, S, input_dim), jnp.float32)

    params = init_params(kp, input_dim, hidden_dim, layer_dim, output_dim)
    lstm_flat, head_flat = prepare_params(params, input_dim, hidden_dim)

    # DF_block schedule: beta = linspace(0.001, 0.2, 100), t = 15, noise_level = 0.5
    beta = jnp.linspace(0.001, 0.2, 100)
    alpha_hat = jnp.cumprod(1.0 - beta)
    a_t = float(alpha_hat[15])
    alpha_sqrt = math.sqrt(a_t)
    noise_scale = math.sqrt(1.0 - a_t) * 0.5

    forward = make_dnn_forward(output_dim, alpha_sqrt, noise_scale)
    out_original, out_noisy = forward(x, noise, lstm_flat, head_flat)
    jax.block_until_ready((out_original, out_noisy))
    assert out_original.shape == (B, S, output_dim)
    assert out_noisy.shape == (B, S, output_dim)
    print("KERNEL_OK")
</pallas_src>

<mosaic_0001>
module attributes {stable_mosaic.version = 11 : i64} {
  func.func @dnn_fused_kernel(%arg0: memref<16x16xf32, #tpu.memory_space<vmem>>, %arg1: memref<16x16xf32, #tpu.memory_space<vmem>>, %arg2: memref<16x512xf32, #tpu.memory_space<vmem>>, %arg3: memref<128x512xf32, #tpu.memory_space<vmem>>, %arg4: memref<1x512xf32, #tpu.memory_space<vmem>>, %arg5: memref<128x512xf32, #tpu.memory_space<vmem>>, %arg6: memref<128x512xf32, #tpu.memory_space<vmem>>, %arg7: memref<1x512xf32, #tpu.memory_space<vmem>>, %arg8: memref<128x128xf32, #tpu.memory_space<vmem>>, %arg9: memref<1x128xf32, #tpu.memory_space<vmem>>, %arg10: memref<128x64xf32, #tpu.memory_space<vmem>>, %arg11: memref<1x64xf32, #tpu.memory_space<vmem>>, %arg12: memref<64x8xf32, #tpu.memory_space<vmem>>, %arg13: memref<1x8xf32, #tpu.memory_space<vmem>>, %arg14: memref<32x8xf32, #tpu.memory_space<vmem>>, %arg15: memref<16x128xf32, #tpu.memory_space<vmem>>, %arg16: memref<32x128xf32, #tpu.memory_space<vmem>>) attributes {dimension_semantics = [], scalar_prefetch = 0 : i64, scratch_operands = 2 : i64, tpu.core_type = #tpu.core_type<tc>} {
    %c0 = arith.constant 0 : index
    %c0_0 = arith.constant 0 : index
    %0 = vector.load %arg0[%c0, %c0_0] : memref<16x16xf32, #tpu.memory_space<vmem>>, vector<16x16xf32>
    %cst = arith.constant 0.878090322 : f32
    %1 = vector.broadcast %cst : f32 to vector<16x16xf32>
    %2 = arith.mulf %1, %0 : vector<16x16xf32>
    %c0_1 = arith.constant 0 : index
    %c0_2 = arith.constant 0 : index
    %3 = vector.load %arg1[%c0_1, %c0_2] : memref<16x16xf32, #tpu.memory_space<vmem>>, vector<16x16xf32>
    %cst_3 = arith.constant 0.239247441 : f32
    %4 = vector.broadcast %cst_3 : f32 to vector<16x16xf32>
    %5 = arith.mulf %4, %3 : vector<16x16xf32>
    %6 = arith.addf %2, %5 : vector<16x16xf32>
    %c0_4 = arith.constant 0 : index
    %c0_5 = arith.constant 0 : index
    %7 = vector.load %arg2[%c0_4, %c0_5] : memref<16x512xf32, #tpu.memory_space<vmem>>, vector<16x512xf32>
    %c0_6 = arith.constant 0 : index
    %c0_7 = arith.constant 0 : index
    %8 = vector.load %arg3[%c0_6, %c0_7] : memref<128x512xf32, #tpu.memory_space<vmem>>, vector<128x512xf32>
    %c0_8 = arith.constant 0 : index
    %c0_9 = arith.constant 0 : index
    %9 = vector.load %arg4[%c0_8, %c0_9] : memref<1x512xf32, #tpu.memory_space<vmem>>, vector<1x512xf32>
    %c0_10 = arith.constant 0 : index
    %c0_11 = arith.constant 0 : index
    %10 = vector.load %arg5[%c0_10, %c0_11] : memref<128x512xf32, #tpu.memory_space<vmem>>, vector<128x512xf32>
    %c0_12 = arith.constant 0 : index
    %c0_13 = arith.constant 0 : index
    %11 = vector.load %arg6[%c0_12, %c0_13] : memref<128x512xf32, #tpu.memory_space<vmem>>, vector<128x512xf32>
    %c0_14 = arith.constant 0 : index
    %c0_15 = arith.constant 0 : index
    %12 = vector.load %arg7[%c0_14, %c0_15] : memref<1x512xf32, #tpu.memory_space<vmem>>, vector<1x512xf32>
    %13 = tpu.concatenate %0, %6 in 0 : vector<16x16xf32>, vector<16x16xf32> -> vector<32x16xf32>
    %cst_16 = arith.constant dense<0.000000e+00> : vector<32x512xf32>
    %14 = tpu.matmul %13, %7, %cst_16 {dimension_numbers = #tpu.dot_dimension_numbers<[1], [0], [0], [1], [0, 0, 1, 1], [], []>} : vector<32x16xf32>, vector<16x512xf32>, vector<32x512xf32> -> vector<32x512xf32>
    %15 = vector.broadcast %9 : vector<1x512xf32> to vector<32x512xf32>
    %16 = arith.addf %14, %15 : vector<32x512xf32>
    %cst_17 = arith.constant 0.000000e+00 : f32
    %17 = vector.broadcast %cst_17 : f32 to vector<2x128xf32>
    %18 = vector.extract_strided_slice %16 {offsets = [0, 0], sizes = [16, 512], strides = [1, 1]} : vector<32x512xf32> to vector<16x512xf32>
    %19 = vector.extract_strided_slice %18 {offsets = [0, 0], sizes = [2, 512], strides = [1, 1]} : vector<16x512xf32> to vector<2x512xf32>
    %cst_18 = arith.constant dense<0.000000e+00> : vector<2x512xf32>
    %20 = tpu.matmul %17, %8, %cst_18 {dimension_numbers = #tpu.dot_dimension_numbers<[1], [0], [0], [1], [0, 0, 1, 1], [], []>} : vector<2x128xf32>, vector<128x512xf32>, vector<2x512xf32> -> vector<2x512xf32>
    %21 = arith.addf %19, %20 : vector<2x512xf32>
    %22 = vector.extract_strided_slice %21 {offsets = [0, 0], sizes = [2, 128], strides = [1, 1]} : vector<2x512xf32> to vector<2x128xf32>
    %cst_19 = arith.constant 5.000000e-01 : f32
    %23 = vector.broadcast %cst_19 : f32 to vector<2x128xf32>
    %24 = arith.mulf %23, %22 : vector<2x128xf32>
    %25 = math.tanh %24 : vector<2x128xf32>
    %cst_20 = arith.constant 1.000000e+00 : f32
    %26 = vector.broadcast %cst_20 : f32 to vector<2x128xf32>
    %27 = arith.addf %25, %26 : vector<2x128xf32>
    %cst_21 = arith.constant 5.000000e-01 : f32
    %28 = vector.broadcast %cst_21 : f32 to vector<2x128xf32>
    %29 = arith.mulf %28, %27 : vector<2x128xf32>
    %30 = vector.extract_strided_slice %21 {offsets = [0, 128], sizes = [2, 128], strides = [1, 1]} : vector<2x512xf32> to vector<2x128xf32>
    %cst_22 = arith.constant 5.000000e-01 : f32
    %31 = vector.broadcast %cst_22 : f32 to vector<2x128xf32>
    %32 = arith.mulf %31, %30 : vector<2x128xf32>
    %33 = math.tanh %32 : vector<2x128xf32>
    %cst_23 = arith.constant 1.000000e+00 : f32
    %34 = vector.broadcast %cst_23 : f32 to vector<2x128xf32>
    %35 = arith.addf %33, %34 : vector<2x128xf32>
    %cst_24 = arith.constant 5.000000e-01 : f32
    %36 = vector.broadcast %cst_24 : f32 to vector<2x128xf32>
    %37 = arith.mulf %36, %35 : vector<2x128xf32>
    %38 = vector.extract_strided_slice %21 {offsets = [0, 256], sizes = [2, 128], strides = [1, 1]} : vector<2x512xf32> to vector<2x128xf32>
    %39 = math.tanh %38 : vector<2x128xf32>
    %40 = vector.extract_strided_slice %21 {offsets = [0, 384], sizes = [2, 128], strides = [1, 1]} : vector<2x512xf32> to vector<2x128xf32>
    %cst_25 = arith.constant 5.000000e-01 : f32
    %41 = vector.broadcast %cst_25 : f32 to vector<2x128xf32>
    %42 = arith.mulf %41, %40 : vector<2x128xf32>
    %43 = math.tanh %42 : vector<2x128xf32>
    %cst_26 = arith.constant 1.000000e+00 : f32
    %44 = vector.broadcast %cst_26 : f32 to vector<2x128xf32>
    %45 = arith.addf %43, %44 : vector<2x128xf32>
    %cst_27 = arith.constant 5.000000e-01 : f32
    %46 = vector.broadcast %cst_27 : f32 to vector<2x128xf32>
    %47 = arith.mulf %46, %45 : vector<2x128xf32>
    %48 = arith.mulf %37, %17 : vector<2x128xf32>
    %49 = arith.mulf %29, %39 : vector<2x128xf32>
    %50 = arith.addf %48, %49 : vector<2x128xf32>
    %51 = math.tanh %50 : vector<2x128xf32>
    %52 = arith.mulf %47, %51 : vector<2x128xf32>
    %c0_28 = arith.constant 0 : index
    %c0_29 = arith.constant 0 : index
    %53 = vector.load %arg15[%c0_28, %c0_29] : memref<16x128xf32, #tpu.memory_space<vmem>>, vector<2x128xf32>
    tpu.vector_store %arg15[%c0_28, %c0_29], %52 {strides = array<i32>} : memref<16x128xf32, #tpu.memory_space<vmem>>, vector<2x128xf32>,
    %54 = vector.extract_strided_slice %18 {offsets = [2, 0], sizes = [2, 512], strides = [1, 1]} : vector<16x512xf32> to vector<2x512xf32>
    %cst_30 = arith.constant dense<0.000000e+00> : vector<2x512xf32>
    %55 = tpu.matmul %52, %8, %cst_30 {dimension_numbers = #tpu.dot_dimension_numbers<[1], [0], [0], [1], [0, 0, 1, 1], [], []>} : vector<2x128xf32>, vector<128x512xf32>, vector<2x512xf32> -> vector<2x512xf32>
    %56 = arith.addf %54, %55 : vector<2x512xf32>
    %57 = vector.extract_strided_slice %56 {offsets = [0, 0], sizes = [2, 128], strides = [1, 1]} : vector<2x512xf32> to vector<2x128xf32>
    %cst_31 = arith.constant 5.000000e-01 : f32
    %58 = vector.broadcast %cst_31 : f32 to vector<2x128xf32>
    %59 = arith.mulf %58, %57 : vector<2x128xf32>
    %60 = math.tanh %59 : vector<2x128xf32>
    %cst_32 = arith.constant 1.000000e+00 : f32
    %61 = vector.broadcast %cst_32 : f32 to vector<2x128xf32>
    %62 = arith.addf %60, %61 : vector<2x128xf32>
    %cst_33 = arith.constant 5.000000e-01 : f32
    %63 = vector.broadcast %cst_33 : f32 to vector<2x128xf32>
    %64 = arith.mulf %63, %62 : vector<2x128xf32>
    %65 = vector.extract_strided_slice %56 {offsets = [0, 128], sizes = [2, 128], strides = [1, 1]} : vector<2x512xf32> to vector<2x128xf32>
    %cst_34 = arith.constant 5.000000e-01 : f32
    %66 = vector.broadcast %cst_34 : f32 to vector<2x128xf32>
    %67 = arith.mulf %66, %65 : vector<2x128xf32>
    %68 = math.tanh %67 : vector<2x128xf32>
    %cst_35 = arith.constant 1.000000e+00 : f32
    %69 = vector.broadcast %cst_35 : f32 to vector<2x128xf32>
    %70 = arith.addf %68, %69 : vector<2x128xf32>
    %cst_36 = arith.constant 5.000000e-01 : f32
    %71 = vector.broadcast %cst_36 : f32 to vector<2x128xf32>
    %72 = arith.mulf %71, %70 : vector<2x128xf32>
    %73 = vector.extract_strided_slice %56 {offsets = [0, 256], sizes = [2, 128], strides = [1, 1]} : vector<2x512xf32> to vector<2x128xf32>
    %74 = math.tanh %73 : vector<2x128xf32>
    %75 = vector.extract_strided_slice %56 {offsets = [0, 384], sizes = [2, 128], strides = [1, 1]} : vector<2x512xf32> to vector<2x128xf32>
    %cst_37 = arith.constant 5.000000e-01 : f32
    %76 = vector.broadcast %cst_37 : f32 to vector<2x128xf32>
    %77 = arith.mulf %76, %75 : vector<2x128xf32>
    %78 = math.tanh %77 : vector<2x128xf32>
    %cst_38 = arith.constant 1.000000e+00 : f32
    %79 = vector.broadcast %cst_38 : f32 to vector<2x128xf32>
    %80 = arith.addf %78, %79 : vector<2x128xf32>
    %cst_39 = arith.constant 5.000000e-01 : f32
    %81 = vector.broadcast %cst_39 : f32 to vector<2x128xf32>
    %82 = arith.mulf %81, %80 : vector<2x128xf32>
    %83 = arith.mulf %72, %50 : vector<2x128xf32>
    %84 = arith.mulf %64, %74 : vector<2x128xf32>
    %85 = arith.addf %83, %84 : vector<2x128xf32>
    %86 = math.tanh %85 : vector<2x128xf32>
    %87 = arith.mulf %82, %86 : vector<2x128xf32>
    %c2 = arith.constant 2 : index
    %c0_40 = arith.constant 0 : index
    %88 = vector.load %arg15[%c2, %c0_40] : memref<16x128xf32, #tpu.memory_space<vmem>>, vector<2x128xf32>
    tpu.vector_store %arg15[%c2, %c0_40], %87 {strides = array<i32>} : memref<16x128xf32, #tpu.memory_space<vmem>>, vector<2x128xf32>,
    %89 = vector.extract_strided_slice %18 {offsets = [4, 0], sizes = [2, 512], strides = [1, 1]} : vector<16x512xf32> to vector<2x512xf32>
    %cst_41 = arith.constant dense<0.000000e+00> : vector<2x512xf32>
    %90 = tpu.matmul %87, %8, %cst_41 {dimension_numbers = #tpu.dot_dimension_numbers<[1], [0], [0], [1], [0, 0, 1, 1], [], []>} : vector<2x128xf32>, vector<128x512xf32>, vector<2x512xf32> -> vector<2x512xf32>
    %91 = arith.addf %89, %90 : vector<2x512xf32>
    %92 = vector.extract_strided_slice %91 {offsets = [0, 0], sizes = [2, 128], strides = [1, 1]} : vector<2x512xf32> to vector<2x128xf32>
    %cst_42 = arith.constant 5.000000e-01 : f32
    %93 = vector.broadcast %cst_42 : f32 to vector<2x128xf32>
    %94 = arith.mulf %93, %92 : vector<2x128xf32>
    %95 = math.tanh %94 : vector<2x128xf32>
    %cst_43 = arith.constant 1.000000e+00 : f32
    %96 = vector.broadcast %cst_43 : f32 to vector<2x128xf32>
    %97 = arith.addf %95, %96 : vector<2x128xf32>
    %cst_44 = arith.constant 5.000000e-01 : f32
    %98 = vector.broadcast %cst_44 : f32 to vector<2x128xf32>
    %99 = arith.mulf %98, %97 : vector<2x128xf32>
    %100 = vector.extract_strided_slice %91 {offsets = [0, 128], sizes = [2, 128], strides = [1, 1]} : vector<2x512xf32> to vector<2x128xf32>
    %cst_45 = arith.constant 5.000000e-01 : f32
    %101 = vector.broadcast %cst_45 : f32 to vector<2x128xf32>
    %102 = arith.mulf %101, %100 : vector<2x128xf32>
    %103 = math.tanh %102 : vector<2x128xf32>
    %cst_46 = arith.constant 1.000000e+00 : f32
    %104 = vector.broadcast %cst_46 : f32 to vector<2x128xf32>
    %105 = arith.addf %103, %104 : vector<2x128xf32>
    %cst_47 = arith.constant 5.000000e-01 : f32
    %106 = vector.broadcast %cst_47 : f32 to vector<2x128xf32>
    %107 = arith.mulf %106, %105 : vector<2x128xf32>
    %108 = vector.extract_strided_slice %91 {offsets = [0, 256], sizes = [2, 128], strides = [1, 1]} : vector<2x512xf32> to vector<2x128xf32>
    %109 = math.tanh %108 : vector<2x128xf32>
    %110 = vector.extract_strided_slice %91 {offsets = [0, 384], sizes = [2, 128], strides = [1, 1]} : vector<2x512xf32> to vector<2x128xf32>
    %cst_48 = arith.constant 5.000000e-01 : f32
    %111 = vector.broadcast %cst_48 : f32 to vector<2x128xf32>
    %112 = arith.mulf %111, %110 : vector<2x128xf32>
    %113 = math.tanh %112 : vector<2x128xf32>
    %cst_49 = arith.constant 1.000000e+00 : f32
    %114 = vector.broadcast %cst_49 : f32 to vector<2x128xf32>
    %115 = arith.addf %113, %114 : vector<2x128xf32>
    %cst_50 = arith.constant 5.000000e-01 : f32
    %116 = vector.broadcast %cst_50 : f32 to vector<2x128xf32>
    %117 = arith.mulf %116, %115 : vector<2x128xf32>
    %118 = arith.mulf %107, %85 : vector<2x128xf32>
    %119 = arith.mulf %99, %109 : vector<2x128xf32>
    %120 = arith.addf %118, %119 : vector<2x128xf32>
    %121 = math.tanh %120 : vector<2x128xf32>
    %122 = arith.mulf %117, %121 : vector<2x128xf32>
    %c4 = arith.constant 4 : index
    %c0_51 = arith.constant 0 : index
    %123 = vector.load %arg15[%c4, %c0_51] : memref<16x128xf32, #tpu.memory_space<vmem>>, vector<2x128xf32>
    tpu.vector_store %arg15[%c4, %c0_51], %122 {strides = array<i32>} : memref<16x128xf32, #tpu.memory_space<vmem>>, vector<2x128xf32>,
    %124 = vector.extract_strided_slice %18 {offsets = [6, 0], sizes = [2, 512], strides = [1, 1]} : vector<16x512xf32> to vector<2x512xf32>
    %cst_52 = arith.constant dense<0.000000e+00> : vector<2x512xf32>
    %125 = tpu.matmul %122, %8, %cst_52 {dimension_numbers = #tpu.dot_dimension_numbers<[1], [0], [0], [1], [0, 0, 1, 1], [], []>} : vector<2x128xf32>, vector<128x512xf32>, vector<2x512xf32> -> vector<2x512xf32>
    %126 = arith.addf %124, %125 : vector<2x512xf32>
    %127 = vector.extract_strided_slice %126 {offsets = [0, 0], sizes = [2, 128], strides = [1, 1]} : vector<2x512xf32> to vector<2x128xf32>
    %cst_53 = arith.constant 5.000000e-01 : f32
    %128 = vector.broadcast %cst_53 : f32 to vector<2x128xf32>
    %129 = arith.mulf %128, %127 : vector<2x128xf32>
    %130 = math.tanh %129 : vector<2x128xf32>
    %cst_54 = arith.constant 1.000000e+00 : f32
    %131 = vector.broadcast %cst_54 : f32 to vector<2x128xf32>
    %132 = arith.addf %130, %131 : vector<2x128xf32>
    %cst_55 = arith.constant 5.000000e-01 : f32
    %133 = vector.broadcast %cst_55 : f32 to vector<2x128xf32>
    %134 = arith.mulf %133, %132 : vector<2x128xf32>
    %135 = vector.extract_strided_slice %126 {offsets = [0, 128], sizes = [2, 128], strides = [1, 1]} : vector<2x512xf32> to vector<2x128xf32>
    %cst_56 = arith.constant 5.000000e-01 : f32
    %136 = vector.broadcast %cst_56 : f32 to vector<2x128xf32>
    %137 = arith.mulf %136, %135 : vector<2x128xf32>
    %138 = math.tanh %137 : vector<2x128xf32>
    %cst_57 = arith.constant 1.000000e+00 : f32
    %139 = vector.broadcast %cst_57 : f32 to vector<2x128xf32>
    %140 = arith.addf %138, %139 : vector<2x128xf32>
    %cst_58 = arith.constant 5.000000e-01 : f32
    %141 = vector.broadcast %cst_58 : f32 to vector<2x128xf32>
    %142 = arith.mulf %141, %140 : vector<2x128xf32>
    %143 = vector.extract_strided_slice %126 {offsets = [0, 256], sizes = [2, 128], strides = [1, 1]} : vector<2x512xf32> to vector<2x128xf32>
    %144 = math.tanh %143 : vector<2x128xf32>
    %145 = vector.extract_strided_slice %126 {offsets = [0, 384], sizes = [2, 128], strides = [1, 1]} : vector<2x512xf32> to vector<2x128xf32>
    %cst_59 = arith.constant 5.000000e-01 : f32
    %146 = vector.broadcast %cst_59 : f32 to vector<2x128xf32>
    %147 = arith.mulf %146, %145 : vector<2x128xf32>
    %148 = math.tanh %147 : vector<2x128xf32>
    %cst_60 = arith.constant 1.000000e+00 : f32
    %149 = vector.broadcast %cst_60 : f32 to vector<2x128xf32>
    %150 = arith.addf %148, %149 : vector<2x128xf32>
    %cst_61 = arith.constant 5.000000e-01 : f32
    %151 = vector.broadcast %cst_61 : f32 to vector<2x128xf32>
    %152 = arith.mulf %151, %150 : vector<2x128xf32>
    %153 = arith.mulf %142, %120 : vector<2x128xf32>
    %154 = arith.mulf %134, %144 : vector<2x128xf32>
    %155 = arith.addf %153, %154 : vector<2x128xf32>
    %156 = math.tanh %155 : vector<2x128xf32>
    %157 = arith.mulf %152, %156 : vector<2x128xf32>
    %c6 = arith.constant 6 : index
    %c0_62 = arith.constant 0 : index
    %158 = vector.load %arg15[%c6, %c0_62] : memref<16x128xf32, #tpu.memory_space<vmem>>, vector<2x128xf32>
    tpu.vector_store %arg15[%c6, %c0_62], %157 {strides = array<i32>} : memref<16x128xf32, #tpu.memory_space<vmem>>, vector<2x128xf32>,
    %159 = vector.extract_strided_slice %18 {offsets = [8, 0], sizes = [2, 512], strides = [1, 1]} : vector<16x512xf32> to vector<2x512xf32>
    %cst_63 = arith.constant dense<0.000000e+00> : vector<2x512xf32>
    %160 = tpu.matmul %157, %8, %cst_63 {dimension_numbers = #tpu.dot_dimension_numbers<[1], [0], [0], [1], [0, 0, 1, 1], [], []>} : vector<2x128xf32>, vector<128x512xf32>, vector<2x512xf32> -> vector<2x512xf32>
    %161 = arith.addf %159, %160 : vector<2x512xf32>
    %162 = vector.extract_strided_slice %161 {offsets = [0, 0], sizes = [2, 128], strides = [1, 1]} : vector<2x512xf32> to vector<2x128xf32>
    %cst_64 = arith.constant 5.000000e-01 : f32
    %163 = vector.broadcast %cst_64 : f32 to vector<2x128xf32>
    %164 = arith.mulf %163, %162 : vector<2x128xf32>
    %165 = math.tanh %164 : vector<2x128xf32>
    %cst_65 = arith.constant 1.000000e+00 : f32
    %166 = vector.broadcast %cst_65 : f32 to vector<2x128xf32>
    %167 = arith.addf %165, %166 : vector<2x128xf32>
    %cst_66 = arith.constant 5.000000e-01 : f32
    %168 = vector.broadcast %cst_66 : f32 to vector<2x128xf32>
    %169 = arith.mulf %168, %167 : vector<2x128xf32>
    %170 = vector.extract_strided_slice %161 {offsets = [0, 128], sizes = [2, 128], strides = [1, 1]} : vector<2x512xf32> to vector<2x128xf32>
    %cst_67 = arith.constant 5.000000e-01 : f32
    %171 = vector.broadcast %cst_67 : f32 to vector<2x128xf32>
    %172 = arith.mulf %171, %170 : vector<2x128xf32>
    %173 = math.tanh %172 : vector<2x128xf32>
    %cst_68 = arith.constant 1.000000e+00 : f32
    %174 = vector.broadcast %cst_68 : f32 to vector<2x128xf32>
    %175 = arith.addf %173, %174 : vector<2x128xf32>
    %cst_69 = arith.constant 5.000000e-01 : f32
    %176 = vector.broadcast %cst_69 : f32 to vector<2x128xf32>
    %177 = arith.mulf %176, %175 : vector<2x128xf32>
    %178 = vector.extract_strided_slice %161 {offsets = [0, 256], sizes = [2, 128], strides = [1, 1]} : vector<2x512xf32> to vector<2x128xf32>
    %179 = math.tanh %178 : vector<2x128xf32>
    %180 = vector.extract_strided_slice %161 {offsets = [0, 384], sizes = [2, 128], strides = [1, 1]} : vector<2x512xf32> to vector<2x128xf32>
    %cst_70 = arith.constant 5.000000e-01 : f32
    %181 = vector.broadcast %cst_70 : f32 to vector<2x128xf32>
    %182 = arith.mulf %181, %180 : vector<2x128xf32>
    %183 = math.tanh %182 : vector<2x128xf32>
    %cst_71 = arith.constant 1.000000e+00 : f32
    %184 = vector.broadcast %cst_71 : f32 to vector<2x128xf32>
    %185 = arith.addf %183, %184 : vector<2x128xf32>
    %cst_72 = arith.constant 5.000000e-01 : f32
    %186 = vector.broadcast %cst_72 : f32 to vector<2x128xf32>
    %187 = arith.mulf %186, %185 : vector<2x128xf32>
    %188 = arith.mulf %177, %155 : vector<2x128xf32>
    %189 = arith.mulf %169, %179 : vector<2x128xf32>
    %190 = arith.addf %188, %189 : vector<2x128xf32>
    %191 = math.tanh %190 : vector<2x128xf32>
    %192 = arith.mulf %187, %191 : vector<2x128xf32>
    %c8 = arith.constant 8 : index
    %c0_73 = arith.constant 0 : index
    %193 = vector.load %arg15[%c8, %c0_73] : memref<16x128xf32, #tpu.memory_space<vmem>>, vector<2x128xf32>
    tpu.vector_store %arg15[%c8, %c0_73], %192 {strides = array<i32>} : memref<16x128xf32, #tpu.memory_space<vmem>>, vector<2x128xf32>,
    %194 = vector.extract_strided_slice %18 {offsets = [10, 0], sizes = [2, 512], strides = [1, 1]} : vector<16x512xf32> to vector<2x512xf32>
    %cst_74 = arith.constant dense<0.000000e+00> : vector<2x512xf32>
    %195 = tpu.matmul %192, %8, %cst_74 {dimension_numbers = #tpu.dot_dimension_numbers<[1], [0], [0], [1], [0, 0, 1, 1], [], []>} : vector<2x128xf32>, vector<128x512xf32>, vector<2x512xf32> -> vector<2x512xf32>
    %196 = arith.addf %194, %195 : vector<2x512xf32>
    %197 = vector.extract_strided_slice %196 {offsets = [0, 0], sizes = [2, 128], strides = [1, 1]} : vector<2x512xf32> to vector<2x128xf32>
    %cst_75 = arith.constant 5.000000e-01 : f32
    %198 = vector.broadcast %cst_75 : f32 to vector<2x128xf32>
    %199 = arith.mulf %198, %197 : vector<2x128xf32>
    %200 = math.tanh %199 : vector<2x128xf32>
    %cst_76 = arith.constant 1.000000e+00 : f32
    %201 = vector.broadcast %cst_76 : f32 to vector<2x128xf32>
    %202 = arith.addf %200, %201 : vector<2x128xf32>
    %cst_77 = arith.constant 5.000000e-01 : f32
    %203 = vector.broadcast %cst_77 : f32 to vector<2x128xf32>
    %204 = arith.mulf %203, %202 : vector<2x128xf32>
    %205 = vector.extract_strided_slice %196 {offsets = [0, 128], sizes = [2, 128], strides = [1, 1]} : vector<2x512xf32> to vector<2x128xf32>
    %cst_78 = arith.constant 5.000000e-01 : f32
    %206 = vector.broadcast %cst_78 : f32 to vector<2x128xf32>
    %207 = arith.mulf %206, %205 : vector<2x128xf32>
    %208 = math.tanh %207 : vector<2x128xf32>
    %cst_79 = arith.constant 1.000000e+00 : f32
    %209 = vector.broadcast %cst_79 : f32 to vector<2x128xf32>
    %210 = arith.addf %208, %209 : vector<2x128xf32>
    %cst_80 = arith.constant 5.000000e-01 : f32
    %211 = vector.broadcast %cst_80 : f32 to vector<2x128xf32>
    %212 = arith.mulf %211, %210 : vector<2x128xf32>
    %213 = vector.extract_strided_slice %196 {offsets = [0, 256], sizes = [2, 128], strides = [1, 1]} : vector<2x512xf32> to vector<2x128xf32>
    %214 = math.tanh %213 : vector<2x128xf32>
    %215 = vector.extract_strided_slice %196 {offsets = [0, 384], sizes = [2, 128], strides = [1, 1]} : vector<2x512xf32> to vector<2x128xf32>
    %cst_81 = arith.constant 5.000000e-01 : f32
    %216 = vector.broadcast %cst_81 : f32 to vector<2x128xf32>
    %217 = arith.mulf %216, %215 : vector<2x128xf32>
    %218 = math.tanh %217 : vector<2x128xf32>
    %cst_82 = arith.constant 1.000000e+00 : f32
    %219 = vector.broadcast %cst_82 : f32 to vector<2x128xf32>
    %220 = arith.addf %218, %219 : vector<2x128xf32>
    %cst_83 = arith.constant 5.000000e-01 : f32
    %221 = vector.broadcast %cst_83 : f32 to vector<2x128xf32>
    %222 = arith.mulf %221, %220 : vector<2x128xf32>
    %223 = arith.mulf %212, %190 : vector<2x128xf32>
    %224 = arith.mulf %204, %214 : vector<2x128xf32>
    %225 = arith.addf %223, %224 : vector<2x128xf32>
    %226 = math.tanh %225 : vector<2x128xf32>
    %227 = arith.mulf %222, %226 : vector<2x128xf32>
    %c10 = arith.constant 10 : index
    %c0_84 = arith.constant 0 : index
    %228 = vector.load %arg15[%c10, %c0_84] : memref<16x128xf32, #tpu.memory_space<vmem>>, vector<2x128xf32>
    tpu.vector_store %arg15[%c10, %c0_84], %227 {strides = array<i32>} : memref<16x128xf32, #tpu.memory_space<vmem>>, vector<2x128xf32>,
    %229 = vector.extract_strided_slice %18 {offsets = [12, 0], sizes = [2, 512], strides = [1, 1]} : vector<16x512xf32> to vector<2x512xf32>
    %cst_85 = arith.constant dense<0.000000e+00> : vector<2x512xf32>
    %230 = tpu.matmul %227, %8, %cst_85 {dimension_numbers = #tpu.dot_dimension_numbers<[1], [0], [0], [1], [0, 0, 1, 1], [], []>} : vector<2x128xf32>, vector<128x512xf32>, vector<2x512xf32> -> vector<2x512xf32>
    %231 = arith.addf %229, %230 : vector<2x512xf32>
    %232 = vector.extract_strided_slice %231 {offsets = [0, 0], sizes = [2, 128], strides = [1, 1]} : vector<2x512xf32> to vector<2x128xf32>
    %cst_86 = arith.constant 5.000000e-01 : f32
    %233 = vector.broadcast %cst_86 : f32 to vector<2x128xf32>
    %234 = arith.mulf %233, %232 : vector<2x128xf32>
    %235 = math.tanh %234 : vector<2x128xf32>
    %cst_87 = arith.constant 1.000000e+00 : f32
    %236 = vector.broadcast %cst_87 : f32 to vector<2x128xf32>
    %237 = arith.addf %235, %236 : vector<2x128xf32>
    %cst_88 = arith.constant 5.000000e-01 : f32
    %238 = vector.broadcast %cst_88 : f32 to vector<2x128xf32>
    %239 = arith.mulf %238, %237 : vector<2x128xf32>
    %240 = vector.extract_strided_slice %231 {offsets = [0, 128], sizes = [2, 128], strides = [1, 1]} : vector<2x512xf32> to vector<2x128xf32>
    %cst_89 = arith.constant 5.000000e-01 : f32
    %241 = vector.broadcast %cst_89 : f32 to vector<2x128xf32>
    %242 = arith.mulf %241, %240 : vector<2x128xf32>
    %243 = math.tanh %242 : vector<2x128xf32>
    %cst_90 = arith.constant 1.000000e+00 : f32
    %244 = vector.broadcast %cst_90 : f32 to vector<2x128xf32>
    %245 = arith.addf %243, %244 : vector<2x128xf32>
    %cst_91 = arith.constant 5.000000e-01 : f32
    %246 = vector.broadcast %cst_91 : f32 to vector<2x128xf32>
    %247 = arith.mulf %246, %245 : vector<2x128xf32>
    %248 = vector.extract_strided_slice %231 {offsets = [0, 256], sizes = [2, 128], strides = [1, 1]} : vector<2x512xf32> to vector<2x128xf32>
    %249 = math.tanh %248 : vector<2x128xf32>
    %250 = vector.extract_strided_slice %231 {offsets = [0, 384], sizes = [2, 128], strides = [1, 1]} : vector<2x512xf32> to vector<2x128xf32>
    %cst_92 = arith.constant 5.000000e-01 : f32
    %251 = vector.broadcast %cst_92 : f32 to vector<2x128xf32>
    %252 = arith.mulf %251, %250 : vector<2x128xf32>
    %253 = math.tanh %252 : vector<2x128xf32>
    %cst_93 = arith.constant 1.000000e+00 : f32
    %254 = vector.broadcast %cst_93 : f32 to vector<2x128xf32>
    %255 = arith.addf %253, %254 : vector<2x128xf32>
    %cst_94 = arith.constant 5.000000e-01 : f32
    %256 = vector.broadcast %cst_94 : f32 to vector<2x128xf32>
    %257 = arith.mulf %256, %255 : vector<2x128xf32>
    %258 = arith.mulf %247, %225 : vector<2x128xf32>
    %259 = arith.mulf %239, %249 : vector<2x128xf32>
    %260 = arith.addf %258, %259 : vector<2x128xf32>
    %261 = math.tanh %260 : vector<2x128xf32>
    %262 = arith.mulf %257, %261 : vector<2x128xf32>
    %c12 = arith.constant 12 : index
    %c0_95 = arith.constant 0 : index
    %263 = vector.load %arg15[%c12, %c0_95] : memref<16x128xf32, #tpu.memory_space<vmem>>, vector<2x128xf32>
    tpu.vector_store %arg15[%c12, %c0_95], %262 {strides = array<i32>} : memref<16x128xf32, #tpu.memory_space<vmem>>, vector<2x128xf32>,
    %264 = vector.extract_strided_slice %18 {offsets = [14, 0], sizes = [2, 512], strides = [1, 1]} : vector<16x512xf32> to vector<2x512xf32>
    %cst_96 = arith.constant dense<0.000000e+00> : vector<2x512xf32>
    %265 = tpu.matmul %262, %8, %cst_96 {dimension_numbers = #tpu.dot_dimension_numbers<[1], [0], [0], [1], [0, 0, 1, 1], [], []>} : vector<2x128xf32>, vector<128x512xf32>, vector<2x512xf32> -> vector<2x512xf32>
    %266 = arith.addf %264, %265 : vector<2x512xf32>
    %267 = vector.extract_strided_slice %266 {offsets = [0, 0], sizes = [2, 128], strides = [1, 1]} : vector<2x512xf32> to vector<2x128xf32>
    %cst_97 = arith.constant 5.000000e-01 : f32
    %268 = vector.broadcast %cst_97 : f32 to vector<2x128xf32>
    %269 = arith.mulf %268, %267 : vector<2x128xf32>
    %270 = math.tanh %269 : vector<2x128xf32>
    %cst_98 = arith.constant 1.000000e+00 : f32
    %271 = vector.broadcast %cst_98 : f32 to vector<2x128xf32>
    %272 = arith.addf %270, %271 : vector<2x128xf32>
    %cst_99 = arith.constant 5.000000e-01 : f32
    %273 = vector.broadcast %cst_99 : f32 to vector<2x128xf32>
    %274 = arith.mulf %273, %272 : vector<2x128xf32>
    %275 = vector.extract_strided_slice %266 {offsets = [0, 128], sizes = [2, 128], strides = [1, 1]} : vector<2x512xf32> to vector<2x128xf32>
    %cst_100 = arith.constant 5.000000e-01 : f32
    %276 = vector.broadcast %cst_100 : f32 to vector<2x128xf32>
    %277 = arith.mulf %276, %275 : vector<2x128xf32>
    %278 = math.tanh %277 : vector<2x128xf32>
    %cst_101 = arith.constant 1.000000e+00 : f32
    %279 = vector.broadcast %cst_101 : f32 to vector<2x128xf32>
    %280 = arith.addf %278, %279 : vector<2x128xf32>
    %cst_102 = arith.constant 5.000000e-01 : f32
    %281 = vector.broadcast %cst_102 : f32 to vector<2x128xf32>
    %282 = arith.mulf %281, %280 : vector<2x128xf32>
    %283 = vector.extract_strided_slice %266 {offsets = [0, 256], sizes = [2, 128], strides = [1, 1]} : vector<2x512xf32> to vector<2x128xf32>
    %284 = math.tanh %283 : vector<2x128xf32>
    %285 = vector.extract_strided_slice %266 {offsets = [0, 384], sizes = [2, 128], strides = [1, 1]} : vector<2x512xf32> to vector<2x128xf32>
    %cst_103 = arith.constant 5.000000e-01 : f32
    %286 = vector.broadcast %cst_103 : f32 to vector<2x128xf32>
    %287 = arith.mulf %286, %285 : vector<2x128xf32>
    %288 = math.tanh %287 : vector<2x128xf32>
    %cst_104 = arith.constant 1.000000e+00 : f32
    %289 = vector.broadcast %cst_104 : f32 to vector<2x128xf32>
    %290 = arith.addf %288, %289 : vector<2x128xf32>
    %cst_105 = arith.constant 5.000000e-01 : f32
    %291 = vector.broadcast %cst_105 : f32 to vector<2x128xf32>
    %292 = arith.mulf %291, %290 : vector<2x128xf32>
    %293 = arith.mulf %282, %260 : vector<2x128xf32>
    %294 = arith.mulf %274, %284 : vector<2x128xf32>
    %295 = arith.addf %293, %294 : vector<2x128xf32>
    %296 = math.tanh %295 : vector<2x128xf32>
    %297 = arith.mulf %292, %296 : vector<2x128xf32>
    %c14 = arith.constant 14 : index
    %c0_106 = arith.constant 0 : index
    %298 = vector.load %arg15[%c14, %c0_106] : memref<16x128xf32, #tpu.memory_space<vmem>>, vector<2x128xf32>
    tpu.vector_store %arg15[%c14, %c0_106], %297 {strides = array<i32>} : memref<16x128xf32, #tpu.memory_space<vmem>>, vector<2x128xf32>,
    %c0_107 = arith.constant 0 : index
    %c0_108 = arith.constant 0 : index
    %299 = vector.load %arg15[%c0_107, %c0_108] : memref<16x128xf32, #tpu.memory_space<vmem>>, vector<16x128xf32>
    %cst_109 = arith.constant dense<0.000000e+00> : vector<16x512xf32>
    %300 = tpu.matmul %299, %10, %cst_109 {dimension_numbers = #tpu.dot_dimension_numbers<[1], [0], [0], [1], [0, 0, 1, 1], [], []>} : vector<16x128xf32>, vector<128x512xf32>, vector<16x512xf32> -> vector<16x512xf32>
    %301 = vector.broadcast %12 : vector<1x512xf32> to vector<16x512xf32>
    %302 = arith.addf %300, %301 : vector<16x512xf32>
    %303 = vector.extract_strided_slice %302 {offsets = [0, 0], sizes = [2, 512], strides = [1, 1]} : vector<16x512xf32> to vector<2x512xf32>
    %cst_110 = arith.constant dense<0.000000e+00> : vector<2x512xf32>
    %304 = tpu.matmul %17, %11, %cst_110 {dimension_numbers = #tpu.dot_dimension_numbers<[1], [0], [0], [1], [0, 0, 1, 1], [], []>} : vector<2x128xf32>, vector<128x512xf32>, vector<2x512xf32> -> vector<2x512xf32>
    %305 = arith.addf %303, %304 : vector<2x512xf32>
    %306 = vector.extract_strided_slice %305 {offsets = [0, 0], sizes = [2, 128], strides = [1, 1]} : vector<2x512xf32> to vector<2x128xf32>
    %cst_111 = arith.constant 5.000000e-01 : f32
    %307 = vector.broadcast %cst_111 : f32 to vector<2x128xf32>
    %308 = arith.mulf %307, %306 : vector<2x128xf32>
    %309 = math.tanh %308 : vector<2x128xf32>
    %cst_112 = arith.constant 1.000000e+00 : f32
    %310 = vector.broadcast %cst_112 : f32 to vector<2x128xf32>
    %311 = arith.addf %309, %310 : vector<2x128xf32>
    %cst_113 = arith.constant 5.000000e-01 : f32
    %312 = vector.broadcast %cst_113 : f32 to vector<2x128xf32>
    %313 = arith.mulf %312, %311 : vector<2x128xf32>
    %314 = vector.extract_strided_slice %305 {offsets = [0, 128], sizes = [2, 128], strides = [1, 1]} : vector<2x512xf32> to vector<2x128xf32>
    %cst_114 = arith.constant 5.000000e-01 : f32
    %315 = vector.broadcast %cst_114 : f32 to vector<2x128xf32>
    %316 = arith.mulf %315, %314 : vector<2x128xf32>
    %317 = math.tanh %316 : vector<2x128xf32>
    %cst_115 = arith.constant 1.000000e+00 : f32
    %318 = vector.broadcast %cst_115 : f32 to vector<2x128xf32>
    %319 = arith.addf %317, %318 : vector<2x128xf32>
    %cst_116 = arith.constant 5.000000e-01 : f32
    %320 = vector.broadcast %cst_116 : f32 to vector<2x128xf32>
    %321 = arith.mulf %320, %319 : vector<2x128xf32>
    %322 = vector.extract_strided_slice %305 {offsets = [0, 256], sizes = [2, 128], strides = [1, 1]} : vector<2x512xf32> to vector<2x128xf32>
    %323 = math.tanh %322 : vector<2x128xf32>
    %324 = vector.extract_strided_slice %305 {offsets = [0, 384], sizes = [2, 128], strides = [1, 1]} : vector<2x512xf32> to vector<2x128xf32>
    %cst_117 = arith.constant 5.000000e-01 : f32
    %325 = vector.broadcast %cst_117 : f32 to vector<2x128xf32>
    %326 = arith.mulf %325, %324 : vector<2x128xf32>
    %327 = math.tanh %326 : vector<2x128xf32>
    %cst_118 = arith.constant 1.000000e+00 : f32
    %328 = vector.broadcast %cst_118 : f32 to vector<2x128xf32>
    %329 = arith.addf %327, %328 : vector<2x128xf32>
    %cst_119 = arith.constant 5.000000e-01 : f32
    %330 = vector.broadcast %cst_119 : f32 to vector<2x128xf32>
    %331 = arith.mulf %330, %329 : vector<2x128xf32>
    %332 = arith.mulf %321, %17 : vector<2x128xf32>
    %333 = arith.mulf %313, %323 : vector<2x128xf32>
    %334 = arith.addf %332, %333 : vector<2x128xf32>
    %335 = math.tanh %334 : vector<2x128xf32>
    %336 = arith.mulf %331, %335 : vector<2x128xf32>
    %c0_120 = arith.constant 0 : index
    %c0_121 = arith.constant 0 : index
    %337 = vector.load %arg16[%c0_120, %c0_121] : memref<32x128xf32, #tpu.memory_space<vmem>>, vector<2x128xf32>
    tpu.vector_store %arg16[%c0_120, %c0_121], %336 {strides = array<i32>} : memref<32x128xf32, #tpu.memory_space<vmem>>, vector<2x128xf32>,
    %338 = vector.extract_strided_slice %302 {offsets = [2, 0], sizes = [2, 512], strides = [1, 1]} : vector<16x512xf32> to vector<2x512xf32>
    %cst_122 = arith.constant dense<0.000000e+00> : vector<2x512xf32>
    %339 = tpu.matmul %336, %11, %cst_122 {dimension_numbers = #tpu.dot_dimension_numbers<[1], [0], [0], [1], [0, 0, 1, 1], [], []>} : vector<2x128xf32>, vector<128x512xf32>, vector<2x512xf32> -> vector<2x512xf32>
    %340 = arith.addf %338, %339 : vector<2x512xf32>
    %341 = vector.extract_strided_slice %340 {offsets = [0, 0], sizes = [2, 128], strides = [1, 1]} : vector<2x512xf32> to vector<2x128xf32>
    %cst_123 = arith.constant 5.000000e-01 : f32
    %342 = vector.broadcast %cst_123 : f32 to vector<2x128xf32>
    %343 = arith.mulf %342, %341 : vector<2x128xf32>
    %344 = math.tanh %343 : vector<2x128xf32>
    %cst_124 = arith.constant 1.000000e+00 : f32
    %345 = vector.broadcast %cst_124 : f32 to vector<2x128xf32>
    %346 = arith.addf %344, %345 : vector<2x128xf32>
    %cst_125 = arith.constant 5.000000e-01 : f32
    %347 = vector.broadcast %cst_125 : f32 to vector<2x128xf32>
    %348 = arith.mulf %347, %346 : vector<2x128xf32>
    %349 = vector.extract_strided_slice %340 {offsets = [0, 128], sizes = [2, 128], strides = [1, 1]} : vector<2x512xf32> to vector<2x128xf32>
    %cst_126 = arith.constant 5.000000e-01 : f32
    %350 = vector.broadcast %cst_126 : f32 to vector<2x128xf32>
    %351 = arith.mulf %350, %349 : vector<2x128xf32>
    %352 = math.tanh %351 : vector<2x128xf32>
    %cst_127 = arith.constant 1.000000e+00 : f32
    %353 = vector.broadcast %cst_127 : f32 to vector<2x128xf32>
    %354 = arith.addf %352, %353 : vector<2x128xf32>
    %cst_128 = arith.constant 5.000000e-01 : f32
    %355 = vector.broadcast %cst_128 : f32 to vector<2x128xf32>
    %356 = arith.mulf %355, %354 : vector<2x128xf32>
    %357 = vector.extract_strided_slice %340 {offsets = [0, 256], sizes = [2, 128], strides = [1, 1]} : vector<2x512xf32> to vector<2x128xf32>
    %358 = math.tanh %357 : vector<2x128xf32>
    %359 = vector.extract_strided_slice %340 {offsets = [0, 384], sizes = [2, 128], strides = [1, 1]} : vector<2x512xf32> to vector<2x128xf32>
    %cst_129 = arith.constant 5.000000e-01 : f32
    %360 = vector.broadcast %cst_129 : f32 to vector<2x128xf32>
    %361 = arith.mulf %360, %359 : vector<2x128xf32>
    %362 = math.tanh %361 : vector<2x128xf32>
    %cst_130 = arith.constant 1.000000e+00 : f32
    %363 = vector.broadcast %cst_130 : f32 to vector<2x128xf32>
    %364 = arith.addf %362, %363 : vector<2x128xf32>
    %cst_131 = arith.constant 5.000000e-01 : f32
    %365 = vector.broadcast %cst_131 : f32 to vector<2x128xf32>
    %366 = arith.mulf %365, %364 : vector<2x128xf32>
    %367 = arith.mulf %356, %334 : vector<2x128xf32>
    %368 = arith.mulf %348, %358 : vector<2x128xf32>
    %369 = arith.addf %367, %368 : vector<2x128xf32>
    %370 = math.tanh %369 : vector<2x128xf32>
    %371 = arith.mulf %366, %370 : vector<2x128xf32>
    %c2_132 = arith.constant 2 : index
    %c0_133 = arith.constant 0 : index
    %372 = vector.load %arg16[%c2_132, %c0_133] : memref<32x128xf32, #tpu.memory_space<vmem>>, vector<2x128xf32>
    tpu.vector_store %arg16[%c2_132, %c0_133], %371 {strides = array<i32>} : memref<32x128xf32, #tpu.memory_space<vmem>>, vector<2x128xf32>,
    %373 = vector.extract_strided_slice %302 {offsets = [4, 0], sizes = [2, 512], strides = [1, 1]} : vector<16x512xf32> to vector<2x512xf32>
    %cst_134 = arith.constant dense<0.000000e+00> : vector<2x512xf32>
    %374 = tpu.matmul %371, %11, %cst_134 {dimension_numbers = #tpu.dot_dimension_numbers<[1], [0], [0], [1], [0, 0, 1, 1], [], []>} : vector<2x128xf32>, vector<128x512xf32>, vector<2x512xf32> -> vector<2x512xf32>
    %375 = arith.addf %373, %374 : vector<2x512xf32>
    %376 = vector.extract_strided_slice %375 {offsets = [0, 0], sizes = [2, 128], strides = [1, 1]} : vector<2x512xf32> to vector<2x128xf32>
    %cst_135 = arith.constant 5.000000e-01 : f32
    %377 = vector.broadcast %cst_135 : f32 to vector<2x128xf32>
    %378 = arith.mulf %377, %376 : vector<2x128xf32>
    %379 = math.tanh %378 : vector<2x128xf32>
    %cst_136 = arith.constant 1.000000e+00 : f32
    %380 = vector.broadcast %cst_136 : f32 to vector<2x128xf32>
    %381 = arith.addf %379, %380 : vector<2x128xf32>
    %cst_137 = arith.constant 5.000000e-01 : f32
    %382 = vector.broadcast %cst_137 : f32 to vector<2x128xf32>
    %383 = arith.mulf %382, %381 : vector<2x128xf32>
    %384 = vector.extract_strided_slice %375 {offsets = [0, 128], sizes = [2, 128], strides = [1, 1]} : vector<2x512xf32> to vector<2x128xf32>
    %cst_138 = arith.constant 5.000000e-01 : f32
    %385 = vector.broadcast %cst_138 : f32 to vector<2x128xf32>
    %386 = arith.mulf %385, %384 : vector<2x128xf32>
    %387 = math.tanh %386 : vector<2x128xf32>
    %cst_139 = arith.constant 1.000000e+00 : f32
    %388 = vector.broadcast %cst_139 : f32 to vector<2x128xf32>
    %389 = arith.addf %387, %388 : vector<2x128xf32>
    %cst_140 = arith.constant 5.000000e-01 : f32
    %390 = vector.broadcast %cst_140 : f32 to vector<2x128xf32>
    %391 = arith.mulf %390, %389 : vector<2x128xf32>
    %392 = vector.extract_strided_slice %375 {offsets = [0, 256], sizes = [2, 128], strides = [1, 1]} : vector<2x512xf32> to vector<2x128xf32>
    %393 = math.tanh %392 : vector<2x128xf32>
    %394 = vector.extract_strided_slice %375 {offsets = [0, 384], sizes = [2, 128], strides = [1, 1]} : vector<2x512xf32> to vector<2x128xf32>
    %cst_141 = arith.constant 5.000000e-01 : f32
    %395 = vector.broadcast %cst_141 : f32 to vector<2x128xf32>
    %396 = arith.mulf %395, %394 : vector<2x128xf32>
    %397 = math.tanh %396 : vector<2x128xf32>
    %cst_142 = arith.constant 1.000000e+00 : f32
    %398 = vector.broadcast %cst_142 : f32 to vector<2x128xf32>
    %399 = arith.addf %397, %398 : vector<2x128xf32>
    %cst_143 = arith.constant 5.000000e-01 : f32
    %400 = vector.broadcast %cst_143 : f32 to vector<2x128xf32>
    %401 = arith.mulf %400, %399 : vector<2x128xf32>
    %402 = arith.mulf %391, %369 : vector<2x128xf32>
    %403 = arith.mulf %383, %393 : vector<2x128xf32>
    %404 = arith.addf %402, %403 : vector<2x128xf32>
    %405 = math.tanh %404 : vector<2x128xf32>
    %406 = arith.mulf %401, %405 : vector<2x128xf32>
    %c4_144 = arith.constant 4 : index
    %c0_145 = arith.constant 0 : index
    %407 = vector.load %arg16[%c4_144, %c0_145] : memref<32x128xf32, #tpu.memory_space<vmem>>, vector<2x128xf32>
    tpu.vector_store %arg16[%c4_144, %c0_145], %406 {strides = array<i32>} : memref<32x128xf32, #tpu.memory_space<vmem>>, vector<2x128xf32>,
    %408 = vector.extract_strided_slice %302 {offsets = [6, 0], sizes = [2, 512], strides = [1, 1]} : vector<16x512xf32> to vector<2x512xf32>
    %cst_146 = arith.constant dense<0.000000e+00> : vector<2x512xf32>
    %409 = tpu.matmul %406, %11, %cst_146 {dimension_numbers = #tpu.dot_dimension_numbers<[1], [0], [0], [1], [0, 0, 1, 1], [], []>} : vector<2x128xf32>, vector<128x512xf32>, vector<2x512xf32> -> vector<2x512xf32>
    %410 = arith.addf %408, %409 : vector<2x512xf32>
    %411 = vector.extract_strided_slice %410 {offsets = [0, 0], sizes = [2, 128], strides = [1, 1]} : vector<2x512xf32> to vector<2x128xf32>
    %cst_147 = arith.constant 5.000000e-01 : f32
    %412 = vector.broadcast %cst_147 : f32 to vector<2x128xf32>
    %413 = arith.mulf %412, %411 : vector<2x128xf32>
    %414 = math.tanh %413 : vector<2x128xf32>
    %cst_148 = arith.constant 1.000000e+00 : f32
    %415 = vector.broadcast %cst_148 : f32 to vector<2x128xf32>
    %416 = arith.addf %414, %415 : vector<2x128xf32>
    %cst_149 = arith.constant 5.000000e-01 : f32
    %417 = vector.broadcast %cst_149 : f32 to vector<2x128xf32>
    %418 = arith.mulf %417, %416 : vector<2x128xf32>
    %419 = vector.extract_strided_slice %410 {offsets = [0, 128], sizes = [2, 128], strides = [1, 1]} : vector<2x512xf32> to vector<2x128xf32>
    %cst_150 = arith.constant 5.000000e-01 : f32
    %420 = vector.broadcast %cst_150 : f32 to vector<2x128xf32>
    %421 = arith.mulf %420, %419 : vector<2x128xf32>
    %422 = math.tanh %421 : vector<2x128xf32>
    %cst_151 = arith.constant 1.000000e+00 : f32
    %423 = vector.broadcast %cst_151 : f32 to vector<2x128xf32>
    %424 = arith.addf %422, %423 : vector<2x128xf32>
    %cst_152 = arith.constant 5.000000e-01 : f32
    %425 = vector.broadcast %cst_152 : f32 to vector<2x128xf32>
    %426 = arith.mulf %425, %424 : vector<2x128xf32>
    %427 = vector.extract_strided_slice %410 {offsets = [0, 256], sizes = [2, 128], strides = [1, 1]} : vector<2x512xf32> to vector<2x128xf32>
    %428 = math.tanh %427 : vector<2x128xf32>
    %429 = vector.extract_strided_slice %410 {offsets = [0, 384], sizes = [2, 128], strides = [1, 1]} : vector<2x512xf32> to vector<2x128xf32>
    %cst_153 = arith.constant 5.000000e-01 : f32
    %430 = vector.broadcast %cst_153 : f32 to vector<2x128xf32>
    %431 = arith.mulf %430, %429 : vector<2x128xf32>
    %432 = math.tanh %431 : vector<2x128xf32>
    %cst_154 = arith.constant 1.000000e+00 : f32
    %433 = vector.broadcast %cst_154 : f32 to vector<2x128xf32>
    %434 = arith.addf %432, %433 : vector<2x128xf32>
    %cst_155 = arith.constant 5.000000e-01 : f32
    %435 = vector.broadcast %cst_155 : f32 to vector<2x128xf32>
    %436 = arith.mulf %435, %434 : vector<2x128xf32>
    %437 = arith.mulf %426, %404 : vector<2x128xf32>
    %438 = arith.mulf %418, %428 : vector<2x128xf32>
    %439 = arith.addf %437, %438 : vector<2x128xf32>
    %440 = math.tanh %439 : vector<2x128xf32>
    %441 = arith.mulf %436, %440 : vector<2x128xf32>
    %c6_156 = arith.constant 6 : index
    %c0_157 = arith.constant 0 : index
    %442 = vector.load %arg16[%c6_156, %c0_157] : memref<32x128xf32, #tpu.memory_space<vmem>>, vector<2x128xf32>
    tpu.vector_store %arg16[%c6_156, %c0_157], %441 {strides = array<i32>} : memref<32x128xf32, #tpu.memory_space<vmem>>, vector<2x128xf32>,
    %443 = vector.extract_strided_slice %302 {offsets = [8, 0], sizes = [2, 512], strides = [1, 1]} : vector<16x512xf32> to vector<2x512xf32>
    %cst_158 = arith.constant dense<0.000000e+00> : vector<2x512xf32>
    %444 = tpu.matmul %441, %11, %cst_158 {dimension_numbers = #tpu.dot_dimension_numbers<[1], [0], [0], [1], [0, 0, 1, 1], [], []>} : vector<2x128xf32>, vector<128x512xf32>, vector<2x512xf32> -> vector<2x512xf32>
    %445 = arith.addf %443, %444 : vector<2x512xf32>
    %446 = vector.extract_strided_slice %445 {offsets = [0, 0], sizes = [2, 128], strides = [1, 1]} : vector<2x512xf32> to vector<2x128xf32>
    %cst_159 = arith.constant 5.000000e-01 : f32
    %447 = vector.broadcast %cst_159 : f32 to vector<2x128xf32>
    %448 = arith.mulf %447, %446 : vector<2x128xf32>
    %449 = math.tanh %448 : vector<2x128xf32>
    %cst_160 = arith.constant 1.000000e+00 : f32
    %450 = vector.broadcast %cst_160 : f32 to vector<2x128xf32>
    %451 = arith.addf %449, %450 : vector<2x128xf32>
    %cst_161 = arith.constant 5.000000e-01 : f32
    %452 = vector.broadcast %cst_161 : f32 to vector<2x128xf32>
    %453 = arith.mulf %452, %451 : vector<2x128xf32>
    %454 = vector.extract_strided_slice %445 {offsets = [0, 128], sizes = [2, 128], strides = [1, 1]} : vector<2x512xf32> to vector<2x128xf32>
    %cst_162 = arith.constant 5.000000e-01 : f32
    %455 = vector.broadcast %cst_162 : f32 to vector<2x128xf32>
    %456 = arith.mulf %455, %454 : vector<2x128xf32>
    %457 = math.tanh %456 : vector<2x128xf32>
    %cst_163 = arith.constant 1.000000e+00 : f32
    %458 = vector.broadcast %cst_163 : f32 to vector<2x128xf32>
    %459 = arith.addf %457, %458 : vector<2x128xf32>
    %cst_164 = arith.constant 5.000000e-01 : f32
    %460 = vector.broadcast %cst_164 : f32 to vector<2x128xf32>
    %461 = arith.mulf %460, %459 : vector<2x128xf32>
    %462 = vector.extract_strided_slice %445 {offsets = [0, 256], sizes = [2, 128], strides = [1, 1]} : vector<2x512xf32> to vector<2x128xf32>
    %463 = math.tanh %462 : vector<2x128xf32>
    %464 = vector.extract_strided_slice %445 {offsets = [0, 384], sizes = [2, 128], strides = [1, 1]} : vector<2x512xf32> to vector<2x128xf32>
    %cst_165 = arith.constant 5.000000e-01 : f32
    %465 = vector.broadcast %cst_165 : f32 to vector<2x128xf32>
    %466 = arith.mulf %465, %464 : vector<2x128xf32>
    %467 = math.tanh %466 : vector<2x128xf32>
    %cst_166 = arith.constant 1.000000e+00 : f32
    %468 = vector.broadcast %cst_166 : f32 to vector<2x128xf32>
    %469 = arith.addf %467, %468 : vector<2x128xf32>
    %cst_167 = arith.constant 5.000000e-01 : f32
    %470 = vector.broadcast %cst_167 : f32 to vector<2x128xf32>
    %471 = arith.mulf %470, %469 : vector<2x128xf32>
    %472 = arith.mulf %461, %439 : vector<2x128xf32>
    %473 = arith.mulf %453, %463 : vector<2x128xf32>
    %474 = arith.addf %472, %473 : vector<2x128xf32>
    %475 = math.tanh %474 : vector<2x128xf32>
    %476 = arith.mulf %471, %475 : vector<2x128xf32>
    %c8_168 = arith.constant 8 : index
    %c0_169 = arith.constant 0 : index
    %477 = vector.load %arg16[%c8_168, %c0_169] : memref<32x128xf32, #tpu.memory_space<vmem>>, vector<2x128xf32>
    tpu.vector_store %arg16[%c8_168, %c0_169], %476 {strides = array<i32>} : memref<32x128xf32, #tpu.memory_space<vmem>>, vector<2x128xf32>,
    %478 = vector.extract_strided_slice %302 {offsets = [10, 0], sizes = [2, 512], strides = [1, 1]} : vector<16x512xf32> to vector<2x512xf32>
    %cst_170 = arith.constant dense<0.000000e+00> : vector<2x512xf32>
    %479 = tpu.matmul %476, %11, %cst_170 {dimension_numbers = #tpu.dot_dimension_numbers<[1], [0], [0], [1], [0, 0, 1, 1], [], []>} : vector<2x128xf32>, vector<128x512xf32>, vector<2x512xf32> -> vector<2x512xf32>
    %480 = arith.addf %478, %479 : vector<2x512xf32>
    %481 = vector.extract_strided_slice %480 {offsets = [0, 0], sizes = [2, 128], strides = [1, 1]} : vector<2x512xf32> to vector<2x128xf32>
    %cst_171 = arith.constant 5.000000e-01 : f32
    %482 = vector.broadcast %cst_171 : f32 to vector<2x128xf32>
    %483 = arith.mulf %482, %481 : vector<2x128xf32>
    %484 = math.tanh %483 : vector<2x128xf32>
    %cst_172 = arith.constant 1.000000e+00 : f32
    %485 = vector.broadcast %cst_172 : f32 to vector<2x128xf32>
    %486 = arith.addf %484, %485 : vector<2x128xf32>
    %cst_173 = arith.constant 5.000000e-01 : f32
    %487 = vector.broadcast %cst_173 : f32 to vector<2x128xf32>
    %488 = arith.mulf %487, %486 : vector<2x128xf32>
    %489 = vector.extract_strided_slice %480 {offsets = [0, 128], sizes = [2, 128], strides = [1, 1]} : vector<2x512xf32> to vector<2x128xf32>
    %cst_174 = arith.constant 5.000000e-01 : f32
    %490 = vector.broadcast %cst_174 : f32 to vector<2x128xf32>
    %491 = arith.mulf %490, %489 : vector<2x128xf32>
    %492 = math.tanh %491 : vector<2x128xf32>
    %cst_175 = arith.constant 1.000000e+00 : f32
    %493 = vector.broadcast %cst_175 : f32 to vector<2x128xf32>
    %494 = arith.addf %492, %493 : vector<2x128xf32>
    %cst_176 = arith.constant 5.000000e-01 : f32
    %495 = vector.broadcast %cst_176 : f32 to vector<2x128xf32>
    %496 = arith.mulf %495, %494 : vector<2x128xf32>
    %497 = vector.extract_strided_slice %480 {offsets = [0, 256], sizes = [2, 128], strides = [1, 1]} : vector<2x512xf32> to vector<2x128xf32>
    %498 = math.tanh %497 : vector<2x128xf32>
    %499 = vector.extract_strided_slice %480 {offsets = [0, 384], sizes = [2, 128], strides = [1, 1]} : vector<2x512xf32> to vector<2x128xf32>
    %cst_177 = arith.constant 5.000000e-01 : f32
    %500 = vector.broadcast %cst_177 : f32 to vector<2x128xf32>
    %501 = arith.mulf %500, %499 : vector<2x128xf32>
    %502 = math.tanh %501 : vector<2x128xf32>
    %cst_178 = arith.constant 1.000000e+00 : f32
    %503 = vector.broadcast %cst_178 : f32 to vector<2x128xf32>
    %504 = arith.addf %502, %503 : vector<2x128xf32>
    %cst_179 = arith.constant 5.000000e-01 : f32
    %505 = vector.broadcast %cst_179 : f32 to vector<2x128xf32>
    %506 = arith.mulf %505, %504 : vector<2x128xf32>
    %507 = arith.mulf %496, %474 : vector<2x128xf32>
    %508 = arith.mulf %488, %498 : vector<2x128xf32>
    %509 = arith.addf %507, %508 : vector<2x128xf32>
    %510 = math.tanh %509 : vector<2x128xf32>
    %511 = arith.mulf %506, %510 : vector<2x128xf32>
    %c10_180 = arith.constant 10 : index
    %c0_181 = arith.constant 0 : index
    %512 = vector.load %arg16[%c10_180, %c0_181] : memref<32x128xf32, #tpu.memory_space<vmem>>, vector<2x128xf32>
    tpu.vector_store %arg16[%c10_180, %c0_181], %511 {strides = array<i32>} : memref<32x128xf32, #tpu.memory_space<vmem>>, vector<2x128xf32>,
    %513 = vector.extract_strided_slice %302 {offsets = [12, 0], sizes = [2, 512], strides = [1, 1]} : vector<16x512xf32> to vector<2x512xf32>
    %cst_182 = arith.constant dense<0.000000e+00> : vector<2x512xf32>
    %514 = tpu.matmul %511, %11, %cst_182 {dimension_numbers = #tpu.dot_dimension_numbers<[1], [0], [0], [1], [0, 0, 1, 1], [], []>} : vector<2x128xf32>, vector<128x512xf32>, vector<2x512xf32> -> vector<2x512xf32>
    %515 = arith.addf %513, %514 : vector<2x512xf32>
    %516 = vector.extract_strided_slice %515 {offsets = [0, 0], sizes = [2, 128], strides = [1, 1]} : vector<2x512xf32> to vector<2x128xf32>
    %cst_183 = arith.constant 5.000000e-01 : f32
    %517 = vector.broadcast %cst_183 : f32 to vector<2x128xf32>
    %518 = arith.mulf %517, %516 : vector<2x128xf32>
    %519 = math.tanh %518 : vector<2x128xf32>
    %cst_184 = arith.constant 1.000000e+00 : f32
    %520 = vector.broadcast %cst_184 : f32 to vector<2x128xf32>
    %521 = arith.addf %519, %520 : vector<2x128xf32>
    %cst_185 = arith.constant 5.000000e-01 : f32
    %522 = vector.broadcast %cst_185 : f32 to vector<2x128xf32>
    %523 = arith.mulf %522, %521 : vector<2x128xf32>
    %524 = vector.extract_strided_slice %515 {offsets = [0, 128], sizes = [2, 128], strides = [1, 1]} : vector<2x512xf32> to vector<2x128xf32>
    %cst_186 = arith.constant 5.000000e-01 : f32
    %525 = vector.broadcast %cst_186 : f32 to vector<2x128xf32>
    %526 = arith.mulf %525, %524 : vector<2x128xf32>
    %527 = math.tanh %526 : vector<2x128xf32>
    %cst_187 = arith.constant 1.000000e+00 : f32
    %528 = vector.broadcast %cst_187 : f32 to vector<2x128xf32>
    %529 = arith.addf %527, %528 : vector<2x128xf32>
    %cst_188 = arith.constant 5.000000e-01 : f32
    %530 = vector.broadcast %cst_188 : f32 to vector<2x128xf32>
    %531 = arith.mulf %530, %529 : vector<2x128xf32>
    %532 = vector.extract_strided_slice %515 {offsets = [0, 256], sizes = [2, 128], strides = [1, 1]} : vector<2x512xf32> to vector<2x128xf32>
    %533 = math.tanh %532 : vector<2x128xf32>
    %534 = vector.extract_strided_slice %515 {offsets = [0, 384], sizes = [2, 128], strides = [1, 1]} : vector<2x512xf32> to vector<2x128xf32>
    %cst_189 = arith.constant 5.000000e-01 : f32
    %535 = vector.broadcast %cst_189 : f32 to vector<2x128xf32>
    %536 = arith.mulf %535, %534 : vector<2x128xf32>
    %537 = math.tanh %536 : vector<2x128xf32>
    %cst_190 = arith.constant 1.000000e+00 : f32
    %538 = vector.broadcast %cst_190 : f32 to vector<2x128xf32>
    %539 = arith.addf %537, %538 : vector<2x128xf32>
    %cst_191 = arith.constant 5.000000e-01 : f32
    %540 = vector.broadcast %cst_191 : f32 to vector<2x128xf32>
    %541 = arith.mulf %540, %539 : vector<2x128xf32>
    %542 = arith.mulf %531, %509 : vector<2x128xf32>
    %543 = arith.mulf %523, %533 : vector<2x128xf32>
    %544 = arith.addf %542, %543 : vector<2x128xf32>
    %545 = math.tanh %544 : vector<2x128xf32>
    %546 = arith.mulf %541, %545 : vector<2x128xf32>
    %c12_192 = arith.constant 12 : index
    %c0_193 = arith.constant 0 : index
    %547 = vector.load %arg16[%c12_192, %c0_193] : memref<32x128xf32, #tpu.memory_space<vmem>>, vector<2x128xf32>
    tpu.vector_store %arg16[%c12_192, %c0_193], %546 {strides = array<i32>} : memref<32x128xf32, #tpu.memory_space<vmem>>, vector<2x128xf32>,
    %548 = vector.extract_strided_slice %302 {offsets = [14, 0], sizes = [2, 512], strides = [1, 1]} : vector<16x512xf32> to vector<2x512xf32>
    %cst_194 = arith.constant dense<0.000000e+00> : vector<2x512xf32>
    %549 = tpu.matmul %546, %11, %cst_194 {dimension_numbers = #tpu.dot_dimension_numbers<[1], [0], [0], [1], [0, 0, 1, 1], [], []>} : vector<2x128xf32>, vector<128x512xf32>, vector<2x512xf32> -> vector<2x512xf32>
    %550 = arith.addf %548, %549 : vector<2x512xf32>
    %551 = vector.extract_strided_slice %550 {offsets = [0, 0], sizes = [2, 128], strides = [1, 1]} : vector<2x512xf32> to vector<2x128xf32>
    %cst_195 = arith.constant 5.000000e-01 : f32
    %552 = vector.broadcast %cst_195 : f32 to vector<2x128xf32>
    %553 = arith.mulf %552, %551 : vector<2x128xf32>
    %554 = math.tanh %553 : vector<2x128xf32>
    %cst_196 = arith.constant 1.000000e+00 : f32
    %555 = vector.broadcast %cst_196 : f32 to vector<2x128xf32>
    %556 = arith.addf %554, %555 : vector<2x128xf32>
    %cst_197 = arith.constant 5.000000e-01 : f32
    %557 = vector.broadcast %cst_197 : f32 to vector<2x128xf32>
    %558 = arith.mulf %557, %556 : vector<2x128xf32>
    %559 = vector.extract_strided_slice %550 {offsets = [0, 128], sizes = [2, 128], strides = [1, 1]} : vector<2x512xf32> to vector<2x128xf32>
    %cst_198 = arith.constant 5.000000e-01 : f32
    %560 = vector.broadcast %cst_198 : f32 to vector<2x128xf32>
    %561 = arith.mulf %560, %559 : vector<2x128xf32>
    %562 = math.tanh %561 : vector<2x128xf32>
    %cst_199 = arith.constant 1.000000e+00 : f32
    %563 = vector.broadcast %cst_199 : f32 to vector<2x128xf32>
    %564 = arith.addf %562, %563 : vector<2x128xf32>
    %cst_200 = arith.constant 5.000000e-01 : f32
    %565 = vector.broadcast %cst_200 : f32 to vector<2x128xf32>
    %566 = arith.mulf %565, %564 : vector<2x128xf32>
    %567 = vector.extract_strided_slice %550 {offsets = [0, 256], sizes = [2, 128], strides = [1, 1]} : vector<2x512xf32> to vector<2x128xf32>
    %568 = math.tanh %567 : vector<2x128xf32>
    %569 = vector.extract_strided_slice %550 {offsets = [0, 384], sizes = [2, 128], strides = [1, 1]} : vector<2x512xf32> to vector<2x128xf32>
    %cst_201 = arith.constant 5.000000e-01 : f32
    %570 = vector.broadcast %cst_201 : f32 to vector<2x128xf32>
    %571 = arith.mulf %570, %569 : vector<2x128xf32>
    %572 = math.tanh %571 : vector<2x128xf32>
    %cst_202 = arith.constant 1.000000e+00 : f32
    %573 = vector.broadcast %cst_202 : f32 to vector<2x128xf32>
    %574 = arith.addf %572, %573 : vector<2x128xf32>
    %cst_203 = arith.constant 5.000000e-01 : f32
    %575 = vector.broadcast %cst_203 : f32 to vector<2x128xf32>
    %576 = arith.mulf %575, %574 : vector<2x128xf32>
    %577 = arith.mulf %566, %544 : vector<2x128xf32>
    %578 = arith.mulf %558, %568 : vector<2x128xf32>
    %579 = arith.addf %577, %578 : vector<2x128xf32>
    %580 = math.tanh %579 : vector<2x128xf32>
    %581 = arith.mulf %576, %580 : vector<2x128xf32>
    %c14_204 = arith.constant 14 : index
    %c0_205 = arith.constant 0 : index
    %582 = vector.load %arg16[%c14_204, %c0_205] : memref<32x128xf32, #tpu.memory_space<vmem>>, vector<2x128xf32>
    tpu.vector_store %arg16[%c14_204, %c0_205], %581 {strides = array<i32>} : memref<32x128xf32, #tpu.memory_space<vmem>>, vector<2x128xf32>,
    %583 = vector.extract_strided_slice %16 {offsets = [16, 0], sizes = [16, 512], strides = [1, 1]} : vector<32x512xf32> to vector<16x512xf32>
    %584 = vector.extract_strided_slice %583 {offsets = [0, 0], sizes = [2, 512], strides = [1, 1]} : vector<16x512xf32> to vector<2x512xf32>
    %cst_206 = arith.constant dense<0.000000e+00> : vector<2x512xf32>
    %585 = tpu.matmul %297, %8, %cst_206 {dimension_numbers = #tpu.dot_dimension_numbers<[1], [0], [0], [1], [0, 0, 1, 1], [], []>} : vector<2x128xf32>, vector<128x512xf32>, vector<2x512xf32> -> vector<2x512xf32>
    %586 = arith.addf %584, %585 : vector<2x512xf32>
    %587 = vector.extract_strided_slice %586 {offsets = [0, 0], sizes = [2, 128], strides = [1, 1]} : vector<2x512xf32> to vector<2x128xf32>
    %cst_207 = arith.constant 5.000000e-01 : f32
    %588 = vector.broadcast %cst_207 : f32 to vector<2x128xf32>
    %589 = arith.mulf %588, %587 : vector<2x128xf32>
    %590 = math.tanh %589 : vector<2x128xf32>
    %cst_208 = arith.constant 1.000000e+00 : f32
    %591 = vector.broadcast %cst_208 : f32 to vector<2x128xf32>
    %592 = arith.addf %590, %591 : vector<2x128xf32>
    %cst_209 = arith.constant 5.000000e-01 : f32
    %593 = vector.broadcast %cst_209 : f32 to vector<2x128xf32>
    %594 = arith.mulf %593, %592 : vector<2x128xf32>
    %595 = vector.extract_strided_slice %586 {offsets = [0, 128], sizes = [2, 128], strides = [1, 1]} : vector<2x512xf32> to vector<2x128xf32>
    %cst_210 = arith.constant 5.000000e-01 : f32
    %596 = vector.broadcast %cst_210 : f32 to vector<2x128xf32>
    %597 = arith.mulf %596, %595 : vector<2x128xf32>
    %598 = math.tanh %597 : vector<2x128xf32>
    %cst_211 = arith.constant 1.000000e+00 : f32
    %599 = vector.broadcast %cst_211 : f32 to vector<2x128xf32>
    %600 = arith.addf %598, %599 : vector<2x128xf32>
    %cst_212 = arith.constant 5.000000e-01 : f32
    %601 = vector.broadcast %cst_212 : f32 to vector<2x128xf32>
    %602 = arith.mulf %601, %600 : vector<2x128xf32>
    %603 = vector.extract_strided_slice %586 {offsets = [0, 256], sizes = [2, 128], strides = [1, 1]} : vector<2x512xf32> to vector<2x128xf32>
    %604 = math.tanh %603 : vector<2x128xf32>
    %605 = vector.extract_strided_slice %586 {offsets = [0, 384], sizes = [2, 128], strides = [1, 1]} : vector<2x512xf32> to vector<2x128xf32>
    %cst_213 = arith.constant 5.000000e-01 : f32
    %606 = vector.broadcast %cst_213 : f32 to vector<2x128xf32>
    %607 = arith.mulf %606, %605 : vector<2x128xf32>
    %608 = math.tanh %607 : vector<2x128xf32>
    %cst_214 = arith.constant 1.000000e+00 : f32
    %609 = vector.broadcast %cst_214 : f32 to vector<2x128xf32>
    %610 = arith.addf %608, %609 : vector<2x128xf32>
    %cst_215 = arith.constant 5.000000e-01 : f32
    %611 = vector.broadcast %cst_215 : f32 to vector<2x128xf32>
    %612 = arith.mulf %611, %610 : vector<2x128xf32>
    %613 = arith.mulf %602, %295 : vector<2x128xf32>
    %614 = arith.mulf %594, %604 : vector<2x128xf32>
    %615 = arith.addf %613, %614 : vector<2x128xf32>
    %616 = math.tanh %615 : vector<2x128xf32>
    %617 = arith.mulf %612, %616 : vector<2x128xf32>
    %c0_216 = arith.constant 0 : index
    %c0_217 = arith.constant 0 : index
    %618 = vector.load %arg15[%c0_216, %c0_217] : memref<16x128xf32, #tpu.memory_space<vmem>>, vector<2x128xf32>
    tpu.vector_store %arg15[%c0_216, %c0_217], %617 {strides = array<i32>} : memref<16x128xf32, #tpu.memory_space<vmem>>, vector<2x128xf32>,
    %619 = vector.extract_strided_slice %583 {offsets = [2, 0], sizes = [2, 512], strides = [1, 1]} : vector<16x512xf32> to vector<2x512xf32>
    %cst_218 = arith.constant dense<0.000000e+00> : vector<2x512xf32>
    %620 = tpu.matmul %617, %8, %cst_218 {dimension_numbers = #tpu.dot_dimension_numbers<[1], [0], [0], [1], [0, 0, 1, 1], [], []>} : vector<2x128xf32>, vector<128x512xf32>, vector<2x512xf32> -> vector<2x512xf32>
    %621 = arith.addf %619, %620 : vector<2x512xf32>
    %622 = vector.extract_strided_slice %621 {offsets = [0, 0], sizes = [2, 128], strides = [1, 1]} : vector<2x512xf32> to vector<2x128xf32>
    %cst_219 = arith.constant 5.000000e-01 : f32
    %623 = vector.broadcast %cst_219 : f32 to vector<2x128xf32>
    %624 = arith.mulf %623, %622 : vector<2x128xf32>
    %625 = math.tanh %624 : vector<2x128xf32>
    %cst_220 = arith.constant 1.000000e+00 : f32
    %626 = vector.broadcast %cst_220 : f32 to vector<2x128xf32>
    %627 = arith.addf %625, %626 : vector<2x128xf32>
    %cst_221 = arith.constant 5.000000e-01 : f32
    %628 = vector.broadcast %cst_221 : f32 to vector<2x128xf32>
    %629 = arith.mulf %628, %627 : vector<2x128xf32>
    %630 = vector.extract_strided_slice %621 {offsets = [0, 128], sizes = [2, 128], strides = [1, 1]} : vector<2x512xf32> to vector<2x128xf32>
    %cst_222 = arith.constant 5.000000e-01 : f32
    %631 = vector.broadcast %cst_222 : f32 to vector<2x128xf32>
    %632 = arith.mulf %631, %630 : vector<2x128xf32>
    %633 = math.tanh %632 : vector<2x128xf32>
    %cst_223 = arith.constant 1.000000e+00 : f32
    %634 = vector.broadcast %cst_223 : f32 to vector<2x128xf32>
    %635 = arith.addf %633, %634 : vector<2x128xf32>
    %cst_224 = arith.constant 5.000000e-01 : f32
    %636 = vector.broadcast %cst_224 : f32 to vector<2x128xf32>
    %637 = arith.mulf %636, %635 : vector<2x128xf32>
    %638 = vector.extract_strided_slice %621 {offsets = [0, 256], sizes = [2, 128], strides = [1, 1]} : vector<2x512xf32> to vector<2x128xf32>
    %639 = math.tanh %638 : vector<2x128xf32>
    %640 = vector.extract_strided_slice %621 {offsets = [0, 384], sizes = [2, 128], strides = [1, 1]} : vector<2x512xf32> to vector<2x128xf32>
    %cst_225 = arith.constant 5.000000e-01 : f32
    %641 = vector.broadcast %cst_225 : f32 to vector<2x128xf32>
    %642 = arith.mulf %641, %640 : vector<2x128xf32>
    %643 = math.tanh %642 : vector<2x128xf32>
    %cst_226 = arith.constant 1.000000e+00 : f32
    %644 = vector.broadcast %cst_226 : f32 to vector<2x128xf32>
    %645 = arith.addf %643, %644 : vector<2x128xf32>
    %cst_227 = arith.constant 5.000000e-01 : f32
    %646 = vector.broadcast %cst_227 : f32 to vector<2x128xf32>
    %647 = arith.mulf %646, %645 : vector<2x128xf32>
    %648 = arith.mulf %637, %615 : vector<2x128xf32>
    %649 = arith.mulf %629, %639 : vector<2x128xf32>
    %650 = arith.addf %648, %649 : vector<2x128xf32>
    %651 = math.tanh %650 : vector<2x128xf32>
    %652 = arith.mulf %647, %651 : vector<2x128xf32>
    %c2_228 = arith.constant 2 : index
    %c0_229 = arith.constant 0 : index
    %653 = vector.load %arg15[%c2_228, %c0_229] : memref<16x128xf32, #tpu.memory_space<vmem>>, vector<2x128xf32>
    tpu.vector_store %arg15[%c2_228, %c0_229], %652 {strides = array<i32>} : memref<16x128xf32, #tpu.memory_space<vmem>>, vector<2x128xf32>,
    %654 = vector.extract_strided_slice %583 {offsets = [4, 0], sizes = [2, 512], strides = [1, 1]} : vector<16x512xf32> to vector<2x512xf32>
    %cst_230 = arith.constant dense<0.000000e+00> : vector<2x512xf32>
    %655 = tpu.matmul %652, %8, %cst_230 {dimension_numbers = #tpu.dot_dimension_numbers<[1], [0], [0], [1], [0, 0, 1, 1], [], []>} : vector<2x128xf32>, vector<128x512xf32>, vector<2x512xf32> -> vector<2x512xf32>
    %656 = arith.addf %654, %655 : vector<2x512xf32>
    %657 = vector.extract_strided_slice %656 {offsets = [0, 0], sizes = [2, 128], strides = [1, 1]} : vector<2x512xf32> to vector<2x128xf32>
    %cst_231 = arith.constant 5.000000e-01 : f32
    %658 = vector.broadcast %cst_231 : f32 to vector<2x128xf32>
    %659 = arith.mulf %658, %657 : vector<2x128xf32>
    %660 = math.tanh %659 : vector<2x128xf32>
    %cst_232 = arith.constant 1.000000e+00 : f32
    %661 = vector.broadcast %cst_232 : f32 to vector<2x128xf32>
    %662 = arith.addf %660, %661 : vector<2x128xf32>
    %cst_233 = arith.constant 5.000000e-01 : f32
    %663 = vector.broadcast %cst_233 : f32 to vector<2x128xf32>
    %664 = arith.mulf %663, %662 : vector<2x128xf32>
    %665 = vector.extract_strided_slice %656 {offsets = [0, 128], sizes = [2, 128], strides = [1, 1]} : vector<2x512xf32> to vector<2x128xf32>
    %cst_234 = arith.constant 5.000000e-01 : f32
    %666 = vector.broadcast %cst_234 : f32 to vector<2x128xf32>
    %667 = arith.mulf %666, %665 : vector<2x128xf32>
    %668 = math.tanh %667 : vector<2x128xf32>
    %cst_235 = arith.constant 1.000000e+00 : f32
    %669 = vector.broadcast %cst_235 : f32 to vector<2x128xf32>
    %670 = arith.addf %668, %669 : vector<2x128xf32>
    %cst_236 = arith.constant 5.000000e-01 : f32
    %671 = vector.broadcast %cst_236 : f32 to vector<2x128xf32>
    %672 = arith.mulf %671, %670 : vector<2x128xf32>
    %673 = vector.extract_strided_slice %656 {offsets = [0, 256], sizes = [2, 128], strides = [1, 1]} : vector<2x512xf32> to vector<2x128xf32>
    %674 = math.tanh %673 : vector<2x128xf32>
    %675 = vector.extract_strided_slice %656 {offsets = [0, 384], sizes = [2, 128], strides = [1, 1]} : vector<2x512xf32> to vector<2x128xf32>
    %cst_237 = arith.constant 5.000000e-01 : f32
    %676 = vector.broadcast %cst_237 : f32 to vector<2x128xf32>
    %677 = arith.mulf %676, %675 : vector<2x128xf32>
    %678 = math.tanh %677 : vector<2x128xf32>
    %cst_238 = arith.constant 1.000000e+00 : f32
    %679 = vector.broadcast %cst_238 : f32 to vector<2x128xf32>
    %680 = arith.addf %678, %679 : vector<2x128xf32>
    %cst_239 = arith.constant 5.000000e-01 : f32
    %681 = vector.broadcast %cst_239 : f32 to vector<2x128xf32>
    %682 = arith.mulf %681, %680 : vector<2x128xf32>
    %683 = arith.mulf %672, %650 : vector<2x128xf32>
    %684 = arith.mulf %664, %674 : vector<2x128xf32>
    %685 = arith.addf %683, %684 : vector<2x128xf32>
    %686 = math.tanh %685 : vector<2x128xf32>
    %687 = arith.mulf %682, %686 : vector<2x128xf32>
    %c4_240 = arith.constant 4 : index
    %c0_241 = arith.constant 0 : index
    %688 = vector.load %arg15[%c4_240, %c0_241] : memref<16x128xf32, #tpu.memory_space<vmem>>, vector<2x128xf32>
    tpu.vector_store %arg15[%c4_240, %c0_241], %687 {strides = array<i32>} : memref<16x128xf32, #tpu.memory_space<vmem>>, vector<2x128xf32>,
    %689 = vector.extract_strided_slice %583 {offsets = [6, 0], sizes = [2, 512], strides = [1, 1]} : vector<16x512xf32> to vector<2x512xf32>
    %cst_242 = arith.constant dense<0.000000e+00> : vector<2x512xf32>
    %690 = tpu.matmul %687, %8, %cst_242 {dimension_numbers = #tpu.dot_dimension_numbers<[1], [0], [0], [1], [0, 0, 1, 1], [], []>} : vector<2x128xf32>, vector<128x512xf32>, vector<2x512xf32> -> vector<2x512xf32>
    %691 = arith.addf %689, %690 : vector<2x512xf32>
    %692 = vector.extract_strided_slice %691 {offsets = [0, 0], sizes = [2, 128], strides = [1, 1]} : vector<2x512xf32> to vector<2x128xf32>
    %cst_243 = arith.constant 5.000000e-01 : f32
    %693 = vector.broadcast %cst_243 : f32 to vector<2x128xf32>
    %694 = arith.mulf %693, %692 : vector<2x128xf32>
    %695 = math.tanh %694 : vector<2x128xf32>
    %cst_244 = arith.constant 1.000000e+00 : f32
    %696 = vector.broadcast %cst_244 : f32 to vector<2x128xf32>
    %697 = arith.addf %695, %696 : vector<2x128xf32>
    %cst_245 = arith.constant 5.000000e-01 : f32
    %698 = vector.broadcast %cst_245 : f32 to vector<2x128xf32>
    %699 = arith.mulf %698, %697 : vector<2x128xf32>
    %700 = vector.extract_strided_slice %691 {offsets = [0, 128], sizes = [2, 128], strides = [1, 1]} : vector<2x512xf32> to vector<2x128xf32>
    %cst_246 = arith.constant 5.000000e-01 : f32
    %701 = vector.broadcast %cst_246 : f32 to vector<2x128xf32>
    %702 = arith.mulf %701, %700 : vector<2x128xf32>
    %703 = math.tanh %702 : vector<2x128xf32>
    %cst_247 = arith.constant 1.000000e+00 : f32
    %704 = vector.broadcast %cst_247 : f32 to vector<2x128xf32>
    %705 = arith.addf %703, %704 : vector<2x128xf32>
    %cst_248 = arith.constant 5.000000e-01 : f32
    %706 = vector.broadcast %cst_248 : f32 to vector<2x128xf32>
    %707 = arith.mulf %706, %705 : vector<2x128xf32>
    %708 = vector.extract_strided_slice %691 {offsets = [0, 256], sizes = [2, 128], strides = [1, 1]} : vector<2x512xf32> to vector<2x128xf32>
    %709 = math.tanh %708 : vector<2x128xf32>
    %710 = vector.extract_strided_slice %691 {offsets = [0, 384], sizes = [2, 128], strides = [1, 1]} : vector<2x512xf32> to vector<2x128xf32>
    %cst_249 = arith.constant 5.000000e-01 : f32
    %711 = vector.broadcast %cst_249 : f32 to vector<2x128xf32>
    %712 = arith.mulf %711, %710 : vector<2x128xf32>
    %713 = math.tanh %712 : vector<2x128xf32>
    %cst_250 = arith.constant 1.000000e+00 : f32
    %714 = vector.broadcast %cst_250 : f32 to vector<2x128xf32>
    %715 = arith.addf %713, %714 : vector<2x128xf32>
    %cst_251 = arith.constant 5.000000e-01 : f32
    %716 = vector.broadcast %cst_251 : f32 to vector<2x128xf32>
    %717 = arith.mulf %716, %715 : vector<2x128xf32>
    %718 = arith.mulf %707, %685 : vector<2x128xf32>
    %719 = arith.mulf %699, %709 : vector<2x128xf32>
    %720 = arith.addf %718, %719 : vector<2x128xf32>
    %721 = math.tanh %720 : vector<2x128xf32>
    %722 = arith.mulf %717, %721 : vector<2x128xf32>
    %c6_252 = arith.constant 6 : index
    %c0_253 = arith.constant 0 : index
    %723 = vector.load %arg15[%c6_252, %c0_253] : memref<16x128xf32, #tpu.memory_space<vmem>>, vector<2x128xf32>
    tpu.vector_store %arg15[%c6_252, %c0_253], %722 {strides = array<i32>} : memref<16x128xf32, #tpu.memory_space<vmem>>, vector<2x128xf32>,
    %724 = vector.extract_strided_slice %583 {offsets = [8, 0], sizes = [2, 512], strides = [1, 1]} : vector<16x512xf32> to vector<2x512xf32>
    %cst_254 = arith.constant dense<0.000000e+00> : vector<2x512xf32>
    %725 = tpu.matmul %722, %8, %cst_254 {dimension_numbers = #tpu.dot_dimension_numbers<[1], [0], [0], [1], [0, 0, 1, 1], [], []>} : vector<2x128xf32>, vector<128x512xf32>, vector<2x512xf32> -> vector<2x512xf32>
    %726 = arith.addf %724, %725 : vector<2x512xf32>
    %727 = vector.extract_strided_slice %726 {offsets = [0, 0], sizes = [2, 128], strides = [1, 1]} : vector<2x512xf32> to vector<2x128xf32>
    %cst_255 = arith.constant 5.000000e-01 : f32
    %728 = vector.broadcast %cst_255 : f32 to vector<2x128xf32>
    %729 = arith.mulf %728, %727 : vector<2x128xf32>
    %730 = math.tanh %729 : vector<2x128xf32>
    %cst_256 = arith.constant 1.000000e+00 : f32
    %731 = vector.broadcast %cst_256 : f32 to vector<2x128xf32>
    %732 = arith.addf %730, %731 : vector<2x128xf32>
    %cst_257 = arith.constant 5.000000e-01 : f32
    %733 = vector.broadcast %cst_257 : f32 to vector<2x128xf32>
    %734 = arith.mulf %733, %732 : vector<2x128xf32>
    %735 = vector.extract_strided_slice %726 {offsets = [0, 128], sizes = [2, 128], strides = [1, 1]} : vector<2x512xf32> to vector<2x128xf32>
    %cst_258 = arith.constant 5.000000e-01 : f32
    %736 = vector.broadcast %cst_258 : f32 to vector<2x128xf32>
    %737 = arith.mulf %736, %735 : vector<2x128xf32>
    %738 = math.tanh %737 : vector<2x128xf32>
    %cst_259 = arith.constant 1.000000e+00 : f32
    %739 = vector.broadcast %cst_259 : f32 to vector<2x128xf32>
    %740 = arith.addf %738, %739 : vector<2x128xf32>
    %cst_260 = arith.constant 5.000000e-01 : f32
    %741 = vector.broadcast %cst_260 : f32 to vector<2x128xf32>
    %742 = arith.mulf %741, %740 : vector<2x128xf32>
    %743 = vector.extract_strided_slice %726 {offsets = [0, 256], sizes = [2, 128], strides = [1, 1]} : vector<2x512xf32> to vector<2x128xf32>
    %744 = math.tanh %743 : vector<2x128xf32>
    %745 = vector.extract_strided_slice %726 {offsets = [0, 384], sizes = [2, 128], strides = [1, 1]} : vector<2x512xf32> to vector<2x128xf32>
    %cst_261 = arith.constant 5.000000e-01 : f32
    %746 = vector.broadcast %cst_261 : f32 to vector<2x128xf32>
    %747 = arith.mulf %746, %745 : vector<2x128xf32>
    %748 = math.tanh %747 : vector<2x128xf32>
    %cst_262 = arith.constant 1.000000e+00 : f32
    %749 = vector.broadcast %cst_262 : f32 to vector<2x128xf32>
    %750 = arith.addf %748, %749 : vector<2x128xf32>
    %cst_263 = arith.constant 5.000000e-01 : f32
    %751 = vector.broadcast %cst_263 : f32 to vector<2x128xf32>
    %752 = arith.mulf %751, %750 : vector<2x128xf32>
    %753 = arith.mulf %742, %720 : vector<2x128xf32>
    %754 = arith.mulf %734, %744 : vector<2x128xf32>
    %755 = arith.addf %753, %754 : vector<2x128xf32>
    %756 = math.tanh %755 : vector<2x128xf32>
    %757 = arith.mulf %752, %756 : vector<2x128xf32>
    %c8_264 = arith.constant 8 : index
    %c0_265 = arith.constant 0 : index
    %758 = vector.load %arg15[%c8_264, %c0_265] : memref<16x128xf32, #tpu.memory_space<vmem>>, vector<2x128xf32>
    tpu.vector_store %arg15[%c8_264, %c0_265], %757 {strides = array<i32>} : memref<16x128xf32, #tpu.memory_space<vmem>>, vector<2x128xf32>,
    %759 = vector.extract_strided_slice %583 {offsets = [10, 0], sizes = [2, 512], strides = [1, 1]} : vector<16x512xf32> to vector<2x512xf32>
    %cst_266 = arith.constant dense<0.000000e+00> : vector<2x512xf32>
    %760 = tpu.matmul %757, %8, %cst_266 {dimension_numbers = #tpu.dot_dimension_numbers<[1], [0], [0], [1], [0, 0, 1, 1], [], []>} : vector<2x128xf32>, vector<128x512xf32>, vector<2x512xf32> -> vector<2x512xf32>
    %761 = arith.addf %759, %760 : vector<2x512xf32>
    %762 = vector.extract_strided_slice %761 {offsets = [0, 0], sizes = [2, 128], strides = [1, 1]} : vector<2x512xf32> to vector<2x128xf32>
    %cst_267 = arith.constant 5.000000e-01 : f32
    %763 = vector.broadcast %cst_267 : f32 to vector<2x128xf32>
    %764 = arith.mulf %763, %762 : vector<2x128xf32>
    %765 = math.tanh %764 : vector<2x128xf32>
    %cst_268 = arith.constant 1.000000e+00 : f32
    %766 = vector.broadcast %cst_268 : f32 to vector<2x128xf32>
    %767 = arith.addf %765, %766 : vector<2x128xf32>
    %cst_269 = arith.constant 5.000000e-01 : f32
    %768 = vector.broadcast %cst_269 : f32 to vector<2x128xf32>
    %769 = arith.mulf %768, %767 : vector<2x128xf32>
    %770 = vector.extract_strided_slice %761 {offsets = [0, 128], sizes = [2, 128], strides = [1, 1]} : vector<2x512xf32> to vector<2x128xf32>
    %cst_270 = arith.constant 5.000000e-01 : f32
    %771 = vector.broadcast %cst_270 : f32 to vector<2x128xf32>
    %772 = arith.mulf %771, %770 : vector<2x128xf32>
    %773 = math.tanh %772 : vector<2x128xf32>
    %cst_271 = arith.constant 1.000000e+00 : f32
    %774 = vector.broadcast %cst_271 : f32 to vector<2x128xf32>
    %775 = arith.addf %773, %774 : vector<2x128xf32>
    %cst_272 = arith.constant 5.000000e-01 : f32
    %776 = vector.broadcast %cst_272 : f32 to vector<2x128xf32>
    %777 = arith.mulf %776, %775 : vector<2x128xf32>
    %778 = vector.extract_strided_slice %761 {offsets = [0, 256], sizes = [2, 128], strides = [1, 1]} : vector<2x512xf32> to vector<2x128xf32>
    %779 = math.tanh %778 : vector<2x128xf32>
    %780 = vector.extract_strided_slice %761 {offsets = [0, 384], sizes = [2, 128], strides = [1, 1]} : vector<2x512xf32> to vector<2x128xf32>
    %cst_273 = arith.constant 5.000000e-01 : f32
    %781 = vector.broadcast %cst_273 : f32 to vector<2x128xf32>
    %782 = arith.mulf %781, %780 : vector<2x128xf32>
    %783 = math.tanh %782 : vector<2x128xf32>
    %cst_274 = arith.constant 1.000000e+00 : f32
    %784 = vector.broadcast %cst_274 : f32 to vector<2x128xf32>
    %785 = arith.addf %783, %784 : vector<2x128xf32>
    %cst_275 = arith.constant 5.000000e-01 : f32
    %786 = vector.broadcast %cst_275 : f32 to vector<2x128xf32>
    %787 = arith.mulf %786, %785 : vector<2x128xf32>
    %788 = arith.mulf %777, %755 : vector<2x128xf32>
    %789 = arith.mulf %769, %779 : vector<2x128xf32>
    %790 = arith.addf %788, %789 : vector<2x128xf32>
    %791 = math.tanh %790 : vector<2x128xf32>
    %792 = arith.mulf %787, %791 : vector<2x128xf32>
    %c10_276 = arith.constant 10 : index
    %c0_277 = arith.constant 0 : index
    %793 = vector.load %arg15[%c10_276, %c0_277] : memref<16x128xf32, #tpu.memory_space<vmem>>, vector<2x128xf32>
    tpu.vector_store %arg15[%c10_276, %c0_277], %792 {strides = array<i32>} : memref<16x128xf32, #tpu.memory_space<vmem>>, vector<2x128xf32>,
    %794 = vector.extract_strided_slice %583 {offsets = [12, 0], sizes = [2, 512], strides = [1, 1]} : vector<16x512xf32> to vector<2x512xf32>
    %cst_278 = arith.constant dense<0.000000e+00> : vector<2x512xf32>
    %795 = tpu.matmul %792, %8, %cst_278 {dimension_numbers = #tpu.dot_dimension_numbers<[1], [0], [0], [1], [0, 0, 1, 1], [], []>} : vector<2x128xf32>, vector<128x512xf32>, vector<2x512xf32> -> vector<2x512xf32>
    %796 = arith.addf %794, %795 : vector<2x512xf32>
    %797 = vector.extract_strided_slice %796 {offsets = [0, 0], sizes = [2, 128], strides = [1, 1]} : vector<2x512xf32> to vector<2x128xf32>
    %cst_279 = arith.constant 5.000000e-01 : f32
    %798 = vector.broadcast %cst_279 : f32 to vector<2x128xf32>
    %799 = arith.mulf %798, %797 : vector<2x128xf32>
    %800 = math.tanh %799 : vector<2x128xf32>
    %cst_280 = arith.constant 1.000000e+00 : f32
    %801 = vector.broadcast %cst_280 : f32 to vector<2x128xf32>
    %802 = arith.addf %800, %801 : vector<2x128xf32>
    %cst_281 = arith.constant 5.000000e-01 : f32
    %803 = vector.broadcast %cst_281 : f32 to vector<2x128xf32>
    %804 = arith.mulf %803, %802 : vector<2x128xf32>
    %805 = vector.extract_strided_slice %796 {offsets = [0, 128], sizes = [2, 128], strides = [1, 1]} : vector<2x512xf32> to vector<2x128xf32>
    %cst_282 = arith.constant 5.000000e-01 : f32
    %806 = vector.broadcast %cst_282 : f32 to vector<2x128xf32>
    %807 = arith.mulf %806, %805 : vector<2x128xf32>
    %808 = math.tanh %807 : vector<2x128xf32>
    %cst_283 = arith.constant 1.000000e+00 : f32
    %809 = vector.broadcast %cst_283 : f32 to vector<2x128xf32>
    %810 = arith.addf %808, %809 : vector<2x128xf32>
    %cst_284 = arith.constant 5.000000e-01 : f32
    %811 = vector.broadcast %cst_284 : f32 to vector<2x128xf32>
    %812 = arith.mulf %811, %810 : vector<2x128xf32>
    %813 = vector.extract_strided_slice %796 {offsets = [0, 256], sizes = [2, 128], strides = [1, 1]} : vector<2x512xf32> to vector<2x128xf32>
    %814 = math.tanh %813 : vector<2x128xf32>
    %815 = vector.extract_strided_slice %796 {offsets = [0, 384], sizes = [2, 128], strides = [1, 1]} : vector<2x512xf32> to vector<2x128xf32>
    %cst_285 = arith.constant 5.000000e-01 : f32
    %816 = vector.broadcast %cst_285 : f32 to vector<2x128xf32>
    %817 = arith.mulf %816, %815 : vector<2x128xf32>
    %818 = math.tanh %817 : vector<2x128xf32>
    %cst_286 = arith.constant 1.000000e+00 : f32
    %819 = vector.broadcast %cst_286 : f32 to vector<2x128xf32>
    %820 = arith.addf %818, %819 : vector<2x128xf32>
    %cst_287 = arith.constant 5.000000e-01 : f32
    %821 = vector.broadcast %cst_287 : f32 to vector<2x128xf32>
    %822 = arith.mulf %821, %820 : vector<2x128xf32>
    %823 = arith.mulf %812, %790 : vector<2x128xf32>
    %824 = arith.mulf %804, %814 : vector<2x128xf32>
    %825 = arith.addf %823, %824 : vector<2x128xf32>
    %826 = math.tanh %825 : vector<2x128xf32>
    %827 = arith.mulf %822, %826 : vector<2x128xf32>
    %c12_288 = arith.constant 12 : index
    %c0_289 = arith.constant 0 : index
    %828 = vector.load %arg15[%c12_288, %c0_289] : memref<16x128xf32, #tpu.memory_space<vmem>>, vector<2x128xf32>
    tpu.vector_store %arg15[%c12_288, %c0_289], %827 {strides = array<i32>} : memref<16x128xf32, #tpu.memory_space<vmem>>, vector<2x128xf32>,
    %829 = vector.extract_strided_slice %583 {offsets = [14, 0], sizes = [2, 512], strides = [1, 1]} : vector<16x512xf32> to vector<2x512xf32>
    %cst_290 = arith.constant dense<0.000000e+00> : vector<2x512xf32>
    %830 = tpu.matmul %827, %8, %cst_290 {dimension_numbers = #tpu.dot_dimension_numbers<[1], [0], [0], [1], [0, 0, 1, 1], [], []>} : vector<2x128xf32>, vector<128x512xf32>, vector<2x512xf32> -> vector<2x512xf32>
    %831 = arith.addf %829, %830 : vector<2x512xf32>
    %832 = vector.extract_strided_slice %831 {offsets = [0, 0], sizes = [2, 128], strides = [1, 1]} : vector<2x512xf32> to vector<2x128xf32>
    %cst_291 = arith.constant 5.000000e-01 : f32
    %833 = vector.broadcast %cst_291 : f32 to vector<2x128xf32>
    %834 = arith.mulf %833, %832 : vector<2x128xf32>
    %835 = math.tanh %834 : vector<2x128xf32>
    %cst_292 = arith.constant 1.000000e+00 : f32
    %836 = vector.broadcast %cst_292 : f32 to vector<2x128xf32>
    %837 = arith.addf %835, %836 : vector<2x128xf32>
    %cst_293 = arith.constant 5.000000e-01 : f32
    %838 = vector.broadcast %cst_293 : f32 to vector<2x128xf32>
    %839 = arith.mulf %838, %837 : vector<2x128xf32>
    %840 = vector.extract_strided_slice %831 {offsets = [0, 128], sizes = [2, 128], strides = [1, 1]} : vector<2x512xf32> to vector<2x128xf32>
    %cst_294 = arith.constant 5.000000e-01 : f32
    %841 = vector.broadcast %cst_294 : f32 to vector<2x128xf32>
    %842 = arith.mulf %841, %840 : vector<2x128xf32>
    %843 = math.tanh %842 : vector<2x128xf32>
    %cst_295 = arith.constant 1.000000e+00 : f32
    %844 = vector.broadcast %cst_295 : f32 to vector<2x128xf32>
    %845 = arith.addf %843, %844 : vector<2x128xf32>
    %cst_296 = arith.constant 5.000000e-01 : f32
    %846 = vector.broadcast %cst_296 : f32 to vector<2x128xf32>
    %847 = arith.mulf %846, %845 : vector<2x128xf32>
    %848 = vector.extract_strided_slice %831 {offsets = [0, 256], sizes = [2, 128], strides = [1, 1]} : vector<2x512xf32> to vector<2x128xf32>
    %849 = math.tanh %848 : vector<2x128xf32>
    %850 = vector.extract_strided_slice %831 {offsets = [0, 384], sizes = [2, 128], strides = [1, 1]} : vector<2x512xf32> to vector<2x128xf32>
    %cst_297 = arith.constant 5.000000e-01 : f32
    %851 = vector.broadcast %cst_297 : f32 to vector<2x128xf32>
    %852 = arith.mulf %851, %850 : vector<2x128xf32>
    %853 = math.tanh %852 : vector<2x128xf32>
    %cst_298 = arith.constant 1.000000e+00 : f32
    %854 = vector.broadcast %cst_298 : f32 to vector<2x128xf32>
    %855 = arith.addf %853, %854 : vector<2x128xf32>
    %cst_299 = arith.constant 5.000000e-01 : f32
    %856 = vector.broadcast %cst_299 : f32 to vector<2x128xf32>
    %857 = arith.mulf %856, %855 : vector<2x128xf32>
    %858 = arith.mulf %847, %825 : vector<2x128xf32>
    %859 = arith.mulf %839, %849 : vector<2x128xf32>
    %860 = arith.addf %858, %859 : vector<2x128xf32>
    %861 = math.tanh %860 : vector<2x128xf32>
    %862 = arith.mulf %857, %861 : vector<2x128xf32>
    %c14_300 = arith.constant 14 : index
    %c0_301 = arith.constant 0 : index
    %863 = vector.load %arg15[%c14_300, %c0_301] : memref<16x128xf32, #tpu.memory_space<vmem>>, vector<2x128xf32>
    tpu.vector_store %arg15[%c14_300, %c0_301], %862 {strides = array<i32>} : memref<16x128xf32, #tpu.memory_space<vmem>>, vector<2x128xf32>,
    %c0_302 = arith.constant 0 : index
    %c0_303 = arith.constant 0 : index
    %864 = vector.load %arg15[%c0_302, %c0_303] : memref<16x128xf32, #tpu.memory_space<vmem>>, vector<16x128xf32>
    %cst_304 = arith.constant dense<0.000000e+00> : vector<16x512xf32>
    %865 = tpu.matmul %864, %10, %cst_304 {dimension_numbers = #tpu.dot_dimension_numbers<[1], [0], [0], [1], [0, 0, 1, 1], [], []>} : vector<16x128xf32>, vector<128x512xf32>, vector<16x512xf32> -> vector<16x512xf32>
    %866 = vector.broadcast %12 : vector<1x512xf32> to vector<16x512xf32>
    %867 = arith.addf %865, %866 : vector<16x512xf32>
    %868 = vector.extract_strided_slice %867 {offsets = [0, 0], sizes = [2, 512], strides = [1, 1]} : vector<16x512xf32> to vector<2x512xf32>
    %cst_305 = arith.constant dense<0.000000e+00> : vector<2x512xf32>
    %869 = tpu.matmul %581, %11, %cst_305 {dimension_numbers = #tpu.dot_dimension_numbers<[1], [0], [0], [1], [0, 0, 1, 1], [], []>} : vector<2x128xf32>, vector<128x512xf32>, vector<2x512xf32> -> vector<2x512xf32>
    %870 = arith.addf %868, %869 : vector<2x512xf32>
    %871 = vector.extract_strided_slice %870 {offsets = [0, 0], sizes = [2, 128], strides = [1, 1]} : vector<2x512xf32> to vector<2x128xf32>
    %cst_306 = arith.constant 5.000000e-01 : f32
    %872 = vector.broadcast %cst_306 : f32 to vector<2x128xf32>
    %873 = arith.mulf %872, %871 : vector<2x128xf32>
    %874 = math.tanh %873 : vector<2x128xf32>
    %cst_307 = arith.constant 1.000000e+00 : f32
    %875 = vector.broadcast %cst_307 : f32 to vector<2x128xf32>
    %876 = arith.addf %874, %875 : vector<2x128xf32>
    %cst_308 = arith.constant 5.000000e-01 : f32
    %877 = vector.broadcast %cst_308 : f32 to vector<2x128xf32>
    %878 = arith.mulf %877, %876 : vector<2x128xf32>
    %879 = vector.extract_strided_slice %870 {offsets = [0, 128], sizes = [2, 128], strides = [1, 1]} : vector<2x512xf32> to vector<2x128xf32>
    %cst_309 = arith.constant 5.000000e-01 : f32
    %880 = vector.broadcast %cst_309 : f32 to vector<2x128xf32>
    %881 = arith.mulf %880, %879 : vector<2x128xf32>
    %882 = math.tanh %881 : vector<2x128xf32>
    %cst_310 = arith.constant 1.000000e+00 : f32
    %883 = vector.broadcast %cst_310 : f32 to vector<2x128xf32>
    %884 = arith.addf %882, %883 : vector<2x128xf32>
    %cst_311 = arith.constant 5.000000e-01 : f32
    %885 = vector.broadcast %cst_311 : f32 to vector<2x128xf32>
    %886 = arith.mulf %885, %884 : vector<2x128xf32>
    %887 = vector.extract_strided_slice %870 {offsets = [0, 256], sizes = [2, 128], strides = [1, 1]} : vector<2x512xf32> to vector<2x128xf32>
    %888 = math.tanh %887 : vector<2x128xf32>
    %889 = vector.extract_strided_slice %870 {offsets = [0, 384], sizes = [2, 128], strides = [1, 1]} : vector<2x512xf32> to vector<2x128xf32>
    %cst_312 = arith.constant 5.000000e-01 : f32
    %890 = vector.broadcast %cst_312 : f32 to vector<2x128xf32>
    %891 = arith.mulf %890, %889 : vector<2x128xf32>
    %892 = math.tanh %891 : vector<2x128xf32>
    %cst_313 = arith.constant 1.000000e+00 : f32
    %893 = vector.broadcast %cst_313 : f32 to vector<2x128xf32>
    %894 = arith.addf %892, %893 : vector<2x128xf32>
    %cst_314 = arith.constant 5.000000e-01 : f32
    %895 = vector.broadcast %cst_314 : f32 to vector<2x128xf32>
    %896 = arith.mulf %895, %894 : vector<2x128xf32>
    %897 = arith.mulf %886, %579 : vector<2x128xf32>
    %898 = arith.mulf %878, %888 : vector<2x128xf32>
    %899 = arith.addf %897, %898 : vector<2x128xf32>
    %900 = math.tanh %899 : vector<2x128xf32>
    %901 = arith.mulf %896, %900 : vector<2x128xf32>
    %c16 = arith.constant 16 : index
    %c0_315 = arith.constant 0 : index
    %902 = vector.load %arg16[%c16, %c0_315] : memref<32x128xf32, #tpu.memory_space<vmem>>, vector<2x128xf32>
    tpu.vector_store %arg16[%c16, %c0_315], %901 {strides = array<i32>} : memref<32x128xf32, #tpu.memory_space<vmem>>, vector<2x128xf32>,
    %903 = vector.extract_strided_slice %867 {offsets = [2, 0], sizes = [2, 512], strides = [1, 1]} : vector<16x512xf32> to vector<2x512xf32>
    %cst_316 = arith.constant dense<0.000000e+00> : vector<2x512xf32>
    %904 = tpu.matmul %901, %11, %cst_316 {dimension_numbers = #tpu.dot_dimension_numbers<[1], [0], [0], [1], [0, 0, 1, 1], [], []>} : vector<2x128xf32>, vector<128x512xf32>, vector<2x512xf32> -> vector<2x512xf32>
    %905 = arith.addf %903, %904 : vector<2x512xf32>
    %906 = vector.extract_strided_slice %905 {offsets = [0, 0], sizes = [2, 128], strides = [1, 1]} : vector<2x512xf32> to vector<2x128xf32>
    %cst_317 = arith.constant 5.000000e-01 : f32
    %907 = vector.broadcast %cst_317 : f32 to vector<2x128xf32>
    %908 = arith.mulf %907, %906 : vector<2x128xf32>
    %909 = math.tanh %908 : vector<2x128xf32>
    %cst_318 = arith.constant 1.000000e+00 : f32
    %910 = vector.broadcast %cst_318 : f32 to vector<2x128xf32>
    %911 = arith.addf %909, %910 : vector<2x128xf32>
    %cst_319 = arith.constant 5.000000e-01 : f32
    %912 = vector.broadcast %cst_319 : f32 to vector<2x128xf32>
    %913 = arith.mulf %912, %911 : vector<2x128xf32>
    %914 = vector.extract_strided_slice %905 {offsets = [0, 128], sizes = [2, 128], strides = [1, 1]} : vector<2x512xf32> to vector<2x128xf32>
    %cst_320 = arith.constant 5.000000e-01 : f32
    %915 = vector.broadcast %cst_320 : f32 to vector<2x128xf32>
    %916 = arith.mulf %915, %914 : vector<2x128xf32>
    %917 = math.tanh %916 : vector<2x128xf32>
    %cst_321 = arith.constant 1.000000e+00 : f32
    %918 = vector.broadcast %cst_321 : f32 to vector<2x128xf32>
    %919 = arith.addf %917, %918 : vector<2x128xf32>
    %cst_322 = arith.constant 5.000000e-01 : f32
    %920 = vector.broadcast %cst_322 : f32 to vector<2x128xf32>
    %921 = arith.mulf %920, %919 : vector<2x128xf32>
    %922 = vector.extract_strided_slice %905 {offsets = [0, 256], sizes = [2, 128], strides = [1, 1]} : vector<2x512xf32> to vector<2x128xf32>
    %923 = math.tanh %922 : vector<2x128xf32>
    %924 = vector.extract_strided_slice %905 {offsets = [0, 384], sizes = [2, 128], strides = [1, 1]} : vector<2x512xf32> to vector<2x128xf32>
    %cst_323 = arith.constant 5.000000e-01 : f32
    %925 = vector.broadcast %cst_323 : f32 to vector<2x128xf32>
    %926 = arith.mulf %925, %924 : vector<2x128xf32>
    %927 = math.tanh %926 : vector<2x128xf32>
    %cst_324 = arith.constant 1.000000e+00 : f32
    %928 = vector.broadcast %cst_324 : f32 to vector<2x128xf32>
    %929 = arith.addf %927, %928 : vector<2x128xf32>
    %cst_325 = arith.constant 5.000000e-01 : f32
    %930 = vector.broadcast %cst_325 : f32 to vector<2x128xf32>
    %931 = arith.mulf %930, %929 : vector<2x128xf32>
    %932 = arith.mulf %921, %899 : vector<2x128xf32>
    %933 = arith.mulf %913, %923 : vector<2x128xf32>
    %934 = arith.addf %932, %933 : vector<2x128xf32>
    %935 = math.tanh %934 : vector<2x128xf32>
    %936 = arith.mulf %931, %935 : vector<2x128xf32>
    %c18 = arith.constant 18 : index
    %c0_326 = arith.constant 0 : index
    %937 = vector.load %arg16[%c18, %c0_326] : memref<32x128xf32, #tpu.memory_space<vmem>>, vector<2x128xf32>
    tpu.vector_store %arg16[%c18, %c0_326], %936 {strides = array<i32>} : memref<32x128xf32, #tpu.memory_space<vmem>>, vector<2x128xf32>,
    %938 = vector.extract_strided_slice %867 {offsets = [4, 0], sizes = [2, 512], strides = [1, 1]} : vector<16x512xf32> to vector<2x512xf32>
    %cst_327 = arith.constant dense<0.000000e+00> : vector<2x512xf32>
    %939 = tpu.matmul %936, %11, %cst_327 {dimension_numbers = #tpu.dot_dimension_numbers<[1], [0], [0], [1], [0, 0, 1, 1], [], []>} : vector<2x128xf32>, vector<128x512xf32>, vector<2x512xf32> -> vector<2x512xf32>
    %940 = arith.addf %938, %939 : vector<2x512xf32>
    %941 = vector.extract_strided_slice %940 {offsets = [0, 0], sizes = [2, 128], strides = [1, 1]} : vector<2x512xf32> to vector<2x128xf32>
    %cst_328 = arith.constant 5.000000e-01 : f32
    %942 = vector.broadcast %cst_328 : f32 to vector<2x128xf32>
    %943 = arith.mulf %942, %941 : vector<2x128xf32>
    %944 = math.tanh %943 : vector<2x128xf32>
    %cst_329 = arith.constant 1.000000e+00 : f32
    %945 = vector.broadcast %cst_329 : f32 to vector<2x128xf32>
    %946 = arith.addf %944, %945 : vector<2x128xf32>
    %cst_330 = arith.constant 5.000000e-01 : f32
    %947 = vector.broadcast %cst_330 : f32 to vector<2x128xf32>
    %948 = arith.mulf %947, %946 : vector<2x128xf32>
    %949 = vector.extract_strided_slice %940 {offsets = [0, 128], sizes = [2, 128], strides = [1, 1]} : vector<2x512xf32> to vector<2x128xf32>
    %cst_331 = arith.constant 5.000000e-01 : f32
    %950 = vector.broadcast %cst_331 : f32 to vector<2x128xf32>
    %951 = arith.mulf %950, %949 : vector<2x128xf32>
    %952 = math.tanh %951 : vector<2x128xf32>
    %cst_332 = arith.constant 1.000000e+00 : f32
    %953 = vector.broadcast %cst_332 : f32 to vector<2x128xf32>
    %954 = arith.addf %952, %953 : vector<2x128xf32>
    %cst_333 = arith.constant 5.000000e-01 : f32
    %955 = vector.broadcast %cst_333 : f32 to vector<2x128xf32>
    %956 = arith.mulf %955, %954 : vector<2x128xf32>
    %957 = vector.extract_strided_slice %940 {offsets = [0, 256], sizes = [2, 128], strides = [1, 1]} : vector<2x512xf32> to vector<2x128xf32>
    %958 = math.tanh %957 : vector<2x128xf32>
    %959 = vector.extract_strided_slice %940 {offsets = [0, 384], sizes = [2, 128], strides = [1, 1]} : vector<2x512xf32> to vector<2x128xf32>
    %cst_334 = arith.constant 5.000000e-01 : f32
    %960 = vector.broadcast %cst_334 : f32 to vector<2x128xf32>
    %961 = arith.mulf %960, %959 : vector<2x128xf32>
    %962 = math.tanh %961 : vector<2x128xf32>
    %cst_335 = arith.constant 1.000000e+00 : f32
    %963 = vector.broadcast %cst_335 : f32 to vector<2x128xf32>
    %964 = arith.addf %962, %963 : vector<2x128xf32>
    %cst_336 = arith.constant 5.000000e-01 : f32
    %965 = vector.broadcast %cst_336 : f32 to vector<2x128xf32>
    %966 = arith.mulf %965, %964 : vector<2x128xf32>
    %967 = arith.mulf %956, %934 : vector<2x128xf32>
    %968 = arith.mulf %948, %958 : vector<2x128xf32>
    %969 = arith.addf %967, %968 : vector<2x128xf32>
    %970 = math.tanh %969 : vector<2x128xf32>
    %971 = arith.mulf %966, %970 : vector<2x128xf32>
    %c20 = arith.constant 20 : index
    %c0_337 = arith.constant 0 : index
    %972 = vector.load %arg16[%c20, %c0_337] : memref<32x128xf32, #tpu.memory_space<vmem>>, vector<2x128xf32>
    tpu.vector_store %arg16[%c20, %c0_337], %971 {strides = array<i32>} : memref<32x128xf32, #tpu.memory_space<vmem>>, vector<2x128xf32>,
    %973 = vector.extract_strided_slice %867 {offsets = [6, 0], sizes = [2, 512], strides = [1, 1]} : vector<16x512xf32> to vector<2x512xf32>
    %cst_338 = arith.constant dense<0.000000e+00> : vector<2x512xf32>
    %974 = tpu.matmul %971, %11, %cst_338 {dimension_numbers = #tpu.dot_dimension_numbers<[1], [0], [0], [1], [0, 0, 1, 1], [], []>} : vector<2x128xf32>, vector<128x512xf32>, vector<2x512xf32> -> vector<2x512xf32>
    %975 = arith.addf %973, %974 : vector<2x512xf32>
    %976 = vector.extract_strided_slice %975 {offsets = [0, 0], sizes = [2, 128], strides = [1, 1]} : vector<2x512xf32> to vector<2x128xf32>
    %cst_339 = arith.constant 5.000000e-01 : f32
    %977 = vector.broadcast %cst_339 : f32 to vector<2x128xf32>
    %978 = arith.mulf %977, %976 : vector<2x128xf32>
    %979 = math.tanh %978 : vector<2x128xf32>
    %cst_340 = arith.constant 1.000000e+00 : f32
    %980 = vector.broadcast %cst_340 : f32 to vector<2x128xf32>
    %981 = arith.addf %979, %980 : vector<2x128xf32>
    %cst_341 = arith.constant 5.000000e-01 : f32
    %982 = vector.broadcast %cst_341 : f32 to vector<2x128xf32>
    %983 = arith.mulf %982, %981 : vector<2x128xf32>
    %984 = vector.extract_strided_slice %975 {offsets = [0, 128], sizes = [2, 128], strides = [1, 1]} : vector<2x512xf32> to vector<2x128xf32>
    %cst_342 = arith.constant 5.000000e-01 : f32
    %985 = vector.broadcast %cst_342 : f32 to vector<2x128xf32>
    %986 = arith.mulf %985, %984 : vector<2x128xf32>
    %987 = math.tanh %986 : vector<2x128xf32>
    %cst_343 = arith.constant 1.000000e+00 : f32
    %988 = vector.broadcast %cst_343 : f32 to vector<2x128xf32>
    %989 = arith.addf %987, %988 : vector<2x128xf32>
    %cst_344 = arith.constant 5.000000e-01 : f32
    %990 = vector.broadcast %cst_344 : f32 to vector<2x128xf32>
    %991 = arith.mulf %990, %989 : vector<2x128xf32>
    %992 = vector.extract_strided_slice %975 {offsets = [0, 256], sizes = [2, 128], strides = [1, 1]} : vector<2x512xf32> to vector<2x128xf32>
    %993 = math.tanh %992 : vector<2x128xf32>
    %994 = vector.extract_strided_slice %975 {offsets = [0, 384], sizes = [2, 128], strides = [1, 1]} : vector<2x512xf32> to vector<2x128xf32>
    %cst_345 = arith.constant 5.000000e-01 : f32
    %995 = vector.broadcast %cst_345 : f32 to vector<2x128xf32>
    %996 = arith.mulf %995, %994 : vector<2x128xf32>
    %997 = math.tanh %996 : vector<2x128xf32>
    %cst_346 = arith.constant 1.000000e+00 : f32
    %998 = vector.broadcast %cst_346 : f32 to vector<2x128xf32>
    %999 = arith.addf %997, %998 : vector<2x128xf32>
    %cst_347 = arith.constant 5.000000e-01 : f32
    %1000 = vector.broadcast %cst_347 : f32 to vector<2x128xf32>
    %1001 = arith.mulf %1000, %999 : vector<2x128xf32>
    %1002 = arith.mulf %991, %969 : vector<2x128xf32>
    %1003 = arith.mulf %983, %993 : vector<2x128xf32>
    %1004 = arith.addf %1002, %1003 : vector<2x128xf32>
    %1005 = math.tanh %1004 : vector<2x128xf32>
    %1006 = arith.mulf %1001, %1005 : vector<2x128xf32>
    %c22 = arith.constant 22 : index
    %c0_348 = arith.constant 0 : index
    %1007 = vector.load %arg16[%c22, %c0_348] : memref<32x128xf32, #tpu.memory_space<vmem>>, vector<2x128xf32>
    tpu.vector_store %arg16[%c22, %c0_348], %1006 {strides = array<i32>} : memref<32x128xf32, #tpu.memory_space<vmem>>, vector<2x128xf32>,
    %1008 = vector.extract_strided_slice %867 {offsets = [8, 0], sizes = [2, 512], strides = [1, 1]} : vector<16x512xf32> to vector<2x512xf32>
    %cst_349 = arith.constant dense<0.000000e+00> : vector<2x512xf32>
    %1009 = tpu.matmul %1006, %11, %cst_349 {dimension_numbers = #tpu.dot_dimension_numbers<[1], [0], [0], [1], [0, 0, 1, 1], [], []>} : vector<2x128xf32>, vector<128x512xf32>, vector<2x512xf32> -> vector<2x512xf32>
    %1010 = arith.addf %1008, %1009 : vector<2x512xf32>
    %1011 = vector.extract_strided_slice %1010 {offsets = [0, 0], sizes = [2, 128], strides = [1, 1]} : vector<2x512xf32> to vector<2x128xf32>
    %cst_350 = arith.constant 5.000000e-01 : f32
    %1012 = vector.broadcast %cst_350 : f32 to vector<2x128xf32>
    %1013 = arith.mulf %1012, %1011 : vector<2x128xf32>
    %1014 = math.tanh %1013 : vector<2x128xf32>
    %cst_351 = arith.constant 1.000000e+00 : f32
    %1015 = vector.broadcast %cst_351 : f32 to vector<2x128xf32>
    %1016 = arith.addf %1014, %1015 : vector<2x128xf32>
    %cst_352 = arith.constant 5.000000e-01 : f32
    %1017 = vector.broadcast %cst_352 : f32 to vector<2x128xf32>
    %1018 = arith.mulf %1017, %1016 : vector<2x128xf32>
    %1019 = vector.extract_strided_slice %1010 {offsets = [0, 128], sizes = [2, 128], strides = [1, 1]} : vector<2x512xf32> to vector<2x128xf32>
    %cst_353 = arith.constant 5.000000e-01 : f32
    %1020 = vector.broadcast %cst_353 : f32 to vector<2x128xf32>
    %1021 = arith.mulf %1020, %1019 : vector<2x128xf32>
    %1022 = math.tanh %1021 : vector<2x128xf32>
    %cst_354 = arith.constant 1.000000e+00 : f32
    %1023 = vector.broadcast %cst_354 : f32 to vector<2x128xf32>
    %1024 = arith.addf %1022, %1023 : vector<2x128xf32>
    %cst_355 = arith.constant 5.000000e-01 : f32
    %1025 = vector.broadcast %cst_355 : f32 to vector<2x128xf32>
    %1026 = arith.mulf %1025, %1024 : vector<2x128xf32>
    %1027 = vector.extract_strided_slice %1010 {offsets = [0, 256], sizes = [2, 128], strides = [1, 1]} : vector<2x512xf32> to vector<2x128xf32>
    %1028 = math.tanh %1027 : vector<2x128xf32>
    %1029 = vector.extract_strided_slice %1010 {offsets = [0, 384], sizes = [2, 128], strides = [1, 1]} : vector<2x512xf32> to vector<2x128xf32>
    %cst_356 = arith.constant 5.000000e-01 : f32
    %1030 = vector.broadcast %cst_356 : f32 to vector<2x128xf32>
    %1031 = arith.mulf %1030, %1029 : vector<2x128xf32>
    %1032 = math.tanh %1031 : vector<2x128xf32>
    %cst_357 = arith.constant 1.000000e+00 : f32
    %1033 = vector.broadcast %cst_357 : f32 to vector<2x128xf32>
    %1034 = arith.addf %1032, %1033 : vector<2x128xf32>
    %cst_358 = arith.constant 5.000000e-01 : f32
    %1035 = vector.broadcast %cst_358 : f32 to vector<2x128xf32>
    %1036 = arith.mulf %1035, %1034 : vector<2x128xf32>
    %1037 = arith.mulf %1026, %1004 : vector<2x128xf32>
    %1038 = arith.mulf %1018, %1028 : vector<2x128xf32>
    %1039 = arith.addf %1037, %1038 : vector<2x128xf32>
    %1040 = math.tanh %1039 : vector<2x128xf32>
    %1041 = arith.mulf %1036, %1040 : vector<2x128xf32>
    %c24 = arith.constant 24 : index
    %c0_359 = arith.constant 0 : index
    %1042 = vector.load %arg16[%c24, %c0_359] : memref<32x128xf32, #tpu.memory_space<vmem>>, vector<2x128xf32>
    tpu.vector_store %arg16[%c24, %c0_359], %1041 {strides = array<i32>} : memref<32x128xf32, #tpu.memory_space<vmem>>, vector<2x128xf32>,
    %1043 = vector.extract_strided_slice %867 {offsets = [10, 0], sizes = [2, 512], strides = [1, 1]} : vector<16x512xf32> to vector<2x512xf32>
    %cst_360 = arith.constant dense<0.000000e+00> : vector<2x512xf32>
    %1044 = tpu.matmul %1041, %11, %cst_360 {dimension_numbers = #tpu.dot_dimension_numbers<[1], [0], [0], [1], [0, 0, 1, 1], [], []>} : vector<2x128xf32>, vector<128x512xf32>, vector<2x512xf32> -> vector<2x512xf32>
    %1045 = arith.addf %1043, %1044 : vector<2x512xf32>
    %1046 = vector.extract_strided_slice %1045 {offsets = [0, 0], sizes = [2, 128], strides = [1, 1]} : vector<2x512xf32> to vector<2x128xf32>
    %cst_361 = arith.constant 5.000000e-01 : f32
    %1047 = vector.broadcast %cst_361 : f32 to vector<2x128xf32>
    %1048 = arith.mulf %1047, %1046 : vector<2x128xf32>
    %1049 = math.tanh %1048 : vector<2x128xf32>
    %cst_362 = arith.constant 1.000000e+00 : f32
    %1050 = vector.broadcast %cst_362 : f32 to vector<2x128xf32>
    %1051 = arith.addf %1049, %1050 : vector<2x128xf32>
    %cst_363 = arith.constant 5.000000e-01 : f32
    %1052 = vector.broadcast %cst_363 : f32 to vector<2x128xf32>
    %1053 = arith.mulf %1052, %1051 : vector<2x128xf32>
    %1054 = vector.extract_strided_slice %1045 {offsets = [0, 128], sizes = [2, 128], strides = [1, 1]} : vector<2x512xf32> to vector<2x128xf32>
    %cst_364 = arith.constant 5.000000e-01 : f32
    %1055 = vector.broadcast %cst_364 : f32 to vector<2x128xf32>
    %1056 = arith.mulf %1055, %1054 : vector<2x128xf32>
    %1057 = math.tanh %1056 : vector<2x128xf32>
    %cst_365 = arith.constant 1.000000e+00 : f32
    %1058 = vector.broadcast %cst_365 : f32 to vector<2x128xf32>
    %1059 = arith.addf %1057, %1058 : vector<2x128xf32>
    %cst_366 = arith.constant 5.000000e-01 : f32
    %1060 = vector.broadcast %cst_366 : f32 to vector<2x128xf32>
    %1061 = arith.mulf %1060, %1059 : vector<2x128xf32>
    %1062 = vector.extract_strided_slice %1045 {offsets = [0, 256], sizes = [2, 128], strides = [1, 1]} : vector<2x512xf32> to vector<2x128xf32>
    %1063 = math.tanh %1062 : vector<2x128xf32>
    %1064 = vector.extract_strided_slice %1045 {offsets = [0, 384], sizes = [2, 128], strides = [1, 1]} : vector<2x512xf32> to vector<2x128xf32>
    %cst_367 = arith.constant 5.000000e-01 : f32
    %1065 = vector.broadcast %cst_367 : f32 to vector<2x128xf32>
    %1066 = arith.mulf %1065, %1064 : vector<2x128xf32>
    %1067 = math.tanh %1066 : vector<2x128xf32>
    %cst_368 = arith.constant 1.000000e+00 : f32
    %1068 = vector.broadcast %cst_368 : f32 to vector<2x128xf32>
    %1069 = arith.addf %1067, %1068 : vector<2x128xf32>
    %cst_369 = arith.constant 5.000000e-01 : f32
    %1070 = vector.broadcast %cst_369 : f32 to vector<2x128xf32>
    %1071 = arith.mulf %1070, %1069 : vector<2x128xf32>
    %1072 = arith.mulf %1061, %1039 : vector<2x128xf32>
    %1073 = arith.mulf %1053, %1063 : vector<2x128xf32>
    %1074 = arith.addf %1072, %1073 : vector<2x128xf32>
    %1075 = math.tanh %1074 : vector<2x128xf32>
    %1076 = arith.mulf %1071, %1075 : vector<2x128xf32>
    %c26 = arith.constant 26 : index
    %c0_370 = arith.constant 0 : index
    %1077 = vector.load %arg16[%c26, %c0_370] : memref<32x128xf32, #tpu.memory_space<vmem>>, vector<2x128xf32>
    tpu.vector_store %arg16[%c26, %c0_370], %1076 {strides = array<i32>} : memref<32x128xf32, #tpu.memory_space<vmem>>, vector<2x128xf32>,
    %1078 = vector.extract_strided_slice %867 {offsets = [12, 0], sizes = [2, 512], strides = [1, 1]} : vector<16x512xf32> to vector<2x512xf32>
    %cst_371 = arith.constant dense<0.000000e+00> : vector<2x512xf32>
    %1079 = tpu.matmul %1076, %11, %cst_371 {dimension_numbers = #tpu.dot_dimension_numbers<[1], [0], [0], [1], [0, 0, 1, 1], [], []>} : vector<2x128xf32>, vector<128x512xf32>, vector<2x512xf32> -> vector<2x512xf32>
    %1080 = arith.addf %1078, %1079 : vector<2x512xf32>
    %1081 = vector.extract_strided_slice %1080 {offsets = [0, 0], sizes = [2, 128], strides = [1, 1]} : vector<2x512xf32> to vector<2x128xf32>
    %cst_372 = arith.constant 5.000000e-01 : f32
    %1082 = vector.broadcast %cst_372 : f32 to vector<2x128xf32>
    %1083 = arith.mulf %1082, %1081 : vector<2x128xf32>
    %1084 = math.tanh %1083 : vector<2x128xf32>
    %cst_373 = arith.constant 1.000000e+00 : f32
    %1085 = vector.broadcast %cst_373 : f32 to vector<2x128xf32>
    %1086 = arith.addf %1084, %1085 : vector<2x128xf32>
    %cst_374 = arith.constant 5.000000e-01 : f32
    %1087 = vector.broadcast %cst_374 : f32 to vector<2x128xf32>
    %1088 = arith.mulf %1087, %1086 : vector<2x128xf32>
    %1089 = vector.extract_strided_slice %1080 {offsets = [0, 128], sizes = [2, 128], strides = [1, 1]} : vector<2x512xf32> to vector<2x128xf32>
    %cst_375 = arith.constant 5.000000e-01 : f32
    %1090 = vector.broadcast %cst_375 : f32 to vector<2x128xf32>
    %1091 = arith.mulf %1090, %1089 : vector<2x128xf32>
    %1092 = math.tanh %1091 : vector<2x128xf32>
    %cst_376 = arith.constant 1.000000e+00 : f32
    %1093 = vector.broadcast %cst_376 : f32 to vector<2x128xf32>
    %1094 = arith.addf %1092, %1093 : vector<2x128xf32>
    %cst_377 = arith.constant 5.000000e-01 : f32
    %1095 = vector.broadcast %cst_377 : f32 to vector<2x128xf32>
    %1096 = arith.mulf %1095, %1094 : vector<2x128xf32>
    %1097 = vector.extract_strided_slice %1080 {offsets = [0, 256], sizes = [2, 128], strides = [1, 1]} : vector<2x512xf32> to vector<2x128xf32>
    %1098 = math.tanh %1097 : vector<2x128xf32>
    %1099 = vector.extract_strided_slice %1080 {offsets = [0, 384], sizes = [2, 128], strides = [1, 1]} : vector<2x512xf32> to vector<2x128xf32>
    %cst_378 = arith.constant 5.000000e-01 : f32
    %1100 = vector.broadcast %cst_378 : f32 to vector<2x128xf32>
    %1101 = arith.mulf %1100, %1099 : vector<2x128xf32>
    %1102 = math.tanh %1101 : vector<2x128xf32>
    %cst_379 = arith.constant 1.000000e+00 : f32
    %1103 = vector.broadcast %cst_379 : f32 to vector<2x128xf32>
    %1104 = arith.addf %1102, %1103 : vector<2x128xf32>
    %cst_380 = arith.constant 5.000000e-01 : f32
    %1105 = vector.broadcast %cst_380 : f32 to vector<2x128xf32>
    %1106 = arith.mulf %1105, %1104 : vector<2x128xf32>
    %1107 = arith.mulf %1096, %1074 : vector<2x128xf32>
    %1108 = arith.mulf %1088, %1098 : vector<2x128xf32>
    %1109 = arith.addf %1107, %1108 : vector<2x128xf32>
    %1110 = math.tanh %1109 : vector<2x128xf32>
    %1111 = arith.mulf %1106, %1110 : vector<2x128xf32>
    %c28 = arith.constant 28 : index
    %c0_381 = arith.constant 0 : index
    %1112 = vector.load %arg16[%c28, %c0_381] : memref<32x128xf32, #tpu.memory_space<vmem>>, vector<2x128xf32>
    tpu.vector_store %arg16[%c28, %c0_381], %1111 {strides = array<i32>} : memref<32x128xf32, #tpu.memory_space<vmem>>, vector<2x128xf32>,
    %1113 = vector.extract_strided_slice %867 {offsets = [14, 0], sizes = [2, 512], strides = [1, 1]} : vector<16x512xf32> to vector<2x512xf32>
    %cst_382 = arith.constant dense<0.000000e+00> : vector<2x512xf32>
    %1114 = tpu.matmul %1111, %11, %cst_382 {dimension_numbers = #tpu.dot_dimension_numbers<[1], [0], [0], [1], [0, 0, 1, 1], [], []>} : vector<2x128xf32>, vector<128x512xf32>, vector<2x512xf32> -> vector<2x512xf32>
    %1115 = arith.addf %1113, %1114 : vector<2x512xf32>
    %1116 = vector.extract_strided_slice %1115 {offsets = [0, 0], sizes = [2, 128], strides = [1, 1]} : vector<2x512xf32> to vector<2x128xf32>
    %cst_383 = arith.constant 5.000000e-01 : f32
    %1117 = vector.broadcast %cst_383 : f32 to vector<2x128xf32>
    %1118 = arith.mulf %1117, %1116 : vector<2x128xf32>
    %1119 = math.tanh %1118 : vector<2x128xf32>
    %cst_384 = arith.constant 1.000000e+00 : f32
    %1120 = vector.broadcast %cst_384 : f32 to vector<2x128xf32>
    %1121 = arith.addf %1119, %1120 : vector<2x128xf32>
    %cst_385 = arith.constant 5.000000e-01 : f32
    %1122 = vector.broadcast %cst_385 : f32 to vector<2x128xf32>
    %1123 = arith.mulf %1122, %1121 : vector<2x128xf32>
    %1124 = vector.extract_strided_slice %1115 {offsets = [0, 128], sizes = [2, 128], strides = [1, 1]} : vector<2x512xf32> to vector<2x128xf32>
    %cst_386 = arith.constant 5.000000e-01 : f32
    %1125 = vector.broadcast %cst_386 : f32 to vector<2x128xf32>
    %1126 = arith.mulf %1125, %1124 : vector<2x128xf32>
    %1127 = math.tanh %1126 : vector<2x128xf32>
    %cst_387 = arith.constant 1.000000e+00 : f32
    %1128 = vector.broadcast %cst_387 : f32 to vector<2x128xf32>
    %1129 = arith.addf %1127, %1128 : vector<2x128xf32>
    %cst_388 = arith.constant 5.000000e-01 : f32
    %1130 = vector.broadcast %cst_388 : f32 to vector<2x128xf32>
    %1131 = arith.mulf %1130, %1129 : vector<2x128xf32>
    %1132 = vector.extract_strided_slice %1115 {offsets = [0, 256], sizes = [2, 128], strides = [1, 1]} : vector<2x512xf32> to vector<2x128xf32>
    %1133 = math.tanh %1132 : vector<2x128xf32>
    %1134 = vector.extract_strided_slice %1115 {offsets = [0, 384], sizes = [2, 128], strides = [1, 1]} : vector<2x512xf32> to vector<2x128xf32>
    %cst_389 = arith.constant 5.000000e-01 : f32
    %1135 = vector.broadcast %cst_389 : f32 to vector<2x128xf32>
    %1136 = arith.mulf %1135, %1134 : vector<2x128xf32>
    %1137 = math.tanh %1136 : vector<2x128xf32>
    %cst_390 = arith.constant 1.000000e+00 : f32
    %1138 = vector.broadcast %cst_390 : f32 to vector<2x128xf32>
    %1139 = arith.addf %1137, %1138 : vector<2x128xf32>
    %cst_391 = arith.constant 5.000000e-01 : f32
    %1140 = vector.broadcast %cst_391 : f32 to vector<2x128xf32>
    %1141 = arith.mulf %1140, %1139 : vector<2x128xf32>
    %1142 = arith.mulf %1131, %1109 : vector<2x128xf32>
    %1143 = arith.mulf %1123, %1133 : vector<2x128xf32>
    %1144 = arith.addf %1142, %1143 : vector<2x128xf32>
    %1145 = math.tanh %1144 : vector<2x128xf32>
    %1146 = arith.mulf %1141, %1145 : vector<2x128xf32>
    %c30 = arith.constant 30 : index
    %c0_392 = arith.constant 0 : index
    %1147 = vector.load %arg16[%c30, %c0_392] : memref<32x128xf32, #tpu.memory_space<vmem>>, vector<2x128xf32>
    tpu.vector_store %arg16[%c30, %c0_392], %1146 {strides = array<i32>} : memref<32x128xf32, #tpu.memory_space<vmem>>, vector<2x128xf32>,
    %c0_393 = arith.constant 0 : index
    %c0_394 = arith.constant 0 : index
    %1148 = vector.load %arg16[%c0_393, %c0_394] : memref<32x128xf32, #tpu.memory_space<vmem>>, vector<32x128xf32>
    %c0_395 = arith.constant 0 : index
    %c0_396 = arith.constant 0 : index
    %1149 = vector.load %arg8[%c0_395, %c0_396] : memref<128x128xf32, #tpu.memory_space<vmem>>, vector<128x128xf32>
    %cst_397 = arith.constant dense<0.000000e+00> : vector<32x128xf32>
    %1150 = tpu.matmul %1148, %1149, %cst_397 {dimension_numbers = #tpu.dot_dimension_numbers<[1], [0], [0], [1], [0, 0, 1, 1], [], []>} : vector<32x128xf32>, vector<128x128xf32>, vector<32x128xf32> -> vector<32x128xf32>
    %c0_398 = arith.constant 0 : index
    %c0_399 = arith.constant 0 : index
    %1151 = vector.load %arg9[%c0_398, %c0_399] : memref<1x128xf32, #tpu.memory_space<vmem>>, vector<1x128xf32>
    %1152 = vector.broadcast %1151 : vector<1x128xf32> to vector<32x128xf32>
    %1153 = arith.addf %1150, %1152 : vector<32x128xf32>
    %1154 = math.tanh %1153 : vector<32x128xf32>
    %c0_400 = arith.constant 0 : index
    %c0_401 = arith.constant 0 : index
    %1155 = vector.load %arg10[%c0_400, %c0_401] : memref<128x64xf32, #tpu.memory_space<vmem>>, vector<128x64xf32>
    %cst_402 = arith.constant dense<0.000000e+00> : vector<32x64xf32>
    %1156 = tpu.matmul %1154, %1155, %cst_402 {dimension_numbers = #tpu.dot_dimension_numbers<[1], [0], [0], [1], [0, 0, 1, 1], [], []>} : vector<32x128xf32>, vector<128x64xf32>, vector<32x64xf32> -> vector<32x64xf32>
    %c0_403 = arith.constant 0 : index
    %c0_404 = arith.constant 0 : index
    %1157 = vector.load %arg11[%c0_403, %c0_404] : memref<1x64xf32, #tpu.memory_space<vmem>>, vector<1x64xf32>
    %1158 = vector.broadcast %1157 : vector<1x64xf32> to vector<32x64xf32>
    %1159 = arith.addf %1156, %1158 : vector<32x64xf32>
    %1160 = math.tanh %1159 : vector<32x64xf32>
    %1161 = vector.extract_strided_slice %581 {offsets = [0, 0], sizes = [2, 64], strides = [1, 1]} : vector<2x128xf32> to vector<2x64xf32>
    %1162 = vector.extract_strided_slice %1146 {offsets = [0, 0], sizes = [2, 64], strides = [1, 1]} : vector<2x128xf32> to vector<2x64xf32>
    %1163 = tpu.concatenate %1161, %1161, %1161, %1161, %1161, %1161, %1161, %1161, %1162, %1162, %1162, %1162, %1162, %1162, %1162, %1162 in 0 : vector<2x64xf32>, vector<2x64xf32>, vector<2x64xf32>, vector<2x64xf32>, vector<2x64xf32>, vector<2x64xf32>, vector<2x64xf32>, vector<2x64xf32>, vector<2x64xf32>, vector<2x64xf32>, vector<2x64xf32>, vector<2x64xf32>, vector<2x64xf32>, vector<2x64xf32>, vector<2x64xf32>, vector<2x64xf32> -> vector<32x64xf32>
    %1164 = arith.addf %1160, %1163 : vector<32x64xf32>
    %c0_405 = arith.constant 0 : index
    %c0_406 = arith.constant 0 : index
    %1165 = vector.load %arg12[%c0_405, %c0_406] : memref<64x8xf32, #tpu.memory_space<vmem>>, vector<64x8xf32>
    %cst_407 = arith.constant dense<0.000000e+00> : vector<32x8xf32>
    %1166 = tpu.matmul %1164, %1165, %cst_407 {dimension_numbers = #tpu.dot_dimension_numbers<[1], [0], [0], [1], [0, 0, 1, 1], [], []>} : vector<32x64xf32>, vector<64x8xf32>, vector<32x8xf32> -> vector<32x8xf32>
    %c0_408 = arith.constant 0 : index
    %c0_409 = arith.constant 0 : index
    %1167 = vector.load %arg13[%c0_408, %c0_409] : memref<1x8xf32, #tpu.memory_space<vmem>>, vector<1x8xf32>
    %1168 = vector.broadcast %1167 : vector<1x8xf32> to vector<32x8xf32>
    %1169 = arith.addf %1166, %1168 : vector<32x8xf32>
    %cst_410 = arith.constant 5.000000e-01 : f32
    %1170 = vector.broadcast %cst_410 : f32 to vector<32x8xf32>
    %1171 = arith.mulf %1170, %1169 : vector<32x8xf32>
    %1172 = math.tanh %1171 : vector<32x8xf32>
    %cst_411 = arith.constant 1.000000e+00 : f32
    %1173 = vector.broadcast %cst_411 : f32 to vector<32x8xf32>
    %1174 = arith.addf %1172, %1173 : vector<32x8xf32>
    %cst_412 = arith.constant 5.000000e-01 : f32
    %1175 = vector.broadcast %cst_412 : f32 to vector<32x8xf32>
    %1176 = arith.mulf %1175, %1174 : vector<32x8xf32>
    %c0_413 = arith.constant 0 : index
    %c0_414 = arith.constant 0 : index
    %1177 = vector.load %arg14[%c0_413, %c0_414] : memref<32x8xf32, #tpu.memory_space<vmem>>, vector<32x8xf32>
    tpu.vector_store %arg14[%c0_413, %c0_414], %1176 {strides = array<i32>} : memref<32x8xf32, #tpu.memory_space<vmem>>, vector<32x8xf32>,
    return
  }
}

</mosaic_0001>

<bundles_post_ra>
// kernel: forward.1
= control target key start
LH: loop header
LB: loop body
LE: loop exit
PB: predicated region body
PF: predicated region fallthrough
CT: control target
= control target key end

     0   :  { %19 = vsyncpa [#allocation5], 0  ;;  %s11939_s0 = inlined_call_operand.vmem [shape: f32[16,16], index: 0, kind: input, shape index: {}]   ;;  %s11940_s1 = inlined_call_operand.vmem [shape: f32[16,16], index: 1, kind: input, shape index: {}]   ;;  %s11941_s2 = inlined_call_operand.vmem [shape: f32[16,512], index: 2, kind: input, shape index: {}]   ;;  %s11942_s3 = inlined_call_operand.hbm [shape: f32[128,512], index: 3, kind: input, shape index: {}]   ;;  %s11943_s4 = inlined_call_operand.vmem [shape: f32[1,512], index: 4, kind: input, shape index: {}]   ;;  %s11944_s5 = inlined_call_operand.hbm [shape: f32[128,512], index: 5, kind: input, shape index: {}]   ;;  %s11945_s6 = inlined_call_operand.hbm [shape: f32[128,512], index: 6, kind: input, shape index: {}]   ;;  %s11946_s7 = inlined_call_operand.vmem [shape: f32[1,512], index: 7, kind: input, shape index: {}]   ;;  %s11947_s8 = inlined_call_operand.vmem [shape: f32[128,128], index: 8, kind: input, shape index: {}]   ;;  %s11948_s9 = inlined_call_operand.vmem [shape: f32[1,128], index: 9, kind: input, shape index: {}]   ;;  %s11949_s10 = inlined_call_operand.vmem [shape: f32[128,64], index: 10, kind: input, shape index: {}]   ;;  %s11950_s11 = inlined_call_operand.vmem [shape: f32[1,64], index: 11, kind: input, shape index: {}]   ;;  %s11951_s12 = inlined_call_operand.vmem [shape: f32[64,8], index: 12, kind: input, shape index: {}]   ;;  %s11952_s13 = inlined_call_operand.vmem [shape: f32[1,8], index: 13, kind: input, shape index: {}]   ;;  %s11953_s14 = inlined_call_operand.vmem [shape: f32[32,8], index: 14, kind: output, shape index: {}]  }
   0x1   :  { %20 = vsyncpa [#allocation7], 0  ;;  %s9818_s29 = smov [#allocation6]   ;;  %s9819_s15 = smov [#allocation4]  }
   0x2   :  { %s46_s30 = sshll.u32 %s9818_s29, 4  ;;  %s32_s16 = sshll.u32 %s9819_s15, 4  ;;  %s47_s30 = int_to_ptr.vmem [resolvable:$true] %s46_s30  ;;  %s9899_s16 = int_to_ptr.vmem [resolvable:$true] %s32_s16 }
   0x3   :  { %s9748_s19 = scalar_lea.hbm %s11944_s5, 8192 }
   0x4   :  { %p9749_p0 = scmp.ne.s32.totalorder %s11944_s5, %s9748_s19  ;;  %p9752_p1 = scmp.lt.u32.totalorder %s9748_s19, %s11944_s5 }
   0x6   :  { %p9754_p2 = pnand %p9752_p1, %p9749_p0 }
   0x8   :  { %9757 = shalt.err (!%p9754_p2)
}
   0x9   :  { %s9758_s24 = scalar_lea.vmem %s47_s30, 8192  ;;  %p9763_p4 = scmp.lt.s32.totalorder %s47_s30, %s47_s30 }
   0xa   :  { %p9759_p3 = scmp.ne.s32.totalorder %s47_s30, %s9758_s24  ;;  %p9764_p5 = scmp.lt.s32.totalorder %s9758_s24, %s9758_s24 }
   0xc   :  { %p9765_p6 = por %p9764_p5, %p9763_p4 }
   0xe   :  { %p9766_p7 = pnand %p9765_p6, %p9759_p3 }
  0x10   :  { %9769 = shalt.err (!%p9766_p7)
}
  0x11   :  { %s9820_s25 = smov 512   ;;  %s9821_s26 = smov 32  }
  0x12   :  { %52 = dma.hbm_to_vmem [thread:$0]  %s11944_s5, 8192, %s47_s30, [#allocation7], %s9820_s25, %s9820_s25, %s9821_s26  }
  0x13   :  { %s9770_s17 = scalar_lea.hbm %s11942_s3, 8192 }
  0x14   :  { %p9771_p8 = scmp.ne.s32.totalorder %s11942_s3, %s9770_s17  ;;  %p9774_p9 = scmp.lt.u32.totalorder %s9770_s17, %s11942_s3 }
  0x16   :  { %p9776_p10 = pnand %p9774_p9, %p9771_p8 }
  0x18   :  { %9779 = shalt.err (!%p9776_p10)
}
  0x19   :  { %s9780_s22 = scalar_lea.vmem %s9899_s16, 8192  ;;  %p9785_p12 = scmp.lt.s32.totalorder %s9899_s16, %s9899_s16 }
  0x1a   :  { %p9781_p11 = scmp.ne.s32.totalorder %s9899_s16, %s9780_s22  ;;  %p9786_p13 = scmp.lt.s32.totalorder %s9780_s22, %s9780_s22 }
  0x1c   :  { %p9787_p0 = por %p9786_p13, %p9785_p12 }
  0x1e   :  { %p9788_p1 = pnand %p9787_p0, %p9781_p11 }
  0x20   :  { %9791 = shalt.err (!%p9788_p1)
}
  0x21   :  { %38 = dma.hbm_to_vmem [thread:$0]  %s11942_s3, 8192, %s9899_s16, [#allocation5], %s9820_s25, %s9820_s25, %s9821_s26  }
  0x22   :  { %s9822_s23 = smov [#allocation8]   ;;  %s9792_s29 = scalar_lea.hbm %s11945_s6, 8192 }
  0x23   :  { %s58_s24 = sshll.u32 %s9822_s23, 4  ;;  %p9793_p2 = scmp.ne.s32.totalorder %s11945_s6, %s9792_s29  ;;  %s59_s24 = int_to_ptr.vmem [resolvable:$true] %s58_s24 }
  0x24   :  { %p9796_p3 = scmp.lt.u32.totalorder %s9792_s29, %s11945_s6 }
  0x26   :  { %p9798_p4 = pnand %p9796_p3, %p9793_p2 }
  0x28   :  { %9801 = shalt.err (!%p9798_p4)
}
  0x29   :  { %s9802_s20 = scalar_lea.vmem %s59_s24, 8192  ;;  %p9807_p6 = scmp.lt.s32.totalorder %s59_s24, %s59_s24 }
  0x2a   :  { %p9803_p5 = scmp.ne.s32.totalorder %s59_s24, %s9802_s20  ;;  %p9808_p7 = scmp.lt.s32.totalorder %s9802_s20, %s9802_s20 }
  0x2c   :  { %p9809_p8 = por %p9808_p7, %p9807_p6 }
  0x2e   :  { %p9810_p9 = pnand %p9809_p8, %p9803_p5 }
  0x30   :  { %9813 = shalt.err (!%p9810_p9)
}
  0x31   :  { %64 = dma.hbm_to_vmem [thread:$0]  %s11945_s6, 8192, %s59_s24, [#allocation7], %s9820_s25, %s9820_s25, %s9821_s26  }
  0x32   :  { %9814 = dma.done.wait [#allocation5], 8192  }
  0x33   :  { %9815 = vsyncadd [#allocation5], 4294959104 }
  0x34   :  { %9816 = dma.done.wait [#allocation7], 16384  }
  0x35   :  { %9817 = vsyncadd [#allocation7], 4294950912  ;;  %v11958_v0 = vmov 0.0   ;;  %v99_v1 = vld [vmem:[%s11941_s2 + $0x8] sm:$0xff]  ;;  %v101_v3 = vld [vmem:[%s11941_s2 + $0x18] sm:$0xff]  ;;  %vm321_vm0 = vcmask 130048  }
  0x36   :  { %398 = vmatprep.mubr.f32.mxu0 %v11958_v0  ;;  %487 = vmatprep.mubr.f32.mxu1 %v11958_v0  ;;  %v103_v2 = vld [vmem:[%s11941_s2 + $0x28] sm:$0xff]  ;;  %v105_v5 = vld [vmem:[%s11941_s2 + $0x38] sm:$0xff]  ;;  %v98_v6 = vld [vmem:[%s11941_s2] sm:$0xff]  ;;  %vm6808_vm1 = vcmask 1041408   ;;  %vm6810_vm2 = vcmask 1043456   ;;  %vm6812_vm3 = vcmask 1045504  }
  0x37   :  { %v7126_v4 = vpack.c.bf16 %v103_v2, %v99_v1  ;;  %v102_v7 = vld [vmem:[%s11941_s2 + $0x20] sm:$0xff]  ;;  %v7130_v8 = vpack.c.bf16 %v105_v5, %v101_v3  ;;  %v100_v10 = vld [vmem:[%s11941_s2 + $0x10] sm:$0xff]  ;;  %v107_v14 = vld [vmem:[#allocation4 + $0x8] sm:$0xff]  ;;  %vm6836_vm4 = vcmask 523264   ;;  %vm6950_vm5 = vcmask 64512  }
  0x38   :  { %v7128_v9 = vpack.c.bf16 %v102_v7, %v98_v6  ;;  %v104_v11 = vld [vmem:[%s11941_s2 + $0x30] sm:$0xff]  ;;  %v9980_v12 = vld [vmem:[%s11939_s0] sm:$0xff]  ;;  %v111_v15 = vld [vmem:[#allocation4 + $0x28] sm:$0xff] }
  0x39   :  { %7127 = vmatprep.subr.bf16.mxu0 %v7126_v4  ;;  %v7132_v13 = vpack.c.bf16 %v104_v11, %v100_v10  ;;  %v109_v16 = vld [vmem:[#allocation4 + $0x18] sm:$0xff]  ;;  %7131 = vmatprep.subr.bf16.mxu1 %v7130_v8  ;;  %v9982_v17 = vpack.c.bf16 %v111_v15, %v107_v14  ;;  %v106_v19 = vld [vmem:[#allocation4] sm:$0xff]  ;;  %v108_v23 = vld [vmem:[#allocation4 + $0x10] sm:$0xff]  ;;  %v90_v8 = vmul.f32 0.8780903, %v9980_v12 }
  0x3a   :  { %7129 = vmatpush1.bf16.msra.mxu0 %v7128_v9  ;;  %v113_v18 = vld [vmem:[#allocation4 + $0x38] sm:$0xff]  ;;  %v110_v20 = vld [vmem:[#allocation4 + $0x20] sm:$0xff]  ;;  %v112_v24 = vld [vmem:[#allocation4 + $0x30] sm:$0xff] }
  0x3b   :  { %12126 = vst [vmem:[#allocation11_spill] sm:$0xff] %v9982_v17  ;;  %7133 = vmatpush1.bf16.msra.mxu1 %v7132_v13  ;;  %v9984_v21 = vpack.c.bf16 %v113_v18, %v109_v16  ;;  %v9986_v22 = vpack.c.bf16 %v110_v20, %v106_v19  ;;  %v115_v25 = vld [vmem:[#allocation4 + $0x48] sm:$0xff]  ;;  %7135 = vmatprep.subr.bf16.mxu0 %v9982_v17  ;;  %v117_v28 = vld [vmem:[#allocation4 + $0x58] sm:$0xff]  ;;  %v114_v32 = vld [vmem:[#allocation4 + $0x40] sm:$0xff] }
  0x3c   :  { %v9989_v26 = vpack.c.bf16 %v112_v24, %v108_v23  ;;  %v119_v27 = vld [vmem:[#allocation4 + $0x68] sm:$0xff]  ;;  %v121_v29 = vld [vmem:[#allocation4 + $0x78] sm:$0xff]  ;;  %v118_v33 = vld [vmem:[#allocation4 + $0x60] sm:$0xff] }
  0x3d   :  { %12127 = vst [vmem:[#allocation12_spill] sm:$0xff] %v9984_v21  ;;  %12128 = vst [vmem:[#allocation13_spill] sm:$0xff] %v9986_v22  ;;  %6961 = vmatmul.mubr.msk.f32.vlgmr.msra.gmra.mrb[0].mxu0 %vm321_vm0, %v9980_v12  ;;  %7167 = vmatprep.subr.bf16.mxu1 %v9984_v21  ;;  %v9994_v30 = vpack.c.bf16 %v119_v27, %v115_v25  ;;  %v9996_v31 = vpack.c.bf16 %v121_v29, %v117_v28  ;;  %v116_v34 = vld [vmem:[#allocation4 + $0x50] sm:$0xff]  ;;  %v123_v37 = vld [vmem:[#allocation4 + $0x88] sm:$0xff] }
  0x3e   :  { %12129 = vst [vmem:[#allocation14_spill] sm:$0xff] %v9989_v26  ;;  %6965 = vmatmul.mubr.msk.f32.vlgmr.msra.gmra.mrb[0].mxu1 %vm321_vm0, %v9980_v12  ;;  %7137 = vmatpush1.bf16.msra.mxu0 %v9986_v22  ;;  %v10001_v35 = vpack.c.bf16 %v118_v33, %v114_v32  ;;  %v120_v36 = vld [vmem:[#allocation4 + $0x70] sm:$0xff]  ;;  %v127_v38 = vld [vmem:[#allocation4 + $0xa8] sm:$0xff]  ;;  %v125_v41 = vld [vmem:[#allocation4 + $0x98] sm:$0xff] }
  0x3f   :  { %12130 = vst [vmem:[#allocation15_spill] sm:$0xff] %v9994_v30  ;;  %12131 = vst [vmem:[#allocation16_spill] sm:$0xff] %v9996_v31  ;;  %7169 = vmatpush1.bf16.msra.mxu1 %v9989_v26  ;;  %7139 = vmatprep.subr.bf16.mxu0 %v9994_v30  ;;  %v10005_v39 = vpack.c.bf16 %v120_v36, %v116_v34  ;;  %v10007_v40 = vpack.c.bf16 %v127_v38, %v123_v37  ;;  %v129_v42 = vld [vmem:[#allocation4 + $0xb8] sm:$0xff]  ;;  %v122_v43 = vld [vmem:[#allocation4 + $0x80] sm:$0xff] }
  0x40   :  { %12132 = vst [vmem:[#allocation17_spill] sm:$0xff] %v10001_v35  ;;  %7171 = vmatprep.subr.bf16.mxu1 %v9996_v31  ;;  %v10010_v44 = vpack.c.bf16 %v129_v42, %v125_v41  ;;  %v126_v45 = vld [vmem:[#allocation4 + $0xa0] sm:$0xff]  ;;  %v124_v46 = vld [vmem:[#allocation4 + $0x90] sm:$0xff]  ;;  %404 = vmatprep.mubr.f32.mxu0 %v11958_v0  ;;  %v131_v48 = vld [vmem:[#allocation4 + $0xc8] sm:$0xff] }
  0x41   :  { %12133 = vst [vmem:[#allocation18_spill] sm:$0xff] %v10005_v39  ;;  %12134 = vst [vmem:[#allocation19_spill] sm:$0xff] %v10007_v40  ;;  %v128_v47 = vld [vmem:[#allocation4 + $0xb0] sm:$0xff]  ;;  %v135_v49 = vld [vmem:[#allocation4 + $0xe8] sm:$0xff]  ;;  %493 = vmatprep.mubr.f32.mxu1 %v11958_v0  ;;  %v10015_v51 = vpack.c.bf16 %v126_v45, %v122_v43 }
  0x42   :  { %12135 = vst [vmem:[#allocation20_spill] sm:$0xff] %v10010_v44  ;;  %v133_v50 = vld [vmem:[#allocation4 + $0xd8] sm:$0xff]  ;;  %7141 = vmatpush1.bf16.msra.mxu0 %v10001_v35  ;;  %v10019_v53 = vpack.c.bf16 %v128_v47, %v124_v46  ;;  %v10021_v54 = vpack.c.bf16 %v135_v49, %v131_v48  ;;  %v130_v55 = vld [vmem:[#allocation4 + $0xc0] sm:$0xff]  ;;  %v132_v57 = vld [vmem:[#allocation4 + $0xd0] sm:$0xff] }
  0x43   :  { %12136 = vst [vmem:[#allocation21_spill] sm:$0xff] %v10015_v51  ;;  %v137_v52 = vld [vmem:[#allocation4 + $0xf8] sm:$0xff]  ;;  %7173 = vmatpush1.bf16.msra.mxu1 %v10005_v39  ;;  %7143 = vmatprep.subr.bf16.mxu0 %v10007_v40  ;;  %v134_v56 = vld [vmem:[#allocation4 + $0xe0] sm:$0xff]  ;;  %v136_v59 = vld [vmem:[#allocation4 + $0xf0] sm:$0xff] }
  0x44   :  { %12137 = vst [vmem:[#allocation22_spill] sm:$0xff] %v10019_v53  ;;  %12138 = vst [vmem:[#allocation23_spill] sm:$0xff] %v10021_v54  ;;  %7175 = vmatprep.subr.bf16.mxu1 %v10010_v44  ;;  %v10024_v58 = vpack.c.bf16 %v137_v52, %v133_v50  ;;  %v139_v60 = vld [vmem:[#allocation4 + $0x108] sm:$0xff]  ;;  %v141_v62 = vld [vmem:[#allocation4 + $0x118] sm:$0xff]  ;;  %v10027_v1 = vpack.c.bf16 %v134_v56, %v130_v55  ;;  %v10034_v3 = vpack.c.bf16 %v136_v59, %v132_v57 }
  0x45   :  { %v143_v61 = vld [vmem:[#allocation4 + $0x128] sm:$0xff]  ;;  %v145_v63 = vld [vmem:[#allocation4 + $0x138] sm:$0xff]  ;;  %v138_v5 = vld [vmem:[#allocation4 + $0x100] sm:$0xff] }
  0x46   :  { %12139 = vst [vmem:[#allocation24_spill] sm:$0xff] %v10024_v58  ;;  %7145 = vmatpush1.bf16.msra.mxu0 %v10015_v51  ;;  %12140 = vst [vmem:[#allocation25_spill] sm:$0xff] %v10027_v1  ;;  %v89_v2 = vld [vmem:[%s11939_s0 + $0x8] sm:$0xff]  ;;  %v10036_v4 = vpack.c.bf16 %v143_v61, %v139_v60  ;;  %v142_v6 = vld [vmem:[#allocation4 + $0x120] sm:$0xff]  ;;  %v10040_v9 = vpack.c.bf16 %v145_v63, %v141_v62 }
  0x47   :  { %7177 = vmatpush1.bf16.msra.mxu1 %v10019_v53  ;;  %7147 = vmatprep.subr.bf16.mxu0 %v10021_v54  ;;  %12141 = vst [vmem:[#allocation26_spill] sm:$0xff] %v10034_v3  ;;  %v140_v7 = vld [vmem:[#allocation4 + $0x110] sm:$0xff]  ;;  %v147_v11 = vld [vmem:[#allocation4 + $0x148] sm:$0xff]  ;;  %v149_v14 = vld [vmem:[#allocation4 + $0x158] sm:$0xff]  ;;  %v10049_v12 = vpack.c.bf16 %v142_v6, %v138_v5  ;;  %v91_v23 = vmul.f32 0.8780903, %v89_v2 }
  0x48   :  { %12142 = vst [vmem:[#allocation27_spill] sm:$0xff] %v10036_v4  ;;  %7179 = vmatprep.subr.bf16.mxu1 %v10024_v58  ;;  %12143 = vst [vmem:[#allocation28_spill] sm:$0xff] %v10040_v9  ;;  %v144_v10 = vld [vmem:[#allocation4 + $0x130] sm:$0xff]  ;;  %6962 = vmatmul.mubr.msk.f32.gmra.mrb[2].mxu0 %vm321_vm0, %v89_v2  ;;  %v151_v13 = vld [vmem:[#allocation4 + $0x168] sm:$0xff] }
  0x49   :  { %6966 = vmatmul.mubr.msk.f32.gmra.mrb[2].mxu1 %vm321_vm0, %v89_v2  ;;  %v153_v15 = vld [vmem:[#allocation4 + $0x178] sm:$0xff]  ;;  %410 = vmatprep.mubr.f32.mxu0 %v11958_v0  ;;  %v92_v16 = vld [vmem:[%s11940_s1] sm:$0xff]  ;;  %12144 = vst [vmem:[#allocation29_spill] sm:$0xff] %v10049_v12  ;;  %v146_v18 = vld [vmem:[#allocation4 + $0x140] sm:$0xff]  ;;  %v10054_v20 = vpack.c.bf16 %v144_v10, %v140_v7  ;;  %v10056_v24 = vpack.c.bf16 %v151_v13, %v147_v11  ;;  %v301_v11 = vlaneseq }
  0x4a   :  { %7149 = vmatpush1.bf16.msra.mxu0 %v10027_v1  ;;  %v94_v19 = vmul.f32 0.23924744, %v92_v16  ;;  %499 = vmatprep.mubr.f32.mxu1 %v11958_v0  ;;  %v150_v25 = vld [vmem:[#allocation4 + $0x160] sm:$0xff]  ;;  %v148_v27 = vld [vmem:[#allocation4 + $0x150] sm:$0xff]  ;;  %v10059_v29 = vpack.c.bf16 %v153_v15, %v149_v14  ;;  %v155_v33 = vld [vmem:[#allocation4 + $0x188] sm:$0xff] }
  0x4b   :  { %7181 = vmatpush1.bf16.msra.mxu1 %v10034_v3  ;;  %7151 = vmatprep.subr.bf16.mxu0 %v10036_v4  ;;  %12145 = vst [vmem:[#allocation30_spill] sm:$0xff] %v10054_v20  ;;  %12146 = vst [vmem:[#allocation31_spill] sm:$0xff] %v10056_v24  ;;  %v152_v28 = vld [vmem:[#allocation4 + $0x170] sm:$0xff]  ;;  %v159_v34 = vld [vmem:[#allocation4 + $0x1a8] sm:$0xff]  ;;  %v10065_v42 = vpack.c.bf16 %v150_v25, %v146_v18  ;;  %v10144_v16 = vshrl.u32 %v301_v11, 7 }
  0x4c   :  { %7183 = vmatprep.subr.bf16.mxu1 %v10040_v9  ;;  %12147 = vst [vmem:[#allocation32_spill] sm:$0xff] %v10059_v29  ;;  %v96_v32 = vadd.f32 %v94_v19, %v90_v8  ;;  %v93_v36 = vld [vmem:[%s11940_s1 + $0x8] sm:$0xff]  ;;  %v10070_v43 = vpack.c.bf16 %v152_v28, %v148_v27  ;;  %v10072_v45 = vpack.c.bf16 %v159_v34, %v155_v33  ;;  %v154_v46 = vld [vmem:[#allocation4 + $0x180] sm:$0xff]  ;;  %v156_v48 = vld [vmem:[#allocation4 + $0x190] sm:$0xff] }
  0x4d   :  { %v157_v37 = vld [vmem:[#allocation4 + $0x198] sm:$0xff]  ;;  %v95_v41 = vmul.f32 0.23924744, %v93_v36  ;;  %12148 = vst [vmem:[#allocation33_spill] sm:$0xff] %v10065_v42  ;;  %v158_v47 = vld [vmem:[#allocation4 + $0x1a0] sm:$0xff]  ;;  %v160_v52 = vld [vmem:[#allocation4 + $0x1b0] sm:$0xff] }
  0x4e   :  { %v161_v38 = vld [vmem:[#allocation4 + $0x1b8] sm:$0xff]  ;;  %7153 = vmatpush1.bf16.msra.mxu0 %v10049_v12  ;;  %6967 = vmatmul.mubr.msk.f32.gmra.mrb[4].mxu1 %vm321_vm0, %v96_v32  ;;  %12149 = vst [vmem:[#allocation34_spill] sm:$0xff] %v10070_v43  ;;  %12150 = vst [vmem:[#allocation35_spill] sm:$0xff] %v10072_v45  ;;  %v163_v55 = vld [vmem:[#allocation4 + $0x1c8] sm:$0xff]  ;;  %v10081_v60 = vpack.c.bf16 %v158_v47, %v154_v46  ;;  %v10086_v61 = vpack.c.bf16 %v160_v52, %v156_v48  ;;  %v11957_v19 = vsub.s32 0, %v10144_v16 }
  0x4f   :  { %7185 = vmatpush1.bf16.msra.mxu1 %v10054_v20  ;;  %7155 = vmatprep.subr.bf16.mxu0 %v10056_v24  ;;  %v97_v49 = vadd.f32 %v95_v41, %v91_v23  ;;  %v10076_v50 = vpack.c.bf16 %v161_v38, %v157_v37  ;;  %v167_v56 = vld [vmem:[#allocation4 + $0x1e8] sm:$0xff]  ;;  %v165_v57 = vld [vmem:[#allocation4 + $0x1d8] sm:$0xff]  ;;  %v162_v63 = vld [vmem:[#allocation4 + $0x1c0] sm:$0xff]  ;;  %v11956_v25 = vsub.s32 1, %v10144_v16  ;;  %v11955_v27 = vsub.s32 2, %v10144_v16 }
  0x50   :  { %7187 = vmatprep.subr.bf16.mxu1 %v10059_v29  ;;  %6963 = vmatmul.mubr.msk.f32.gmra.mrb[4].mxu0 %vm321_vm0, %v96_v32  ;;  %v169_v59 = vld [vmem:[#allocation4 + $0x1f8] sm:$0xff]  ;;  %12152 = vst [vmem:[#allocation37_spill] sm:$0xff] %v10081_v60  ;;  %12153 = vst [vmem:[#allocation38_spill] sm:$0xff] %v10086_v61  ;;  %v10088_v62 = vpack.c.bf16 %v167_v56, %v163_v55  ;;  %v166_v2 = vld [vmem:[#allocation4 + $0x1e0] sm:$0xff]  ;;  %v11954_v28 = vsub.s32 3, %v10144_v16 }
  0x51   :  { %12151 = vst [vmem:[#allocation36_spill] sm:$0xff] %v10076_v50  ;;  %416 = vmatprep.mubr.f32.mxu0 %v11958_v0  ;;  %505 = vmatprep.mubr.f32.mxu1 %v11958_v0  ;;  %v10092_v5 = vpack.c.bf16 %v169_v59, %v165_v57  ;;  %v164_v6 = vld [vmem:[#allocation4 + $0x1d0] sm:$0xff]  ;;  %v10097_v8 = vpack.c.bf16 %v166_v2, %v162_v63 }
  0x52   :  { %7157 = vmatpush1.bf16.msra.mxu0 %v10065_v42  ;;  %6968 = vmatmul.mubr.msk.f32.gmra.mrb[6].mxu1 %vm321_vm0, %v97_v49  ;;  %12154 = vst [vmem:[#allocation39_spill] sm:$0xff] %v10088_v62  ;;  %v168_v7 = vld [vmem:[#allocation4 + $0x1f0] sm:$0xff] }
  0x53   :  { %7189 = vmatpush1.bf16.msra.mxu1 %v10070_v43  ;;  %7159 = vmatprep.subr.bf16.mxu0 %v10072_v45  ;;  %12155 = vst [vmem:[#allocation40_spill] sm:$0xff] %v10092_v5  ;;  %12156 = vst [vmem:[#allocation41_spill] sm:$0xff] %v10097_v8  ;;  %v10101_v10 = vpack.c.bf16 %v168_v7, %v164_v6  ;;  %v170_v23 = vld [vmem:[%s11943_s4] sm:$0xf] }
  0x54   :  { %7191 = vmatprep.subr.bf16.mxu1 %v10076_v50  ;;  %6964 = vmatmul.mubr.msk.f32.gmra.mrb[6].mxu0 %vm321_vm0, %v97_v49  ;;  %v304_v32 = vrot.slane %v170_v23, %v11957_v19  ;;  %v308_v33 = vrot.slane %v170_v23, %v11956_v25  ;;  %v312_v34 = vrot.slane %v170_v23, %v11955_v27 }
  0x55   :  { %576 = vmatprep.mubr.f32.mxu0 %v11958_v0  ;;  %647 = vmatprep.mubr.f32.mxu1 %v11958_v0  ;;  %12157 = vst [vmem:[#allocation42_spill] sm:$0xff] %v10101_v10  ;;  %v316_v37 = vrot.slane %v170_v23, %v11954_v28 }
  0x56   :  { %7161 = vmatpush1.bf16.msra.mxu0 %v10081_v60 }
  0x57   :  { %7193 = vmatpush1.bf16.msra.mxu1 %v10086_v61  ;;  %7163 = vmatprep.subr.bf16.mxu0 %v10088_v62 }
  0x58   :  { %7195 = vmatprep.subr.bf16.mxu1 %v10092_v5 }
  0x5a   :  { %7165 = vmatpush1.bf16.msra.mxu0 %v10097_v8 }
  0x5b   :  { %7197 = vmatpush1.bf16.msra.mxu1 %v10101_v10  ;;  %7199 = vmatprep.subr.bf16.mxu0 %v9982_v17 }
  0x5c   :  { %7231 = vmatprep.subr.bf16.mxu1 %v9984_v21 }
  0x5d   :  { %577 = vmatmul.mubr.f32.vlgmr.msra.gmra.mrb[8].mxu0 %v11958_v0 }
  0x5e   :  { %648 = vmatmul.mubr.f32.vlgmr.msra.gmra.mrb[8].mxu1 %v11958_v0  ;;  %7201 = vmatpush1.bf16.msra.mxu0 %v9986_v22 }
  0x5f   :  { %7233 = vmatpush1.bf16.msra.mxu1 %v9989_v26  ;;  %7203 = vmatprep.subr.bf16.mxu0 %v9994_v30 }
  0x60   :  { %7235 = vmatprep.subr.bf16.mxu1 %v9996_v31  ;;  %741 = vmatprep.mubr.f32.mxu0 %v11958_v0 }
  0x61   :  { %812 = vmatprep.mubr.f32.mxu1 %v11958_v0 }
  0x62   :  { %7205 = vmatpush1.bf16.msra.mxu0 %v10001_v35 }
  0x63   :  { %7237 = vmatpush1.bf16.msra.mxu1 %v10005_v39  ;;  %7207 = vmatprep.subr.bf16.mxu0 %v10007_v40 }
  0x64   :  { %7239 = vmatprep.subr.bf16.mxu1 %v10010_v44 }
  0x66   :  { %7209 = vmatpush1.bf16.msra.mxu0 %v10015_v51 }
  0x67   :  { %7241 = vmatpush1.bf16.msra.mxu1 %v10019_v53  ;;  %7211 = vmatprep.subr.bf16.mxu0 %v10021_v54 }
  0x68   :  { %7243 = vmatprep.subr.bf16.mxu1 %v10024_v58 }
  0x6a   :  { %7213 = vmatpush1.bf16.msra.mxu0 %v10027_v1 }
  0x6b   :  { %7245 = vmatpush1.bf16.msra.mxu1 %v10034_v3  ;;  %7215 = vmatprep.subr.bf16.mxu0 %v10036_v4 }
  0x6c   :  { %7247 = vmatprep.subr.bf16.mxu1 %v10040_v9 }
  0x6e   :  { %7217 = vmatpush1.bf16.msra.mxu0 %v10049_v12 }
  0x6f   :  { %7249 = vmatpush1.bf16.msra.mxu1 %v10054_v20  ;;  %7219 = vmatprep.subr.bf16.mxu0 %v10056_v24 }
  0x70   :  { %7251 = vmatprep.subr.bf16.mxu1 %v10059_v29 }
  0x72   :  { %7221 = vmatpush1.bf16.msra.mxu0 %v10065_v42 }
  0x73   :  { %7253 = vmatpush1.bf16.msra.mxu1 %v10070_v43  ;;  %7223 = vmatprep.subr.bf16.mxu0 %v10072_v45 }
  0x74   :  { %7255 = vmatprep.subr.bf16.mxu1 %v10076_v50 }
  0x76   :  { %7225 = vmatpush1.bf16.msra.mxu0 %v10081_v60 }
  0x77   :  { %7257 = vmatpush1.bf16.msra.mxu1 %v10086_v61  ;;  %7227 = vmatprep.subr.bf16.mxu0 %v10088_v62 }
  0x78   :  { %7259 = vmatprep.subr.bf16.mxu1 %v10092_v5 }
  0x7a   :  { %7229 = vmatpush1.bf16.msra.mxu0 %v10097_v8 }
  0x7b   :  { %7261 = vmatpush1.bf16.msra.mxu1 %v10101_v10  ;;  %7263 = vmatprep.subr.bf16.mxu0 %v9982_v17 }
  0x7c   :  { %7295 = vmatprep.subr.bf16.mxu1 %v9984_v21 }
 0x110   :  { %v400_v13 = vpop.f32.mrb[0].mxu0 }
 0x111   :  { %v402_v14 = vpop.f32.mrb[1].mxu0  ;;  %v489_v15 = vpop.f32.mrb[0].mxu1  ;;  %v10185_v27 = vadd.f32 %v400_v13, %v304_v32 }
 0x112   :  { %v491_v18 = vpop.f32.mrb[1].mxu1 }
 0x113   :  { %v10194_v13 = vadd.f32 %v491_v18, %v316_v37 }
 0x11b   :  { %v406_v36 = vpop.f32.mrb[2].mxu0 }
 0x11c   :  { %v10161_v38 = vadd.f32 %v406_v36, %v304_v32  ;;  %v408_v41 = vpop.f32.mrb[3].mxu0  ;;  %v495_v46 = vpop.f32.mrb[2].mxu1 }
 0x11d   :  { %v10163_v47 = vadd.f32 %v408_v41, %v308_v33  ;;  %v10165_v48 = vadd.f32 %v495_v46, %v312_v34  ;;  %v497_v49 = vpop.f32.mrb[3].mxu1 }
 0x11e   :  { %v10167_v52 = vadd.f32 %v497_v49, %v316_v37 }
 0x121   :  { %v501_v55 = vpop.f32.mrb[4].mxu1 }
 0x122   :  { %v10169_v56 = vadd.f32 %v501_v55, %v312_v34  ;;  %v503_v57 = vpop.f32.mrb[5].mxu1 }
 0x123   :  { %v412_v59 = vpop.f32.mrb[4].mxu0  ;;  %v10171_v63 = vadd.f32 %v503_v57, %v316_v37  ;;  %v10187_v57 = vadd.f32 %v402_v14, %v308_v33 }
 0x124   :  { %12158 = vst [vmem:[#allocation43_spill] sm:$0xff] %v10169_v56  ;;  %v10173_v2 = vadd.f32 %v412_v59, %v304_v32  ;;  %v414_v6 = vpop.f32.mrb[5].mxu0  ;;  %v190_v56 = vld [vmem:[#allocation6 + $0x98] sm:$0xff] }
 0x125   :  { %12159 = vst [vmem:[#allocation44_spill] sm:$0xff] %v10171_v63  ;;  %v10175_v7 = vadd.f32 %v414_v6, %v308_v33  ;;  %v507_v11 = vpop.f32.mrb[6].mxu1 }
 0x126   :  { %12160 = vst [vmem:[#allocation45_spill] sm:$0xff] %v10173_v2  ;;  %v10177_v23 = vadd.f32 %v507_v11, %v312_v34  ;;  %v509_v36 = vpop.f32.mrb[7].mxu1  ;;  %v268_v2 = vld [vmem:[#allocation8 + $0x108] sm:$0xff] }
 0x127   :  { %12161 = vst [vmem:[#allocation46_spill] sm:$0xff] %v10175_v7  ;;  %v418_v41 = vpop.f32.mrb[6].mxu0  ;;  %v10179_v46 = vadd.f32 %v509_v36, %v316_v37  ;;  %v194_v7 = vld [vmem:[#allocation6 + $0xb8] sm:$0xff] }
 0x128   :  { %12162 = vst [vmem:[#allocation47_spill] sm:$0xff] %v10177_v23  ;;  %v10181_v49 = vadd.f32 %v418_v41, %v304_v32  ;;  %v420_v55 = vpop.f32.mrb[7].mxu0  ;;  %v10191_v23 = vadd.f32 %v489_v15, %v312_v34 }
 0x129   :  { %12163 = vst [vmem:[#allocation48_spill] sm:$0xff] %v10179_v46  ;;  %v10183_v28 = vadd.f32 %v420_v55, %v308_v33 }
 0x12a   :  { %12164 = vst [vmem:[#allocation49_spill] sm:$0xff] %v10181_v49 }
 0x12b   :  { %12165 = vst [vmem:[#allocation50_spill] sm:$0xff] %v10183_v28 }
 0x130   :  { %v578_v59 = vpop.f32.mrb[8].mxu0 }
 0x131   :  { %v654_v6 = vadd.f32 %v578_v59, %v10185_v27  ;;  %v649_v25 = vpop.f32.mrb[8].mxu1  ;;  %v580_v19 = vpop.f32.mrb[9].mxu0 }
 0x132   :  { %v655_v11 = vadd.f32 %v580_v19, %v10187_v57  ;;  %v651_v0 = vpop.f32.mrb[9].mxu1  ;;  %v656_v55 = vadd.f32 %v649_v25, %v10191_v23 }
 0x133   :  { %v658_v36 = vmul.f32 0.5, %v654_v6  ;;  %v657_v14 = vadd.f32 %v651_v0, %v10194_v13 }
 0x134   :  { %v662_v41 = vmul.f32 0.5, %v655_v11 }
 0x135   :  { %9404 = vtanh.f32 %v658_v36  ;;  %v667_v32 = vmul.f32 0.5, %v657_v14 }
 0x136   :  { %9406 = vtanh.f32 %v662_v41 }
 0x137   :  { %9408 = vtanh.f32 %v656_v55 }
 0x138   :  { %9410 = vtanh.f32 %v667_v32 }
 0x13f   :  { %v9405_v33 = vpop.eup %9404 }
 0x140   :  { %v9407_v59 = vpop.eup %9406  ;;  %v660_v46 = vadd.f32 1.0, %v9405_v33 }
 0x141   :  { %v664_v28 = vadd.f32 1.0, %v9407_v59  ;;  %v9409_v15 = vpop.eup %9408 }
 0x142   :  { %v661_v19 = vmul.f32 0.5, %v660_v46  ;;  %v9411_v18 = vpop.eup %9410 }
 0x143   :  { %v665_v34 = vmul.f32 0.5, %v664_v28  ;;  %v669_v25 = vadd.f32 1.0, %v9411_v18  ;;  %v12166_v28 = vmov 0.0  }
 0x144   :  { %v672_v6 = vmul.f32 %v9409_v15, %v661_v19 }
 0x145   :  { %v671_v11 = vmul.f32 0.0, %v665_v34  ;;  %v670_v37 = vmul.f32 0.5, %v669_v25 }
 0x147   :  { %v10197_v36 = vadd.f32 %v672_v6, %v671_v11 }
 0x149   :  { %9412 = vtanh.f32 %v10197_v36 }
 0x153   :  { %v9413_v41 = vpop.eup %9412 }
 0x154   :  { %v675_v0 = vmul.f32 %v9413_v41, %v670_v37 }
 0x156   :  { %676 = vst [vmem:[#allocation2] sm:$0x3] %v675_v0  ;;  %742 = vmatmul.mubr.f32.vlgmr.msra.gmra.mrb[10].mxu0 %v675_v0  ;;  %813 = vmatmul.mubr.f32.vlgmr.msra.gmra.mrb[10].mxu1 %v675_v0 }
 0x157   :  { %7265 = vmatpush1.bf16.msra.mxu0 %v9986_v22  ;;  %7297 = vmatpush1.bf16.msra.mxu1 %v9989_v26 }
 0x158   :  { %7267 = vmatprep.subr.bf16.mxu0 %v9994_v30  ;;  %7299 = vmatprep.subr.bf16.mxu1 %v9996_v31 }
 0x159   :  { %924 = vmatprep.mubr.f32.mxu0 %v12166_v28  ;;  %995 = vmatprep.mubr.f32.mxu1 %v12166_v28 }
 0x15b   :  { %7269 = vmatpush1.bf16.msra.mxu0 %v10001_v35  ;;  %7301 = vmatpush1.bf16.msra.mxu1 %v10005_v39 }
 0x15c   :  { %7271 = vmatprep.subr.bf16.mxu0 %v10007_v40  ;;  %7303 = vmatprep.subr.bf16.mxu1 %v10010_v44 }
 0x15f   :  { %7273 = vmatpush1.bf16.msra.mxu0 %v10015_v51  ;;  %7305 = vmatpush1.bf16.msra.mxu1 %v10019_v53 }
 0x160   :  { %7275 = vmatprep.subr.bf16.mxu0 %v10021_v54  ;;  %7307 = vmatprep.subr.bf16.mxu1 %v10024_v58 }
 0x163   :  { %7277 = vmatpush1.bf16.msra.mxu0 %v10027_v1  ;;  %7309 = vmatpush1.bf16.msra.mxu1 %v10034_v3 }
 0x164   :  { %7279 = vmatprep.subr.bf16.mxu0 %v10036_v4  ;;  %7311 = vmatprep.subr.bf16.mxu1 %v10040_v9 }
 0x167   :  { %7281 = vmatpush1.bf16.msra.mxu0 %v10049_v12  ;;  %7313 = vmatpush1.bf16.msra.mxu1 %v10054_v20 }
 0x168   :  { %7283 = vmatprep.subr.bf16.mxu0 %v10056_v24  ;;  %7315 = vmatprep.subr.bf16.mxu1 %v10059_v29 }
 0x16b   :  { %7285 = vmatpush1.bf16.msra.mxu0 %v10065_v42  ;;  %7317 = vmatpush1.bf16.msra.mxu1 %v10070_v43 }
 0x16c   :  { %7287 = vmatprep.subr.bf16.mxu0 %v10072_v45  ;;  %7319 = vmatprep.subr.bf16.mxu1 %v10076_v50 }
 0x16f   :  { %7289 = vmatpush1.bf16.msra.mxu0 %v10081_v60  ;;  %7321 = vmatpush1.bf16.msra.mxu1 %v10086_v61 }
 0x170   :  { %7291 = vmatprep.subr.bf16.mxu0 %v10088_v62  ;;  %7323 = vmatprep.subr.bf16.mxu1 %v10092_v5 }
 0x173   :  { %7293 = vmatpush1.bf16.msra.mxu0 %v10097_v8  ;;  %7325 = vmatpush1.bf16.msra.mxu1 %v10101_v10 }
 0x174   :  { %7327 = vmatprep.subr.bf16.mxu0 %v9982_v17  ;;  %7359 = vmatprep.subr.bf16.mxu1 %v9984_v21 }
 0x229   :  { %v743_v46 = vpop.f32.mrb[10].mxu0  ;;  %v814_v55 = vpop.f32.mrb[10].mxu1 }
 0x22a   :  { %v823_v14 = vrot.slane %v743_v46, 6  ;;  %v745_v32 = vpop.f32.mrb[11].mxu0  ;;  %v816_v33 = vpop.f32.mrb[11].mxu1  ;;  %v825_v15 = vrot.slane %v814_v55, 6 }
 0x22b   :  { %v824_v59 = vrot.slane %v745_v32, 6  ;;  %v826_v25 = vrot.slane %v816_v33, 6 }
 0x22c   :  { %v831_v19 = vadd.f32 %v823_v14, %v10185_v27  ;;  %v833_v18 = vadd.f32 %v825_v15, %v10191_v23 }
 0x22d   :  { %v832_v34 = vadd.f32 %v824_v59, %v10187_v57  ;;  %v834_v37 = vadd.f32 %v826_v25, %v10194_v13  ;;  %v849_v59 = vrot.slane %v10197_v36, 6 }
 0x22e   :  { %v835_v6 = vmul.f32 0.5, %v831_v19 }
 0x22f   :  { %v839_v11 = vmul.f32 0.5, %v832_v34  ;;  %v844_v41 = vmul.f32 0.5, %v834_v37 }
 0x230   :  { %9414 = vtanh.f32 %v835_v6 }
 0x231   :  { %9416 = vtanh.f32 %v839_v11 }
 0x232   :  { %9418 = vtanh.f32 %v833_v18 }
 0x233   :  { %9420 = vtanh.f32 %v844_v41 }
 0x23a   :  { %v9415_v0 = vpop.eup %9414 }
 0x23b   :  { %v9417_v46 = vpop.eup %9416  ;;  %v837_v49 = vadd.f32 1.0, %v9415_v0 }
 0x23c   :  { %v841_v32 = vadd.f32 1.0, %v9417_v46  ;;  %v9419_v55 = vpop.eup %9418 }
 0x23d   :  { %v838_v14 = vmul.f32 0.5, %v837_v49  ;;  %v9421_v33 = vpop.eup %9420 }
 0x23e   :  { %v842_v19 = vmul.f32 0.5, %v841_v32  ;;  %v846_v15 = vadd.f32 1.0, %v9421_v33 }
 0x23f   :  { %v852_v34 = vmul.f32 %v9419_v55, %v838_v14 }
 0x240   :  { %v851_v6 = vmul.f32 %v849_v59, %v842_v19  ;;  %v847_v11 = vmul.f32 0.5, %v846_v15 }
 0x242   :  { %v10239_v63 = vadd.f32 %v852_v34, %v851_v6 }
 0x244   :  { %9422 = vtanh.f32 %v10239_v63 }
 0x24e   :  { %v9423_v18 = vpop.eup %9422 }
 0x24f   :  { %v855_v25 = vmul.f32 %v9423_v18, %v847_v11 }
 0x251   :  { %856 = vst [vmem:[#allocation2] sm:$0xc] %v855_v25  ;;  %v858_v37 = vrot.slane %v855_v25, 2 }
 0x253   :  { %925 = vmatmul.mubr.f32.vlgmr.msra.gmra.mrb[12].mxu0 %v858_v37  ;;  %996 = vmatmul.mubr.f32.vlgmr.msra.gmra.mrb[12].mxu1 %v858_v37 }
 0x254   :  { %7329 = vmatpush1.bf16.msra.mxu0 %v9986_v22  ;;  %7361 = vmatpush1.bf16.msra.mxu1 %v9989_v26 }
 0x255   :  { %7331 = vmatprep.subr.bf16.mxu0 %v9994_v30  ;;  %7363 = vmatprep.subr.bf16.mxu1 %v9996_v31 }
 0x256   :  { %1107 = vmatprep.mubr.f32.mxu0 %v12166_v28  ;;  %1178 = vmatprep.mubr.f32.mxu1 %v12166_v28 }
 0x258   :  { %7333 = vmatpush1.bf16.msra.mxu0 %v10001_v35  ;;  %7365 = vmatpush1.bf16.msra.mxu1 %v10005_v39 }
 0x259   :  { %7335 = vmatprep.subr.bf16.mxu0 %v10007_v40  ;;  %7367 = vmatprep.subr.bf16.mxu1 %v10010_v44 }
 0x25c   :  { %7337 = vmatpush1.bf16.msra.mxu0 %v10015_v51  ;;  %7369 = vmatpush1.bf16.msra.mxu1 %v10019_v53 }
 0x25d   :  { %7339 = vmatprep.subr.bf16.mxu0 %v10021_v54  ;;  %7371 = vmatprep.subr.bf16.mxu1 %v10024_v58 }
 0x260   :  { %7341 = vmatpush1.bf16.msra.mxu0 %v10027_v1  ;;  %7373 = vmatpush1.bf16.msra.mxu1 %v10034_v3 }
 0x261   :  { %7343 = vmatprep.subr.bf16.mxu0 %v10036_v4  ;;  %7375 = vmatprep.subr.bf16.mxu1 %v10040_v9 }
 0x264   :  { %7345 = vmatpush1.bf16.msra.mxu0 %v10049_v12  ;;  %7377 = vmatpush1.bf16.msra.mxu1 %v10054_v20 }
 0x265   :  { %7347 = vmatprep.subr.bf16.mxu0 %v10056_v24  ;;  %7379 = vmatprep.subr.bf16.mxu1 %v10059_v29 }
 0x268   :  { %7349 = vmatpush1.bf16.msra.mxu0 %v10065_v42  ;;  %7381 = vmatpush1.bf16.msra.mxu1 %v10070_v43 }
 0x269   :  { %7351 = vmatprep.subr.bf16.mxu0 %v10072_v45  ;;  %7383 = vmatprep.subr.bf16.mxu1 %v10076_v50 }
 0x26c   :  { %7353 = vmatpush1.bf16.msra.mxu0 %v10081_v60  ;;  %7385 = vmatpush1.bf16.msra.mxu1 %v10086_v61 }
 0x26d   :  { %7355 = vmatprep.subr.bf16.mxu0 %v10088_v62  ;;  %7387 = vmatprep.subr.bf16.mxu1 %v10092_v5 }
 0x270   :  { %7357 = vmatpush1.bf16.msra.mxu0 %v10097_v8  ;;  %7389 = vmatpush1.bf16.msra.mxu1 %v10101_v10 }
 0x271   :  { %7391 = vmatprep.subr.bf16.mxu0 %v9982_v17  ;;  %7423 = vmatprep.subr.bf16.mxu1 %v9984_v21 }
 0x326   :  { %v926_v49 = vpop.f32.mrb[12].mxu0  ;;  %v997_v36 = vpop.f32.mrb[12].mxu1 }
 0x327   :  { %v1006_v41 = vrot.slane %v926_v49, 4  ;;  %v928_v0 = vpop.f32.mrb[13].mxu0  ;;  %v999_v46 = vpop.f32.mrb[13].mxu1  ;;  %v1008_v55 = vrot.slane %v997_v36, 4 }
 0x328   :  { %v1007_v32 = vrot.slane %v928_v0, 4  ;;  %v1009_v33 = vrot.slane %v999_v46, 4 }
 0x329   :  { %v1014_v14 = vadd.f32 %v1006_v41, %v10185_v27  ;;  %v1016_v6 = vadd.f32 %v1008_v55, %v10191_v23 }
 0x32a   :  { %v1015_v59 = vadd.f32 %v1007_v32, %v10187_v57  ;;  %v1017_v15 = vadd.f32 %v1009_v33, %v10194_v13  ;;  %v1032_v32 = vrot.slane %v10239_v63, 6 }
 0x32b   :  { %v1018_v19 = vmul.f32 0.5, %v1014_v14 }
 0x32c   :  { %v1022_v34 = vmul.f32 0.5, %v1015_v59  ;;  %v1027_v11 = vmul.f32 0.5, %v1017_v15 }
 0x32d   :  { %9424 = vtanh.f32 %v1018_v19 }
 0x32e   :  { %9426 = vtanh.f32 %v1022_v34 }
 0x32f   :  { %9428 = vtanh.f32 %v1016_v6 }
 0x330   :  { %9430 = vtanh.f32 %v1027_v11 }
 0x337   :  { %v9425_v18 = vpop.eup %9424 }
 0x338   :  { %v9427_v25 = vpop.eup %9426  ;;  %v1020_v37 = vadd.f32 1.0, %v9425_v18 }
 0x339   :  { %v1024_v49 = vadd.f32 1.0, %v9427_v25  ;;  %v9429_v36 = vpop.eup %9428 }
 0x33a   :  { %v1021_v41 = vmul.f32 0.5, %v1020_v37  ;;  %v9431_v46 = vpop.eup %9430 }
 0x33b   :  { %v1025_v0 = vmul.f32 0.5, %v1024_v49  ;;  %v1029_v55 = vadd.f32 1.0, %v9431_v46 }
 0x33c   :  { %v1035_v14 = vmul.f32 %v9429_v36, %v1021_v41 }
 0x33d   :  { %v1034_v59 = vmul.f32 %v1032_v32, %v1025_v0  ;;  %v1030_v34 = vmul.f32 0.5, %v1029_v55 }
 0x33f   :  { %v10281_v19 = vadd.f32 %v1035_v14, %v1034_v59 }
 0x341   :  { %9432 = vtanh.f32 %v10281_v19 }
 0x34b   :  { %v9433_v6 = vpop.eup %9432 }
 0x34c   :  { %v1038_v33 = vmul.f32 %v9433_v6, %v1030_v34 }
 0x34e   :  { %1039 = vst [vmem:[#allocation2] sm:$0x30] %v1038_v33  ;;  %v1041_v15 = vrot.slane %v1038_v33, 4 }
 0x350   :  { %1108 = vmatmul.mubr.f32.vlgmr.msra.gmra.mrb[14].mxu0 %v1041_v15  ;;  %1179 = vmatmul.mubr.f32.vlgmr.msra.gmra.mrb[14].mxu1 %v1041_v15 }
 0x351   :  { %7393 = vmatpush1.bf16.msra.mxu0 %v9986_v22  ;;  %7425 = vmatpush1.bf16.msra.mxu1 %v9989_v26 }
 0x352   :  { %7395 = vmatprep.subr.bf16.mxu0 %v9994_v30  ;;  %7427 = vmatprep.subr.bf16.mxu1 %v9996_v31 }
 0x353   :  { %1290 = vmatprep.mubr.f32.mxu0 %v12166_v28  ;;  %1361 = vmatprep.mubr.f32.mxu1 %v12166_v28 }
 0x355   :  { %7397 = vmatpush1.bf16.msra.mxu0 %v10001_v35  ;;  %7429 = vmatpush1.bf16.msra.mxu1 %v10005_v39 }
 0x356   :  { %7399 = vmatprep.subr.bf16.mxu0 %v10007_v40  ;;  %7431 = vmatprep.subr.bf16.mxu1 %v10010_v44 }
 0x359   :  { %7401 = vmatpush1.bf16.msra.mxu0 %v10015_v51  ;;  %7433 = vmatpush1.bf16.msra.mxu1 %v10019_v53 }
 0x35a   :  { %7403 = vmatprep.subr.bf16.mxu0 %v10021_v54  ;;  %7435 = vmatprep.subr.bf16.mxu1 %v10024_v58 }
 0x35d   :  { %7405 = vmatpush1.bf16.msra.mxu0 %v10027_v1  ;;  %7437 = vmatpush1.bf16.msra.mxu1 %v10034_v3 }
 0x35e   :  { %7407 = vmatprep.subr.bf16.mxu0 %v10036_v4  ;;  %7439 = vmatprep.subr.bf16.mxu1 %v10040_v9 }
 0x361   :  { %7409 = vmatpush1.bf16.msra.mxu0 %v10049_v12  ;;  %7441 = vmatpush1.bf16.msra.mxu1 %v10054_v20 }
 0x362   :  { %7411 = vmatprep.subr.bf16.mxu0 %v10056_v24  ;;  %7443 = vmatprep.subr.bf16.mxu1 %v10059_v29 }
 0x365   :  { %7413 = vmatpush1.bf16.msra.mxu0 %v10065_v42  ;;  %7445 = vmatpush1.bf16.msra.mxu1 %v10070_v43 }
 0x366   :  { %7415 = vmatprep.subr.bf16.mxu0 %v10072_v45  ;;  %7447 = vmatprep.subr.bf16.mxu1 %v10076_v50 }
 0x369   :  { %7417 = vmatpush1.bf16.msra.mxu0 %v10081_v60  ;;  %7449 = vmatpush1.bf16.msra.mxu1 %v10086_v61 }
 0x36a   :  { %7419 = vmatprep.subr.bf16.mxu0 %v10088_v62  ;;  %7451 = vmatprep.subr.bf16.mxu1 %v10092_v5 }
 0x36d   :  { %7421 = vmatpush1.bf16.msra.mxu0 %v10097_v8  ;;  %7453 = vmatpush1.bf16.msra.mxu1 %v10101_v10 }
 0x36e   :  { %7455 = vmatprep.subr.bf16.mxu0 %v9982_v17  ;;  %7487 = vmatprep.subr.bf16.mxu1 %v9984_v21 }
 0x423   :  { %v1109_v63 = vpop.f32.mrb[14].mxu0  ;;  %v1180_v11 = vpop.f32.mrb[14].mxu1 }
 0x424   :  { %v1189_v18 = vrot.slane %v1109_v63, 2  ;;  %v1111_v25 = vpop.f32.mrb[15].mxu0  ;;  %v1182_v37 = vpop.f32.mrb[15].mxu1  ;;  %v1191_v36 = vrot.slane %v1180_v11, 2 }
 0x425   :  { %v1190_v49 = vrot.slane %v1111_v25, 2  ;;  %v1192_v46 = vrot.slane %v1182_v37, 2 }
 0x426   :  { %v1197_v41 = vadd.f32 %v1189_v18, %v10185_v27  ;;  %v1199_v59 = vadd.f32 %v1191_v36, %v10191_v23 }
 0x427   :  { %v1198_v0 = vadd.f32 %v1190_v49, %v10187_v57  ;;  %v1200_v55 = vadd.f32 %v1192_v46, %v10194_v13  ;;  %v1215_v57 = vrot.slane %v10281_v19, 6 }
 0x428   :  { %v1201_v32 = vmul.f32 0.5, %v1197_v41 }
 0x429   :  { %v1205_v14 = vmul.f32 0.5, %v1198_v0  ;;  %v1210_v34 = vmul.f32 0.5, %v1200_v55 }
 0x42a   :  { %9434 = vtanh.f32 %v1201_v32 }
 0x42b   :  { %9436 = vtanh.f32 %v1205_v14 }
 0x42c   :  { %9438 = vtanh.f32 %v1199_v59 }
 0x42d   :  { %9440 = vtanh.f32 %v1210_v34 }
 0x434   :  { %v9435_v6 = vpop.eup %9434 }
 0x435   :  { %v9437_v33 = vpop.eup %9436  ;;  %v1203_v15 = vadd.f32 1.0, %v9435_v6 }
 0x436   :  { %v1207_v63 = vadd.f32 1.0, %v9437_v33  ;;  %v9439_v11 = vpop.eup %9438 }
 0x437   :  { %v1204_v27 = vmul.f32 0.5, %v1203_v15  ;;  %v9441_v23 = vpop.eup %9440 }
 0x438   :  { %v1208_v18 = vmul.f32 0.5, %v1207_v63  ;;  %v1212_v37 = vadd.f32 1.0, %v9441_v23 }
 0x439   :  { %v1218_v25 = vmul.f32 %v9439_v11, %v1204_v27 }
 0x43a   :  { %v1217_v49 = vmul.f32 %v1215_v57, %v1208_v18  ;;  %v1213_v13 = vmul.f32 0.5, %v1212_v37 }
 0x43c   :  { %v10323_v41 = vadd.f32 %v1218_v25, %v1217_v49 }
 0x43e   :  { %9442 = vtanh.f32 %v10323_v41 }
 0x448   :  { %v9443_v36 = vpop.eup %9442 }
 0x449   :  { %v1221_v0 = vmul.f32 %v9443_v36, %v1213_v13  ;;  %v1386_v13 = vrot.slane %v10323_v41, 6 }
 0x44b   :  { %1222 = vst [vmem:[#allocation2] sm:$0xc0] %v1221_v0  ;;  %v1224_v32 = vrot.slane %v1221_v0, 6 }
 0x44d   :  { %1291 = vmatmul.mubr.f32.vlgmr.msra.gmra.mrb[16].mxu0 %v1224_v32  ;;  %1362 = vmatmul.mubr.f32.vlgmr.msra.gmra.mrb[16].mxu1 %v1224_v32 }
 0x44e   :  { %7457 = vmatpush1.bf16.msra.mxu0 %v9986_v22  ;;  %7489 = vmatpush1.bf16.msra.mxu1 %v9989_v26 }
 0x44f   :  { %7459 = vmatprep.subr.bf16.mxu0 %v9994_v30  ;;  %7491 = vmatprep.subr.bf16.mxu1 %v9996_v31 }
 0x450   :  { %1458 = vmatprep.mubr.f32.mxu0 %v12166_v28  ;;  %1529 = vmatprep.mubr.f32.mxu1 %v12166_v28 }
 0x452   :  { %7461 = vmatpush1.bf16.msra.mxu0 %v10001_v35  ;;  %7493 = vmatpush1.bf16.msra.mxu1 %v10005_v39 }
 0x453   :  { %7463 = vmatprep.subr.bf16.mxu0 %v10007_v40  ;;  %7495 = vmatprep.subr.bf16.mxu1 %v10010_v44 }
 0x456   :  { %7465 = vmatpush1.bf16.msra.mxu0 %v10015_v51  ;;  %7497 = vmatpush1.bf16.msra.mxu1 %v10019_v53 }
 0x457   :  { %7467 = vmatprep.subr.bf16.mxu0 %v10021_v54  ;;  %7499 = vmatprep.subr.bf16.mxu1 %v10024_v58 }
 0x45a   :  { %7469 = vmatpush1.bf16.msra.mxu0 %v10027_v1  ;;  %7501 = vmatpush1.bf16.msra.mxu1 %v10034_v3 }
 0x45b   :  { %7471 = vmatprep.subr.bf16.mxu0 %v10036_v4  ;;  %7503 = vmatprep.subr.bf16.mxu1 %v10040_v9 }
 0x45e   :  { %7473 = vmatpush1.bf16.msra.mxu0 %v10049_v12  ;;  %7505 = vmatpush1.bf16.msra.mxu1 %v10054_v20 }
 0x45f   :  { %7475 = vmatprep.subr.bf16.mxu0 %v10056_v24  ;;  %7507 = vmatprep.subr.bf16.mxu1 %v10059_v29 }
 0x462   :  { %7477 = vmatpush1.bf16.msra.mxu0 %v10065_v42  ;;  %7509 = vmatpush1.bf16.msra.mxu1 %v10070_v43 }
 0x463   :  { %7479 = vmatprep.subr.bf16.mxu0 %v10072_v45  ;;  %7511 = vmatprep.subr.bf16.mxu1 %v10076_v50 }
 0x466   :  { %7481 = vmatpush1.bf16.msra.mxu0 %v10081_v60  ;;  %7513 = vmatpush1.bf16.msra.mxu1 %v10086_v61 }
 0x467   :  { %7483 = vmatprep.subr.bf16.mxu0 %v10088_v62  ;;  %7515 = vmatprep.subr.bf16.mxu1 %v10092_v5 }
 0x46a   :  { %7485 = vmatpush1.bf16.msra.mxu0 %v10097_v8  ;;  %7517 = vmatpush1.bf16.msra.mxu1 %v10101_v10 }
 0x46b   :  { %7519 = vmatprep.subr.bf16.mxu0 %v9982_v17  ;;  %7551 = vmatprep.subr.bf16.mxu1 %v9984_v21 }
 0x520   :  { %v1292_v19 = vpop.f32.mrb[16].mxu0  ;;  %v1363_v14 = vpop.f32.mrb[16].mxu1 }
 0x521   :  { %v1368_v59 = vadd.f32 %v1292_v19, %v10161_v38  ;;  %v1294_v46 = vpop.f32.mrb[17].mxu0  ;;  %v1365_v55 = vpop.f32.mrb[17].mxu1  ;;  %v1370_v15 = vadd.f32 %v1363_v14, %v10165_v48 }
 0x522   :  { %v1369_v34 = vadd.f32 %v1294_v46, %v10163_v47  ;;  %v1371_v63 = vadd.f32 %v1365_v55, %v10167_v52 }
 0x523   :  { %v1372_v6 = vmul.f32 0.5, %v1368_v59 }
 0x524   :  { %v1376_v33 = vmul.f32 0.5, %v1369_v34  ;;  %v1381_v27 = vmul.f32 0.5, %v1371_v63 }
 0x525   :  { %9444 = vtanh.f32 %v1372_v6 }
 0x526   :  { %9446 = vtanh.f32 %v1376_v33 }
 0x527   :  { %9448 = vtanh.f32 %v1370_v15 }
 0x528   :  { %9450 = vtanh.f32 %v1381_v27 }
 0x52f   :  { %v9445_v11 = vpop.eup %9444 }
 0x530   :  { %v9447_v18 = vpop.eup %9446  ;;  %v1374_v57 = vadd.f32 1.0, %v9445_v11 }
 0x531   :  { %v1378_v25 = vadd.f32 1.0, %v9447_v18  ;;  %v9449_v23 = vpop.eup %9448 }
 0x532   :  { %v1375_v49 = vmul.f32 0.5, %v1374_v57  ;;  %v9451_v19 = vpop.eup %9450 }
 0x533   :  { %v1379_v37 = vmul.f32 0.5, %v1378_v25  ;;  %v1383_v14 = vadd.f32 1.0, %v9451_v19 }
 0x534   :  { %v1389_v36 = vmul.f32 %v9449_v23, %v1375_v49 }
 0x535   :  { %v1388_v0 = vmul.f32 %v1386_v13, %v1379_v37  ;;  %v1384_v59 = vmul.f32 0.5, %v1383_v14 }
 0x537   :  { %v10365_v32 = vadd.f32 %v1389_v36, %v1388_v0 }
 0x539   :  { %9452 = vtanh.f32 %v10365_v32 }
 0x543   :  { %v9453_v46 = vpop.eup %9452 }
 0x544   :  { %v1392_v55 = vmul.f32 %v9453_v46, %v1384_v59 }
 0x546   :  { %1393 = vst [vmem:[#allocation2 + $0x8] sm:$0x3] %v1392_v55  ;;  %1459 = vmatmul.mubr.f32.vlgmr.msra.gmra.mrb[18].mxu0 %v1392_v55  ;;  %1530 = vmatmul.mubr.f32.vlgmr.msra.gmra.mrb[18].mxu1 %v1392_v55 }
 0x547   :  { %7521 = vmatpush1.bf16.msra.mxu0 %v9986_v22  ;;  %7553 = vmatpush1.bf16.msra.mxu1 %v9989_v26 }
 0x548   :  { %7523 = vmatprep.subr.bf16.mxu0 %v9994_v30  ;;  %7555 = vmatprep.subr.bf16.mxu1 %v9996_v31 }
 0x549   :  { %1641 = vmatprep.mubr.f32.mxu0 %v12166_v28  ;;  %1712 = vmatprep.mubr.f32.mxu1 %v12166_v28 }
 0x54b   :  { %7525 = vmatpush1.bf16.msra.mxu0 %v10001_v35  ;;  %7557 = vmatpush1.bf16.msra.mxu1 %v10005_v39 }
 0x54c   :  { %7527 = vmatprep.subr.bf16.mxu0 %v10007_v40  ;;  %7559 = vmatprep.subr.bf16.mxu1 %v10010_v44 }
 0x54f   :  { %7529 = vmatpush1.bf16.msra.mxu0 %v10015_v51  ;;  %7561 = vmatpush1.bf16.msra.mxu1 %v10019_v53 }
 0x550   :  { %7531 = vmatprep.subr.bf16.mxu0 %v10021_v54  ;;  %7563 = vmatprep.subr.bf16.mxu1 %v10024_v58 }
 0x553   :  { %7533 = vmatpush1.bf16.msra.mxu0 %v10027_v1  ;;  %7565 = vmatpush1.bf16.msra.mxu1 %v10034_v3 }
 0x554   :  { %7535 = vmatprep.subr.bf16.mxu0 %v10036_v4  ;;  %7567 = vmatprep.subr.bf16.mxu1 %v10040_v9 }
 0x557   :  { %7537 = vmatpush1.bf16.msra.mxu0 %v10049_v12  ;;  %7569 = vmatpush1.bf16.msra.mxu1 %v10054_v20 }
 0x558   :  { %7539 = vmatprep.subr.bf16.mxu0 %v10056_v24  ;;  %7571 = vmatprep.subr.bf16.mxu1 %v10059_v29 }
 0x55b   :  { %7541 = vmatpush1.bf16.msra.mxu0 %v10065_v42  ;;  %7573 = vmatpush1.bf16.msra.mxu1 %v10070_v43 }
 0x55c   :  { %7543 = vmatprep.subr.bf16.mxu0 %v10072_v45  ;;  %7575 = vmatprep.subr.bf16.mxu1 %v10076_v50 }
 0x55f   :  { %7545 = vmatpush1.bf16.msra.mxu0 %v10081_v60  ;;  %7577 = vmatpush1.bf16.msra.mxu1 %v10086_v61 }
 0x560   :  { %7547 = vmatprep.subr.bf16.mxu0 %v10088_v62  ;;  %7579 = vmatprep.subr.bf16.mxu1 %v10092_v5 }
 0x563   :  { %7549 = vmatpush1.bf16.msra.mxu0 %v10097_v8  ;;  %7581 = vmatpush1.bf16.msra.mxu1 %v10101_v10 }
 0x564   :  { %7583 = vmatprep.subr.bf16.mxu0 %v9982_v17  ;;  %7615 = vmatprep.subr.bf16.mxu1 %v9984_v21 }
 0x619   :  { %v1460_v41 = vpop.f32.mrb[18].mxu0  ;;  %v1531_v34 = vpop.f32.mrb[18].mxu1 }
 0x61a   :  { %v1540_v6 = vrot.slane %v1460_v41, 6  ;;  %v1462_v33 = vpop.f32.mrb[19].mxu0  ;;  %v1533_v15 = vpop.f32.mrb[19].mxu1  ;;  %v1542_v11 = vrot.slane %v1531_v34, 6  ;;  %v1566_v41 = vrot.slane %v10365_v32, 6  ;;  %v172_v32 = vld [vmem:[#allocation6 + $0x8] sm:$0xff] }
 0x61b   :  { %v1541_v63 = vrot.slane %v1462_v33, 6  ;;  %v1543_v23 = vrot.slane %v1533_v15, 6 }
 0x61c   :  { %v1548_v27 = vadd.f32 %v1540_v6, %v10161_v38  ;;  %v1550_v49 = vadd.f32 %v1542_v11, %v10165_v48 }
 0x61d   :  { %v1549_v18 = vadd.f32 %v1541_v63, %v10163_v47  ;;  %v1551_v37 = vadd.f32 %v1543_v23, %v10167_v52 }
 0x61e   :  { %v1552_v57 = vmul.f32 0.5, %v1548_v27 }
 0x61f   :  { %v1556_v25 = vmul.f32 0.5, %v1549_v18  ;;  %v1561_v13 = vmul.f32 0.5, %v1551_v37  ;;  %v178_v37 = vld [vmem:[#allocation6 + $0x38] sm:$0xff] }
 0x620   :  { %9454 = vtanh.f32 %v1552_v57 }
 0x621   :  { %9456 = vtanh.f32 %v1556_v25  ;;  %v176_v25 = vld [vmem:[#allocation6 + $0x28] sm:$0xff] }
 0x622   :  { %9458 = vtanh.f32 %v1550_v49  ;;  %v174_v49 = vld [vmem:[#allocation6 + $0x18] sm:$0xff]  ;;  %v10442_v23 = vpack.c.bf16 %v176_v25, %v172_v32 }
 0x623   :  { %9460 = vtanh.f32 %v1561_v13  ;;  %v10444_v13 = vpack.c.bf16 %v178_v37, %v174_v49 }
 0x624   :  { %12167 = vst [vmem:[#allocation51_spill] sm:$0xff] %v10442_v23 }
 0x625   :  { %12168 = vst [vmem:[#allocation52_spill] sm:$0xff] %v10444_v13 }
 0x62a   :  { %v9455_v36 = vpop.eup %9454 }
 0x62b   :  { %v9457_v0 = vpop.eup %9456  ;;  %v1554_v19 = vadd.f32 1.0, %v9455_v36 }
 0x62c   :  { %v1558_v14 = vadd.f32 1.0, %v9457_v0  ;;  %v9459_v46 = vpop.eup %9458 }
 0x62d   :  { %v1555_v59 = vmul.f32 0.5, %v1554_v19  ;;  %v9461_v15 = vpop.eup %9460 }
 0x62e   :  { %v1559_v55 = vmul.f32 0.5, %v1558_v14  ;;  %v1563_v63 = vadd.f32 1.0, %v9461_v15 }
 0x62f   :  { %v1569_v34 = vmul.f32 %v9459_v46, %v1555_v59 }
 0x630   :  { %v1568_v6 = vmul.f32 %v1566_v41, %v1559_v55  ;;  %v1564_v27 = vmul.f32 0.5, %v1563_v63 }
 0x632   :  { %v10407_v33 = vadd.f32 %v1569_v34, %v1568_v6 }
 0x634   :  { %9462 = vtanh.f32 %v10407_v33 }
 0x63e   :  { %v9463_v11 = vpop.eup %9462 }
 0x63f   :  { %v1572_v18 = vmul.f32 %v9463_v11, %v1564_v27 }
 0x641   :  { %1573 = vst [vmem:[#allocation2 + $0x8] sm:$0xc] %v1572_v18  ;;  %v1575_v57 = vrot.slane %v1572_v18, 2 }
 0x643   :  { %1642 = vmatmul.mubr.f32.vlgmr.msra.gmra.mrb[20].mxu0 %v1575_v57  ;;  %1713 = vmatmul.mubr.f32.vlgmr.msra.gmra.mrb[20].mxu1 %v1575_v57 }
 0x644   :  { %7585 = vmatpush1.bf16.msra.mxu0 %v9986_v22  ;;  %7617 = vmatpush1.bf16.msra.mxu1 %v9989_v26 }
 0x645   :  { %7587 = vmatprep.subr.bf16.mxu0 %v9994_v30  ;;  %7619 = vmatprep.subr.bf16.mxu1 %v9996_v31 }
 0x646   :  { %1824 = vmatprep.mubr.f32.mxu0 %v12166_v28  ;;  %1895 = vmatprep.mubr.f32.mxu1 %v12166_v28 }
 0x648   :  { %7589 = vmatpush1.bf16.msra.mxu0 %v10001_v35  ;;  %7621 = vmatpush1.bf16.msra.mxu1 %v10005_v39 }
 0x649   :  { %7591 = vmatprep.subr.bf16.mxu0 %v10007_v40  ;;  %7623 = vmatprep.subr.bf16.mxu1 %v10010_v44 }
 0x64c   :  { %7593 = vmatpush1.bf16.msra.mxu0 %v10015_v51  ;;  %7625 = vmatpush1.bf16.msra.mxu1 %v10019_v53 }
 0x64d   :  { %7595 = vmatprep.subr.bf16.mxu0 %v10021_v54  ;;  %7627 = vmatprep.subr.bf16.mxu1 %v10024_v58 }
 0x650   :  { %7597 = vmatpush1.bf16.msra.mxu0 %v10027_v1  ;;  %7629 = vmatpush1.bf16.msra.mxu1 %v10034_v3 }
 0x651   :  { %7599 = vmatprep.subr.bf16.mxu0 %v10036_v4  ;;  %7631 = vmatprep.subr.bf16.mxu1 %v10040_v9  ;;  %v293_v9 = vld [vmem:[#allocation8 + $0x1d0] sm:$0xff] }
 0x652   :  { %v297_v4 = vld [vmem:[#allocation8 + $0x1f0] sm:$0xff] }
 0x654   :  { %7601 = vmatpush1.bf16.msra.mxu0 %v10049_v12  ;;  %7633 = vmatpush1.bf16.msra.mxu1 %v10054_v20  ;;  %v291_v20 = vld [vmem:[#allocation8 + $0x1c0] sm:$0xff] }
 0x655   :  { %7603 = vmatprep.subr.bf16.mxu0 %v10056_v24  ;;  %7635 = vmatprep.subr.bf16.mxu1 %v10059_v29  ;;  %v290_v29 = vld [vmem:[#allocation8 + $0x1b8] sm:$0xff] }
 0x656   :  { %v298_v24 = vld [vmem:[#allocation8 + $0x1f8] sm:$0xff] }
 0x658   :  { %7605 = vmatpush1.bf16.msra.mxu0 %v10065_v42  ;;  %7637 = vmatpush1.bf16.msra.mxu1 %v10070_v43  ;;  %v288_v43 = vld [vmem:[#allocation8 + $0x1a8] sm:$0xff]  ;;  %v286_v42 = vld [vmem:[#allocation8 + $0x198] sm:$0xff] }
 0x659   :  { %7607 = vmatprep.subr.bf16.mxu0 %v10072_v45  ;;  %7639 = vmatprep.subr.bf16.mxu1 %v10076_v50  ;;  %v284_v50 = vld [vmem:[#allocation8 + $0x188] sm:$0xff] }
 0x65c   :  { %7609 = vmatpush1.bf16.msra.mxu0 %v10081_v60  ;;  %7641 = vmatpush1.bf16.msra.mxu1 %v10086_v61  ;;  %v280_v61 = vld [vmem:[#allocation8 + $0x168] sm:$0xff]  ;;  %v278_v60 = vld [vmem:[#allocation8 + $0x158] sm:$0xff] }
 0x65d   :  { %7611 = vmatprep.subr.bf16.mxu0 %v10088_v62  ;;  %7643 = vmatprep.subr.bf16.mxu1 %v10092_v5  ;;  %v276_v62 = vld [vmem:[#allocation8 + $0x148] sm:$0xff] }
 0x660   :  { %7613 = vmatpush1.bf16.msra.mxu0 %v10097_v8  ;;  %7645 = vmatpush1.bf16.msra.mxu1 %v10101_v10  ;;  %v272_v10 = vld [vmem:[#allocation8 + $0x128] sm:$0xff]  ;;  %v271_v8 = vld [vmem:[#allocation8 + $0x120] sm:$0xff] }
 0x661   :  { %7647 = vmatprep.subr.bf16.mxu0 %v10442_v23  ;;  %7679 = vmatprep.subr.bf16.mxu1 %v10444_v13  ;;  %v188_v13 = vld [vmem:[#allocation6 + $0x88] sm:$0xff] }
 0x662   :  { %v192_v23 = vld [vmem:[#allocation6 + $0xa8] sm:$0xff] }
 0x716   :  { %v1643_v36 = vpop.f32.mrb[20].mxu0  ;;  %v1714_v0 = vpop.f32.mrb[20].mxu1 }
 0x717   :  { %v1723_v19 = vrot.slane %v1643_v36, 4  ;;  %v1645_v14 = vpop.f32.mrb[21].mxu0  ;;  %v1716_v59 = vpop.f32.mrb[21].mxu1  ;;  %v1725_v41 = vrot.slane %v1714_v0, 4 }
 0x718   :  { %v1724_v46 = vrot.slane %v1645_v14, 4  ;;  %v1726_v27 = vrot.slane %v1716_v59, 4 }
 0x719   :  { %v1731_v55 = vadd.f32 %v1723_v19, %v10161_v38  ;;  %v1733_v63 = vadd.f32 %v1725_v41, %v10165_v48  ;;  %v1749_v19 = vrot.slane %v10407_v33, 6 }
 0x71a   :  { %v1732_v34 = vadd.f32 %v1724_v46, %v10163_v47  ;;  %v1734_v11 = vadd.f32 %v1726_v27, %v10167_v52  ;;  %v177_v27 = vld [vmem:[#allocation6 + $0x30] sm:$0xff] }
 0x71b   :  { %v1735_v6 = vmul.f32 0.5, %v1731_v55 }
 0x71c   :  { %v1739_v15 = vmul.f32 0.5, %v1732_v34  ;;  %v1744_v18 = vmul.f32 0.5, %v1734_v11  ;;  %v171_v34 = vld [vmem:[#allocation6] sm:$0xff]  ;;  %v180_v11 = vld [vmem:[#allocation6 + $0x48] sm:$0xff] }
 0x71d   :  { %9464 = vtanh.f32 %v1735_v6  ;;  %v175_v6 = vld [vmem:[#allocation6 + $0x20] sm:$0xff] }
 0x71e   :  { %9466 = vtanh.f32 %v1739_v15  ;;  %v10456_v33 = vpack.c.bf16 %v175_v6, %v171_v34 }
 0x71f   :  { %9468 = vtanh.f32 %v1733_v63  ;;  %v173_v63 = vld [vmem:[#allocation6 + $0x10] sm:$0xff] }
 0x720   :  { %9470 = vtanh.f32 %v1744_v18  ;;  %12169 = vst [vmem:[#allocation53_spill] sm:$0xff] %v10456_v33 }
 0x727   :  { %v9465_v57 = vpop.eup %9464 }
 0x728   :  { %v9467_v32 = vpop.eup %9466  ;;  %v1737_v25 = vadd.f32 1.0, %v9465_v57  ;;  %v184_v57 = vld [vmem:[#allocation6 + $0x68] sm:$0xff] }
 0x729   :  { %v1741_v49 = vadd.f32 1.0, %v9467_v32  ;;  %v9469_v36 = vpop.eup %9468  ;;  %v182_v32 = vld [vmem:[#allocation6 + $0x58] sm:$0xff] }
 0x72a   :  { %v1738_v37 = vmul.f32 0.5, %v1737_v25  ;;  %v9471_v59 = vpop.eup %9470  ;;  %v186_v25 = vld [vmem:[#allocation6 + $0x78] sm:$0xff] }
 0x72b   :  { %v1742_v0 = vmul.f32 0.5, %v1741_v49  ;;  %v1746_v41 = vadd.f32 1.0, %v9471_v59  ;;  %v181_v59 = vld [vmem:[#allocation6 + $0x50] sm:$0xff] }
 0x72c   :  { %v1752_v14 = vmul.f32 %v9469_v36, %v1738_v37  ;;  %v10458_v37 = vpack.c.bf16 %v177_v27, %v173_v63  ;;  %v179_v36 = vld [vmem:[#allocation6 + $0x40] sm:$0xff]  ;;  %v10472_v27 = vpack.c.bf16 %v192_v23, %v188_v13 }
 0x72d   :  { %v1751_v46 = vmul.f32 %v1749_v19, %v1742_v0  ;;  %v1747_v15 = vmul.f32 0.5, %v1746_v41  ;;  %v183_v0 = vld [vmem:[#allocation6 + $0x60] sm:$0xff]  ;;  %v185_v41 = vld [vmem:[#allocation6 + $0x70] sm:$0xff] }
 0x72e   :  { %12170 = vst [vmem:[#allocation54_spill] sm:$0xff] %v10458_v37  ;;  %v10466_v34 = vpack.c.bf16 %v183_v0, %v179_v36  ;;  %v10468_v6 = vpack.c.bf16 %v185_v41, %v181_v59  ;;  %v191_v63 = vld [vmem:[#allocation6 + $0xa0] sm:$0xff]  ;;  %12175 = vst [vmem:[#allocation59_spill] sm:$0xff] %v10472_v27  ;;  %v197_v59 = vld [vmem:[#allocation6 + $0xd0] sm:$0xff] }
 0x72f   :  { %v10453_v55 = vadd.f32 %v1752_v14, %v1751_v46  ;;  %v10460_v14 = vpack.c.bf16 %v184_v57, %v180_v11  ;;  %v10462_v46 = vpack.c.bf16 %v186_v25, %v182_v32  ;;  %v10474_v11 = vpack.c.bf16 %v194_v7, %v190_v56  ;;  %v193_v57 = vld [vmem:[#allocation6 + $0xb0] sm:$0xff]  ;;  %v196_v32 = vld [vmem:[#allocation6 + $0xc8] sm:$0xff]  ;;  %v195_v56 = vld [vmem:[#allocation6 + $0xc0] sm:$0xff] }
 0x730   :  { %12173 = vst [vmem:[#allocation57_spill] sm:$0xff] %v10466_v34  ;;  %12174 = vst [vmem:[#allocation58_spill] sm:$0xff] %v10468_v6  ;;  %v200_v25 = vld [vmem:[#allocation6 + $0xe8] sm:$0xff]  ;;  %v199_v7 = vld [vmem:[#allocation6 + $0xe0] sm:$0xff] }
 0x731   :  { %9472 = vtanh.f32 %v10453_v55  ;;  %12171 = vst [vmem:[#allocation55_spill] sm:$0xff] %v10460_v14  ;;  %12172 = vst [vmem:[#allocation56_spill] sm:$0xff] %v10462_v46  ;;  %v10486_v13 = vpack.c.bf16 %v200_v25, %v196_v32  ;;  %v201_v41 = vld [vmem:[#allocation6 + $0xf0] sm:$0xff] }
 0x732   :  { %12176 = vst [vmem:[#allocation60_spill] sm:$0xff] %v10474_v11 }
 0x733   :  { %12179 = vst [vmem:[#allocation63_spill] sm:$0xff] %v10486_v13 }
 0x73b   :  { %v9473_v18 = vpop.eup %9472 }
 0x73c   :  { %v1755_v49 = vmul.f32 %v9473_v18, %v1747_v15  ;;  %v187_v15 = vld [vmem:[#allocation6 + $0x80] sm:$0xff]  ;;  %v189_v18 = vld [vmem:[#allocation6 + $0x90] sm:$0xff] }
 0x73d   :  { %v10480_v36 = vpack.c.bf16 %v191_v63, %v187_v15  ;;  %v10482_v23 = vpack.c.bf16 %v193_v57, %v189_v18  ;;  %v10492_v15 = vpack.c.bf16 %v199_v7, %v195_v56  ;;  %v10494_v63 = vpack.c.bf16 %v201_v41, %v197_v59  ;;  %v203_v18 = vld [vmem:[#allocation6 + $0x100] sm:$0xff] }
 0x73e   :  { %1756 = vst [vmem:[#allocation2 + $0x8] sm:$0x30] %v1755_v49  ;;  %v1758_v19 = vrot.slane %v1755_v49, 4  ;;  %v198_v49 = vld [vmem:[#allocation6 + $0xd8] sm:$0xff]  ;;  %v207_v57 = vld [vmem:[#allocation6 + $0x120] sm:$0xff] }
 0x73f   :  { %12177 = vst [vmem:[#allocation61_spill] sm:$0xff] %v10480_v36  ;;  %12178 = vst [vmem:[#allocation62_spill] sm:$0xff] %v10482_v23  ;;  %v10504_v56 = vpack.c.bf16 %v207_v57, %v203_v18  ;;  %v211_v59 = vld [vmem:[#allocation6 + $0x140] sm:$0xff] }
 0x740   :  { %1825 = vmatmul.mubr.f32.vlgmr.msra.gmra.mrb[22].mxu0 %v1758_v19  ;;  %1896 = vmatmul.mubr.f32.vlgmr.msra.gmra.mrb[22].mxu1 %v1758_v19  ;;  %v202_v19 = vld [vmem:[#allocation6 + $0xf8] sm:$0xff]  ;;  %12181 = vst [vmem:[#allocation65_spill] sm:$0xff] %v10492_v15  ;;  %12182 = vst [vmem:[#allocation66_spill] sm:$0xff] %v10494_v63  ;;  %v215_v41 = vld [vmem:[#allocation6 + $0x160] sm:$0xff] }
 0x741   :  { %7649 = vmatpush1.bf16.msra.mxu0 %v10456_v33  ;;  %7681 = vmatpush1.bf16.msra.mxu1 %v10458_v37  ;;  %v10488_v0 = vpack.c.bf16 %v202_v19, %v198_v49  ;;  %v205_v49 = vld [vmem:[#allocation6 + $0x110] sm:$0xff]  ;;  %12185 = vst [vmem:[#allocation69_spill] sm:$0xff] %v10504_v56  ;;  %v10516_v18 = vpack.c.bf16 %v215_v41, %v211_v59 }
 0x742   :  { %7651 = vmatprep.subr.bf16.mxu0 %v10460_v14  ;;  %7683 = vmatprep.subr.bf16.mxu1 %v10462_v46  ;;  %v204_v46 = vld [vmem:[#allocation6 + $0x108] sm:$0xff]  ;;  %v206_v14 = vld [vmem:[#allocation6 + $0x118] sm:$0xff]  ;;  %v209_v19 = vld [vmem:[#allocation6 + $0x130] sm:$0xff] }
 0x743   :  { %2027 = vmatprep.mubr.f32.mxu0 %v12166_v28  ;;  %2104 = vmatprep.mubr.f32.mxu1 %v12166_v28  ;;  %12180 = vst [vmem:[#allocation64_spill] sm:$0xff] %v10488_v0  ;;  %v10506_v7 = vpack.c.bf16 %v209_v19, %v205_v49  ;;  %12189 = vst [vmem:[#allocation73_spill] sm:$0xff] %v10516_v18  ;;  %v219_v49 = vld [vmem:[#allocation6 + $0x180] sm:$0xff]  ;;  %v261_v37 = vld [vmem:[#allocation8 + $0xd0] sm:$0xff] }
 0x744   :  { %v223_v19 = vld [vmem:[#allocation6 + $0x1a0] sm:$0xff]  ;;  %v265_v33 = vld [vmem:[#allocation8 + $0xf0] sm:$0xff] }
 0x745   :  { %7653 = vmatpush1.bf16.msra.mxu0 %v10466_v34  ;;  %7685 = vmatpush1.bf16.msra.mxu1 %v10468_v6  ;;  %v208_v34 = vld [vmem:[#allocation6 + $0x128] sm:$0xff]  ;;  %v210_v6 = vld [vmem:[#allocation6 + $0x138] sm:$0xff]  ;;  %12186 = vst [vmem:[#allocation70_spill] sm:$0xff] %v10506_v7  ;;  %v10528_v59 = vpack.c.bf16 %v223_v19, %v219_v49 }
 0x746   :  { %7655 = vmatprep.subr.bf16.mxu0 %v10472_v27  ;;  %7687 = vmatprep.subr.bf16.mxu1 %v10474_v11  ;;  %v10498_v32 = vpack.c.bf16 %v208_v34, %v204_v46  ;;  %v10500_v25 = vpack.c.bf16 %v210_v6, %v206_v14  ;;  %v212_v11 = vld [vmem:[#allocation6 + $0x148] sm:$0xff]  ;;  %v214_v27 = vld [vmem:[#allocation6 + $0x158] sm:$0xff]  ;;  %v213_v34 = vld [vmem:[#allocation6 + $0x150] sm:$0xff] }
 0x747   :  { %v217_v6 = vld [vmem:[#allocation6 + $0x170] sm:$0xff]  ;;  %12193 = vst [vmem:[#allocation77_spill] sm:$0xff] %v10528_v59 }
 0x748   :  { %12183 = vst [vmem:[#allocation67_spill] sm:$0xff] %v10498_v32  ;;  %12184 = vst [vmem:[#allocation68_spill] sm:$0xff] %v10500_v25  ;;  %v10518_v57 = vpack.c.bf16 %v217_v6, %v213_v34  ;;  %v227_v34 = vld [vmem:[#allocation6 + $0x1c0] sm:$0xff]  ;;  %v233_v6 = vld [vmem:[#allocation6 + $0x1f0] sm:$0xff] }
 0x749   :  { %7657 = vmatpush1.bf16.msra.mxu0 %v10480_v36  ;;  %7689 = vmatpush1.bf16.msra.mxu1 %v10482_v23  ;;  %v216_v36 = vld [vmem:[#allocation6 + $0x168] sm:$0xff]  ;;  %v218_v23 = vld [vmem:[#allocation6 + $0x178] sm:$0xff] }
 0x74a   :  { %7659 = vmatprep.subr.bf16.mxu0 %v10486_v13  ;;  %7691 = vmatprep.subr.bf16.mxu1 %v10488_v0  ;;  %v10510_v14 = vpack.c.bf16 %v216_v36, %v212_v11  ;;  %v10512_v46 = vpack.c.bf16 %v218_v23, %v214_v27  ;;  %v220_v0 = vld [vmem:[#allocation6 + $0x188] sm:$0xff]  ;;  %v222_v13 = vld [vmem:[#allocation6 + $0x198] sm:$0xff]  ;;  %12190 = vst [vmem:[#allocation74_spill] sm:$0xff] %v10518_v57  ;;  %v221_v36 = vld [vmem:[#allocation6 + $0x190] sm:$0xff] }
 0x74b   :  { %v225_v23 = vld [vmem:[#allocation6 + $0x1b0] sm:$0xff] }
 0x74c   :  { %12187 = vst [vmem:[#allocation71_spill] sm:$0xff] %v10510_v14  ;;  %12188 = vst [vmem:[#allocation72_spill] sm:$0xff] %v10512_v46  ;;  %v10530_v41 = vpack.c.bf16 %v225_v23, %v221_v36  ;;  %v242_v23 = vld [vmem:[#allocation8 + $0x38] sm:$0xff] }
 0x74d   :  { %7661 = vmatpush1.bf16.msra.mxu0 %v10492_v15  ;;  %7693 = vmatpush1.bf16.msra.mxu1 %v10494_v63  ;;  %v224_v15 = vld [vmem:[#allocation6 + $0x1a8] sm:$0xff]  ;;  %v226_v63 = vld [vmem:[#allocation6 + $0x1b8] sm:$0xff] }
 0x74e   :  { %7663 = vmatprep.subr.bf16.mxu0 %v10498_v32  ;;  %7695 = vmatprep.subr.bf16.mxu1 %v10500_v25  ;;  %v10522_v27 = vpack.c.bf16 %v224_v15, %v220_v0  ;;  %v10524_v11 = vpack.c.bf16 %v226_v63, %v222_v13  ;;  %v228_v25 = vld [vmem:[#allocation6 + $0x1c8] sm:$0xff]  ;;  %v230_v32 = vld [vmem:[#allocation6 + $0x1d8] sm:$0xff]  ;;  %12194 = vst [vmem:[#allocation78_spill] sm:$0xff] %v10530_v41  ;;  %v231_v15 = vld [vmem:[#allocation6 + $0x1e0] sm:$0xff] }
 0x74f   :  { %v229_v63 = vld [vmem:[#allocation6 + $0x1d0] sm:$0xff]  ;;  %v10540_v49 = vpack.c.bf16 %v231_v15, %v227_v34  ;;  %v235_v34 = vld [vmem:[#allocation8] sm:$0xff] }
 0x750   :  { %12191 = vst [vmem:[#allocation75_spill] sm:$0xff] %v10522_v27  ;;  %12192 = vst [vmem:[#allocation76_spill] sm:$0xff] %v10524_v11  ;;  %v10542_v19 = vpack.c.bf16 %v233_v6, %v229_v63  ;;  %v239_v15 = vld [vmem:[#allocation8 + $0x20] sm:$0xff] }
 0x751   :  { %7665 = vmatpush1.bf16.msra.mxu0 %v10504_v56  ;;  %7697 = vmatpush1.bf16.msra.mxu1 %v10506_v7  ;;  %v232_v56 = vld [vmem:[#allocation6 + $0x1e8] sm:$0xff]  ;;  %v234_v7 = vld [vmem:[#allocation6 + $0x1f8] sm:$0xff]  ;;  %12197 = vst [vmem:[#allocation81_spill] sm:$0xff] %v10540_v49  ;;  %v10554_v6 = vpack.c.bf16 %v239_v15, %v235_v34  ;;  %v247_v34 = vld [vmem:[#allocation8 + $0x60] sm:$0xff] }
 0x752   :  { %7667 = vmatprep.subr.bf16.mxu0 %v10510_v14  ;;  %7699 = vmatprep.subr.bf16.mxu1 %v10512_v46  ;;  %v10534_v13 = vpack.c.bf16 %v232_v56, %v228_v25  ;;  %v10536_v0 = vpack.c.bf16 %v234_v7, %v230_v32  ;;  %12198 = vst [vmem:[#allocation82_spill] sm:$0xff] %v10542_v19  ;;  %v1940_v32 = vld [vmem:[#allocation2] sm:$0xff]  ;;  %v236_v25 = vld [vmem:[#allocation8 + $0x8] sm:$0xff]  ;;  %v238_v7 = vld [vmem:[#allocation8 + $0x18] sm:$0xff] }
 0x753   :  { %v240_v56 = vld [vmem:[#allocation8 + $0x28] sm:$0xff]  ;;  %v10552_v63 = vpack.c.bf16 %v242_v23, %v238_v7  ;;  %v250_v7 = vld [vmem:[#allocation8 + $0x78] sm:$0xff]  ;;  %v243_v23 = vld [vmem:[#allocation8 + $0x40] sm:$0xff] }
 0x754   :  { %12195 = vst [vmem:[#allocation79_spill] sm:$0xff] %v10534_v13  ;;  %12196 = vst [vmem:[#allocation80_spill] sm:$0xff] %v10536_v0  ;;  %v10550_v36 = vpack.c.bf16 %v240_v56, %v236_v25  ;;  %v248_v25 = vld [vmem:[#allocation8 + $0x68] sm:$0xff]  ;;  %v246_v56 = vld [vmem:[#allocation8 + $0x58] sm:$0xff] }
 0x755   :  { %7669 = vmatpush1.bf16.msra.mxu0 %v10516_v18  ;;  %7701 = vmatpush1.bf16.msra.mxu1 %v10518_v57  ;;  %v10564_v15 = vpack.c.bf16 %v250_v7, %v246_v56  ;;  %v258_v56 = vld [vmem:[#allocation8 + $0xb8] sm:$0xff]  ;;  %v251_v7 = vld [vmem:[#allocation8 + $0x80] sm:$0xff]  ;;  %v260_v46 = vld [vmem:[#allocation8 + $0xc8] sm:$0xff] }
 0x756   :  { %7671 = vmatprep.subr.bf16.mxu0 %v10522_v27  ;;  %7703 = vmatprep.subr.bf16.mxu1 %v10524_v11  ;;  %v252_v11 = vld [vmem:[#allocation8 + $0x88] sm:$0xff]  ;;  %v263_v14 = vld [vmem:[#allocation8 + $0xe0] sm:$0xff] }
 0x759   :  { %7673 = vmatpush1.bf16.msra.mxu0 %v10528_v59  ;;  %7705 = vmatpush1.bf16.msra.mxu1 %v10530_v41  ;;  %v10566_v41 = vpack.c.bf16 %v247_v34, %v243_v23  ;;  %v255_v23 = vld [vmem:[#allocation8 + $0xa0] sm:$0xff] }
 0x75a   :  { %7675 = vmatprep.subr.bf16.mxu0 %v10534_v13  ;;  %7707 = vmatprep.subr.bf16.mxu1 %v10536_v0  ;;  %v244_v0 = vld [vmem:[#allocation8 + $0x48] sm:$0xff]  ;;  %v10578_v57 = vpack.c.bf16 %v255_v23, %v251_v7  ;;  %v259_v7 = vld [vmem:[#allocation8 + $0xc0] sm:$0xff] }
 0x75b   :  { %v10562_v13 = vpack.c.bf16 %v248_v25, %v244_v0  ;;  %v256_v0 = vld [vmem:[#allocation8 + $0xa8] sm:$0xff]  ;;  %v254_v25 = vld [vmem:[#allocation8 + $0x98] sm:$0xff] }
 0x75c   :  { %v10574_v27 = vpack.c.bf16 %v256_v0, %v252_v11  ;;  %v10576_v34 = vpack.c.bf16 %v258_v56, %v254_v25  ;;  %12201 = vst [vmem:[#allocation85_spill] sm:$0xff] %v10578_v57  ;;  %v264_v11 = vld [vmem:[#allocation8 + $0xe8] sm:$0xff]  ;;  %v262_v25 = vld [vmem:[#allocation8 + $0xd8] sm:$0xff] }
 0x75d   :  { %7677 = vmatpush1.bf16.msra.mxu0 %v10540_v49  ;;  %7709 = vmatpush1.bf16.msra.mxu1 %v10542_v19  ;;  %v237_v19 = vld [vmem:[#allocation8 + $0x10] sm:$0xff]  ;;  %v10586_v0 = vpack.c.bf16 %v264_v11, %v260_v46  ;;  %v266_v56 = vld [vmem:[#allocation8 + $0xf8] sm:$0xff]  ;;  %v10598_v11 = vpack.c.bf16 %v272_v10, %v268_v2  ;;  %v10610_v10 = vpack.c.bf16 %v280_v61, %v276_v62 }
 0x75e   :  { %v241_v49 = vld [vmem:[#allocation8 + $0x30] sm:$0xff]  ;;  %7711 = vmatprep.subr.bf16.mxu0 %v10550_v36  ;;  %7743 = vmatprep.subr.bf16.mxu1 %v10552_v63  ;;  %12199 = vst [vmem:[#allocation83_spill] sm:$0xff] %v10574_v27  ;;  %12200 = vst [vmem:[#allocation84_spill] sm:$0xff] %v10576_v34  ;;  %v10588_v23 = vpack.c.bf16 %v266_v56, %v262_v25  ;;  %v270_v46 = vld [vmem:[#allocation8 + $0x118] sm:$0xff]  ;;  %v10620_v61 = vpack.c.bf16 %v288_v43, %v284_v50 }
 0x75f   :  { %12203 = vst [vmem:[#allocation87_spill] sm:$0xff] %v10586_v0  ;;  %12207 = vst [vmem:[#allocation91_spill] sm:$0xff] %v10598_v11  ;;  %v274_v25 = vld [vmem:[#allocation8 + $0x138] sm:$0xff]  ;;  %v267_v56 = vld [vmem:[#allocation8 + $0x100] sm:$0xff]  ;;  %v10622_v62 = vpack.c.bf16 %v290_v29, %v286_v42 }
 0x760   :  { %2028 = vmatmul.mubr.f32.vlgmr.msra.gmra.mrb[24].mxu0 %v1940_v32  ;;  %2105 = vmatmul.mubr.f32.vlgmr.msra.gmra.mrb[24].mxu1 %v1940_v32  ;;  %v10557_v32 = vpack.c.bf16 %v241_v49, %v237_v19  ;;  %v245_v49 = vld [vmem:[#allocation8 + $0x50] sm:$0xff]  ;;  %12204 = vst [vmem:[#allocation88_spill] sm:$0xff] %v10588_v23  ;;  %v10600_v5 = vpack.c.bf16 %v274_v25, %v270_v46  ;;  %12211 = vst [vmem:[#allocation95_spill] sm:$0xff] %v10610_v10  ;;  %v282_v2 = vld [vmem:[#allocation8 + $0x178] sm:$0xff] }
 0x761   :  { %2033 = vmatprep.mubr.f32.mxu0 %v12166_v28  ;;  %2110 = vmatprep.mubr.f32.mxu1 %v12166_v28  ;;  %v249_v19 = vld [vmem:[#allocation8 + $0x70] sm:$0xff]  ;;  %v279_v46 = vld [vmem:[#allocation8 + $0x160] sm:$0xff]  ;;  %v10612_v25 = vpack.c.bf16 %v282_v2, %v278_v60  ;;  %12215 = vst [vmem:[#allocation99_spill] sm:$0xff] %v10620_v61  ;;  %12216 = vst [vmem:[#allocation100_spill] sm:$0xff] %v10622_v62 }
 0x762   :  { %7713 = vmatpush1.bf16.msra.mxu0 %v10554_v6  ;;  %7745 = vmatpush1.bf16.msra.mxu1 %v10557_v32  ;;  %v10569_v59 = vpack.c.bf16 %v249_v19, %v245_v49  ;;  %v253_v49 = vld [vmem:[#allocation8 + $0x90] sm:$0xff]  ;;  %12208 = vst [vmem:[#allocation92_spill] sm:$0xff] %v10600_v5  ;;  %v283_v60 = vld [vmem:[#allocation8 + $0x180] sm:$0xff]  ;;  %v292_v43 = vld [vmem:[#allocation8 + $0x1c8] sm:$0xff] }
 0x763   :  { %7715 = vmatprep.subr.bf16.mxu0 %v10562_v13  ;;  %7747 = vmatprep.subr.bf16.mxu1 %v10564_v15  ;;  %v257_v19 = vld [vmem:[#allocation8 + $0xb0] sm:$0xff]  ;;  %12212 = vst [vmem:[#allocation96_spill] sm:$0xff] %v10612_v25  ;;  %v287_v2 = vld [vmem:[#allocation8 + $0x1a0] sm:$0xff]  ;;  %v296_v50 = vld [vmem:[#allocation8 + $0x1e8] sm:$0xff] }
 0x764   :  { %v10581_v18 = vpack.c.bf16 %v257_v19, %v253_v49  ;;  %v10591_v49 = vpack.c.bf16 %v263_v14, %v259_v7  ;;  %v10593_v19 = vpack.c.bf16 %v265_v33, %v261_v37  ;;  %v10602_v14 = vpack.c.bf16 %v271_v8, %v267_v56  ;;  %v269_v33 = vld [vmem:[#allocation8 + $0x110] sm:$0xff]  ;;  %v275_v8 = vld [vmem:[#allocation8 + $0x140] sm:$0xff]  ;;  %v294_v29 = vld [vmem:[#allocation8 + $0x1d8] sm:$0xff] }
 0x765   :  { %v273_v37 = vld [vmem:[#allocation8 + $0x130] sm:$0xff]  ;;  %v10614_v56 = vpack.c.bf16 %v279_v46, %v275_v8  ;;  %v10626_v46 = vpack.c.bf16 %v287_v2, %v283_v60  ;;  %v10634_v42 = vpack.c.bf16 %v296_v50, %v292_v43  ;;  %v295_v60 = vld [vmem:[#allocation8 + $0x1e0] sm:$0xff]  ;;  %v10636_v2 = vpack.c.bf16 %v298_v24, %v294_v29 }
 0x766   :  { %7717 = vmatpush1.bf16.msra.mxu0 %v10566_v41  ;;  %7749 = vmatpush1.bf16.msra.mxu1 %v10569_v59  ;;  %12202 = vst [vmem:[#allocation86_spill] sm:$0xff] %v10581_v18  ;;  %12205 = vst [vmem:[#allocation89_spill] sm:$0xff] %v10591_v49  ;;  %v10605_v7 = vpack.c.bf16 %v273_v37, %v269_v33  ;;  %v277_v33 = vld [vmem:[#allocation8 + $0x150] sm:$0xff]  ;;  %v10638_v12 = vpack.c.bf16 %v295_v60, %v291_v20 }
 0x767   :  { %7719 = vmatprep.subr.bf16.mxu0 %v10574_v27  ;;  %7751 = vmatprep.subr.bf16.mxu1 %v10576_v34  ;;  %12206 = vst [vmem:[#allocation90_spill] sm:$0xff] %v10593_v19  ;;  %12209 = vst [vmem:[#allocation93_spill] sm:$0xff] %v10602_v14  ;;  %v281_v37 = vld [vmem:[#allocation8 + $0x170] sm:$0xff] }
 0x768   :  { %12210 = vst [vmem:[#allocation94_spill] sm:$0xff] %v10605_v7  ;;  %12213 = vst [vmem:[#allocation97_spill] sm:$0xff] %v10614_v56  ;;  %v10617_v45 = vpack.c.bf16 %v281_v37, %v277_v33  ;;  %v285_v8 = vld [vmem:[#allocation8 + $0x190] sm:$0xff] }
 0x769   :  { %12217 = vst [vmem:[#allocation101_spill] sm:$0xff] %v10626_v46  ;;  %v289_v33 = vld [vmem:[#allocation8 + $0x1b0] sm:$0xff]  ;;  %12219 = vst [vmem:[#allocation103_spill] sm:$0xff] %v10634_v42 }
 0x76a   :  { %7721 = vmatpush1.bf16.msra.mxu0 %v10578_v57  ;;  %7753 = vmatpush1.bf16.msra.mxu1 %v10581_v18  ;;  %12214 = vst [vmem:[#allocation98_spill] sm:$0xff] %v10617_v45  ;;  %v10630_v37 = vpack.c.bf16 %v289_v33, %v285_v8  ;;  %12220 = vst [vmem:[#allocation104_spill] sm:$0xff] %v10636_v2  ;;  %v10641_v8 = vpack.c.bf16 %v297_v4, %v293_v9 }
 0x76b   :  { %7723 = vmatprep.subr.bf16.mxu0 %v10586_v0  ;;  %7755 = vmatprep.subr.bf16.mxu1 %v10588_v23  ;;  %12221 = vst [vmem:[#allocation105_spill] sm:$0xff] %v10638_v12 }
 0x76c   :  { %12218 = vst [vmem:[#allocation102_spill] sm:$0xff] %v10630_v37  ;;  %12222 = vst [vmem:[#allocation106_spill] sm:$0xff] %v10641_v8 }
 0x76e   :  { %7725 = vmatpush1.bf16.msra.mxu0 %v10591_v49  ;;  %7757 = vmatpush1.bf16.msra.mxu1 %v10593_v19 }
 0x76f   :  { %7727 = vmatprep.subr.bf16.mxu0 %v10598_v11  ;;  %7759 = vmatprep.subr.bf16.mxu1 %v10600_v5 }
 0x772   :  { %7729 = vmatpush1.bf16.msra.mxu0 %v10602_v14  ;;  %7761 = vmatpush1.bf16.msra.mxu1 %v10605_v7 }
 0x773   :  { %7731 = vmatprep.subr.bf16.mxu0 %v10610_v10  ;;  %7763 = vmatprep.subr.bf16.mxu1 %v10612_v25 }
 0x776   :  { %7733 = vmatpush1.bf16.msra.mxu0 %v10614_v56  ;;  %7765 = vmatpush1.bf16.msra.mxu1 %v10617_v45 }
 0x777   :  { %7735 = vmatprep.subr.bf16.mxu0 %v10620_v61  ;;  %7767 = vmatprep.subr.bf16.mxu1 %v10622_v62 }
 0x77a   :  { %7737 = vmatpush1.bf16.msra.mxu0 %v10626_v46  ;;  %7769 = vmatpush1.bf16.msra.mxu1 %v10630_v37 }
 0x77b   :  { %7739 = vmatprep.subr.bf16.mxu0 %v10634_v42  ;;  %7771 = vmatprep.subr.bf16.mxu1 %v10636_v2 }
 0x77e   :  { %7741 = vmatpush1.bf16.msra.mxu0 %v10638_v12  ;;  %7773 = vmatpush1.bf16.msra.mxu1 %v10641_v8 }
 0x77f   :  { %7775 = vmatprep.subr.bf16.mxu0 %v10550_v36  ;;  %7807 = vmatprep.subr.bf16.mxu1 %v10552_v63 }
 0x813   :  { %v1826_v24 = vpop.f32.mrb[22].mxu0  ;;  %v1897_v33 = vpop.f32.mrb[22].mxu1 }
 0x814   :  { %v1906_v20 = vrot.slane %v1826_v24, 2  ;;  %v1828_v43 = vpop.f32.mrb[23].mxu0  ;;  %v1899_v50 = vpop.f32.mrb[23].mxu1  ;;  %v1908_v4 = vrot.slane %v1897_v33, 2 }
 0x815   :  { %v1907_v29 = vrot.slane %v1828_v43, 2  ;;  %v1909_v54 = vrot.slane %v1899_v50, 2  ;;  %v299_v50 = vld [vmem:[%s11946_s7] sm:$0xf] }
 0x816   :  { %v1914_v60 = vadd.f32 %v1906_v20, %v10161_v38  ;;  %v1916_v58 = vadd.f32 %v1908_v4, %v10165_v48  ;;  %v12225_v4 = vsub.s32 0, %v10144_v16 }
 0x817   :  { %v1915_v9 = vadd.f32 %v1907_v29, %v10163_v47  ;;  %v1917_v53 = vadd.f32 %v1909_v54, %v10167_v52  ;;  %v1932_v47 = vrot.slane %v10453_v55, 6 }
 0x818   :  { %v1918_v3 = vmul.f32 0.5, %v1914_v60 }
 0x819   :  { %v1922_v1 = vmul.f32 0.5, %v1915_v9  ;;  %v1927_v51 = vmul.f32 0.5, %v1917_v53  ;;  %v10706_v9 = vrot.slane %v299_v50, %v12225_v4 }
 0x81a   :  { %9474 = vtanh.f32 %v1918_v3 }
 0x81b   :  { %9476 = vtanh.f32 %v1922_v1  ;;  %12226 = vst [vmem:[#allocation109_spill] sm:$0xff] %v10706_v9 }
 0x81c   :  { %9478 = vtanh.f32 %v1916_v58 }
 0x81d   :  { %9480 = vtanh.f32 %v1927_v51 }
 0x824   :  { %v9475_v24 = vpop.eup %9474 }
 0x825   :  { %v9477_v44 = vpop.eup %9476  ;;  %v1920_v40 = vadd.f32 1.0, %v9475_v24  ;;  %v12227_v24 = vsub.s32 1, %v10144_v16 }
 0x826   :  { %v1924_v43 = vadd.f32 1.0, %v9477_v44  ;;  %v9479_v33 = vpop.eup %9478 }
 0x827   :  { %v1921_v38 = vmul.f32 0.5, %v1920_v40  ;;  %v9481_v58 = vpop.eup %9480 }
 0x828   :  { %v1925_v20 = vmul.f32 0.5, %v1924_v43  ;;  %v1929_v1 = vadd.f32 1.0, %v9481_v58  ;;  %v10710_v43 = vrot.slane %v299_v50, %v12227_v24 }
 0x829   :  { %v1935_v29 = vmul.f32 %v9479_v33, %v1921_v38 }
 0x82a   :  { %v1934_v3 = vmul.f32 %v1932_v47, %v1925_v20  ;;  %v1930_v44 = vmul.f32 0.5, %v1929_v1  ;;  %12228 = vst [vmem:[#allocation110_spill] sm:$0xff] %v10710_v43 }
 0x82c   :  { %v10653_v60 = vadd.f32 %v1935_v29, %v1934_v3  ;;  %v12229_v3 = vsub.s32 2, %v10144_v16 }
 0x82e   :  { %12223 = vst [vmem:[#allocation107_spill] sm:$0xff] %v10653_v60  ;;  %9482 = vtanh.f32 %v10653_v60  ;;  %v10725_v58 = vrot.slane %v299_v50, %v12229_v3 }
 0x830   :  { %12230 = vst [vmem:[#allocation111_spill] sm:$0xff] %v10725_v58 }
 0x833   :  { %v2029_v54 = vpop.f32.mrb[24].mxu0  ;;  %v10656_v53 = vpop.f32.mrb[24].mxu1 }
 0x834   :  { %v2031_v48 = vpop.f32.mrb[25].mxu0  ;;  %v10658_v52 = vpop.f32.mrb[25].mxu1  ;;  %v10721_v29 = vadd.f32 %v2029_v54, %v10706_v9  ;;  %v12231_v54 = vsub.s32 3, %v10144_v16 }
 0x835   :  { %v10728_v1 = vadd.f32 %v2031_v48, %v10710_v43 }
 0x836   :  { %v10738_v39 = vrot.slane %v299_v50, %v12231_v54 }
 0x838   :  { %v9483_v40 = vpop.eup %9482  ;;  %12232 = vst [vmem:[#allocation112_spill] sm:$0xff] %v10738_v39 }
 0x839   :  { %v10660_v51 = vmul.f32 %v9483_v40, %v1930_v44 }
 0x83b   :  { %12224 = vst [vmem:[#allocation108_spill] sm:$0xff] %v10660_v51  ;;  %1939 = vst [vmem:[#allocation2 + $0x8] sm:$0xc0] %v10660_v51  ;;  %v10734_v51 = vadd.f32 %v10656_v53, %v10725_v58 }
 0x842   :  { %v1941_v55 = vld [vmem:[#allocation2 + $0x8] sm:$0xff] }
 0x843   :  { %2034 = vmatmul.mubr.f32.gmra.mrb[26].mxu0 %v1941_v55  ;;  %2111 = vmatmul.mubr.f32.gmra.mrb[26].mxu1 %v1941_v55 }
 0x844   :  { %2181 = vmatprep.mubr.f32.mxu0 %v12166_v28  ;;  %2252 = vmatprep.mubr.f32.mxu1 %v12166_v28 }
 0x847   :  { %2182 = vmatmul.mubr.f32.vlgmr.msra.gmra.mrb[28].mxu0 %v12166_v28  ;;  %2253 = vmatmul.mubr.f32.vlgmr.msra.gmra.mrb[28].mxu1 %v12166_v28 }
 0x848   :  { %7777 = vmatpush1.bf16.msra.mxu0 %v10554_v6  ;;  %7809 = vmatpush1.bf16.msra.mxu1 %v10557_v32 }
 0x849   :  { %7779 = vmatprep.subr.bf16.mxu0 %v10562_v13  ;;  %7811 = vmatprep.subr.bf16.mxu1 %v10564_v15 }
 0x84a   :  { %2346 = vmatprep.mubr.f32.mxu0 %v12166_v28  ;;  %2417 = vmatprep.mubr.f32.mxu1 %v12166_v28 }
 0x84c   :  { %7781 = vmatpush1.bf16.msra.mxu0 %v10566_v41  ;;  %7813 = vmatpush1.bf16.msra.mxu1 %v10569_v59 }
 0x84d   :  { %7783 = vmatprep.subr.bf16.mxu0 %v10574_v27  ;;  %7815 = vmatprep.subr.bf16.mxu1 %v10576_v34 }
 0x850   :  { %7785 = vmatpush1.bf16.msra.mxu0 %v10578_v57  ;;  %7817 = vmatpush1.bf16.msra.mxu1 %v10581_v18 }
 0x851   :  { %7787 = vmatprep.subr.bf16.mxu0 %v10586_v0  ;;  %7819 = vmatprep.subr.bf16.mxu1 %v10588_v23 }
 0x854   :  { %7789 = vmatpush1.bf16.msra.mxu0 %v10591_v49  ;;  %7821 = vmatpush1.bf16.msra.mxu1 %v10593_v19 }
 0x855   :  { %7791 = vmatprep.subr.bf16.mxu0 %v10598_v11  ;;  %7823 = vmatprep.subr.bf16.mxu1 %v10600_v5 }
 0x858   :  { %7793 = vmatpush1.bf16.msra.mxu0 %v10602_v14  ;;  %7825 = vmatpush1.bf16.msra.mxu1 %v10605_v7 }
 0x859   :  { %7795 = vmatprep.subr.bf16.mxu0 %v10610_v10  ;;  %7827 = vmatprep.subr.bf16.mxu1 %v10612_v25 }
 0x85c   :  { %7797 = vmatpush1.bf16.msra.mxu0 %v10614_v56  ;;  %7829 = vmatpush1.bf16.msra.mxu1 %v10617_v45 }
 0x85d   :  { %7799 = vmatprep.subr.bf16.mxu0 %v10620_v61  ;;  %7831 = vmatprep.subr.bf16.mxu1 %v10622_v62 }
 0x860   :  { %7801 = vmatpush1.bf16.msra.mxu0 %v10626_v46  ;;  %7833 = vmatpush1.bf16.msra.mxu1 %v10630_v37 }
 0x861   :  { %7803 = vmatprep.subr.bf16.mxu0 %v10634_v42  ;;  %7835 = vmatprep.subr.bf16.mxu1 %v10636_v2 }
 0x864   :  { %7805 = vmatpush1.bf16.msra.mxu0 %v10638_v12  ;;  %7837 = vmatpush1.bf16.msra.mxu1 %v10641_v8 }
 0x865   :  { %7839 = vmatprep.subr.bf16.mxu0 %v10550_v36  ;;  %7871 = vmatprep.subr.bf16.mxu1 %v10552_v63 }
 0x916   :  { %v10712_v38 = vpop.f32.mrb[26].mxu0  ;;  %v10714_v33 = vpop.f32.mrb[26].mxu1 }
 0x917   :  { %v10716_v20 = vpop.f32.mrb[27].mxu0  ;;  %v10718_v47 = vpop.f32.mrb[27].mxu1 }
 0x91a   :  { %v2183_v44 = vpop.f32.mrb[28].mxu0  ;;  %v2254_v40 = vpop.f32.mrb[28].mxu1 }
 0x91b   :  { %v2259_v55 = vadd.f32 %v2183_v44, %v10721_v29  ;;  %v2185_v4 = vpop.f32.mrb[29].mxu0  ;;  %v2256_v24 = vpop.f32.mrb[29].mxu1  ;;  %v2261_v48 = vadd.f32 %v2254_v40, %v10734_v51  ;;  %v10743_v44 = vadd.f32 %v10658_v52, %v10738_v39 }
 0x91c   :  { %v2260_v60 = vadd.f32 %v2185_v4, %v10728_v1 }
 0x91d   :  { %v2263_v3 = vmul.f32 0.5, %v2259_v55  ;;  %v2262_v4 = vadd.f32 %v2256_v24, %v10743_v44 }
 0x91e   :  { %v2267_v35 = vmul.f32 0.5, %v2260_v60 }
 0x91f   :  { %9484 = vtanh.f32 %v2263_v3  ;;  %v2272_v31 = vmul.f32 0.5, %v2262_v4 }
 0x920   :  { %9486 = vtanh.f32 %v2267_v35 }
 0x921   :  { %9488 = vtanh.f32 %v2261_v48 }
 0x922   :  { %9490 = vtanh.f32 %v2272_v31 }
 0x929   :  { %v9485_v53 = vpop.eup %9484 }
 0x92a   :  { %v9487_v30 = vpop.eup %9486  ;;  %v2265_v26 = vadd.f32 1.0, %v9485_v53 }
 0x92b   :  { %v2269_v16 = vadd.f32 1.0, %v9487_v30  ;;  %v9489_v55 = vpop.eup %9488 }
 0x92c   :  { %v2266_v50 = vmul.f32 0.5, %v2265_v26  ;;  %v9491_v35 = vpop.eup %9490 }
 0x92d   :  { %v2270_v60 = vmul.f32 0.5, %v2269_v16  ;;  %v2274_v52 = vadd.f32 1.0, %v9491_v35 }
 0x92e   :  { %v2277_v54 = vmul.f32 %v9489_v55, %v2266_v50 }
 0x92f   :  { %v2276_v3 = vmul.f32 0.0, %v2270_v60  ;;  %v2275_v48 = vmul.f32 0.5, %v2274_v52 }
 0x931   :  { %v10746_v40 = vadd.f32 %v2277_v54, %v2276_v3 }
 0x933   :  { %9492 = vtanh.f32 %v10746_v40 }
 0x93d   :  { %v9493_v22 = vpop.eup %9492 }
 0x93e   :  { %v2280_v24 = vmul.f32 %v9493_v22, %v2275_v48 }
 0x940   :  { %2281 = vst [vmem:[#allocation3] sm:$0x3] %v2280_v24  ;;  %2347 = vmatmul.mubr.f32.vlgmr.msra.gmra.mrb[30].mxu0 %v2280_v24  ;;  %2418 = vmatmul.mubr.f32.vlgmr.msra.gmra.mrb[30].mxu1 %v2280_v24 }
 0x941   :  { %7841 = vmatpush1.bf16.msra.mxu0 %v10554_v6  ;;  %7873 = vmatpush1.bf16.msra.mxu1 %v10557_v32 }
 0x942   :  { %7843 = vmatprep.subr.bf16.mxu0 %v10562_v13  ;;  %7875 = vmatprep.subr.bf16.mxu1 %v10564_v15 }
 0x943   :  { %2529 = vmatprep.mubr.f32.mxu0 %v12166_v28  ;;  %2600 = vmatprep.mubr.f32.mxu1 %v12166_v28 }
 0x945   :  { %7845 = vmatpush1.bf16.msra.mxu0 %v10566_v41  ;;  %7877 = vmatpush1.bf16.msra.mxu1 %v10569_v59 }
 0x946   :  { %7847 = vmatprep.subr.bf16.mxu0 %v10574_v27  ;;  %7879 = vmatprep.subr.bf16.mxu1 %v10576_v34 }
 0x949   :  { %7849 = vmatpush1.bf16.msra.mxu0 %v10578_v57  ;;  %7881 = vmatpush1.bf16.msra.mxu1 %v10581_v18 }
 0x94a   :  { %7851 = vmatprep.subr.bf16.mxu0 %v10586_v0  ;;  %7883 = vmatprep.subr.bf16.mxu1 %v10588_v23 }
 0x94d   :  { %7853 = vmatpush1.bf16.msra.mxu0 %v10591_v49  ;;  %7885 = vmatpush1.bf16.msra.mxu1 %v10593_v19 }
 0x94e   :  { %7855 = vmatprep.subr.bf16.mxu0 %v10598_v11  ;;  %7887 = vmatprep.subr.bf16.mxu1 %v10600_v5 }
 0x951   :  { %7857 = vmatpush1.bf16.msra.mxu0 %v10602_v14  ;;  %7889 = vmatpush1.bf16.msra.mxu1 %v10605_v7 }
 0x952   :  { %7859 = vmatprep.subr.bf16.mxu0 %v10610_v10  ;;  %7891 = vmatprep.subr.bf16.mxu1 %v10612_v25 }
 0x955   :  { %7861 = vmatpush1.bf16.msra.mxu0 %v10614_v56  ;;  %7893 = vmatpush1.bf16.msra.mxu1 %v10617_v45 }
 0x956   :  { %7863 = vmatprep.subr.bf16.mxu0 %v10620_v61  ;;  %7895 = vmatprep.subr.bf16.mxu1 %v10622_v62 }
 0x959   :  { %7865 = vmatpush1.bf16.msra.mxu0 %v10626_v46  ;;  %7897 = vmatpush1.bf16.msra.mxu1 %v10630_v37 }
 0x95a   :  { %7867 = vmatprep.subr.bf16.mxu0 %v10634_v42  ;;  %7899 = vmatprep.subr.bf16.mxu1 %v10636_v2 }
 0x95d   :  { %7869 = vmatpush1.bf16.msra.mxu0 %v10638_v12  ;;  %7901 = vmatpush1.bf16.msra.mxu1 %v10641_v8 }
 0x95e   :  { %7903 = vmatprep.subr.bf16.mxu0 %v10550_v36  ;;  %7935 = vmatprep.subr.bf16.mxu1 %v10552_v63 }
 0xa13   :  { %v2348_v22 = vpop.f32.mrb[30].mxu0  ;;  %v2419_v26 = vpop.f32.mrb[30].mxu1 }
 0xa14   :  { %v2428_v30 = vrot.slane %v2348_v22, 6  ;;  %v2350_v31 = vpop.f32.mrb[31].mxu0  ;;  %v2421_v4 = vpop.f32.mrb[31].mxu1  ;;  %v2430_v50 = vrot.slane %v2419_v26, 6 }
 0xa15   :  { %v2429_v53 = vrot.slane %v2350_v31, 6  ;;  %v2431_v35 = vrot.slane %v2421_v4, 6 }
 0xa16   :  { %v2436_v16 = vadd.f32 %v2428_v30, %v10721_v29  ;;  %v2438_v3 = vadd.f32 %v2430_v50, %v10734_v51 }
 0xa17   :  { %v2437_v55 = vadd.f32 %v2429_v53, %v10728_v1  ;;  %v2439_v52 = vadd.f32 %v2431_v35, %v10743_v44  ;;  %v2454_v53 = vrot.slane %v10746_v40, 6 }
 0xa18   :  { %v2440_v60 = vmul.f32 0.5, %v2436_v16 }
 0xa19   :  { %v2444_v54 = vmul.f32 0.5, %v2437_v55  ;;  %v2449_v48 = vmul.f32 0.5, %v2439_v52 }
 0xa1a   :  { %9494 = vtanh.f32 %v2440_v60 }
 0xa1b   :  { %9496 = vtanh.f32 %v2444_v54 }
 0xa1c   :  { %9498 = vtanh.f32 %v2438_v3 }
 0xa1d   :  { %9500 = vtanh.f32 %v2449_v48 }
 0xa24   :  { %v9495_v24 = vpop.eup %9494 }
 0xa25   :  { %v9497_v22 = vpop.eup %9496  ;;  %v2442_v21 = vadd.f32 1.0, %v9495_v24 }
 0xa26   :  { %v2446_v31 = vadd.f32 1.0, %v9497_v22  ;;  %v9499_v26 = vpop.eup %9498 }
 0xa27   :  { %v2443_v30 = vmul.f32 0.5, %v2442_v21  ;;  %v9501_v4 = vpop.eup %9500 }
 0xa28   :  { %v2447_v16 = vmul.f32 0.5, %v2446_v31  ;;  %v2451_v50 = vadd.f32 1.0, %v9501_v4 }
 0xa29   :  { %v2457_v55 = vmul.f32 %v9499_v26, %v2443_v30 }
 0xa2a   :  { %v2456_v60 = vmul.f32 %v2454_v53, %v2447_v16  ;;  %v2452_v54 = vmul.f32 0.5, %v2451_v50 }
 0xa2c   :  { %v10788_v17 = vadd.f32 %v2457_v55, %v2456_v60 }
 0xa2e   :  { %9502 = vtanh.f32 %v10788_v17 }
 0xa38   :  { %v9503_v3 = vpop.eup %9502 }
 0xa39   :  { %v2460_v35 = vmul.f32 %v9503_v3, %v2452_v54 }
 0xa3b   :  { %2461 = vst [vmem:[#allocation3] sm:$0xc] %v2460_v35  ;;  %v2463_v52 = vrot.slane %v2460_v35, 2 }
 0xa3d   :  { %2530 = vmatmul.mubr.f32.vlgmr.msra.gmra.mrb[32].mxu0 %v2463_v52  ;;  %2601 = vmatmul.mubr.f32.vlgmr.msra.gmra.mrb[32].mxu1 %v2463_v52 }
 0xa3e   :  { %7905 = vmatpush1.bf16.msra.mxu0 %v10554_v6  ;;  %7937 = vmatpush1.bf16.msra.mxu1 %v10557_v32 }
 0xa3f   :  { %7907 = vmatprep.subr.bf16.mxu0 %v10562_v13  ;;  %7939 = vmatprep.subr.bf16.mxu1 %v10564_v15 }
 0xa40   :  { %2712 = vmatprep.mubr.f32.mxu0 %v12166_v28  ;;  %2783 = vmatprep.mubr.f32.mxu1 %v12166_v28 }
 0xa42   :  { %7909 = vmatpush1.bf16.msra.mxu0 %v10566_v41  ;;  %7941 = vmatpush1.bf16.msra.mxu1 %v10569_v59 }
 0xa43   :  { %7911 = vmatprep.subr.bf16.mxu0 %v10574_v27  ;;  %7943 = vmatprep.subr.bf16.mxu1 %v10576_v34 }
 0xa46   :  { %7913 = vmatpush1.bf16.msra.mxu0 %v10578_v57  ;;  %7945 = vmatpush1.bf16.msra.mxu1 %v10581_v18 }
 0xa47   :  { %7915 = vmatprep.subr.bf16.mxu0 %v10586_v0  ;;  %7947 = vmatprep.subr.bf16.mxu1 %v10588_v23 }
 0xa4a   :  { %7917 = vmatpush1.bf16.msra.mxu0 %v10591_v49  ;;  %7949 = vmatpush1.bf16.msra.mxu1 %v10593_v19 }
 0xa4b   :  { %7919 = vmatprep.subr.bf16.mxu0 %v10598_v11  ;;  %7951 = vmatprep.subr.bf16.mxu1 %v10600_v5 }
 0xa4e   :  { %7921 = vmatpush1.bf16.msra.mxu0 %v10602_v14  ;;  %7953 = vmatpush1.bf16.msra.mxu1 %v10605_v7 }
 0xa4f   :  { %7923 = vmatprep.subr.bf16.mxu0 %v10610_v10  ;;  %7955 = vmatprep.subr.bf16.mxu1 %v10612_v25 }
 0xa52   :  { %7925 = vmatpush1.bf16.msra.mxu0 %v10614_v56  ;;  %7957 = vmatpush1.bf16.msra.mxu1 %v10617_v45 }
 0xa53   :  { %7927 = vmatprep.subr.bf16.mxu0 %v10620_v61  ;;  %7959 = vmatprep.subr.bf16.mxu1 %v10622_v62 }
 0xa56   :  { %7929 = vmatpush1.bf16.msra.mxu0 %v10626_v46  ;;  %7961 = vmatpush1.bf16.msra.mxu1 %v10630_v37 }
 0xa57   :  { %7931 = vmatprep.subr.bf16.mxu0 %v10634_v42  ;;  %7963 = vmatprep.subr.bf16.mxu1 %v10636_v2 }
 0xa5a   :  { %7933 = vmatpush1.bf16.msra.mxu0 %v10638_v12  ;;  %7965 = vmatpush1.bf16.msra.mxu1 %v10641_v8 }
 0xa5b   :  { %7967 = vmatprep.subr.bf16.mxu0 %v10550_v36  ;;  %7999 = vmatprep.subr.bf16.mxu1 %v10552_v63 }
 0xb10   :  { %v2531_v21 = vpop.f32.mrb[32].mxu0  ;;  %v2602_v40 = vpop.f32.mrb[32].mxu1 }
 0xb11   :  { %v2611_v48 = vrot.slane %v2531_v21, 4  ;;  %v2533_v24 = vpop.f32.mrb[33].mxu0  ;;  %v2604_v22 = vpop.f32.mrb[33].mxu1  ;;  %v2613_v26 = vrot.slane %v2602_v40, 4 }
 0xb12   :  { %v2612_v31 = vrot.slane %v2533_v24, 4  ;;  %v2614_v4 = vrot.slane %v2604_v22, 4 }
 0xb13   :  { %v2619_v30 = vadd.f32 %v2611_v48, %v10721_v29  ;;  %v2621_v60 = vadd.f32 %v2613_v26, %v10734_v51 }
 0xb14   :  { %v2620_v53 = vadd.f32 %v2612_v31, %v10728_v1  ;;  %v2622_v50 = vadd.f32 %v2614_v4, %v10743_v44  ;;  %v2637_v31 = vrot.slane %v10788_v17, 6 }
 0xb15   :  { %v2623_v16 = vmul.f32 0.5, %v2619_v30 }
 0xb16   :  { %v2627_v55 = vmul.f32 0.5, %v2620_v53  ;;  %v2632_v54 = vmul.f32 0.5, %v2622_v50 }
 0xb17   :  { %9504 = vtanh.f32 %v2623_v16 }
 0xb18   :  { %9506 = vtanh.f32 %v2627_v55 }
 0xb19   :  { %9508 = vtanh.f32 %v2621_v60 }
 0xb1a   :  { %9510 = vtanh.f32 %v2632_v54 }
 0xb21   :  { %v9505_v3 = vpop.eup %9504 }
 0xb22   :  { %v9507_v35 = vpop.eup %9506  ;;  %v2625_v52 = vadd.f32 1.0, %v9505_v3 }
 0xb23   :  { %v2629_v21 = vadd.f32 1.0, %v9507_v35  ;;  %v9509_v40 = vpop.eup %9508 }
 0xb24   :  { %v2626_v48 = vmul.f32 0.5, %v2625_v52  ;;  %v9511_v22 = vpop.eup %9510 }
 0xb25   :  { %v2630_v24 = vmul.f32 0.5, %v2629_v21  ;;  %v2634_v26 = vadd.f32 1.0, %v9511_v22 }
 0xb26   :  { %v2640_v30 = vmul.f32 %v9509_v40, %v2626_v48 }
 0xb27   :  { %v2639_v53 = vmul.f32 %v2637_v31, %v2630_v24  ;;  %v2635_v55 = vmul.f32 0.5, %v2634_v26 }
 0xb29   :  { %v10830_v16 = vadd.f32 %v2640_v30, %v2639_v53 }
 0xb2b   :  { %9512 = vtanh.f32 %v10830_v16 }
 0xb35   :  { %v9513_v60 = vpop.eup %9512 }
 0xb36   :  { %v2643_v4 = vmul.f32 %v9513_v60, %v2635_v55 }
 0xb38   :  { %2644 = vst [vmem:[#allocation3] sm:$0x30] %v2643_v4  ;;  %v2646_v50 = vrot.slane %v2643_v4, 4 }
 0xb3a   :  { %2713 = vmatmul.mubr.f32.vlgmr.msra.gmra.mrb[34].mxu0 %v2646_v50  ;;  %2784 = vmatmul.mubr.f32.vlgmr.msra.gmra.mrb[34].mxu1 %v2646_v50 }
 0xb3b   :  { %7969 = vmatpush1.bf16.msra.mxu0 %v10554_v6  ;;  %8001 = vmatpush1.bf16.msra.mxu1 %v10557_v32 }
 0xb3c   :  { %7971 = vmatprep.subr.bf16.mxu0 %v10562_v13  ;;  %8003 = vmatprep.subr.bf16.mxu1 %v10564_v15 }
 0xb3d   :  { %2895 = vmatprep.mubr.f32.mxu0 %v12166_v28  ;;  %2966 = vmatprep.mubr.f32.mxu1 %v12166_v28 }
 0xb3f   :  { %7973 = vmatpush1.bf16.msra.mxu0 %v10566_v41  ;;  %8005 = vmatpush1.bf16.msra.mxu1 %v10569_v59 }
 0xb40   :  { %7975 = vmatprep.subr.bf16.mxu0 %v10574_v27  ;;  %8007 = vmatprep.subr.bf16.mxu1 %v10576_v34 }
 0xb43   :  { %7977 = vmatpush1.bf16.msra.mxu0 %v10578_v57  ;;  %8009 = vmatpush1.bf16.msra.mxu1 %v10581_v18 }
 0xb44   :  { %7979 = vmatprep.subr.bf16.mxu0 %v10586_v0  ;;  %8011 = vmatprep.subr.bf16.mxu1 %v10588_v23 }
 0xb47   :  { %7981 = vmatpush1.bf16.msra.mxu0 %v10591_v49  ;;  %8013 = vmatpush1.bf16.msra.mxu1 %v10593_v19 }
 0xb48   :  { %7983 = vmatprep.subr.bf16.mxu0 %v10598_v11  ;;  %8015 = vmatprep.subr.bf16.mxu1 %v10600_v5 }
 0xb4b   :  { %7985 = vmatpush1.bf16.msra.mxu0 %v10602_v14  ;;  %8017 = vmatpush1.bf16.msra.mxu1 %v10605_v7 }
 0xb4c   :  { %7987 = vmatprep.subr.bf16.mxu0 %v10610_v10  ;;  %8019 = vmatprep.subr.bf16.mxu1 %v10612_v25 }
 0xb4f   :  { %7989 = vmatpush1.bf16.msra.mxu0 %v10614_v56  ;;  %8021 = vmatpush1.bf16.msra.mxu1 %v10617_v45 }
 0xb50   :  { %7991 = vmatprep.subr.bf16.mxu0 %v10620_v61  ;;  %8023 = vmatprep.subr.bf16.mxu1 %v10622_v62 }
 0xb53   :  { %7993 = vmatpush1.bf16.msra.mxu0 %v10626_v46  ;;  %8025 = vmatpush1.bf16.msra.mxu1 %v10630_v37 }
 0xb54   :  { %7995 = vmatprep.subr.bf16.mxu0 %v10634_v42  ;;  %8027 = vmatprep.subr.bf16.mxu1 %v10636_v2 }
 0xb57   :  { %7997 = vmatpush1.bf16.msra.mxu0 %v10638_v12  ;;  %8029 = vmatpush1.bf16.msra.mxu1 %v10641_v8 }
 0xb58   :  { %8031 = vmatprep.subr.bf16.mxu0 %v10550_v36  ;;  %8063 = vmatprep.subr.bf16.mxu1 %v10552_v63 }
 0xc0d   :  { %v2714_v17 = vpop.f32.mrb[34].mxu0  ;;  %v2785_v54 = vpop.f32.mrb[34].mxu1 }
 0xc0e   :  { %v2794_v3 = vrot.slane %v2714_v17, 2  ;;  %v2716_v35 = vpop.f32.mrb[35].mxu0  ;;  %v2787_v52 = vpop.f32.mrb[35].mxu1  ;;  %v2796_v40 = vrot.slane %v2785_v54, 2 }
 0xc0f   :  { %v2795_v21 = vrot.slane %v2716_v35, 2  ;;  %v2797_v22 = vrot.slane %v2787_v52, 2 }
 0xc10   :  { %v2802_v48 = vadd.f32 %v2794_v3, %v10721_v29  ;;  %v2804_v53 = vadd.f32 %v2796_v40, %v10734_v51 }
 0xc11   :  { %v2803_v24 = vadd.f32 %v2795_v21, %v10728_v1  ;;  %v2805_v26 = vadd.f32 %v2797_v22, %v10743_v44  ;;  %v2820_v1 = vrot.slane %v10830_v16, 6  ;;  %v10911_v16 = vadd.f32 %v10712_v38, %v10706_v9  ;;  %v12258_v9 = vld [vmem:[#allocation36_spill] sm:$0xff] }
 0xc12   :  { %v2806_v31 = vmul.f32 0.5, %v2802_v48 }
 0xc13   :  { %v2810_v30 = vmul.f32 0.5, %v2803_v24  ;;  %v2815_v55 = vmul.f32 0.5, %v2805_v26 }
 0xc14   :  { %9514 = vtanh.f32 %v2806_v31 }
 0xc15   :  { %9516 = vtanh.f32 %v2810_v30  ;;  %v10915_v30 = vadd.f32 %v10716_v20, %v10710_v43  ;;  %v10926_v20 = vadd.f32 %v10718_v47, %v10738_v39  ;;  %v12255_v39 = vld [vmem:[#allocation33_spill] sm:$0xff]  ;;  %v12257_v43 = vld [vmem:[#allocation35_spill] sm:$0xff] }
 0xc16   :  { %9518 = vtanh.f32 %v2804_v53 }
 0xc17   :  { %9520 = vtanh.f32 %v2815_v55 }
 0xc1e   :  { %v9515_v60 = vpop.eup %9514 }
 0xc1f   :  { %v9517_v4 = vpop.eup %9516  ;;  %v2808_v50 = vadd.f32 1.0, %v9515_v60 }
 0xc20   :  { %v2812_v17 = vadd.f32 1.0, %v9517_v4  ;;  %v9519_v54 = vpop.eup %9518 }
 0xc21   :  { %v2809_v29 = vmul.f32 0.5, %v2808_v50  ;;  %v9521_v51 = vpop.eup %9520  ;;  %v10921_v50 = vadd.f32 %v10714_v33, %v10725_v58  ;;  %v12256_v58 = vld [vmem:[#allocation34_spill] sm:$0xff] }
 0xc22   :  { %v2813_v3 = vmul.f32 0.5, %v2812_v17  ;;  %v2817_v52 = vadd.f32 1.0, %v9521_v51 }
 0xc23   :  { %v2823_v35 = vmul.f32 %v9519_v54, %v2809_v29 }
 0xc24   :  { %v2822_v21 = vmul.f32 %v2820_v1, %v2813_v3  ;;  %v2818_v44 = vmul.f32 0.5, %v2817_v52 }
 0xc26   :  { %v10872_v48 = vadd.f32 %v2823_v35, %v2822_v21 }
 0xc28   :  { %9522 = vtanh.f32 %v10872_v48 }
 0xc32   :  { %v9523_v40 = vpop.eup %9522 }
 0xc33   :  { %v2826_v24 = vmul.f32 %v9523_v40, %v2818_v44  ;;  %v2991_v40 = vrot.slane %v10872_v48, 6 }
 0xc35   :  { %2827 = vst [vmem:[#allocation3] sm:$0xc0] %v2826_v24  ;;  %v2829_v31 = vrot.slane %v2826_v24, 6 }
 0xc37   :  { %2896 = vmatmul.mubr.f32.vlgmr.msra.gmra.mrb[36].mxu0 %v2829_v31  ;;  %2967 = vmatmul.mubr.f32.vlgmr.msra.gmra.mrb[36].mxu1 %v2829_v31 }
 0xc38   :  { %8033 = vmatpush1.bf16.msra.mxu0 %v10554_v6  ;;  %8065 = vmatpush1.bf16.msra.mxu1 %v10557_v32 }
 0xc39   :  { %8035 = vmatprep.subr.bf16.mxu0 %v10562_v13  ;;  %8067 = vmatprep.subr.bf16.mxu1 %v10564_v15 }
 0xc3a   :  { %3063 = vmatprep.mubr.f32.mxu0 %v12166_v28  ;;  %3134 = vmatprep.mubr.f32.mxu1 %v12166_v28 }
 0xc3c   :  { %8037 = vmatpush1.bf16.msra.mxu0 %v10566_v41  ;;  %8069 = vmatpush1.bf16.msra.mxu1 %v10569_v59 }
 0xc3d   :  { %8039 = vmatprep.subr.bf16.mxu0 %v10574_v27  ;;  %8071 = vmatprep.subr.bf16.mxu1 %v10576_v34 }
 0xc40   :  { %8041 = vmatpush1.bf16.msra.mxu0 %v10578_v57  ;;  %8073 = vmatpush1.bf16.msra.mxu1 %v10581_v18 }
 0xc41   :  { %8043 = vmatprep.subr.bf16.mxu0 %v10586_v0  ;;  %8075 = vmatprep.subr.bf16.mxu1 %v10588_v23 }
 0xc44   :  { %8045 = vmatpush1.bf16.msra.mxu0 %v10591_v49  ;;  %8077 = vmatpush1.bf16.msra.mxu1 %v10593_v19 }
 0xc45   :  { %8047 = vmatprep.subr.bf16.mxu0 %v10598_v11  ;;  %8079 = vmatprep.subr.bf16.mxu1 %v10600_v5 }
 0xc48   :  { %8049 = vmatpush1.bf16.msra.mxu0 %v10602_v14  ;;  %8081 = vmatpush1.bf16.msra.mxu1 %v10605_v7 }
 0xc49   :  { %8051 = vmatprep.subr.bf16.mxu0 %v10610_v10  ;;  %8083 = vmatprep.subr.bf16.mxu1 %v10612_v25 }
 0xc4c   :  { %8053 = vmatpush1.bf16.msra.mxu0 %v10614_v56  ;;  %8085 = vmatpush1.bf16.msra.mxu1 %v10617_v45 }
 0xc4d   :  { %8055 = vmatprep.subr.bf16.mxu0 %v10620_v61  ;;  %8087 = vmatprep.subr.bf16.mxu1 %v10622_v62 }
 0xc50   :  { %8057 = vmatpush1.bf16.msra.mxu0 %v10626_v46  ;;  %8089 = vmatpush1.bf16.msra.mxu1 %v10630_v37 }
 0xc51   :  { %8059 = vmatprep.subr.bf16.mxu0 %v10634_v42  ;;  %8091 = vmatprep.subr.bf16.mxu1 %v10636_v2 }
 0xc54   :  { %8061 = vmatpush1.bf16.msra.mxu0 %v10638_v12  ;;  %8093 = vmatpush1.bf16.msra.mxu1 %v10641_v8 }
 0xc55   :  { %8095 = vmatprep.subr.bf16.mxu0 %v10550_v36  ;;  %8127 = vmatprep.subr.bf16.mxu1 %v10552_v63 }
 0xd0a   :  { %v2897_v53 = vpop.f32.mrb[36].mxu0  ;;  %v2968_v22 = vpop.f32.mrb[36].mxu1 }
 0xd0b   :  { %v2973_v26 = vadd.f32 %v2897_v53, %v10911_v16  ;;  %v2899_v55 = vpop.f32.mrb[37].mxu0  ;;  %v2970_v60 = vpop.f32.mrb[37].mxu1  ;;  %v2975_v38 = vadd.f32 %v2968_v22, %v10921_v50 }
 0xd0c   :  { %v2974_v4 = vadd.f32 %v2899_v55, %v10915_v30  ;;  %v2976_v54 = vadd.f32 %v2970_v60, %v10926_v20 }
 0xd0d   :  { %v2977_v17 = vmul.f32 0.5, %v2973_v26 }
 0xd0e   :  { %v2981_v29 = vmul.f32 0.5, %v2974_v4  ;;  %v2986_v3 = vmul.f32 0.5, %v2976_v54 }
 0xd0f   :  { %9524 = vtanh.f32 %v2977_v17 }
 0xd10   :  { %9526 = vtanh.f32 %v2981_v29 }
 0xd11   :  { %9528 = vtanh.f32 %v2975_v38 }
 0xd12   :  { %9530 = vtanh.f32 %v2986_v3 }
 0xd19   :  { %v9525_v1 = vpop.eup %9524 }
 0xd1a   :  { %v9527_v35 = vpop.eup %9526  ;;  %v2979_v21 = vadd.f32 1.0, %v9525_v1 }
 0xd1b   :  { %v2983_v51 = vadd.f32 1.0, %v9527_v35  ;;  %v9529_v52 = vpop.eup %9528 }
 0xd1c   :  { %v2980_v33 = vmul.f32 0.5, %v2979_v21  ;;  %v9531_v47 = vpop.eup %9530 }
 0xd1d   :  { %v2984_v44 = vmul.f32 0.5, %v2983_v51  ;;  %v2988_v22 = vadd.f32 1.0, %v9531_v47 }
 0xd1e   :  { %v2994_v24 = vmul.f32 %v9529_v52, %v2980_v33 }
 0xd1f   :  { %v2993_v31 = vmul.f32 %v2991_v40, %v2984_v44  ;;  %v2989_v26 = vmul.f32 0.5, %v2988_v22 }
 0xd21   :  { %v10930_v53 = vadd.f32 %v2994_v24, %v2993_v31 }
 0xd23   :  { %9532 = vtanh.f32 %v10930_v53 }
 0xd2d   :  { %v9533_v55 = vpop.eup %9532 }
 0xd2e   :  { %v2997_v60 = vmul.f32 %v9533_v55, %v2989_v26 }
 0xd30   :  { %2998 = vst [vmem:[#allocation3 + $0x8] sm:$0x3] %v2997_v60  ;;  %3064 = vmatmul.mubr.f32.vlgmr.msra.gmra.mrb[38].mxu0 %v2997_v60  ;;  %3135 = vmatmul.mubr.f32.vlgmr.msra.gmra.mrb[38].mxu1 %v2997_v60 }
 0xd31   :  { %8097 = vmatpush1.bf16.msra.mxu0 %v10554_v6  ;;  %8129 = vmatpush1.bf16.msra.mxu1 %v10557_v32 }
 0xd32   :  { %8099 = vmatprep.subr.bf16.mxu0 %v10562_v13  ;;  %8131 = vmatprep.subr.bf16.mxu1 %v10564_v15 }
 0xd33   :  { %3246 = vmatprep.mubr.f32.mxu0 %v12166_v28  ;;  %3317 = vmatprep.mubr.f32.mxu1 %v12166_v28 }
 0xd35   :  { %8101 = vmatpush1.bf16.msra.mxu0 %v10566_v41  ;;  %8133 = vmatpush1.bf16.msra.mxu1 %v10569_v59 }
 0xd36   :  { %8103 = vmatprep.subr.bf16.mxu0 %v10574_v27  ;;  %8135 = vmatprep.subr.bf16.mxu1 %v10576_v34 }
 0xd39   :  { %8105 = vmatpush1.bf16.msra.mxu0 %v10578_v57  ;;  %8137 = vmatpush1.bf16.msra.mxu1 %v10581_v18 }
 0xd3a   :  { %8107 = vmatprep.subr.bf16.mxu0 %v10586_v0  ;;  %8139 = vmatprep.subr.bf16.mxu1 %v10588_v23 }
 0xd3d   :  { %8109 = vmatpush1.bf16.msra.mxu0 %v10591_v49  ;;  %8141 = vmatpush1.bf16.msra.mxu1 %v10593_v19 }
 0xd3e   :  { %8111 = vmatprep.subr.bf16.mxu0 %v10598_v11  ;;  %8143 = vmatprep.subr.bf16.mxu1 %v10600_v5 }
 0xd41   :  { %8113 = vmatpush1.bf16.msra.mxu0 %v10602_v14  ;;  %8145 = vmatpush1.bf16.msra.mxu1 %v10605_v7 }
 0xd42   :  { %8115 = vmatprep.subr.bf16.mxu0 %v10610_v10  ;;  %8147 = vmatprep.subr.bf16.mxu1 %v10612_v25 }
 0xd45   :  { %8117 = vmatpush1.bf16.msra.mxu0 %v10614_v56  ;;  %8149 = vmatpush1.bf16.msra.mxu1 %v10617_v45 }
 0xd46   :  { %8119 = vmatprep.subr.bf16.mxu0 %v10620_v61  ;;  %8151 = vmatprep.subr.bf16.mxu1 %v10622_v62 }
 0xd49   :  { %8121 = vmatpush1.bf16.msra.mxu0 %v10626_v46  ;;  %8153 = vmatpush1.bf16.msra.mxu1 %v10630_v37 }
 0xd4a   :  { %8123 = vmatprep.subr.bf16.mxu0 %v10634_v42  ;;  %8155 = vmatprep.subr.bf16.mxu1 %v10636_v2 }
 0xd4d   :  { %8125 = vmatpush1.bf16.msra.mxu0 %v10638_v12  ;;  %8157 = vmatpush1.bf16.msra.mxu1 %v10641_v8 }
 0xd4e   :  { %8159 = vmatprep.subr.bf16.mxu0 %v10550_v36  ;;  %8191 = vmatprep.subr.bf16.mxu1 %v10552_v63 }
 0xe03   :  { %v3065_v48 = vpop.f32.mrb[38].mxu0  ;;  %v3136_v4 = vpop.f32.mrb[38].mxu1 }
 0xe04   :  { %v3145_v17 = vrot.slane %v3065_v48, 6  ;;  %v3067_v29 = vpop.f32.mrb[39].mxu0  ;;  %v3138_v38 = vpop.f32.mrb[39].mxu1  ;;  %v3147_v1 = vrot.slane %v3136_v4, 6  ;;  %v3171_v48 = vrot.slane %v10930_v53, 6  ;;  %v12233_v53 = vld [vmem:[#allocation11_spill] sm:$0xff] }
 0xe05   :  { %v3146_v54 = vrot.slane %v3067_v29, 6  ;;  %v3148_v52 = vrot.slane %v3138_v38, 6 }
 0xe06   :  { %v3153_v3 = vadd.f32 %v3145_v17, %v10911_v16  ;;  %v3155_v33 = vadd.f32 %v3147_v1, %v10921_v50 }
 0xe07   :  { %v3154_v35 = vadd.f32 %v3146_v54, %v10915_v30  ;;  %v3156_v44 = vadd.f32 %v3148_v52, %v10926_v20 }
 0xe08   :  { %v3157_v21 = vmul.f32 0.5, %v3153_v3 }
 0xe09   :  { %v3161_v51 = vmul.f32 0.5, %v3154_v35  ;;  %v3166_v40 = vmul.f32 0.5, %v3156_v44 }
 0xe0a   :  { %9534 = vtanh.f32 %v3157_v21 }
 0xe0b   :  { %9536 = vtanh.f32 %v3161_v51  ;;  %v12234_v51 = vld [vmem:[#allocation12_spill] sm:$0xff] }
 0xe0c   :  { %9538 = vtanh.f32 %v3155_v33 }
 0xe0d   :  { %9540 = vtanh.f32 %v3166_v40 }
 0xe14   :  { %v9535_v24 = vpop.eup %9534 }
 0xe15   :  { %v9537_v31 = vpop.eup %9536  ;;  %v3159_v47 = vadd.f32 1.0, %v9535_v24 }
 0xe16   :  { %v3163_v22 = vadd.f32 1.0, %v9537_v31  ;;  %v9539_v55 = vpop.eup %9538 }
 0xe17   :  { %v3160_v26 = vmul.f32 0.5, %v3159_v47  ;;  %v9541_v38 = vpop.eup %9540 }
 0xe18   :  { %v3164_v60 = vmul.f32 0.5, %v3163_v22  ;;  %v3168_v54 = vadd.f32 1.0, %v9541_v38 }
 0xe19   :  { %v3174_v4 = vmul.f32 %v9539_v55, %v3160_v26 }
 0xe1a   :  { %v3173_v17 = vmul.f32 %v3171_v48, %v3164_v60  ;;  %v3169_v3 = vmul.f32 0.5, %v3168_v54 }
 0xe1c   :  { %v10972_v29 = vadd.f32 %v3174_v4, %v3173_v17 }
 0xe1e   :  { %9542 = vtanh.f32 %v10972_v29 }
 0xe28   :  { %v9543_v1 = vpop.eup %9542 }
 0xe29   :  { %v3177_v35 = vmul.f32 %v9543_v1, %v3169_v3 }
 0xe2b   :  { %3178 = vst [vmem:[#allocation3 + $0x8] sm:$0xc] %v3177_v35  ;;  %v3180_v21 = vrot.slane %v3177_v35, 2 }
 0xe2d   :  { %3247 = vmatmul.mubr.f32.vlgmr.msra.gmra.mrb[40].mxu0 %v3180_v21  ;;  %3318 = vmatmul.mubr.f32.vlgmr.msra.gmra.mrb[40].mxu1 %v3180_v21 }
 0xe2e   :  { %8161 = vmatpush1.bf16.msra.mxu0 %v10554_v6  ;;  %8193 = vmatpush1.bf16.msra.mxu1 %v10557_v32 }
 0xe2f   :  { %8163 = vmatprep.subr.bf16.mxu0 %v10562_v13  ;;  %8195 = vmatprep.subr.bf16.mxu1 %v10564_v15 }
 0xe30   :  { %3429 = vmatprep.mubr.f32.mxu0 %v12166_v28  ;;  %3500 = vmatprep.mubr.f32.mxu1 %v12166_v28 }
 0xe32   :  { %8165 = vmatpush1.bf16.msra.mxu0 %v10566_v41  ;;  %8197 = vmatpush1.bf16.msra.mxu1 %v10569_v59 }
 0xe33   :  { %8167 = vmatprep.subr.bf16.mxu0 %v10574_v27  ;;  %8199 = vmatprep.subr.bf16.mxu1 %v10576_v34 }
 0xe36   :  { %8169 = vmatpush1.bf16.msra.mxu0 %v10578_v57  ;;  %8201 = vmatpush1.bf16.msra.mxu1 %v10581_v18 }
 0xe37   :  { %8171 = vmatprep.subr.bf16.mxu0 %v10586_v0  ;;  %8203 = vmatprep.subr.bf16.mxu1 %v10588_v23 }
 0xe3a   :  { %8173 = vmatpush1.bf16.msra.mxu0 %v10591_v49  ;;  %8205 = vmatpush1.bf16.msra.mxu1 %v10593_v19 }
 0xe3b   :  { %8175 = vmatprep.subr.bf16.mxu0 %v10598_v11  ;;  %8207 = vmatprep.subr.bf16.mxu1 %v10600_v5 }
 0xe3e   :  { %8177 = vmatpush1.bf16.msra.mxu0 %v10602_v14  ;;  %8209 = vmatpush1.bf16.msra.mxu1 %v10605_v7 }
 0xe3f   :  { %8179 = vmatprep.subr.bf16.mxu0 %v10610_v10  ;;  %8211 = vmatprep.subr.bf16.mxu1 %v10612_v25 }
 0xe42   :  { %8181 = vmatpush1.bf16.msra.mxu0 %v10614_v56  ;;  %8213 = vmatpush1.bf16.msra.mxu1 %v10617_v45 }
 0xe43   :  { %8183 = vmatprep.subr.bf16.mxu0 %v10620_v61  ;;  %8215 = vmatprep.subr.bf16.mxu1 %v10622_v62  ;;  %v12265_v62 = vld [vmem:[#allocation108_spill] sm:$0xff] }
 0xe44   :  { %v3546_v61 = vrot.slane %v12265_v62, 6 }
 0xe46   :  { %8185 = vmatpush1.bf16.msra.mxu0 %v10626_v46  ;;  %8217 = vmatpush1.bf16.msra.mxu1 %v10630_v37  ;;  %v12263_v37 = vld [vmem:[#allocation41_spill] sm:$0xff]  ;;  %v12264_v46 = vld [vmem:[#allocation42_spill] sm:$0xff] }
 0xe47   :  { %8187 = vmatprep.subr.bf16.mxu0 %v10634_v42  ;;  %8219 = vmatprep.subr.bf16.mxu1 %v10636_v2  ;;  %v12261_v2 = vld [vmem:[#allocation39_spill] sm:$0xff]  ;;  %v12262_v42 = vld [vmem:[#allocation40_spill] sm:$0xff] }
 0xe4a   :  { %8189 = vmatpush1.bf16.msra.mxu0 %v10638_v12  ;;  %8221 = vmatpush1.bf16.msra.mxu1 %v10641_v8  ;;  %v12259_v8 = vld [vmem:[#allocation37_spill] sm:$0xff]  ;;  %v12260_v12 = vld [vmem:[#allocation38_spill] sm:$0xff] }
 0xe4b   :  { %8223 = vmatprep.subr.bf16.mxu0 %v12233_v53  ;;  %8255 = vmatprep.subr.bf16.mxu1 %v12234_v51 }
 0xf00   :  { %v3248_v33 = vpop.f32.mrb[40].mxu0  ;;  %v3319_v52 = vpop.f32.mrb[40].mxu1 }
 0xf01   :  { %v3328_v44 = vrot.slane %v3248_v33, 4  ;;  %v3250_v40 = vpop.f32.mrb[41].mxu0  ;;  %v3321_v24 = vpop.f32.mrb[41].mxu1  ;;  %v3330_v22 = vrot.slane %v3319_v52, 4 }
 0xf02   :  { %v3329_v31 = vrot.slane %v3250_v40, 4  ;;  %v3331_v4 = vrot.slane %v3321_v24, 4 }
 0xf03   :  { %v3336_v47 = vadd.f32 %v3328_v44, %v10911_v16  ;;  %v3338_v48 = vadd.f32 %v3330_v22, %v10921_v50  ;;  %v3354_v44 = vrot.slane %v10972_v29, 6  ;;  %v12237_v29 = vld [vmem:[#allocation15_spill] sm:$0xff] }
 0xf04   :  { %v3337_v26 = vadd.f32 %v3329_v31, %v10915_v30  ;;  %v3339_v17 = vadd.f32 %v3331_v4, %v10926_v20  ;;  %v12235_v4 = vld [vmem:[#allocation13_spill] sm:$0xff] }
 0xf05   :  { %v3340_v55 = vmul.f32 0.5, %v3336_v47 }
 0xf06   :  { %v3344_v60 = vmul.f32 0.5, %v3337_v26  ;;  %v3349_v38 = vmul.f32 0.5, %v3339_v17  ;;  %v12236_v17 = vld [vmem:[#allocation14_spill] sm:$0xff] }
 0xf07   :  { %9544 = vtanh.f32 %v3340_v55 }
 0xf08   :  { %9546 = vtanh.f32 %v3344_v60 }
 0xf09   :  { %9548 = vtanh.f32 %v3338_v48 }
 0xf0a   :  { %9550 = vtanh.f32 %v3349_v38  ;;  %v12238_v38 = vld [vmem:[#allocation16_spill] sm:$0xff] }
 0xf11   :  { %v9545_v54 = vpop.eup %9544 }
 0xf12   :  { %v9547_v3 = vpop.eup %9546  ;;  %v3342_v1 = vadd.f32 1.0, %v9545_v54  ;;  %v12239_v54 = vld [vmem:[#allocation17_spill] sm:$0xff] }
 0xf13   :  { %v3346_v35 = vadd.f32 1.0, %v9547_v3  ;;  %v9549_v33 = vpop.eup %9548  ;;  %v12240_v3 = vld [vmem:[#allocation18_spill] sm:$0xff] }
 0xf14   :  { %v3343_v21 = vmul.f32 0.5, %v3342_v1  ;;  %v9551_v24 = vpop.eup %9550  ;;  %v12241_v1 = vld [vmem:[#allocation19_spill] sm:$0xff] }
 0xf15   :  { %v3347_v52 = vmul.f32 0.5, %v3346_v35  ;;  %v3351_v22 = vadd.f32 1.0, %v9551_v24  ;;  %v12242_v35 = vld [vmem:[#allocation20_spill] sm:$0xff]  ;;  %v12249_v24 = vld [vmem:[#allocation27_spill] sm:$0xff] }
 0xf16   :  { %v3357_v40 = vmul.f32 %v9549_v33, %v3343_v21  ;;  %v12243_v21 = vld [vmem:[#allocation21_spill] sm:$0xff]  ;;  %v12244_v33 = vld [vmem:[#allocation22_spill] sm:$0xff] }
 0xf17   :  { %v3356_v31 = vmul.f32 %v3354_v44, %v3347_v52  ;;  %v3352_v26 = vmul.f32 0.5, %v3351_v22  ;;  %v12245_v52 = vld [vmem:[#allocation23_spill] sm:$0xff]  ;;  %v12246_v44 = vld [vmem:[#allocation24_spill] sm:$0xff] }
 0xf18   :  { %v12250_v22 = vld [vmem:[#allocation28_spill] sm:$0xff] }
 0xf19   :  { %v11014_v47 = vadd.f32 %v3357_v40, %v3356_v31  ;;  %v12247_v40 = vld [vmem:[#allocation25_spill] sm:$0xff]  ;;  %v12248_v31 = vld [vmem:[#allocation26_spill] sm:$0xff] }
 0xf1b   :  { %9552 = vtanh.f32 %v11014_v47 }
 0xf25   :  { %v9553_v55 = vpop.eup %9552 }
 0xf26   :  { %v3360_v60 = vmul.f32 %v9553_v55, %v3352_v26  ;;  %v12251_v26 = vld [vmem:[#allocation29_spill] sm:$0xff]  ;;  %v12252_v55 = vld [vmem:[#allocation30_spill] sm:$0xff] }
 0xf28   :  { %3361 = vst [vmem:[#allocation3 + $0x8] sm:$0x30] %v3360_v60  ;;  %v3363_v48 = vrot.slane %v3360_v60, 4  ;;  %v12253_v60 = vld [vmem:[#allocation31_spill] sm:$0xff] }
 0xf2a   :  { %3430 = vmatmul.mubr.f32.vlgmr.msra.gmra.mrb[42].mxu0 %v3363_v48  ;;  %3501 = vmatmul.mubr.f32.vlgmr.msra.gmra.mrb[42].mxu1 %v3363_v48  ;;  %v12254_v48 = vld [vmem:[#allocation32_spill] sm:$0xff] }
 0xf2b   :  { %8225 = vmatpush1.bf16.msra.mxu0 %v12235_v4  ;;  %8257 = vmatpush1.bf16.msra.mxu1 %v12236_v17 }
 0xf2c   :  { %8227 = vmatprep.subr.bf16.mxu0 %v12237_v29  ;;  %8259 = vmatprep.subr.bf16.mxu1 %v12238_v38 }
 0xf2d   :  { %3612 = vmatprep.mubr.f32.mxu0 %v12166_v28  ;;  %3683 = vmatprep.mubr.f32.mxu1 %v12166_v28 }
 0xf2f   :  { %8229 = vmatpush1.bf16.msra.mxu0 %v12239_v54  ;;  %8261 = vmatpush1.bf16.msra.mxu1 %v12240_v3 }
 0xf30   :  { %8231 = vmatprep.subr.bf16.mxu0 %v12241_v1  ;;  %8263 = vmatprep.subr.bf16.mxu1 %v12242_v35 }
 0xf33   :  { %8233 = vmatpush1.bf16.msra.mxu0 %v12243_v21  ;;  %8265 = vmatpush1.bf16.msra.mxu1 %v12244_v33 }
 0xf34   :  { %8235 = vmatprep.subr.bf16.mxu0 %v12245_v52  ;;  %8267 = vmatprep.subr.bf16.mxu1 %v12246_v44 }
 0xf37   :  { %8237 = vmatpush1.bf16.msra.mxu0 %v12247_v40  ;;  %8269 = vmatpush1.bf16.msra.mxu1 %v12248_v31 }
 0xf38   :  { %8239 = vmatprep.subr.bf16.mxu0 %v12249_v24  ;;  %8271 = vmatprep.subr.bf16.mxu1 %v12250_v22 }
 0xf3b   :  { %8241 = vmatpush1.bf16.msra.mxu0 %v12251_v26  ;;  %8273 = vmatpush1.bf16.msra.mxu1 %v12252_v55 }
 0xf3c   :  { %8243 = vmatprep.subr.bf16.mxu0 %v12253_v60  ;;  %8275 = vmatprep.subr.bf16.mxu1 %v12254_v48 }
 0xf3f   :  { %8245 = vmatpush1.bf16.msra.mxu0 %v12255_v39  ;;  %8277 = vmatpush1.bf16.msra.mxu1 %v12256_v58 }
 0xf40   :  { %8247 = vmatprep.subr.bf16.mxu0 %v12257_v43  ;;  %8279 = vmatprep.subr.bf16.mxu1 %v12258_v9 }
 0xf43   :  { %8249 = vmatpush1.bf16.msra.mxu0 %v12259_v8  ;;  %8281 = vmatpush1.bf16.msra.mxu1 %v12260_v12 }
 0xf44   :  { %8251 = vmatprep.subr.bf16.mxu0 %v12261_v2  ;;  %8283 = vmatprep.subr.bf16.mxu1 %v12262_v42 }
 0xf47   :  { %8253 = vmatpush1.bf16.msra.mxu0 %v12263_v37  ;;  %8285 = vmatpush1.bf16.msra.mxu1 %v12264_v46 }
 0xf48   :  { %8287 = vmatprep.subr.bf16.mxu0 %v12233_v53  ;;  %8319 = vmatprep.subr.bf16.mxu1 %v12234_v51 }
 0xf4a   :  { %3613 = vmatmul.mubr.f32.vlgmr.msra.gmra.mrb[44].mxu0 %v3546_v61  ;;  %3684 = vmatmul.mubr.f32.vlgmr.msra.gmra.mrb[44].mxu1 %v3546_v61 }
 0xf4b   :  { %8289 = vmatpush1.bf16.msra.mxu0 %v12235_v4  ;;  %8321 = vmatpush1.bf16.msra.mxu1 %v12236_v17 }
 0xf4c   :  { %8291 = vmatprep.subr.bf16.mxu0 %v12237_v29  ;;  %8323 = vmatprep.subr.bf16.mxu1 %v12238_v38 }
 0xf4d   :  { %3780 = vmatprep.mubr.f32.mxu0 %v12166_v28  ;;  %3851 = vmatprep.mubr.f32.mxu1 %v12166_v28 }
 0xf4f   :  { %8293 = vmatpush1.bf16.msra.mxu0 %v12239_v54  ;;  %8325 = vmatpush1.bf16.msra.mxu1 %v12240_v3 }
 0xf50   :  { %8295 = vmatprep.subr.bf16.mxu0 %v12241_v1  ;;  %8327 = vmatprep.subr.bf16.mxu1 %v12242_v35 }
 0xf53   :  { %8297 = vmatpush1.bf16.msra.mxu0 %v12243_v21  ;;  %8329 = vmatpush1.bf16.msra.mxu1 %v12244_v33 }
 0xf54   :  { %8299 = vmatprep.subr.bf16.mxu0 %v12245_v52  ;;  %8331 = vmatprep.subr.bf16.mxu1 %v12246_v44 }
 0xf57   :  { %8301 = vmatpush1.bf16.msra.mxu0 %v12247_v40  ;;  %8333 = vmatpush1.bf16.msra.mxu1 %v12248_v31 }
 0xf58   :  { %8303 = vmatprep.subr.bf16.mxu0 %v12249_v24  ;;  %8335 = vmatprep.subr.bf16.mxu1 %v12250_v22 }
 0xf5b   :  { %8305 = vmatpush1.bf16.msra.mxu0 %v12251_v26  ;;  %8337 = vmatpush1.bf16.msra.mxu1 %v12252_v55 }
 0xf5c   :  { %8307 = vmatprep.subr.bf16.mxu0 %v12253_v60  ;;  %8339 = vmatprep.subr.bf16.mxu1 %v12254_v48 }
 0xf5f   :  { %8309 = vmatpush1.bf16.msra.mxu0 %v12255_v39  ;;  %8341 = vmatpush1.bf16.msra.mxu1 %v12256_v58 }
 0xf60   :  { %8311 = vmatprep.subr.bf16.mxu0 %v12257_v43  ;;  %8343 = vmatprep.subr.bf16.mxu1 %v12258_v9 }
 0xf63   :  { %8313 = vmatpush1.bf16.msra.mxu0 %v12259_v8  ;;  %8345 = vmatpush1.bf16.msra.mxu1 %v12260_v12 }
 0xf64   :  { %8315 = vmatprep.subr.bf16.mxu0 %v12261_v2  ;;  %8347 = vmatprep.subr.bf16.mxu1 %v12262_v42 }
 0xf67   :  { %8317 = vmatpush1.bf16.msra.mxu0 %v12263_v37  ;;  %8349 = vmatpush1.bf16.msra.mxu1 %v12264_v46 }
 0xf68   :  { %8351 = vmatprep.subr.bf16.mxu0 %v12233_v53  ;;  %8383 = vmatprep.subr.bf16.mxu1 %v12234_v51 }
 0xffd   :  { %v3431_v61 = vpop.f32.mrb[42].mxu0  ;;  %v3502_v62 = vpop.f32.mrb[42].mxu1 }
 0xffe   :  { %v3511_v45 = vrot.slane %v3431_v61, 2  ;;  %v3433_v56 = vpop.f32.mrb[43].mxu0  ;;  %v3504_v25 = vpop.f32.mrb[43].mxu1  ;;  %v3513_v14 = vrot.slane %v3502_v62, 2 }
 0xfff   :  { %v3512_v10 = vrot.slane %v3433_v56, 2  ;;  %v3514_v23 = vrot.slane %v3504_v25, 2 }
0x1000   :  { %v3519_v7 = vadd.f32 %v3511_v45, %v10911_v16  ;;  %v3521_v49 = vadd.f32 %v3513_v14, %v10921_v50  ;;  %v12267_v14 = vld [vmem:[#allocation45_spill] sm:$0xff] }
0x1001   :  { %v3520_v5 = vadd.f32 %v3512_v10, %v10915_v30  ;;  %v3522_v0 = vadd.f32 %v3514_v23, %v10926_v20 }
0x1002   :  { %v3523_v11 = vmul.f32 0.5, %v3519_v7  ;;  %v3537_v7 = vrot.slane %v11014_v47, 6 }
0x1003   :  { %v3527_v19 = vmul.f32 0.5, %v3520_v5  ;;  %v3532_v18 = vmul.f32 0.5, %v3522_v0 }
0x1004   :  { %9554 = vtanh.f32 %v3523_v11 }
0x1005   :  { %9556 = vtanh.f32 %v3527_v19 }
0x1006   :  { %9558 = vtanh.f32 %v3521_v49 }
0x1007   :  { %9560 = vtanh.f32 %v3532_v18  ;;  %v12268_v18 = vld [vmem:[#allocation46_spill] sm:$0xff] }
0x100e   :  { %v9555_v61 = vpop.eup %9554 }
0x100f   :  { %v9557_v57 = vpop.eup %9556  ;;  %v3525_v34 = vadd.f32 1.0, %v9555_v61 }
0x1010   :  { %v3529_v56 = vadd.f32 1.0, %v9557_v57  ;;  %v9559_v16 = vpop.eup %9558 }
0x1011   :  { %v3526_v45 = vmul.f32 0.5, %v3525_v34  ;;  %v9561_v49 = vpop.eup %9560 }
0x1012   :  { %v3530_v62 = vmul.f32 0.5, %v3529_v56  ;;  %v3534_v19 = vadd.f32 1.0, %v9561_v49  ;;  %v12269_v56 = vld [vmem:[#allocation43_spill] sm:$0xff] }
0x1013   :  { %v3540_v5 = vmul.f32 %v9559_v16, %v3526_v45 }
0x1014   :  { %v3539_v11 = vmul.f32 %v3537_v7, %v3530_v62  ;;  %v3535_v20 = vmul.f32 0.5, %v3534_v19  ;;  %v12271_v62 = vld [vmem:[#allocation44_spill] sm:$0xff] }
0x1016   :  { %v11091_v10 = vadd.f32 %v3540_v5, %v3539_v11 }
0x1018   :  { %12266 = vst [vmem:[#allocation11_spill] sm:$0xff] %v11091_v10  ;;  %9562 = vtanh.f32 %v11091_v10 }
0x101d   :  { %v3614_v23 = vpop.f32.mrb[44].mxu0  ;;  %v3685_v0 = vpop.f32.mrb[44].mxu1 }
0x101e   :  { %v3690_v25 = vadd.f32 %v3614_v23, %v12267_v14  ;;  %v3616_v30 = vpop.f32.mrb[45].mxu0  ;;  %v3687_v57 = vpop.f32.mrb[45].mxu1  ;;  %v3692_v45 = vadd.f32 %v3685_v0, %v12269_v56 }
0x101f   :  { %v3691_v34 = vadd.f32 %v3616_v30, %v12268_v18  ;;  %v3693_v7 = vadd.f32 %v3687_v57, %v12271_v62 }
0x1020   :  { %v3694_v50 = vmul.f32 0.5, %v3690_v25 }
0x1021   :  { %v3698_v61 = vmul.f32 0.5, %v3691_v34  ;;  %v3703_v5 = vmul.f32 0.5, %v3693_v7 }
0x1022   :  { %v9563_v47 = vpop.eup %9562  ;;  %9564 = vtanh.f32 %v3694_v50  ;;  %v12272_v50 = vld [vmem:[#allocation107_spill] sm:$0xff] }
0x1023   :  { %v11097_v16 = vmul.f32 %v9563_v47, %v3535_v20  ;;  %9566 = vtanh.f32 %v3698_v61  ;;  %v3708_v10 = vrot.slane %v12272_v50, 6 }
0x1024   :  { %9568 = vtanh.f32 %v3692_v45 }
0x1025   :  { %12270 = vst [vmem:[#allocation12_spill] sm:$0xff] %v11097_v16  ;;  %3544 = vst [vmem:[#allocation3 + $0x8] sm:$0xc0] %v11097_v16  ;;  %9570 = vtanh.f32 %v3703_v5 }
0x102c   :  { %v9565_v11 = vpop.eup %9564 }
0x102d   :  { %v9567_v49 = vpop.eup %9566  ;;  %v3696_v23 = vadd.f32 1.0, %v9565_v11 }
0x102e   :  { %v3700_v30 = vadd.f32 1.0, %v9567_v49  ;;  %v9569_v25 = vpop.eup %9568 }
0x102f   :  { %v3697_v19 = vmul.f32 0.5, %v3696_v23  ;;  %v9571_v61 = vpop.eup %9570 }
0x1030   :  { %v3701_v34 = vmul.f32 0.5, %v3700_v30  ;;  %v3705_v45 = vadd.f32 1.0, %v9571_v61 }
0x1031   :  { %v3711_v0 = vmul.f32 %v9569_v25, %v3697_v19 }
0x1032   :  { %v3710_v20 = vmul.f32 %v3708_v10, %v3701_v34  ;;  %v3706_v57 = vmul.f32 0.5, %v3705_v45 }
0x1034   :  { %v11102_v47 = vadd.f32 %v3711_v0, %v3710_v20 }
0x1036   :  { %9572 = vtanh.f32 %v11102_v47 }
0x1040   :  { %v9573_v7 = vpop.eup %9572 }
0x1041   :  { %v3714_v16 = vmul.f32 %v9573_v7, %v3706_v57 }
0x1043   :  { %3715 = vst [vmem:[#allocation2] sm:$0x3] %v3714_v16  ;;  %3781 = vmatmul.mubr.f32.vlgmr.msra.gmra.mrb[46].mxu0 %v3714_v16  ;;  %3852 = vmatmul.mubr.f32.vlgmr.msra.gmra.mrb[46].mxu1 %v3714_v16 }
0x1044   :  { %8353 = vmatpush1.bf16.msra.mxu0 %v12235_v4  ;;  %8385 = vmatpush1.bf16.msra.mxu1 %v12236_v17 }
0x1045   :  { %8355 = vmatprep.subr.bf16.mxu0 %v12237_v29  ;;  %8387 = vmatprep.subr.bf16.mxu1 %v12238_v38 }
0x1046   :  { %3963 = vmatprep.mubr.f32.mxu0 %v12166_v28  ;;  %4034 = vmatprep.mubr.f32.mxu1 %v12166_v28 }
0x1048   :  { %8357 = vmatpush1.bf16.msra.mxu0 %v12239_v54  ;;  %8389 = vmatpush1.bf16.msra.mxu1 %v12240_v3 }
0x1049   :  { %8359 = vmatprep.subr.bf16.mxu0 %v12241_v1  ;;  %8391 = vmatprep.subr.bf16.mxu1 %v12242_v35 }
0x104c   :  { %8361 = vmatpush1.bf16.msra.mxu0 %v12243_v21  ;;  %8393 = vmatpush1.bf16.msra.mxu1 %v12244_v33 }
0x104d   :  { %8363 = vmatprep.subr.bf16.mxu0 %v12245_v52  ;;  %8395 = vmatprep.subr.bf16.mxu1 %v12246_v44 }
0x1050   :  { %8365 = vmatpush1.bf16.msra.mxu0 %v12247_v40  ;;  %8397 = vmatpush1.bf16.msra.mxu1 %v12248_v31 }
0x1051   :  { %8367 = vmatprep.subr.bf16.mxu0 %v12249_v24  ;;  %8399 = vmatprep.subr.bf16.mxu1 %v12250_v22 }
0x1054   :  { %8369 = vmatpush1.bf16.msra.mxu0 %v12251_v26  ;;  %8401 = vmatpush1.bf16.msra.mxu1 %v12252_v55 }
0x1055   :  { %8371 = vmatprep.subr.bf16.mxu0 %v12253_v60  ;;  %8403 = vmatprep.subr.bf16.mxu1 %v12254_v48 }
0x1058   :  { %8373 = vmatpush1.bf16.msra.mxu0 %v12255_v39  ;;  %8405 = vmatpush1.bf16.msra.mxu1 %v12256_v58 }
0x1059   :  { %8375 = vmatprep.subr.bf16.mxu0 %v12257_v43  ;;  %8407 = vmatprep.subr.bf16.mxu1 %v12258_v9 }
0x105c   :  { %8377 = vmatpush1.bf16.msra.mxu0 %v12259_v8  ;;  %8409 = vmatpush1.bf16.msra.mxu1 %v12260_v12 }
0x105d   :  { %8379 = vmatprep.subr.bf16.mxu0 %v12261_v2  ;;  %8411 = vmatprep.subr.bf16.mxu1 %v12262_v42 }
0x1060   :  { %8381 = vmatpush1.bf16.msra.mxu0 %v12263_v37  ;;  %8413 = vmatpush1.bf16.msra.mxu1 %v12264_v46 }
0x1061   :  { %8415 = vmatprep.subr.bf16.mxu0 %v12233_v53  ;;  %8447 = vmatprep.subr.bf16.mxu1 %v12234_v51 }
0x1116   :  { %v3782_v10 = vpop.f32.mrb[46].mxu0  ;;  %v3853_v16 = vpop.f32.mrb[46].mxu1 }
0x1117   :  { %v3862_v5 = vrot.slane %v3782_v10, 6  ;;  %v3784_v11 = vpop.f32.mrb[47].mxu0  ;;  %v3855_v49 = vpop.f32.mrb[47].mxu1  ;;  %v3864_v19 = vrot.slane %v3853_v16, 6 }
0x1118   :  { %v3863_v23 = vrot.slane %v3784_v11, 6  ;;  %v3865_v20 = vrot.slane %v3855_v49, 6 }
0x1119   :  { %v3870_v30 = vadd.f32 %v3862_v5, %v12267_v14  ;;  %v3872_v0 = vadd.f32 %v3864_v19, %v12269_v56 }
0x111a   :  { %v3871_v25 = vadd.f32 %v3863_v23, %v12268_v18  ;;  %v3873_v61 = vadd.f32 %v3865_v20, %v12271_v62  ;;  %v3888_v23 = vrot.slane %v11102_v47, 6 }
0x111b   :  { %v3874_v34 = vmul.f32 0.5, %v3870_v30 }
0x111c   :  { %v3878_v50 = vmul.f32 0.5, %v3871_v25  ;;  %v3883_v45 = vmul.f32 0.5, %v3873_v61 }
0x111d   :  { %9574 = vtanh.f32 %v3874_v34 }
0x111e   :  { %9576 = vtanh.f32 %v3878_v50 }
0x111f   :  { %9578 = vtanh.f32 %v3872_v0 }
0x1120   :  { %9580 = vtanh.f32 %v3883_v45 }
0x1127   :  { %v9575_v57 = vpop.eup %9574 }
0x1128   :  { %v9577_v7 = vpop.eup %9576  ;;  %v3876_v10 = vadd.f32 1.0, %v9575_v57 }
0x1129   :  { %v3880_v11 = vadd.f32 1.0, %v9577_v7  ;;  %v9579_v16 = vpop.eup %9578 }
0x112a   :  { %v3877_v5 = vmul.f32 0.5, %v3876_v10  ;;  %v9581_v49 = vpop.eup %9580 }
0x112b   :  { %v3881_v27 = vmul.f32 0.5, %v3880_v11  ;;  %v3885_v19 = vadd.f32 1.0, %v9581_v49 }
0x112c   :  { %v3891_v30 = vmul.f32 %v9579_v16, %v3877_v5 }
0x112d   :  { %v3890_v25 = vmul.f32 %v3888_v23, %v3881_v27  ;;  %v3886_v50 = vmul.f32 0.5, %v3885_v19 }
0x112f   :  { %v11144_v34 = vadd.f32 %v3891_v30, %v3890_v25 }
0x1131   :  { %9582 = vtanh.f32 %v11144_v34 }
0x113b   :  { %v9583_v0 = vpop.eup %9582 }
0x113c   :  { %v3894_v20 = vmul.f32 %v9583_v0, %v3886_v50 }
0x113e   :  { %3895 = vst [vmem:[#allocation2] sm:$0xc] %v3894_v20  ;;  %v3897_v61 = vrot.slane %v3894_v20, 2 }
0x1140   :  { %3964 = vmatmul.mubr.f32.vlgmr.msra.gmra.mrb[48].mxu0 %v3897_v61  ;;  %4035 = vmatmul.mubr.f32.vlgmr.msra.gmra.mrb[48].mxu1 %v3897_v61 }
0x1141   :  { %8417 = vmatpush1.bf16.msra.mxu0 %v12235_v4  ;;  %8449 = vmatpush1.bf16.msra.mxu1 %v12236_v17 }
0x1142   :  { %8419 = vmatprep.subr.bf16.mxu0 %v12237_v29  ;;  %8451 = vmatprep.subr.bf16.mxu1 %v12238_v38 }
0x1143   :  { %4146 = vmatprep.mubr.f32.mxu0 %v12166_v28  ;;  %4217 = vmatprep.mubr.f32.mxu1 %v12166_v28 }
0x1145   :  { %8421 = vmatpush1.bf16.msra.mxu0 %v12239_v54  ;;  %8453 = vmatpush1.bf16.msra.mxu1 %v12240_v3 }
0x1146   :  { %8423 = vmatprep.subr.bf16.mxu0 %v12241_v1  ;;  %8455 = vmatprep.subr.bf16.mxu1 %v12242_v35 }
0x1149   :  { %8425 = vmatpush1.bf16.msra.mxu0 %v12243_v21  ;;  %8457 = vmatpush1.bf16.msra.mxu1 %v12244_v33 }
0x114a   :  { %8427 = vmatprep.subr.bf16.mxu0 %v12245_v52  ;;  %8459 = vmatprep.subr.bf16.mxu1 %v12246_v44 }
0x114d   :  { %8429 = vmatpush1.bf16.msra.mxu0 %v12247_v40  ;;  %8461 = vmatpush1.bf16.msra.mxu1 %v12248_v31 }
0x114e   :  { %8431 = vmatprep.subr.bf16.mxu0 %v12249_v24  ;;  %8463 = vmatprep.subr.bf16.mxu1 %v12250_v22 }
0x1151   :  { %8433 = vmatpush1.bf16.msra.mxu0 %v12251_v26  ;;  %8465 = vmatpush1.bf16.msra.mxu1 %v12252_v55 }
0x1152   :  { %8435 = vmatprep.subr.bf16.mxu0 %v12253_v60  ;;  %8467 = vmatprep.subr.bf16.mxu1 %v12254_v48 }
0x1155   :  { %8437 = vmatpush1.bf16.msra.mxu0 %v12255_v39  ;;  %8469 = vmatpush1.bf16.msra.mxu1 %v12256_v58 }
0x1156   :  { %8439 = vmatprep.subr.bf16.mxu0 %v12257_v43  ;;  %8471 = vmatprep.subr.bf16.mxu1 %v12258_v9 }
0x1159   :  { %8441 = vmatpush1.bf16.msra.mxu0 %v12259_v8  ;;  %8473 = vmatpush1.bf16.msra.mxu1 %v12260_v12 }
0x115a   :  { %8443 = vmatprep.subr.bf16.mxu0 %v12261_v2  ;;  %8475 = vmatprep.subr.bf16.mxu1 %v12262_v42 }
0x115d   :  { %8445 = vmatpush1.bf16.msra.mxu0 %v12263_v37  ;;  %8477 = vmatpush1.bf16.msra.mxu1 %v12264_v46 }
0x115e   :  { %8479 = vmatprep.subr.bf16.mxu0 %v12233_v53  ;;  %8511 = vmatprep.subr.bf16.mxu1 %v12234_v51 }
0x1213   :  { %v3965_v27 = vpop.f32.mrb[48].mxu0  ;;  %v4036_v47 = vpop.f32.mrb[48].mxu1 }
0x1214   :  { %v4045_v45 = vrot.slane %v3965_v27, 4  ;;  %v3967_v57 = vpop.f32.mrb[49].mxu0  ;;  %v4038_v7 = vpop.f32.mrb[49].mxu1  ;;  %v4047_v5 = vrot.slane %v4036_v47, 4 }
0x1215   :  { %v4046_v10 = vrot.slane %v3967_v57, 4  ;;  %v4048_v49 = vrot.slane %v4038_v7, 4 }
0x1216   :  { %v4053_v11 = vadd.f32 %v4045_v45, %v12267_v14  ;;  %v4055_v25 = vadd.f32 %v4047_v5, %v12269_v56 }
0x1217   :  { %v4054_v16 = vadd.f32 %v4046_v10, %v12268_v18  ;;  %v4056_v19 = vadd.f32 %v4048_v49, %v12271_v62  ;;  %v4071_v10 = vrot.slane %v11144_v34, 6 }
0x1218   :  { %v4057_v23 = vmul.f32 0.5, %v4053_v11 }
0x1219   :  { %v4061_v30 = vmul.f32 0.5, %v4054_v16  ;;  %v4066_v50 = vmul.f32 0.5, %v4056_v19 }
0x121a   :  { %9584 = vtanh.f32 %v4057_v23 }
0x121b   :  { %9586 = vtanh.f32 %v4061_v30 }
0x121c   :  { %9588 = vtanh.f32 %v4055_v25 }
0x121d   :  { %9590 = vtanh.f32 %v4066_v50 }
0x1224   :  { %v9585_v0 = vpop.eup %9584 }
0x1225   :  { %v9587_v20 = vpop.eup %9586  ;;  %v4059_v61 = vadd.f32 1.0, %v9585_v0 }
0x1226   :  { %v4063_v27 = vadd.f32 1.0, %v9587_v20  ;;  %v9589_v47 = vpop.eup %9588 }
0x1227   :  { %v4060_v45 = vmul.f32 0.5, %v4059_v61  ;;  %v9591_v7 = vpop.eup %9590 }
0x1228   :  { %v4064_v57 = vmul.f32 0.5, %v4063_v27  ;;  %v4068_v5 = vadd.f32 1.0, %v9591_v7 }
0x1229   :  { %v4074_v11 = vmul.f32 %v9589_v47, %v4060_v45 }
0x122a   :  { %v4073_v16 = vmul.f32 %v4071_v10, %v4064_v57  ;;  %v4069_v30 = vmul.f32 0.5, %v4068_v5 }
0x122c   :  { %v11186_v23 = vadd.f32 %v4074_v11, %v4073_v16 }
0x122e   :  { %9592 = vtanh.f32 %v11186_v23 }
0x1238   :  { %v9593_v25 = vpop.eup %9592 }
0x1239   :  { %v4077_v49 = vmul.f32 %v9593_v25, %v4069_v30 }
0x123b   :  { %4078 = vst [vmem:[#allocation2] sm:$0x30] %v4077_v49  ;;  %v4080_v19 = vrot.slane %v4077_v49, 4 }
0x123d   :  { %4147 = vmatmul.mubr.f32.vlgmr.msra.gmra.mrb[50].mxu0 %v4080_v19  ;;  %4218 = vmatmul.mubr.f32.vlgmr.msra.gmra.mrb[50].mxu1 %v4080_v19 }
0x123e   :  { %8481 = vmatpush1.bf16.msra.mxu0 %v12235_v4  ;;  %8513 = vmatpush1.bf16.msra.mxu1 %v12236_v17 }
0x123f   :  { %8483 = vmatprep.subr.bf16.mxu0 %v12237_v29  ;;  %8515 = vmatprep.subr.bf16.mxu1 %v12238_v38 }
0x1240   :  { %4329 = vmatprep.mubr.f32.mxu0 %v12166_v28  ;;  %4400 = vmatprep.mubr.f32.mxu1 %v12166_v28 }
0x1242   :  { %8485 = vmatpush1.bf16.msra.mxu0 %v12239_v54  ;;  %8517 = vmatpush1.bf16.msra.mxu1 %v12240_v3 }
0x1243   :  { %8487 = vmatprep.subr.bf16.mxu0 %v12241_v1  ;;  %8519 = vmatprep.subr.bf16.mxu1 %v12242_v35 }
0x1246   :  { %8489 = vmatpush1.bf16.msra.mxu0 %v12243_v21  ;;  %8521 = vmatpush1.bf16.msra.mxu1 %v12244_v33 }
0x1247   :  { %8491 = vmatprep.subr.bf16.mxu0 %v12245_v52  ;;  %8523 = vmatprep.subr.bf16.mxu1 %v12246_v44 }
0x124a   :  { %8493 = vmatpush1.bf16.msra.mxu0 %v12247_v40  ;;  %8525 = vmatpush1.bf16.msra.mxu1 %v12248_v31 }
0x124b   :  { %8495 = vmatprep.subr.bf16.mxu0 %v12249_v24  ;;  %8527 = vmatprep.subr.bf16.mxu1 %v12250_v22 }
0x124e   :  { %8497 = vmatpush1.bf16.msra.mxu0 %v12251_v26  ;;  %8529 = vmatpush1.bf16.msra.mxu1 %v12252_v55 }
0x124f   :  { %8499 = vmatprep.subr.bf16.mxu0 %v12253_v60  ;;  %8531 = vmatprep.subr.bf16.mxu1 %v12254_v48 }
0x1252   :  { %8501 = vmatpush1.bf16.msra.mxu0 %v12255_v39  ;;  %8533 = vmatpush1.bf16.msra.mxu1 %v12256_v58 }
0x1253   :  { %8503 = vmatprep.subr.bf16.mxu0 %v12257_v43  ;;  %8535 = vmatprep.subr.bf16.mxu1 %v12258_v9 }
0x1256   :  { %8505 = vmatpush1.bf16.msra.mxu0 %v12259_v8  ;;  %8537 = vmatpush1.bf16.msra.mxu1 %v12260_v12 }
0x1257   :  { %8507 = vmatprep.subr.bf16.mxu0 %v12261_v2  ;;  %8539 = vmatprep.subr.bf16.mxu1 %v12262_v42 }
0x125a   :  { %8509 = vmatpush1.bf16.msra.mxu0 %v12263_v37  ;;  %8541 = vmatpush1.bf16.msra.mxu1 %v12264_v46 }
0x125b   :  { %8543 = vmatprep.subr.bf16.mxu0 %v12233_v53  ;;  %8575 = vmatprep.subr.bf16.mxu1 %v12234_v51 }
0x1310   :  { %v4148_v34 = vpop.f32.mrb[50].mxu0  ;;  %v4219_v50 = vpop.f32.mrb[50].mxu1 }
0x1311   :  { %v4228_v0 = vrot.slane %v4148_v34, 2  ;;  %v4150_v20 = vpop.f32.mrb[51].mxu0  ;;  %v4221_v61 = vpop.f32.mrb[51].mxu1  ;;  %v4230_v47 = vrot.slane %v4219_v50, 2 }
0x1312   :  { %v4229_v27 = vrot.slane %v4150_v20, 2  ;;  %v4231_v7 = vrot.slane %v4221_v61, 2 }
0x1313   :  { %v4236_v45 = vadd.f32 %v4228_v0, %v12267_v14  ;;  %v4238_v16 = vadd.f32 %v4230_v47, %v12269_v56 }
0x1314   :  { %v4237_v57 = vadd.f32 %v4229_v27, %v12268_v18  ;;  %v4239_v5 = vadd.f32 %v4231_v7, %v12271_v62  ;;  %v4254_v18 = vrot.slane %v11186_v23, 6 }
0x1315   :  { %v4240_v10 = vmul.f32 0.5, %v4236_v45 }
0x1316   :  { %v4244_v11 = vmul.f32 0.5, %v4237_v57  ;;  %v4249_v30 = vmul.f32 0.5, %v4239_v5 }
0x1317   :  { %9594 = vtanh.f32 %v4240_v10 }
0x1318   :  { %9596 = vtanh.f32 %v4244_v11 }
0x1319   :  { %9598 = vtanh.f32 %v4238_v16  ;;  %v12273_v16 = vld [vmem:[#allocation49_spill] sm:$0xff] }
0x131a   :  { %9600 = vtanh.f32 %v4249_v30 }
0x1321   :  { %v9595_v25 = vpop.eup %9594 }
0x1322   :  { %v9597_v49 = vpop.eup %9596  ;;  %v4242_v19 = vadd.f32 1.0, %v9595_v25  ;;  %v12274_v25 = vld [vmem:[#allocation50_spill] sm:$0xff] }
0x1323   :  { %v4246_v34 = vadd.f32 1.0, %v9597_v49  ;;  %v9599_v50 = vpop.eup %9598 }
0x1324   :  { %v4243_v14 = vmul.f32 0.5, %v4242_v19  ;;  %v9601_v56 = vpop.eup %9600 }
0x1325   :  { %v4247_v0 = vmul.f32 0.5, %v4246_v34  ;;  %v4251_v61 = vadd.f32 1.0, %v9601_v56 }
0x1326   :  { %v4257_v20 = vmul.f32 %v9599_v50, %v4243_v14  ;;  %v12275_v14 = vld [vmem:[#allocation47_spill] sm:$0xff] }
0x1327   :  { %v4256_v27 = vmul.f32 %v4254_v18, %v4247_v0  ;;  %v4252_v62 = vmul.f32 0.5, %v4251_v61  ;;  %v12276_v0 = vld [vmem:[#allocation48_spill] sm:$0xff] }
0x1329   :  { %v11228_v45 = vadd.f32 %v4257_v20, %v4256_v27 }
0x132b   :  { %9602 = vtanh.f32 %v11228_v45 }
0x1335   :  { %v9603_v47 = vpop.eup %9602 }
0x1336   :  { %v4260_v57 = vmul.f32 %v9603_v47, %v4252_v62 }
0x1338   :  { %4261 = vst [vmem:[#allocation2] sm:$0xc0] %v4260_v57  ;;  %v4263_v10 = vrot.slane %v4260_v57, 6 }
0x133a   :  { %4330 = vmatmul.mubr.f32.vlgmr.msra.gmra.mrb[52].mxu0 %v4263_v10  ;;  %4401 = vmatmul.mubr.f32.vlgmr.msra.gmra.mrb[52].mxu1 %v4263_v10 }
0x133b   :  { %8545 = vmatpush1.bf16.msra.mxu0 %v12235_v4  ;;  %8577 = vmatpush1.bf16.msra.mxu1 %v12236_v17 }
0x133c   :  { %8547 = vmatprep.subr.bf16.mxu0 %v12237_v29  ;;  %8579 = vmatprep.subr.bf16.mxu1 %v12238_v38 }
0x133d   :  { %4497 = vmatprep.mubr.f32.mxu0 %v12166_v28  ;;  %4568 = vmatprep.mubr.f32.mxu1 %v12166_v28 }
0x133f   :  { %8549 = vmatpush1.bf16.msra.mxu0 %v12239_v54  ;;  %8581 = vmatpush1.bf16.msra.mxu1 %v12240_v3 }
0x1340   :  { %8551 = vmatprep.subr.bf16.mxu0 %v12241_v1  ;;  %8583 = vmatprep.subr.bf16.mxu1 %v12242_v35 }
0x1343   :  { %8553 = vmatpush1.bf16.msra.mxu0 %v12243_v21  ;;  %8585 = vmatpush1.bf16.msra.mxu1 %v12244_v33 }
0x1344   :  { %8555 = vmatprep.subr.bf16.mxu0 %v12245_v52  ;;  %8587 = vmatprep.subr.bf16.mxu1 %v12246_v44 }
0x1347   :  { %8557 = vmatpush1.bf16.msra.mxu0 %v12247_v40  ;;  %8589 = vmatpush1.bf16.msra.mxu1 %v12248_v31 }
0x1348   :  { %8559 = vmatprep.subr.bf16.mxu0 %v12249_v24  ;;  %8591 = vmatprep.subr.bf16.mxu1 %v12250_v22 }
0x134b   :  { %8561 = vmatpush1.bf16.msra.mxu0 %v12251_v26  ;;  %8593 = vmatpush1.bf16.msra.mxu1 %v12252_v55 }
0x134c   :  { %8563 = vmatprep.subr.bf16.mxu0 %v12253_v60  ;;  %8595 = vmatprep.subr.bf16.mxu1 %v12254_v48 }
0x134f   :  { %8565 = vmatpush1.bf16.msra.mxu0 %v12255_v39  ;;  %8597 = vmatpush1.bf16.msra.mxu1 %v12256_v58 }
0x1350   :  { %8567 = vmatprep.subr.bf16.mxu0 %v12257_v43  ;;  %8599 = vmatprep.subr.bf16.mxu1 %v12258_v9 }
0x1353   :  { %8569 = vmatpush1.bf16.msra.mxu0 %v12259_v8  ;;  %8601 = vmatpush1.bf16.msra.mxu1 %v12260_v12 }
0x1354   :  { %8571 = vmatprep.subr.bf16.mxu0 %v12261_v2  ;;  %8603 = vmatprep.subr.bf16.mxu1 %v12262_v42 }
0x1357   :  { %8573 = vmatpush1.bf16.msra.mxu0 %v12263_v37  ;;  %8605 = vmatpush1.bf16.msra.mxu1 %v12264_v46 }
0x1358   :  { %8607 = vmatprep.subr.bf16.mxu0 %v12233_v53  ;;  %8639 = vmatprep.subr.bf16.mxu1 %v12234_v51 }
0x140d   :  { %v4331_v23 = vpop.f32.mrb[52].mxu0  ;;  %v4402_v11 = vpop.f32.mrb[52].mxu1 }
0x140e   :  { %v4407_v7 = vadd.f32 %v4331_v23, %v12273_v16  ;;  %v4333_v5 = vpop.f32.mrb[53].mxu0  ;;  %v4404_v30 = vpop.f32.mrb[53].mxu1  ;;  %v4409_v50 = vadd.f32 %v4402_v11, %v12275_v14  ;;  %v4425_v23 = vrot.slane %v11228_v45, 6 }
0x140f   :  { %v4408_v49 = vadd.f32 %v4333_v5, %v12274_v25  ;;  %v4410_v18 = vadd.f32 %v4404_v30, %v12276_v0 }
0x1410   :  { %v4411_v19 = vmul.f32 0.5, %v4407_v7 }
0x1411   :  { %v4415_v34 = vmul.f32 0.5, %v4408_v49  ;;  %v4420_v20 = vmul.f32 0.5, %v4410_v18 }
0x1412   :  { %9604 = vtanh.f32 %v4411_v19 }
0x1413   :  { %9606 = vtanh.f32 %v4415_v34 }
0x1414   :  { %9608 = vtanh.f32 %v4409_v50 }
0x1415   :  { %9610 = vtanh.f32 %v4420_v20 }
0x141c   :  { %v9605_v27 = vpop.eup %9604 }
0x141d   :  { %v9607_v56 = vpop.eup %9606  ;;  %v4413_v61 = vadd.f32 1.0, %v9605_v27 }
0x141e   :  { %v4417_v62 = vadd.f32 1.0, %v9607_v56  ;;  %v9609_v57 = vpop.eup %9608 }
0x141f   :  { %v4414_v47 = vmul.f32 0.5, %v4413_v61  ;;  %v9611_v11 = vpop.eup %9610 }
0x1420   :  { %v4418_v10 = vmul.f32 0.5, %v4417_v62  ;;  %v4422_v19 = vadd.f32 1.0, %v9611_v11 }
0x1421   :  { %v4428_v7 = vmul.f32 %v9609_v57, %v4414_v47 }
0x1422   :  { %v4427_v5 = vmul.f32 %v4425_v23, %v4418_v10  ;;  %v4423_v30 = vmul.f32 0.5, %v4422_v19 }
0x1424   :  { %v11270_v49 = vadd.f32 %v4428_v7, %v4427_v5 }
0x1426   :  { %9612 = vtanh.f32 %v11270_v49 }
0x1430   :  { %v9613_v34 = vpop.eup %9612 }
0x1431   :  { %v4431_v50 = vmul.f32 %v9613_v34, %v4423_v30 }
0x1433   :  { %4432 = vst [vmem:[#allocation2 + $0x8] sm:$0x3] %v4431_v50  ;;  %4498 = vmatmul.mubr.f32.vlgmr.msra.gmra.mrb[54].mxu0 %v4431_v50  ;;  %4569 = vmatmul.mubr.f32.vlgmr.msra.gmra.mrb[54].mxu1 %v4431_v50 }
0x1434   :  { %8609 = vmatpush1.bf16.msra.mxu0 %v12235_v4  ;;  %8641 = vmatpush1.bf16.msra.mxu1 %v12236_v17 }
0x1435   :  { %8611 = vmatprep.subr.bf16.mxu0 %v12237_v29  ;;  %8643 = vmatprep.subr.bf16.mxu1 %v12238_v38 }
0x1436   :  { %4680 = vmatprep.mubr.f32.mxu0 %v12166_v28  ;;  %4751 = vmatprep.mubr.f32.mxu1 %v12166_v28 }
0x1438   :  { %8613 = vmatpush1.bf16.msra.mxu0 %v12239_v54  ;;  %8645 = vmatpush1.bf16.msra.mxu1 %v12240_v3 }
0x1439   :  { %8615 = vmatprep.subr.bf16.mxu0 %v12241_v1  ;;  %8647 = vmatprep.subr.bf16.mxu1 %v12242_v35 }
0x143c   :  { %8617 = vmatpush1.bf16.msra.mxu0 %v12243_v21  ;;  %8649 = vmatpush1.bf16.msra.mxu1 %v12244_v33 }
0x143d   :  { %8619 = vmatprep.subr.bf16.mxu0 %v12245_v52  ;;  %8651 = vmatprep.subr.bf16.mxu1 %v12246_v44 }
0x1440   :  { %8621 = vmatpush1.bf16.msra.mxu0 %v12247_v40  ;;  %8653 = vmatpush1.bf16.msra.mxu1 %v12248_v31 }
0x1441   :  { %8623 = vmatprep.subr.bf16.mxu0 %v12249_v24  ;;  %8655 = vmatprep.subr.bf16.mxu1 %v12250_v22 }
0x1444   :  { %8625 = vmatpush1.bf16.msra.mxu0 %v12251_v26  ;;  %8657 = vmatpush1.bf16.msra.mxu1 %v12252_v55 }
0x1445   :  { %8627 = vmatprep.subr.bf16.mxu0 %v12253_v60  ;;  %8659 = vmatprep.subr.bf16.mxu1 %v12254_v48 }
0x1448   :  { %8629 = vmatpush1.bf16.msra.mxu0 %v12255_v39  ;;  %8661 = vmatpush1.bf16.msra.mxu1 %v12256_v58 }
0x1449   :  { %8631 = vmatprep.subr.bf16.mxu0 %v12257_v43  ;;  %8663 = vmatprep.subr.bf16.mxu1 %v12258_v9 }
0x144c   :  { %8633 = vmatpush1.bf16.msra.mxu0 %v12259_v8  ;;  %8665 = vmatpush1.bf16.msra.mxu1 %v12260_v12 }
0x144d   :  { %8635 = vmatprep.subr.bf16.mxu0 %v12261_v2  ;;  %8667 = vmatprep.subr.bf16.mxu1 %v12262_v42 }
0x1450   :  { %8637 = vmatpush1.bf16.msra.mxu0 %v12263_v37  ;;  %8669 = vmatpush1.bf16.msra.mxu1 %v12264_v46 }
0x1451   :  { %8671 = vmatprep.subr.bf16.mxu0 %v12233_v53  ;;  %8703 = vmatprep.subr.bf16.mxu1 %v12234_v51 }
0x1506   :  { %v4499_v45 = vpop.f32.mrb[54].mxu0  ;;  %v4570_v18 = vpop.f32.mrb[54].mxu1 }
0x1507   :  { %v4579_v20 = vrot.slane %v4499_v45, 6  ;;  %v4501_v27 = vpop.f32.mrb[55].mxu0  ;;  %v4572_v56 = vpop.f32.mrb[55].mxu1  ;;  %v4581_v47 = vrot.slane %v4570_v18, 6 }
0x1508   :  { %v4580_v61 = vrot.slane %v4501_v27, 6  ;;  %v4582_v5 = vrot.slane %v4572_v56, 6 }
0x1509   :  { %v4587_v62 = vadd.f32 %v4579_v20, %v12273_v16  ;;  %v4589_v7 = vadd.f32 %v4581_v47, %v12275_v14  ;;  %v4605_v20 = vrot.slane %v11270_v49, 6 }
0x150a   :  { %v4588_v57 = vadd.f32 %v4580_v61, %v12274_v25  ;;  %v4590_v53 = vadd.f32 %v4582_v5, %v12276_v0 }
0x150b   :  { %v4591_v10 = vmul.f32 0.5, %v4587_v62 }
0x150c   :  { %v4595_v23 = vmul.f32 0.5, %v4588_v57  ;;  %v4600_v51 = vmul.f32 0.5, %v4590_v53 }
0x150d   :  { %9614 = vtanh.f32 %v4591_v10 }
0x150e   :  { %9616 = vtanh.f32 %v4595_v23 }
0x150f   :  { %9618 = vtanh.f32 %v4589_v7 }
0x1510   :  { %9620 = vtanh.f32 %v4600_v51 }
0x1517   :  { %v9615_v11 = vpop.eup %9614 }
0x1518   :  { %v9617_v19 = vpop.eup %9616  ;;  %v4593_v30 = vadd.f32 1.0, %v9615_v11  ;;  %v12279_v11 = vld [vmem:[#allocation53_spill] sm:$0xff] }
0x1519   :  { %v4597_v34 = vadd.f32 1.0, %v9617_v19  ;;  %v9619_v45 = vpop.eup %9618  ;;  %v12280_v19 = vld [vmem:[#allocation54_spill] sm:$0xff] }
0x151a   :  { %v4594_v50 = vmul.f32 0.5, %v4593_v30  ;;  %v9621_v56 = vpop.eup %9620  ;;  %v12281_v30 = vld [vmem:[#allocation55_spill] sm:$0xff] }
0x151b   :  { %v4598_v18 = vmul.f32 0.5, %v4597_v34  ;;  %v4602_v47 = vadd.f32 1.0, %v9621_v56  ;;  %v12282_v34 = vld [vmem:[#allocation56_spill] sm:$0xff] }
0x151c   :  { %v4608_v27 = vmul.f32 %v9619_v45, %v4594_v50  ;;  %v12283_v50 = vld [vmem:[#allocation57_spill] sm:$0xff]  ;;  %v12284_v45 = vld [vmem:[#allocation58_spill] sm:$0xff]  ;;  %v12290_v56 = vld [vmem:[#allocation64_spill] sm:$0xff] }
0x151d   :  { %v4607_v61 = vmul.f32 %v4605_v20, %v4598_v18  ;;  %v4603_v57 = vmul.f32 0.5, %v4602_v47  ;;  %v12285_v18 = vld [vmem:[#allocation59_spill] sm:$0xff]  ;;  %v12286_v20 = vld [vmem:[#allocation60_spill] sm:$0xff]  ;;  %v12291_v47 = vld [vmem:[#allocation65_spill] sm:$0xff] }
0x151f   :  { %v11312_v62 = vadd.f32 %v4608_v27, %v4607_v61  ;;  %v12287_v27 = vld [vmem:[#allocation61_spill] sm:$0xff]  ;;  %v12288_v61 = vld [vmem:[#allocation62_spill] sm:$0xff] }
0x1521   :  { %9622 = vtanh.f32 %v11312_v62 }
0x152b   :  { %v9623_v10 = vpop.eup %9622 }
0x152c   :  { %v4611_v23 = vmul.f32 %v9623_v10, %v4603_v57  ;;  %v12292_v57 = vld [vmem:[#allocation66_spill] sm:$0xff]  ;;  %v12293_v10 = vld [vmem:[#allocation67_spill] sm:$0xff] }
0x152e   :  { %4612 = vst [vmem:[#allocation2 + $0x8] sm:$0xc] %v4611_v23  ;;  %v4614_v7 = vrot.slane %v4611_v23, 2  ;;  %v12294_v23 = vld [vmem:[#allocation68_spill] sm:$0xff] }
0x1530   :  { %4681 = vmatmul.mubr.f32.vlgmr.msra.gmra.mrb[56].mxu0 %v4614_v7  ;;  %4752 = vmatmul.mubr.f32.vlgmr.msra.gmra.mrb[56].mxu1 %v4614_v7  ;;  %v12295_v7 = vld [vmem:[#allocation69_spill] sm:$0xff] }
0x1531   :  { %8673 = vmatpush1.bf16.msra.mxu0 %v12235_v4  ;;  %8705 = vmatpush1.bf16.msra.mxu1 %v12236_v17  ;;  %v12277_v4 = vld [vmem:[#allocation51_spill] sm:$0xff] }
0x1532   :  { %8675 = vmatprep.subr.bf16.mxu0 %v12237_v29  ;;  %8707 = vmatprep.subr.bf16.mxu1 %v12238_v38 }
0x1533   :  { %4863 = vmatprep.mubr.f32.mxu0 %v12166_v28  ;;  %4934 = vmatprep.mubr.f32.mxu1 %v12166_v28 }
0x1535   :  { %8677 = vmatpush1.bf16.msra.mxu0 %v12239_v54  ;;  %8709 = vmatpush1.bf16.msra.mxu1 %v12240_v3 }
0x1536   :  { %8679 = vmatprep.subr.bf16.mxu0 %v12241_v1  ;;  %8711 = vmatprep.subr.bf16.mxu1 %v12242_v35 }
0x1539   :  { %8681 = vmatpush1.bf16.msra.mxu0 %v12243_v21  ;;  %8713 = vmatpush1.bf16.msra.mxu1 %v12244_v33 }
0x153a   :  { %8683 = vmatprep.subr.bf16.mxu0 %v12245_v52  ;;  %8715 = vmatprep.subr.bf16.mxu1 %v12246_v44 }
0x153d   :  { %8685 = vmatpush1.bf16.msra.mxu0 %v12247_v40  ;;  %8717 = vmatpush1.bf16.msra.mxu1 %v12248_v31 }
0x153e   :  { %8687 = vmatprep.subr.bf16.mxu0 %v12249_v24  ;;  %8719 = vmatprep.subr.bf16.mxu1 %v12250_v22  ;;  %v4788_v24 = vrot.slane %v11312_v62, 6  ;;  %v12289_v62 = vld [vmem:[#allocation63_spill] sm:$0xff] }
0x1541   :  { %8689 = vmatpush1.bf16.msra.mxu0 %v12251_v26  ;;  %8721 = vmatpush1.bf16.msra.mxu1 %v12252_v55 }
0x1542   :  { %8691 = vmatprep.subr.bf16.mxu0 %v12253_v60  ;;  %8723 = vmatprep.subr.bf16.mxu1 %v12254_v48 }
0x1545   :  { %8693 = vmatpush1.bf16.msra.mxu0 %v12255_v39  ;;  %8725 = vmatpush1.bf16.msra.mxu1 %v12256_v58  ;;  %v12278_v39 = vld [vmem:[#allocation52_spill] sm:$0xff] }
0x1546   :  { %8695 = vmatprep.subr.bf16.mxu0 %v12257_v43  ;;  %8727 = vmatprep.subr.bf16.mxu1 %v12258_v9 }
0x1549   :  { %8697 = vmatpush1.bf16.msra.mxu0 %v12259_v8  ;;  %8729 = vmatpush1.bf16.msra.mxu1 %v12260_v12 }
0x154a   :  { %8699 = vmatprep.subr.bf16.mxu0 %v12261_v2  ;;  %8731 = vmatprep.subr.bf16.mxu1 %v12262_v42 }
0x154d   :  { %8701 = vmatpush1.bf16.msra.mxu0 %v12263_v37  ;;  %8733 = vmatpush1.bf16.msra.mxu1 %v12264_v46 }
0x154e   :  { %8735 = vmatprep.subr.bf16.mxu0 %v12277_v4  ;;  %8767 = vmatprep.subr.bf16.mxu1 %v12278_v39  ;;  %v12296_v4 = vld [vmem:[#allocation70_spill] sm:$0xff]  ;;  %v12297_v39 = vld [vmem:[#allocation71_spill] sm:$0xff] }
0x1603   :  { %v4682_v58 = vpop.f32.mrb[56].mxu0  ;;  %v4753_v43 = vpop.f32.mrb[56].mxu1 }
0x1604   :  { %v4762_v17 = vrot.slane %v4682_v58, 4  ;;  %v4684_v9 = vpop.f32.mrb[57].mxu0  ;;  %v4755_v29 = vpop.f32.mrb[57].mxu1  ;;  %v4764_v38 = vrot.slane %v4753_v43, 4  ;;  %v12298_v58 = vld [vmem:[#allocation72_spill] sm:$0xff]  ;;  %v12299_v43 = vld [vmem:[#allocation73_spill] sm:$0xff] }
0x1605   :  { %v4763_v8 = vrot.slane %v4684_v9, 4  ;;  %v4765_v37 = vrot.slane %v4755_v29, 4  ;;  %v12301_v9 = vld [vmem:[#allocation75_spill] sm:$0xff]  ;;  %v12302_v29 = vld [vmem:[#allocation76_spill] sm:$0xff] }
0x1606   :  { %v4770_v12 = vadd.f32 %v4762_v17, %v12273_v16  ;;  %v4772_v46 = vadd.f32 %v4764_v38, %v12275_v14  ;;  %v12300_v17 = vld [vmem:[#allocation74_spill] sm:$0xff]  ;;  %v12305_v38 = vld [vmem:[#allocation79_spill] sm:$0xff] }
0x1607   :  { %v4771_v2 = vadd.f32 %v4763_v8, %v12274_v25  ;;  %v4773_v3 = vadd.f32 %v4765_v37, %v12276_v0  ;;  %v12303_v8 = vld [vmem:[#allocation77_spill] sm:$0xff]  ;;  %v12309_v37 = vld [vmem:[#allocation83_spill] sm:$0xff] }
0x1608   :  { %v4774_v42 = vmul.f32 0.5, %v4770_v12  ;;  %v12304_v12 = vld [vmem:[#allocation78_spill] sm:$0xff] }
0x1609   :  { %v4778_v54 = vmul.f32 0.5, %v4771_v2  ;;  %v4783_v1 = vmul.f32 0.5, %v4773_v3  ;;  %v12306_v2 = vld [vmem:[#allocation80_spill] sm:$0xff] }
0x160a   :  { %9624 = vtanh.f32 %v4774_v42  ;;  %v12307_v42 = vld [vmem:[#allocation81_spill] sm:$0xff]  ;;  %v12310_v3 = vld [vmem:[#allocation84_spill] sm:$0xff] }
0x160b   :  { %9626 = vtanh.f32 %v4778_v54  ;;  %v12308_v54 = vld [vmem:[#allocation82_spill] sm:$0xff] }
0x160c   :  { %9628 = vtanh.f32 %v4772_v46  ;;  %v4979_v46 = vld [vmem:[#allocation2] sm:$0xff] }
0x160d   :  { %9630 = vtanh.f32 %v4783_v1  ;;  %v12311_v1 = vld [vmem:[#allocation85_spill] sm:$0xff] }
0x1614   :  { %v9625_v35 = vpop.eup %9624 }
0x1615   :  { %v9627_v21 = vpop.eup %9626  ;;  %v4776_v33 = vadd.f32 1.0, %v9625_v35  ;;  %v12312_v35 = vld [vmem:[#allocation86_spill] sm:$0xff] }
0x1616   :  { %v4780_v52 = vadd.f32 1.0, %v9627_v21  ;;  %v9629_v40 = vpop.eup %9628  ;;  %v12313_v21 = vld [vmem:[#allocation87_spill] sm:$0xff] }
0x1617   :  { %v4777_v44 = vmul.f32 0.5, %v4776_v33  ;;  %v9631_v60 = vpop.eup %9630  ;;  %v12314_v33 = vld [vmem:[#allocation88_spill] sm:$0xff] }
0x1618   :  { %v4781_v31 = vmul.f32 0.5, %v4780_v52  ;;  %v4785_v48 = vadd.f32 1.0, %v9631_v60  ;;  %v12315_v52 = vld [vmem:[#allocation89_spill] sm:$0xff]  ;;  %v12322_v60 = vld [vmem:[#allocation96_spill] sm:$0xff] }
0x1619   :  { %v4791_v22 = vmul.f32 %v9629_v40, %v4777_v44  ;;  %v12316_v44 = vld [vmem:[#allocation90_spill] sm:$0xff]  ;;  %v12317_v40 = vld [vmem:[#allocation91_spill] sm:$0xff] }
0x161a   :  { %v4790_v26 = vmul.f32 %v4788_v24, %v4781_v31  ;;  %v4786_v49 = vmul.f32 0.5, %v4785_v48  ;;  %v12318_v31 = vld [vmem:[#allocation92_spill] sm:$0xff]  ;;  %v12319_v24 = vld [vmem:[#allocation93_spill] sm:$0xff] }
0x161b   :  { %v12323_v48 = vld [vmem:[#allocation97_spill] sm:$0xff] }
0x161c   :  { %v11354_v55 = vadd.f32 %v4791_v22, %v4790_v26  ;;  %v12320_v22 = vld [vmem:[#allocation94_spill] sm:$0xff]  ;;  %v12321_v26 = vld [vmem:[#allocation95_spill] sm:$0xff] }
0x161e   :  { %9632 = vtanh.f32 %v11354_v55 }
0x1628   :  { %v9633_v5 = vpop.eup %9632 }
0x1629   :  { %v4794_v53 = vmul.f32 %v9633_v5, %v4786_v49  ;;  %v12324_v49 = vld [vmem:[#allocation98_spill] sm:$0xff]  ;;  %v12325_v5 = vld [vmem:[#allocation99_spill] sm:$0xff] }
0x162b   :  { %4795 = vst [vmem:[#allocation2 + $0x8] sm:$0x30] %v4794_v53  ;;  %v4797_v51 = vrot.slane %v4794_v53, 4  ;;  %v12326_v53 = vld [vmem:[#allocation100_spill] sm:$0xff] }
0x162d   :  { %4864 = vmatmul.mubr.f32.vlgmr.msra.gmra.mrb[58].mxu0 %v4797_v51  ;;  %4935 = vmatmul.mubr.f32.vlgmr.msra.gmra.mrb[58].mxu1 %v4797_v51  ;;  %v12327_v51 = vld [vmem:[#allocation101_spill] sm:$0xff] }
0x162e   :  { %8737 = vmatpush1.bf16.msra.mxu0 %v12279_v11  ;;  %8769 = vmatpush1.bf16.msra.mxu1 %v12280_v19  ;;  %v12328_v11 = vld [vmem:[#allocation102_spill] sm:$0xff]  ;;  %v12329_v19 = vld [vmem:[#allocation103_spill] sm:$0xff] }
0x162f   :  { %8739 = vmatprep.subr.bf16.mxu0 %v12281_v30  ;;  %8771 = vmatprep.subr.bf16.mxu1 %v12282_v34  ;;  %v12330_v30 = vld [vmem:[#allocation104_spill] sm:$0xff]  ;;  %v12331_v34 = vld [vmem:[#allocation105_spill] sm:$0xff] }
0x1630   :  { %5045 = vmatprep.mubr.f32.mxu0 %v12166_v28  ;;  %5122 = vmatprep.mubr.f32.mxu1 %v12166_v28 }
0x1632   :  { %8741 = vmatpush1.bf16.msra.mxu0 %v12283_v50  ;;  %8773 = vmatpush1.bf16.msra.mxu1 %v12284_v45  ;;  %v12332_v50 = vld [vmem:[#allocation106_spill] sm:$0xff] }
0x1633   :  { %8743 = vmatprep.subr.bf16.mxu0 %v12285_v18  ;;  %8775 = vmatprep.subr.bf16.mxu1 %v12286_v20 }
0x1636   :  { %8745 = vmatpush1.bf16.msra.mxu0 %v12287_v27  ;;  %8777 = vmatpush1.bf16.msra.mxu1 %v12288_v61 }
0x1637   :  { %8747 = vmatprep.subr.bf16.mxu0 %v12289_v62  ;;  %8779 = vmatprep.subr.bf16.mxu1 %v12290_v56 }
0x163a   :  { %8749 = vmatpush1.bf16.msra.mxu0 %v12291_v47  ;;  %8781 = vmatpush1.bf16.msra.mxu1 %v12292_v57 }
0x163b   :  { %8751 = vmatprep.subr.bf16.mxu0 %v12293_v10  ;;  %8783 = vmatprep.subr.bf16.mxu1 %v12294_v23 }
0x163e   :  { %8753 = vmatpush1.bf16.msra.mxu0 %v12295_v7  ;;  %8785 = vmatpush1.bf16.msra.mxu1 %v12296_v4 }
0x163f   :  { %8755 = vmatprep.subr.bf16.mxu0 %v12297_v39  ;;  %8787 = vmatprep.subr.bf16.mxu1 %v12298_v58 }
0x1642   :  { %8757 = vmatpush1.bf16.msra.mxu0 %v12299_v43  ;;  %8789 = vmatpush1.bf16.msra.mxu1 %v12300_v17 }
0x1643   :  { %8759 = vmatprep.subr.bf16.mxu0 %v12301_v9  ;;  %8791 = vmatprep.subr.bf16.mxu1 %v12302_v29 }
0x1646   :  { %8761 = vmatpush1.bf16.msra.mxu0 %v12303_v8  ;;  %8793 = vmatpush1.bf16.msra.mxu1 %v12304_v12 }
0x1647   :  { %8763 = vmatprep.subr.bf16.mxu0 %v12305_v38  ;;  %8795 = vmatprep.subr.bf16.mxu1 %v12306_v2 }
0x164a   :  { %8765 = vmatpush1.bf16.msra.mxu0 %v12307_v42  ;;  %8797 = vmatpush1.bf16.msra.mxu1 %v12308_v54 }
0x164b   :  { %8799 = vmatprep.subr.bf16.mxu0 %v10550_v36  ;;  %8831 = vmatprep.subr.bf16.mxu1 %v10552_v63 }
0x164d   :  { %5046 = vmatmul.mubr.f32.vlgmr.msra.gmra.mrb[60].mxu0 %v4979_v46  ;;  %5123 = vmatmul.mubr.f32.vlgmr.msra.gmra.mrb[60].mxu1 %v4979_v46 }
0x164e   :  { %8801 = vmatpush1.bf16.msra.mxu0 %v10554_v6  ;;  %8833 = vmatpush1.bf16.msra.mxu1 %v10557_v32 }
0x164f   :  { %8803 = vmatprep.subr.bf16.mxu0 %v10562_v13  ;;  %8835 = vmatprep.subr.bf16.mxu1 %v10564_v15 }
0x1650   :  { %5051 = vmatprep.mubr.f32.mxu0 %v12166_v28  ;;  %5128 = vmatprep.mubr.f32.mxu1 %v12166_v28 }
0x1652   :  { %8805 = vmatpush1.bf16.msra.mxu0 %v10566_v41  ;;  %8837 = vmatpush1.bf16.msra.mxu1 %v10569_v59 }
0x1653   :  { %8807 = vmatprep.subr.bf16.mxu0 %v12309_v37  ;;  %8839 = vmatprep.subr.bf16.mxu1 %v12310_v3 }
0x1656   :  { %8809 = vmatpush1.bf16.msra.mxu0 %v12311_v1  ;;  %8841 = vmatpush1.bf16.msra.mxu1 %v12312_v35 }
0x1657   :  { %8811 = vmatprep.subr.bf16.mxu0 %v12313_v21  ;;  %8843 = vmatprep.subr.bf16.mxu1 %v12314_v33 }
0x165a   :  { %8813 = vmatpush1.bf16.msra.mxu0 %v12315_v52  ;;  %8845 = vmatpush1.bf16.msra.mxu1 %v12316_v44 }
0x165b   :  { %8815 = vmatprep.subr.bf16.mxu0 %v12317_v40  ;;  %8847 = vmatprep.subr.bf16.mxu1 %v12318_v31 }
0x165e   :  { %8817 = vmatpush1.bf16.msra.mxu0 %v12319_v24  ;;  %8849 = vmatpush1.bf16.msra.mxu1 %v12320_v22 }
0x165f   :  { %8819 = vmatprep.subr.bf16.mxu0 %v12321_v26  ;;  %8851 = vmatprep.subr.bf16.mxu1 %v12322_v60 }
0x1662   :  { %8821 = vmatpush1.bf16.msra.mxu0 %v12323_v48  ;;  %8853 = vmatpush1.bf16.msra.mxu1 %v12324_v49 }
0x1663   :  { %8823 = vmatprep.subr.bf16.mxu0 %v12325_v5  ;;  %8855 = vmatprep.subr.bf16.mxu1 %v12326_v53 }
0x1666   :  { %8825 = vmatpush1.bf16.msra.mxu0 %v12327_v51  ;;  %8857 = vmatpush1.bf16.msra.mxu1 %v12328_v11 }
0x1667   :  { %8827 = vmatprep.subr.bf16.mxu0 %v12329_v19  ;;  %8859 = vmatprep.subr.bf16.mxu1 %v12330_v30 }
0x166a   :  { %8829 = vmatpush1.bf16.msra.mxu0 %v12331_v34  ;;  %8861 = vmatpush1.bf16.msra.mxu1 %v12332_v50 }
0x166b   :  { %8863 = vmatprep.subr.bf16.mxu0 %v10550_v36  ;;  %8895 = vmatprep.subr.bf16.mxu1 %v10552_v63 }
0x1700   :  { %v4865_v45 = vpop.f32.mrb[58].mxu0  ;;  %v4936_v18 = vpop.f32.mrb[58].mxu1 }
0x1701   :  { %v4945_v20 = vrot.slane %v4865_v45, 2  ;;  %v4867_v27 = vpop.f32.mrb[59].mxu0  ;;  %v4938_v61 = vpop.f32.mrb[59].mxu1  ;;  %v4947_v47 = vrot.slane %v4936_v18, 2 }
0x1702   :  { %v4946_v62 = vrot.slane %v4867_v27, 2  ;;  %v4948_v4 = vrot.slane %v4938_v61, 2 }
0x1703   :  { %v4953_v56 = vadd.f32 %v4945_v20, %v12273_v16  ;;  %v4955_v7 = vadd.f32 %v4947_v47, %v12275_v14 }
0x1704   :  { %v4954_v57 = vadd.f32 %v4946_v62, %v12274_v25  ;;  %v4956_v39 = vadd.f32 %v4948_v4, %v12276_v0  ;;  %v4971_v25 = vrot.slane %v11354_v55, 6  ;;  %v12333_v55 = vld [vmem:[#allocation12_spill] sm:$0xff] }
0x1705   :  { %v4957_v10 = vmul.f32 0.5, %v4953_v56  ;;  %v11435_v56 = vrot.slane %v12333_v55, 6 }
0x1706   :  { %v4961_v23 = vmul.f32 0.5, %v4954_v57  ;;  %v4966_v58 = vmul.f32 0.5, %v4956_v39  ;;  %v12336_v39 = vld [vmem:[#allocation110_spill] sm:$0xff] }
0x1707   :  { %9634 = vtanh.f32 %v4957_v10  ;;  %12334 = vst [vmem:[#allocation13_spill] sm:$0xff] %v11435_v56 }
0x1708   :  { %9636 = vtanh.f32 %v4961_v23 }
0x1709   :  { %9638 = vtanh.f32 %v4955_v7  ;;  %v12335_v7 = vld [vmem:[#allocation109_spill] sm:$0xff] }
0x170a   :  { %9640 = vtanh.f32 %v4966_v58 }
0x1711   :  { %v9635_v43 = vpop.eup %9634 }
0x1712   :  { %v9637_v17 = vpop.eup %9636  ;;  %v4959_v9 = vadd.f32 1.0, %v9635_v43 }
0x1713   :  { %v4963_v29 = vadd.f32 1.0, %v9637_v17  ;;  %v9639_v8 = vpop.eup %9638 }
0x1714   :  { %v4960_v16 = vmul.f32 0.5, %v4959_v9  ;;  %v9641_v14 = vpop.eup %9640 }
0x1715   :  { %v4964_v12 = vmul.f32 0.5, %v4963_v29  ;;  %v4968_v54 = vadd.f32 1.0, %v9641_v14  ;;  %v12338_v14 = vld [vmem:[#allocation112_spill] sm:$0xff] }
0x1716   :  { %v4974_v38 = vmul.f32 %v9639_v8, %v4960_v16 }
0x1717   :  { %v4973_v2 = vmul.f32 %v4971_v25, %v4964_v12  ;;  %v4969_v20 = vmul.f32 0.5, %v4968_v54  ;;  %v12337_v12 = vld [vmem:[#allocation111_spill] sm:$0xff] }
0x1719   :  { %v4975_v42 = vadd.f32 %v4974_v38, %v4973_v2 }
0x171b   :  { %9642 = vtanh.f32 %v4975_v42 }
0x1720   :  { %v5047_v46 = vpop.f32.mrb[60].mxu0  ;;  %v5124_v45 = vpop.f32.mrb[60].mxu1 }
0x1721   :  { %v5049_v0 = vpop.f32.mrb[61].mxu0  ;;  %v11430_v18 = vpop.f32.mrb[61].mxu1  ;;  %v11482_v4 = vadd.f32 %v5047_v46, %v12335_v7  ;;  %v11490_v25 = vadd.f32 %v5124_v45, %v12337_v12 }
0x1722   :  { %v11485_v58 = vadd.f32 %v5049_v0, %v12336_v39  ;;  %v11495_v54 = vadd.f32 %v11430_v18, %v12338_v14 }
0x1725   :  { %v9643_v27 = vpop.eup %9642 }
0x1726   :  { %v4977_v61 = vmul.f32 %v9643_v27, %v4969_v20 }
0x1728   :  { %4978 = vst [vmem:[#allocation2 + $0x8] sm:$0xc0] %v4977_v61 }
0x172f   :  { %v4980_v62 = vld [vmem:[#allocation2 + $0x8] sm:$0xff] }
0x1730   :  { %5052 = vmatmul.mubr.f32.gmra.mrb[62].mxu0 %v4980_v62  ;;  %5129 = vmatmul.mubr.f32.gmra.mrb[62].mxu1 %v4980_v62 }
0x1731   :  { %5202 = vmatprep.mubr.f32.mxu0 %v12166_v28  ;;  %5273 = vmatprep.mubr.f32.mxu1 %v12166_v28 }
0x1734   :  { %5203 = vmatmul.mubr.f32.vlgmr.msra.gmra.mrb[64].mxu0 %v11435_v56  ;;  %5274 = vmatmul.mubr.f32.vlgmr.msra.gmra.mrb[64].mxu1 %v11435_v56 }
0x1735   :  { %8865 = vmatpush1.bf16.msra.mxu0 %v10554_v6  ;;  %8897 = vmatpush1.bf16.msra.mxu1 %v10557_v32 }
0x1736   :  { %8867 = vmatprep.subr.bf16.mxu0 %v10562_v13  ;;  %8899 = vmatprep.subr.bf16.mxu1 %v10564_v15 }
0x1737   :  { %5370 = vmatprep.mubr.f32.mxu0 %v12166_v28  ;;  %5441 = vmatprep.mubr.f32.mxu1 %v12166_v28 }
0x1739   :  { %8869 = vmatpush1.bf16.msra.mxu0 %v10566_v41  ;;  %8901 = vmatpush1.bf16.msra.mxu1 %v10569_v59 }
0x173a   :  { %8871 = vmatprep.subr.bf16.mxu0 %v12309_v37  ;;  %8903 = vmatprep.subr.bf16.mxu1 %v12310_v3 }
0x173d   :  { %8873 = vmatpush1.bf16.msra.mxu0 %v12311_v1  ;;  %8905 = vmatpush1.bf16.msra.mxu1 %v12312_v35 }
0x173e   :  { %8875 = vmatprep.subr.bf16.mxu0 %v12313_v21  ;;  %8907 = vmatprep.subr.bf16.mxu1 %v12314_v33 }
0x1741   :  { %8877 = vmatpush1.bf16.msra.mxu0 %v12315_v52  ;;  %8909 = vmatpush1.bf16.msra.mxu1 %v12316_v44 }
0x1742   :  { %8879 = vmatprep.subr.bf16.mxu0 %v12317_v40  ;;  %8911 = vmatprep.subr.bf16.mxu1 %v12318_v31 }
0x1745   :  { %8881 = vmatpush1.bf16.msra.mxu0 %v12319_v24  ;;  %8913 = vmatpush1.bf16.msra.mxu1 %v12320_v22 }
0x1746   :  { %8883 = vmatprep.subr.bf16.mxu0 %v12321_v26  ;;  %8915 = vmatprep.subr.bf16.mxu1 %v12322_v60 }
0x1749   :  { %8885 = vmatpush1.bf16.msra.mxu0 %v12323_v48  ;;  %8917 = vmatpush1.bf16.msra.mxu1 %v12324_v49 }
0x174a   :  { %8887 = vmatprep.subr.bf16.mxu0 %v12325_v5  ;;  %8919 = vmatprep.subr.bf16.mxu1 %v12326_v53 }
0x174d   :  { %8889 = vmatpush1.bf16.msra.mxu0 %v12327_v51  ;;  %8921 = vmatpush1.bf16.msra.mxu1 %v12328_v11 }
0x174e   :  { %8891 = vmatprep.subr.bf16.mxu0 %v12329_v19  ;;  %8923 = vmatprep.subr.bf16.mxu1 %v12330_v30 }
0x1751   :  { %8893 = vmatpush1.bf16.msra.mxu0 %v12331_v34  ;;  %8925 = vmatpush1.bf16.msra.mxu1 %v12332_v50 }
0x1752   :  { %8927 = vmatprep.subr.bf16.mxu0 %v10550_v36  ;;  %8959 = vmatprep.subr.bf16.mxu1 %v10552_v63 }
0x1803   :  { %v11473_v47 = vpop.f32.mrb[62].mxu0  ;;  %v11475_v57 = vpop.f32.mrb[62].mxu1 }
0x1804   :  { %v11477_v10 = vpop.f32.mrb[63].mxu0  ;;  %v11479_v23 = vpop.f32.mrb[63].mxu1 }
0x1807   :  { %v5204_v43 = vpop.f32.mrb[64].mxu0  ;;  %v5275_v17 = vpop.f32.mrb[64].mxu1 }
0x1808   :  { %v5280_v9 = vadd.f32 %v5204_v43, %v11482_v4  ;;  %v5206_v29 = vpop.f32.mrb[65].mxu0  ;;  %v5277_v16 = vpop.f32.mrb[65].mxu1  ;;  %v5282_v42 = vadd.f32 %v5275_v17, %v11490_v25 }
0x1809   :  { %v5281_v8 = vadd.f32 %v5206_v29, %v11485_v58  ;;  %v5283_v46 = vadd.f32 %v5277_v16, %v11495_v54  ;;  %v12339_v29 = vld [vmem:[#allocation11_spill] sm:$0xff] }
0x180a   :  { %v5284_v38 = vmul.f32 0.5, %v5280_v9 }
0x180b   :  { %v5288_v2 = vmul.f32 0.5, %v5281_v8  ;;  %v5293_v0 = vmul.f32 0.5, %v5283_v46  ;;  %v5298_v8 = vrot.slane %v12339_v29, 6 }
0x180c   :  { %9644 = vtanh.f32 %v5284_v38 }
0x180d   :  { %9646 = vtanh.f32 %v5288_v2 }
0x180e   :  { %9648 = vtanh.f32 %v5282_v42 }
0x180f   :  { %9650 = vtanh.f32 %v5293_v0 }
0x1816   :  { %v9645_v20 = vpop.eup %9644 }
0x1817   :  { %v9647_v27 = vpop.eup %9646  ;;  %v5286_v61 = vadd.f32 1.0, %v9645_v20 }
0x1818   :  { %v5290_v62 = vadd.f32 1.0, %v9647_v27  ;;  %v9649_v43 = vpop.eup %9648 }
0x1819   :  { %v5287_v45 = vmul.f32 0.5, %v5286_v61  ;;  %v9651_v18 = vpop.eup %9650 }
0x181a   :  { %v5291_v9 = vmul.f32 0.5, %v5290_v62  ;;  %v5295_v42 = vadd.f32 1.0, %v9651_v18 }
0x181b   :  { %v5301_v17 = vmul.f32 %v9649_v43, %v5287_v45 }
0x181c   :  { %v5300_v38 = vmul.f32 %v5298_v8, %v5291_v9  ;;  %v5296_v16 = vmul.f32 0.5, %v5295_v42 }
0x181e   :  { %v11499_v2 = vadd.f32 %v5301_v17, %v5300_v38 }
0x1820   :  { %9652 = vtanh.f32 %v11499_v2 }
0x182a   :  { %v9653_v46 = vpop.eup %9652 }
0x182b   :  { %v5304_v56 = vmul.f32 %v9653_v46, %v5296_v16 }
0x182d   :  { %5305 = vst [vmem:[#allocation3 + $0x10] sm:$0x3] %v5304_v56  ;;  %5371 = vmatmul.mubr.f32.vlgmr.msra.gmra.mrb[66].mxu0 %v5304_v56  ;;  %5442 = vmatmul.mubr.f32.vlgmr.msra.gmra.mrb[66].mxu1 %v5304_v56 }
0x182e   :  { %8929 = vmatpush1.bf16.msra.mxu0 %v10554_v6  ;;  %8961 = vmatpush1.bf16.msra.mxu1 %v10557_v32 }
0x182f   :  { %8931 = vmatprep.subr.bf16.mxu0 %v10562_v13  ;;  %8963 = vmatprep.subr.bf16.mxu1 %v10564_v15 }
0x1830   :  { %5553 = vmatprep.mubr.f32.mxu0 %v12166_v28  ;;  %5624 = vmatprep.mubr.f32.mxu1 %v12166_v28 }
0x1832   :  { %8933 = vmatpush1.bf16.msra.mxu0 %v10566_v41  ;;  %8965 = vmatpush1.bf16.msra.mxu1 %v10569_v59 }
0x1833   :  { %8935 = vmatprep.subr.bf16.mxu0 %v12309_v37  ;;  %8967 = vmatprep.subr.bf16.mxu1 %v12310_v3 }
0x1836   :  { %8937 = vmatpush1.bf16.msra.mxu0 %v12311_v1  ;;  %8969 = vmatpush1.bf16.msra.mxu1 %v12312_v35 }
0x1837   :  { %8939 = vmatprep.subr.bf16.mxu0 %v12313_v21  ;;  %8971 = vmatprep.subr.bf16.mxu1 %v12314_v33 }
0x183a   :  { %8941 = vmatpush1.bf16.msra.mxu0 %v12315_v52  ;;  %8973 = vmatpush1.bf16.msra.mxu1 %v12316_v44 }
0x183b   :  { %8943 = vmatprep.subr.bf16.mxu0 %v12317_v40  ;;  %8975 = vmatprep.subr.bf16.mxu1 %v12318_v31 }
0x183e   :  { %8945 = vmatpush1.bf16.msra.mxu0 %v12319_v24  ;;  %8977 = vmatpush1.bf16.msra.mxu1 %v12320_v22 }
0x183f   :  { %8947 = vmatprep.subr.bf16.mxu0 %v12321_v26  ;;  %8979 = vmatprep.subr.bf16.mxu1 %v12322_v60 }
0x1842   :  { %8949 = vmatpush1.bf16.msra.mxu0 %v12323_v48  ;;  %8981 = vmatpush1.bf16.msra.mxu1 %v12324_v49 }
0x1843   :  { %8951 = vmatprep.subr.bf16.mxu0 %v12325_v5  ;;  %8983 = vmatprep.subr.bf16.mxu1 %v12326_v53 }
0x1846   :  { %8953 = vmatpush1.bf16.msra.mxu0 %v12327_v51  ;;  %8985 = vmatpush1.bf16.msra.mxu1 %v12328_v11 }
0x1847   :  { %8955 = vmatprep.subr.bf16.mxu0 %v12329_v19  ;;  %8987 = vmatprep.subr.bf16.mxu1 %v12330_v30 }
0x184a   :  { %8957 = vmatpush1.bf16.msra.mxu0 %v12331_v34  ;;  %8989 = vmatpush1.bf16.msra.mxu1 %v12332_v50 }
0x184b   :  { %8991 = vmatprep.subr.bf16.mxu0 %v10550_v36  ;;  %9023 = vmatprep.subr.bf16.mxu1 %v10552_v63 }
0x1900   :  { %v5372_v56 = vpop.f32.mrb[66].mxu0  ;;  %v5443_v0 = vpop.f32.mrb[66].mxu1 }
0x1901   :  { %v5452_v20 = vrot.slane %v5372_v56, 6  ;;  %v5374_v27 = vpop.f32.mrb[67].mxu0  ;;  %v5445_v61 = vpop.f32.mrb[67].mxu1  ;;  %v5454_v43 = vrot.slane %v5443_v0, 6 }
0x1902   :  { %v5453_v62 = vrot.slane %v5374_v27, 6  ;;  %v5455_v38 = vrot.slane %v5445_v61, 6 }
0x1903   :  { %v5460_v45 = vadd.f32 %v5452_v20, %v11482_v4  ;;  %v5462_v17 = vadd.f32 %v5454_v43, %v11490_v25 }
0x1904   :  { %v5461_v9 = vadd.f32 %v5453_v62, %v11485_v58  ;;  %v5463_v18 = vadd.f32 %v5455_v38, %v11495_v54  ;;  %v5478_v62 = vrot.slane %v11499_v2, 6 }
0x1905   :  { %v5464_v29 = vmul.f32 0.5, %v5460_v45 }
0x1906   :  { %v5468_v8 = vmul.f32 0.5, %v5461_v9  ;;  %v5473_v42 = vmul.f32 0.5, %v5463_v18 }
0x1907   :  { %9654 = vtanh.f32 %v5464_v29 }
0x1908   :  { %9656 = vtanh.f32 %v5468_v8 }
0x1909   :  { %9658 = vtanh.f32 %v5462_v17 }
0x190a   :  { %9660 = vtanh.f32 %v5473_v42 }
0x1911   :  { %v9655_v16 = vpop.eup %9654 }
0x1912   :  { %v9657_v46 = vpop.eup %9656  ;;  %v5466_v56 = vadd.f32 1.0, %v9655_v16 }
0x1913   :  { %v5470_v27 = vadd.f32 1.0, %v9657_v46  ;;  %v9659_v0 = vpop.eup %9658 }
0x1914   :  { %v5467_v20 = vmul.f32 0.5, %v5466_v56  ;;  %v9661_v61 = vpop.eup %9660 }
0x1915   :  { %v5471_v55 = vmul.f32 0.5, %v5470_v27  ;;  %v5475_v43 = vadd.f32 1.0, %v9661_v61 }
0x1916   :  { %v5481_v45 = vmul.f32 %v9659_v0, %v5467_v20 }
0x1917   :  { %v5480_v9 = vmul.f32 %v5478_v62, %v5471_v55  ;;  %v5476_v8 = vmul.f32 0.5, %v5475_v43 }
0x1919   :  { %v11541_v29 = vadd.f32 %v5481_v45, %v5480_v9 }
0x191b   :  { %9662 = vtanh.f32 %v11541_v29 }
0x1925   :  { %v9663_v17 = vpop.eup %9662 }
0x1926   :  { %v5484_v38 = vmul.f32 %v9663_v17, %v5476_v8 }
0x1928   :  { %5485 = vst [vmem:[#allocation3 + $0x10] sm:$0xc] %v5484_v38  ;;  %v5487_v18 = vrot.slane %v5484_v38, 2 }
0x192a   :  { %5554 = vmatmul.mubr.f32.vlgmr.msra.gmra.mrb[68].mxu0 %v5487_v18  ;;  %5625 = vmatmul.mubr.f32.vlgmr.msra.gmra.mrb[68].mxu1 %v5487_v18 }
0x192b   :  { %8993 = vmatpush1.bf16.msra.mxu0 %v10554_v6  ;;  %9025 = vmatpush1.bf16.msra.mxu1 %v10557_v32 }
0x192c   :  { %8995 = vmatprep.subr.bf16.mxu0 %v10562_v13  ;;  %9027 = vmatprep.subr.bf16.mxu1 %v10564_v15 }
0x192d   :  { %5736 = vmatprep.mubr.f32.mxu0 %v12166_v28  ;;  %5807 = vmatprep.mubr.f32.mxu1 %v12166_v28 }
0x192f   :  { %8997 = vmatpush1.bf16.msra.mxu0 %v10566_v41  ;;  %9029 = vmatpush1.bf16.msra.mxu1 %v10569_v59 }
0x1930   :  { %8999 = vmatprep.subr.bf16.mxu0 %v12309_v37  ;;  %9031 = vmatprep.subr.bf16.mxu1 %v12310_v3 }
0x1933   :  { %9001 = vmatpush1.bf16.msra.mxu0 %v12311_v1  ;;  %9033 = vmatpush1.bf16.msra.mxu1 %v12312_v35 }
0x1934   :  { %9003 = vmatprep.subr.bf16.mxu0 %v12313_v21  ;;  %9035 = vmatprep.subr.bf16.mxu1 %v12314_v33 }
0x1937   :  { %9005 = vmatpush1.bf16.msra.mxu0 %v12315_v52  ;;  %9037 = vmatpush1.bf16.msra.mxu1 %v12316_v44 }
0x1938   :  { %9007 = vmatprep.subr.bf16.mxu0 %v12317_v40  ;;  %9039 = vmatprep.subr.bf16.mxu1 %v12318_v31 }
0x193b   :  { %9009 = vmatpush1.bf16.msra.mxu0 %v12319_v24  ;;  %9041 = vmatpush1.bf16.msra.mxu1 %v12320_v22 }
0x193c   :  { %9011 = vmatprep.subr.bf16.mxu0 %v12321_v26  ;;  %9043 = vmatprep.subr.bf16.mxu1 %v12322_v60 }
0x193f   :  { %9013 = vmatpush1.bf16.msra.mxu0 %v12323_v48  ;;  %9045 = vmatpush1.bf16.msra.mxu1 %v12324_v49 }
0x1940   :  { %9015 = vmatprep.subr.bf16.mxu0 %v12325_v5  ;;  %9047 = vmatprep.subr.bf16.mxu1 %v12326_v53 }
0x1943   :  { %9017 = vmatpush1.bf16.msra.mxu0 %v12327_v51  ;;  %9049 = vmatpush1.bf16.msra.mxu1 %v12328_v11 }
0x1944   :  { %9019 = vmatprep.subr.bf16.mxu0 %v12329_v19  ;;  %9051 = vmatprep.subr.bf16.mxu1 %v12330_v30 }
0x1947   :  { %9021 = vmatpush1.bf16.msra.mxu0 %v12331_v34  ;;  %9053 = vmatpush1.bf16.msra.mxu1 %v12332_v50 }
0x1948   :  { %9055 = vmatprep.subr.bf16.mxu0 %v10550_v36  ;;  %9087 = vmatprep.subr.bf16.mxu1 %v10552_v63 }
0x19fd   :  { %v5555_v55 = vpop.f32.mrb[68].mxu0  ;;  %v5626_v2 = vpop.f32.mrb[68].mxu1 }
0x19fe   :  { %v5635_v42 = vrot.slane %v5555_v55, 4  ;;  %v5557_v16 = vpop.f32.mrb[69].mxu0  ;;  %v5628_v46 = vpop.f32.mrb[69].mxu1  ;;  %v5637_v20 = vrot.slane %v5626_v2, 4 }
0x19ff   :  { %v5636_v56 = vrot.slane %v5557_v16, 4  ;;  %v5638_v61 = vrot.slane %v5628_v46, 4 }
0x1a00   :  { %v5643_v27 = vadd.f32 %v5635_v42, %v11482_v4  ;;  %v5645_v9 = vadd.f32 %v5637_v20, %v11490_v25 }
0x1a01   :  { %v5644_v0 = vadd.f32 %v5636_v56, %v11485_v58  ;;  %v5646_v43 = vadd.f32 %v5638_v61, %v11495_v54  ;;  %v5661_v56 = vrot.slane %v11541_v29, 6 }
0x1a02   :  { %v5647_v62 = vmul.f32 0.5, %v5643_v27 }
0x1a03   :  { %v5651_v45 = vmul.f32 0.5, %v5644_v0  ;;  %v5656_v8 = vmul.f32 0.5, %v5646_v43 }
0x1a04   :  { %9664 = vtanh.f32 %v5647_v62 }
0x1a05   :  { %9666 = vtanh.f32 %v5651_v45 }
0x1a06   :  { %9668 = vtanh.f32 %v5645_v9 }
0x1a07   :  { %9670 = vtanh.f32 %v5656_v8 }
0x1a0e   :  { %v9665_v17 = vpop.eup %9664 }
0x1a0f   :  { %v9667_v38 = vpop.eup %9666  ;;  %v5649_v18 = vadd.f32 1.0, %v9665_v17 }
0x1a10   :  { %v5653_v55 = vadd.f32 1.0, %v9667_v38  ;;  %v9669_v2 = vpop.eup %9668 }
0x1a11   :  { %v5650_v42 = vmul.f32 0.5, %v5649_v18  ;;  %v9671_v46 = vpop.eup %9670 }
0x1a12   :  { %v5654_v16 = vmul.f32 0.5, %v5653_v55  ;;  %v5658_v20 = vadd.f32 1.0, %v9671_v46 }
0x1a13   :  { %v5664_v27 = vmul.f32 %v9669_v2, %v5650_v42 }
0x1a14   :  { %v5663_v0 = vmul.f32 %v5661_v56, %v5654_v16  ;;  %v5659_v45 = vmul.f32 0.5, %v5658_v20 }
0x1a16   :  { %v11583_v62 = vadd.f32 %v5664_v27, %v5663_v0 }
0x1a18   :  { %9672 = vtanh.f32 %v11583_v62 }
0x1a22   :  { %v9673_v9 = vpop.eup %9672 }
0x1a23   :  { %v5667_v61 = vmul.f32 %v9673_v9, %v5659_v45 }
0x1a25   :  { %5668 = vst [vmem:[#allocation3 + $0x10] sm:$0x30] %v5667_v61  ;;  %v5670_v43 = vrot.slane %v5667_v61, 4 }
0x1a27   :  { %5737 = vmatmul.mubr.f32.vlgmr.msra.gmra.mrb[70].mxu0 %v5670_v43  ;;  %5808 = vmatmul.mubr.f32.vlgmr.msra.gmra.mrb[70].mxu1 %v5670_v43 }
0x1a28   :  { %9057 = vmatpush1.bf16.msra.mxu0 %v10554_v6  ;;  %9089 = vmatpush1.bf16.msra.mxu1 %v10557_v32 }
0x1a29   :  { %9059 = vmatprep.subr.bf16.mxu0 %v10562_v13  ;;  %9091 = vmatprep.subr.bf16.mxu1 %v10564_v15 }
0x1a2a   :  { %5919 = vmatprep.mubr.f32.mxu0 %v12166_v28  ;;  %5990 = vmatprep.mubr.f32.mxu1 %v12166_v28 }
0x1a2c   :  { %9061 = vmatpush1.bf16.msra.mxu0 %v10566_v41  ;;  %9093 = vmatpush1.bf16.msra.mxu1 %v10569_v59 }
0x1a2d   :  { %9063 = vmatprep.subr.bf16.mxu0 %v12309_v37  ;;  %9095 = vmatprep.subr.bf16.mxu1 %v12310_v3 }
0x1a30   :  { %9065 = vmatpush1.bf16.msra.mxu0 %v12311_v1  ;;  %9097 = vmatpush1.bf16.msra.mxu1 %v12312_v35 }
0x1a31   :  { %9067 = vmatprep.subr.bf16.mxu0 %v12313_v21  ;;  %9099 = vmatprep.subr.bf16.mxu1 %v12314_v33 }
0x1a34   :  { %9069 = vmatpush1.bf16.msra.mxu0 %v12315_v52  ;;  %9101 = vmatpush1.bf16.msra.mxu1 %v12316_v44 }
0x1a35   :  { %9071 = vmatprep.subr.bf16.mxu0 %v12317_v40  ;;  %9103 = vmatprep.subr.bf16.mxu1 %v12318_v31 }
0x1a38   :  { %9073 = vmatpush1.bf16.msra.mxu0 %v12319_v24  ;;  %9105 = vmatpush1.bf16.msra.mxu1 %v12320_v22 }
0x1a39   :  { %9075 = vmatprep.subr.bf16.mxu0 %v12321_v26  ;;  %9107 = vmatprep.subr.bf16.mxu1 %v12322_v60 }
0x1a3c   :  { %9077 = vmatpush1.bf16.msra.mxu0 %v12323_v48  ;;  %9109 = vmatpush1.bf16.msra.mxu1 %v12324_v49 }
0x1a3d   :  { %9079 = vmatprep.subr.bf16.mxu0 %v12325_v5  ;;  %9111 = vmatprep.subr.bf16.mxu1 %v12326_v53 }
0x1a40   :  { %9081 = vmatpush1.bf16.msra.mxu0 %v12327_v51  ;;  %9113 = vmatpush1.bf16.msra.mxu1 %v12328_v11 }
0x1a41   :  { %9083 = vmatprep.subr.bf16.mxu0 %v12329_v19  ;;  %9115 = vmatprep.subr.bf16.mxu1 %v12330_v30 }
0x1a44   :  { %9085 = vmatpush1.bf16.msra.mxu0 %v12331_v34  ;;  %9117 = vmatpush1.bf16.msra.mxu1 %v12332_v50 }
0x1a45   :  { %9119 = vmatprep.subr.bf16.mxu0 %v10550_v36  ;;  %9151 = vmatprep.subr.bf16.mxu1 %v10552_v63 }
0x1afa   :  { %v5738_v29 = vpop.f32.mrb[70].mxu0  ;;  %v5809_v8 = vpop.f32.mrb[70].mxu1 }
0x1afb   :  { %v5818_v17 = vrot.slane %v5738_v29, 2  ;;  %v5740_v38 = vpop.f32.mrb[71].mxu0  ;;  %v5811_v18 = vpop.f32.mrb[71].mxu1  ;;  %v5820_v2 = vrot.slane %v5809_v8, 2 }
0x1afc   :  { %v5819_v55 = vrot.slane %v5740_v38, 2  ;;  %v5821_v46 = vrot.slane %v5811_v18, 2 }
0x1afd   :  { %v5826_v42 = vadd.f32 %v5818_v17, %v11482_v4  ;;  %v5828_v0 = vadd.f32 %v5820_v2, %v11490_v25 }
0x1afe   :  { %v5827_v16 = vadd.f32 %v5819_v55, %v11485_v58  ;;  %v5829_v20 = vadd.f32 %v5821_v46, %v11495_v54  ;;  %v5844_v58 = vrot.slane %v11583_v62, 6  ;;  %v11664_v62 = vadd.f32 %v11473_v47, %v12335_v7 }
0x1aff   :  { %v5830_v56 = vmul.f32 0.5, %v5826_v42 }
0x1b00   :  { %v5834_v27 = vmul.f32 0.5, %v5827_v16  ;;  %v5839_v45 = vmul.f32 0.5, %v5829_v20 }
0x1b01   :  { %9674 = vtanh.f32 %v5830_v56 }
0x1b02   :  { %9676 = vtanh.f32 %v5834_v27  ;;  %v11668_v27 = vadd.f32 %v11477_v10, %v12336_v39  ;;  %v11679_v10 = vadd.f32 %v11479_v23, %v12338_v14 }
0x1b03   :  { %9678 = vtanh.f32 %v5828_v0 }
0x1b04   :  { %9680 = vtanh.f32 %v5839_v45 }
0x1b0b   :  { %v9675_v9 = vpop.eup %9674 }
0x1b0c   :  { %v9677_v61 = vpop.eup %9676  ;;  %v5832_v43 = vadd.f32 1.0, %v9675_v9 }
0x1b0d   :  { %v5836_v29 = vadd.f32 1.0, %v9677_v61  ;;  %v9679_v8 = vpop.eup %9678 }
0x1b0e   :  { %v5833_v4 = vmul.f32 0.5, %v5832_v43  ;;  %v9681_v25 = vpop.eup %9680  ;;  %v11674_v43 = vadd.f32 %v11475_v57, %v12337_v12 }
0x1b0f   :  { %v5837_v17 = vmul.f32 0.5, %v5836_v29  ;;  %v5841_v18 = vadd.f32 1.0, %v9681_v25 }
0x1b10   :  { %v5847_v38 = vmul.f32 %v9679_v8, %v5833_v4 }
0x1b11   :  { %v5846_v55 = vmul.f32 %v5844_v58, %v5837_v17  ;;  %v5842_v54 = vmul.f32 0.5, %v5841_v18 }
0x1b13   :  { %v11625_v42 = vadd.f32 %v5847_v38, %v5846_v55 }
0x1b15   :  { %9682 = vtanh.f32 %v11625_v42  ;;  %v6015_v25 = vrot.slane %v11625_v42, 6 }
0x1b1f   :  { %v9683_v2 = vpop.eup %9682 }
0x1b20   :  { %v5850_v16 = vmul.f32 %v9683_v2, %v5842_v54 }
0x1b22   :  { %5851 = vst [vmem:[#allocation3 + $0x10] sm:$0xc0] %v5850_v16  ;;  %v5853_v56 = vrot.slane %v5850_v16, 6 }
0x1b24   :  { %5920 = vmatmul.mubr.f32.vlgmr.msra.gmra.mrb[72].mxu0 %v5853_v56  ;;  %5991 = vmatmul.mubr.f32.vlgmr.msra.gmra.mrb[72].mxu1 %v5853_v56 }
0x1b25   :  { %9121 = vmatpush1.bf16.msra.mxu0 %v10554_v6  ;;  %9153 = vmatpush1.bf16.msra.mxu1 %v10557_v32 }
0x1b26   :  { %9123 = vmatprep.subr.bf16.mxu0 %v10562_v13  ;;  %9155 = vmatprep.subr.bf16.mxu1 %v10564_v15 }
0x1b27   :  { %6087 = vmatprep.mubr.f32.mxu0 %v12166_v28  ;;  %6158 = vmatprep.mubr.f32.mxu1 %v12166_v28 }
0x1b29   :  { %9125 = vmatpush1.bf16.msra.mxu0 %v10566_v41  ;;  %9157 = vmatpush1.bf16.msra.mxu1 %v10569_v59 }
0x1b2a   :  { %9127 = vmatprep.subr.bf16.mxu0 %v12309_v37  ;;  %9159 = vmatprep.subr.bf16.mxu1 %v12310_v3 }
0x1b2d   :  { %9129 = vmatpush1.bf16.msra.mxu0 %v12311_v1  ;;  %9161 = vmatpush1.bf16.msra.mxu1 %v12312_v35 }
0x1b2e   :  { %9131 = vmatprep.subr.bf16.mxu0 %v12313_v21  ;;  %9163 = vmatprep.subr.bf16.mxu1 %v12314_v33 }
0x1b31   :  { %9133 = vmatpush1.bf16.msra.mxu0 %v12315_v52  ;;  %9165 = vmatpush1.bf16.msra.mxu1 %v12316_v44 }
0x1b32   :  { %9135 = vmatprep.subr.bf16.mxu0 %v12317_v40  ;;  %9167 = vmatprep.subr.bf16.mxu1 %v12318_v31 }
0x1b35   :  { %9137 = vmatpush1.bf16.msra.mxu0 %v12319_v24  ;;  %9169 = vmatpush1.bf16.msra.mxu1 %v12320_v22 }
0x1b36   :  { %9139 = vmatprep.subr.bf16.mxu0 %v12321_v26  ;;  %9171 = vmatprep.subr.bf16.mxu1 %v12322_v60 }
0x1b39   :  { %9141 = vmatpush1.bf16.msra.mxu0 %v12323_v48  ;;  %9173 = vmatpush1.bf16.msra.mxu1 %v12324_v49 }
0x1b3a   :  { %9143 = vmatprep.subr.bf16.mxu0 %v12325_v5  ;;  %9175 = vmatprep.subr.bf16.mxu1 %v12326_v53 }
0x1b3d   :  { %9145 = vmatpush1.bf16.msra.mxu0 %v12327_v51  ;;  %9177 = vmatpush1.bf16.msra.mxu1 %v12328_v11 }
0x1b3e   :  { %9147 = vmatprep.subr.bf16.mxu0 %v12329_v19  ;;  %9179 = vmatprep.subr.bf16.mxu1 %v12330_v30 }
0x1b41   :  { %9149 = vmatpush1.bf16.msra.mxu0 %v12331_v34  ;;  %9181 = vmatpush1.bf16.msra.mxu1 %v12332_v50 }
0x1b42   :  { %9183 = vmatprep.subr.bf16.mxu0 %v10550_v36  ;;  %9215 = vmatprep.subr.bf16.mxu1 %v10552_v63 }
0x1bf7   :  { %v5921_v0 = vpop.f32.mrb[72].mxu0  ;;  %v5992_v46 = vpop.f32.mrb[72].mxu1 }
0x1bf8   :  { %v5997_v20 = vadd.f32 %v5921_v0, %v11664_v62  ;;  %v5923_v45 = vpop.f32.mrb[73].mxu0  ;;  %v5994_v9 = vpop.f32.mrb[73].mxu1  ;;  %v5999_v47 = vadd.f32 %v5992_v46, %v11674_v43 }
0x1bf9   :  { %v5998_v61 = vadd.f32 %v5923_v45, %v11668_v27  ;;  %v6000_v7 = vadd.f32 %v5994_v9, %v11679_v10 }
0x1bfa   :  { %v6001_v29 = vmul.f32 0.5, %v5997_v20 }
0x1bfb   :  { %v6005_v4 = vmul.f32 0.5, %v5998_v61  ;;  %v6010_v39 = vmul.f32 0.5, %v6000_v7 }
0x1bfc   :  { %9684 = vtanh.f32 %v6001_v29 }
0x1bfd   :  { %9686 = vtanh.f32 %v6005_v4 }
0x1bfe   :  { %9688 = vtanh.f32 %v5999_v47 }
0x1bff   :  { %9690 = vtanh.f32 %v6010_v39 }
0x1c06   :  { %v9685_v8 = vpop.eup %9684 }
0x1c07   :  { %v9687_v17 = vpop.eup %9686  ;;  %v6003_v58 = vadd.f32 1.0, %v9685_v8 }
0x1c08   :  { %v6007_v38 = vadd.f32 1.0, %v9687_v17  ;;  %v9689_v12 = vpop.eup %9688 }
0x1c09   :  { %v6004_v57 = vmul.f32 0.5, %v6003_v58  ;;  %v9691_v23 = vpop.eup %9690 }
0x1c0a   :  { %v6008_v55 = vmul.f32 0.5, %v6007_v38  ;;  %v6012_v14 = vadd.f32 1.0, %v9691_v23 }
0x1c0b   :  { %v6018_v18 = vmul.f32 %v9689_v12, %v6004_v57 }
0x1c0c   :  { %v6017_v54 = vmul.f32 %v6015_v25, %v6008_v55  ;;  %v6013_v16 = vmul.f32 0.5, %v6012_v14 }
0x1c0e   :  { %v11683_v2 = vadd.f32 %v6018_v18, %v6017_v54 }
0x1c10   :  { %9692 = vtanh.f32 %v11683_v2  ;;  %v6195_v54 = vrot.slane %v11683_v2, 6 }
0x1c1a   :  { %v9693_v56 = vpop.eup %9692 }
0x1c1b   :  { %v6021_v0 = vmul.f32 %v9693_v56, %v6013_v16 }
0x1c1d   :  { %6022 = vst [vmem:[#allocation3 + $0x18] sm:$0x3] %v6021_v0  ;;  %6088 = vmatmul.mubr.f32.vlgmr.msra.gmra.mrb[74].mxu0 %v6021_v0  ;;  %6159 = vmatmul.mubr.f32.vlgmr.msra.gmra.mrb[74].mxu1 %v6021_v0 }
0x1c1e   :  { %9185 = vmatpush1.bf16.msra.mxu0 %v10554_v6  ;;  %9217 = vmatpush1.bf16.msra.mxu1 %v10557_v32 }
0x1c1f   :  { %9187 = vmatprep.subr.bf16.mxu0 %v10562_v13  ;;  %9219 = vmatprep.subr.bf16.mxu1 %v10564_v15 }
0x1c20   :  { %6270 = vmatprep.mubr.f32.mxu0 %v12166_v28  ;;  %6341 = vmatprep.mubr.f32.mxu1 %v12166_v28 }
0x1c22   :  { %9189 = vmatpush1.bf16.msra.mxu0 %v10566_v41  ;;  %9221 = vmatpush1.bf16.msra.mxu1 %v10569_v59 }
0x1c23   :  { %9191 = vmatprep.subr.bf16.mxu0 %v12309_v37  ;;  %9223 = vmatprep.subr.bf16.mxu1 %v12310_v3 }
0x1c26   :  { %9193 = vmatpush1.bf16.msra.mxu0 %v12311_v1  ;;  %9225 = vmatpush1.bf16.msra.mxu1 %v12312_v35 }
0x1c27   :  { %9195 = vmatprep.subr.bf16.mxu0 %v12313_v21  ;;  %9227 = vmatprep.subr.bf16.mxu1 %v12314_v33 }
0x1c2a   :  { %9197 = vmatpush1.bf16.msra.mxu0 %v12315_v52  ;;  %9229 = vmatpush1.bf16.msra.mxu1 %v12316_v44 }
0x1c2b   :  { %9199 = vmatprep.subr.bf16.mxu0 %v12317_v40  ;;  %9231 = vmatprep.subr.bf16.mxu1 %v12318_v31 }
0x1c2e   :  { %9201 = vmatpush1.bf16.msra.mxu0 %v12319_v24  ;;  %9233 = vmatpush1.bf16.msra.mxu1 %v12320_v22 }
0x1c2f   :  { %9203 = vmatprep.subr.bf16.mxu0 %v12321_v26  ;;  %9235 = vmatprep.subr.bf16.mxu1 %v12322_v60 }
0x1c32   :  { %9205 = vmatpush1.bf16.msra.mxu0 %v12323_v48  ;;  %9237 = vmatpush1.bf16.msra.mxu1 %v12324_v49 }
0x1c33   :  { %9207 = vmatprep.subr.bf16.mxu0 %v12325_v5  ;;  %9239 = vmatprep.subr.bf16.mxu1 %v12326_v53 }
0x1c36   :  { %9209 = vmatpush1.bf16.msra.mxu0 %v12327_v51  ;;  %9241 = vmatpush1.bf16.msra.mxu1 %v12328_v11 }
0x1c37   :  { %9211 = vmatprep.subr.bf16.mxu0 %v12329_v19  ;;  %9243 = vmatprep.subr.bf16.mxu1 %v12330_v30 }
0x1c3a   :  { %9213 = vmatpush1.bf16.msra.mxu0 %v12331_v34  ;;  %9245 = vmatpush1.bf16.msra.mxu1 %v12332_v50 }
0x1c3b   :  { %9247 = vmatprep.subr.bf16.mxu0 %v10550_v36  ;;  %9279 = vmatprep.subr.bf16.mxu1 %v10552_v63 }
0x1cf0   :  { %v6089_v42 = vpop.f32.mrb[74].mxu0  ;;  %v6160_v46 = vpop.f32.mrb[74].mxu1 }
0x1cf1   :  { %v6169_v20 = vrot.slane %v6089_v42, 6  ;;  %v6091_v45 = vpop.f32.mrb[75].mxu0  ;;  %v6162_v9 = vpop.f32.mrb[75].mxu1  ;;  %v6171_v4 = vrot.slane %v6160_v46, 6 }
0x1cf2   :  { %v6170_v61 = vrot.slane %v6091_v45, 6  ;;  %v6172_v17 = vrot.slane %v6162_v9, 6 }
0x1cf3   :  { %v6177_v29 = vadd.f32 %v6169_v20, %v11664_v62  ;;  %v6179_v8 = vadd.f32 %v6171_v4, %v11674_v43 }
0x1cf4   :  { %v6178_v47 = vadd.f32 %v6170_v61, %v11668_v27  ;;  %v6180_v36 = vadd.f32 %v6172_v17, %v11679_v10  ;;  %v6575_v61 = vld [vmem:[%s11947_s8 + $0x10] sm:$0xff] }
0x1cf5   :  { %v6181_v7 = vmul.f32 0.5, %v6177_v29  ;;  %v6576_v29 = vld [vmem:[%s11947_s8 + $0x18] sm:$0xff]  ;;  %v6569_v17 = vld [vmem:[#allocation3] sm:$0xff] }
0x1cf6   :  { %v6185_v39 = vmul.f32 0.5, %v6178_v47  ;;  %v6190_v63 = vmul.f32 0.5, %v6180_v36 }
0x1cf7   :  { %9694 = vtanh.f32 %v6181_v7  ;;  %v9314_v7 = vpack.c.bf16 %v6576_v29, %v6575_v61 }
0x1cf8   :  { %9696 = vtanh.f32 %v6185_v39  ;;  %v6577_v39 = vld [vmem:[%s11947_s8 + $0x20] sm:$0xff] }
0x1cf9   :  { %9698 = vtanh.f32 %v6179_v8  ;;  %v6578_v8 = vld [vmem:[%s11947_s8 + $0x28] sm:$0xff] }
0x1cfa   :  { %9700 = vtanh.f32 %v6190_v63  ;;  %v9318_v36 = vpack.c.bf16 %v6578_v8, %v6577_v39  ;;  %v6579_v63 = vld [vmem:[%s11947_s8 + $0x30] sm:$0xff] }
0x1d01   :  { %v9695_v58 = vpop.eup %9694 }
0x1d02   :  { %v9697_v38 = vpop.eup %9696  ;;  %v6183_v57 = vadd.f32 1.0, %v9695_v58  ;;  %v6580_v58 = vld [vmem:[%s11947_s8 + $0x38] sm:$0xff] }
0x1d03   :  { %v6187_v12 = vadd.f32 1.0, %v9697_v38  ;;  %v9699_v25 = vpop.eup %9698  ;;  %v9322_v38 = vpack.c.bf16 %v6580_v58, %v6579_v63 }
0x1d04   :  { %v6184_v55 = vmul.f32 0.5, %v6183_v57  ;;  %v9701_v56 = vpop.eup %9700  ;;  %v6581_v57 = vld [vmem:[%s11947_s8 + $0x40] sm:$0xff] }
0x1d05   :  { %v6188_v18 = vmul.f32 0.5, %v6187_v12  ;;  %v6192_v0 = vadd.f32 1.0, %v9701_v56  ;;  %v6582_v12 = vld [vmem:[%s11947_s8 + $0x48] sm:$0xff]  ;;  %v6587_v56 = vld [vmem:[%s11947_s8 + $0x70] sm:$0xff] }
0x1d06   :  { %v6198_v23 = vmul.f32 %v9699_v25, %v6184_v55  ;;  %v9326_v55 = vpack.c.bf16 %v6582_v12, %v6581_v57  ;;  %v6583_v25 = vld [vmem:[%s11947_s8 + $0x50] sm:$0xff] }
0x1d07   :  { %v6197_v14 = vmul.f32 %v6195_v54, %v6188_v18  ;;  %v6193_v42 = vmul.f32 0.5, %v6192_v0  ;;  %v6584_v18 = vld [vmem:[%s11947_s8 + $0x58] sm:$0xff] }
0x1d08   :  { %v9330_v54 = vpack.c.bf16 %v6584_v18, %v6583_v25  ;;  %v6588_v0 = vld [vmem:[%s11947_s8 + $0x78] sm:$0xff] }
0x1d09   :  { %v11725_v16 = vadd.f32 %v6198_v23, %v6197_v14  ;;  %v6585_v23 = vld [vmem:[%s11947_s8 + $0x60] sm:$0xff]  ;;  %v6586_v14 = vld [vmem:[%s11947_s8 + $0x68] sm:$0xff] }
0x1d0b   :  { %9702 = vtanh.f32 %v11725_v16 }
0x1d15   :  { %v9703_v46 = vpop.eup %9702 }
0x1d16   :  { %v6201_v20 = vmul.f32 %v9703_v46, %v6193_v42  ;;  %v9338_v42 = vpack.c.bf16 %v6588_v0, %v6587_v56  ;;  %v6570_v46 = vld [vmem:[#allocation3 + $0x8] sm:$0xff] }
0x1d18   :  { %6202 = vst [vmem:[#allocation3 + $0x18] sm:$0xc] %v6201_v20  ;;  %v6204_v45 = vrot.slane %v6201_v20, 2  ;;  %v6571_v20 = vld [vmem:[#allocation3 + $0x10] sm:$0xff] }
0x1d1a   :  { %6271 = vmatmul.mubr.f32.vlgmr.msra.gmra.mrb[76].mxu0 %v6204_v45  ;;  %6342 = vmatmul.mubr.f32.vlgmr.msra.gmra.mrb[76].mxu1 %v6204_v45  ;;  %v6685_v45 = vld [vmem:[%s11949_s10] sm:$0xff] }
0x1d1b   :  { %9249 = vmatpush1.bf16.msra.mxu0 %v10554_v6  ;;  %9281 = vmatpush1.bf16.msra.mxu1 %v10557_v32 }
0x1d1c   :  { %9251 = vmatprep.subr.bf16.mxu0 %v10562_v13  ;;  %9283 = vmatprep.subr.bf16.mxu1 %v10564_v15 }
0x1d1d   :  { %6453 = vmatprep.mubr.f32.mxu0 %v12166_v28  ;;  %6524 = vmatprep.mubr.f32.mxu1 %v12166_v28  ;;  %v6573_v28 = vld [vmem:[%s11947_s8] sm:$0xff] }
0x1d1f   :  { %9253 = vmatpush1.bf16.msra.mxu0 %v10566_v41  ;;  %9285 = vmatpush1.bf16.msra.mxu1 %v10569_v59  ;;  %v6574_v59 = vld [vmem:[%s11947_s8 + $0x8] sm:$0xff] }
0x1d20   :  { %9255 = vmatprep.subr.bf16.mxu0 %v12309_v37  ;;  %9287 = vmatprep.subr.bf16.mxu1 %v12310_v3  ;;  %v9310_v41 = vpack.c.bf16 %v6574_v59, %v6573_v28  ;;  %v6686_v28 = vld [vmem:[%s11949_s10 + $0x8] sm:$0xff] }
0x1d21   :  { %v9342_v59 = vpack.c.bf16 %v6686_v28, %v6685_v45  ;;  %v6822_v45 = vld [vmem:[%s11951_s12 + $0x8] sm:$0xff] }
0x1d23   :  { %9257 = vmatpush1.bf16.msra.mxu0 %v12311_v1  ;;  %9289 = vmatpush1.bf16.msra.mxu1 %v12312_v35 }
0x1d24   :  { %9259 = vmatprep.subr.bf16.mxu0 %v12313_v21  ;;  %9291 = vmatprep.subr.bf16.mxu1 %v12314_v33 }
0x1d27   :  { %9261 = vmatpush1.bf16.msra.mxu0 %v12315_v52  ;;  %9293 = vmatpush1.bf16.msra.mxu1 %v12316_v44 }
0x1d28   :  { %9263 = vmatprep.subr.bf16.mxu0 %v12317_v40  ;;  %9295 = vmatprep.subr.bf16.mxu1 %v12318_v31 }
0x1d2b   :  { %9265 = vmatpush1.bf16.msra.mxu0 %v12319_v24  ;;  %9297 = vmatpush1.bf16.msra.mxu1 %v12320_v22 }
0x1d2c   :  { %9267 = vmatprep.subr.bf16.mxu0 %v12321_v26  ;;  %9299 = vmatprep.subr.bf16.mxu1 %v12322_v60 }
0x1d2f   :  { %9269 = vmatpush1.bf16.msra.mxu0 %v12323_v48  ;;  %9301 = vmatpush1.bf16.msra.mxu1 %v12324_v49 }
0x1d30   :  { %9271 = vmatprep.subr.bf16.mxu0 %v12325_v5  ;;  %9303 = vmatprep.subr.bf16.mxu1 %v12326_v53 }
0x1d33   :  { %9273 = vmatpush1.bf16.msra.mxu0 %v12327_v51  ;;  %9305 = vmatpush1.bf16.msra.mxu1 %v12328_v11  ;;  %v6378_v51 = vrot.slane %v11725_v16, 6  ;;  %v9334_v16 = vpack.c.bf16 %v6586_v14, %v6585_v23 }
0x1d34   :  { %9275 = vmatprep.subr.bf16.mxu0 %v12329_v19  ;;  %9307 = vmatprep.subr.bf16.mxu1 %v12330_v30 }
0x1d37   :  { %9277 = vmatpush1.bf16.msra.mxu0 %v12331_v34  ;;  %9309 = vmatpush1.bf16.msra.mxu1 %v12332_v50 }
0x1d38   :  { %9311 = vmatprep.subr.bf16.mxu0 %v9310_v41  ;;  %9343 = vmatprep.subr.bf16.mxu1 %v9342_v59 }
0x1ded   :  { %v6272_v13 = vpop.f32.mrb[76].mxu0  ;;  %v6343_v6 = vpop.f32.mrb[76].mxu1 }
0x1dee   :  { %v6352_v32 = vrot.slane %v6272_v13, 4  ;;  %v6274_v15 = vpop.f32.mrb[77].mxu0  ;;  %v6345_v37 = vpop.f32.mrb[77].mxu1  ;;  %v6354_v35 = vrot.slane %v6343_v6, 4  ;;  %v6688_v13 = vld [vmem:[%s11949_s10 + $0x18] sm:$0xff] }
0x1def   :  { %v6353_v3 = vrot.slane %v6274_v15, 4  ;;  %v6355_v40 = vrot.slane %v6345_v37, 4  ;;  %v6690_v15 = vld [vmem:[%s11949_s10 + $0x28] sm:$0xff] }
0x1df0   :  { %v6360_v1 = vadd.f32 %v6352_v32, %v11664_v62  ;;  %v6362_v44 = vadd.f32 %v6354_v35, %v11674_v43  ;;  %v6689_v32 = vld [vmem:[%s11949_s10 + $0x20] sm:$0xff] }
0x1df1   :  { %v6361_v21 = vadd.f32 %v6353_v3, %v11668_v27  ;;  %v6363_v31 = vadd.f32 %v6355_v40, %v11679_v10  ;;  %v9350_v37 = vpack.c.bf16 %v6690_v15, %v6689_v32  ;;  %v6691_v3 = vld [vmem:[%s11949_s10 + $0x30] sm:$0xff]  ;;  %v6696_v40 = vld [vmem:[%s11949_s10 + $0x58] sm:$0xff]  ;;  %v6826_v32 = vld [vmem:[%s11951_s12 + $0x28] sm:$0xff] }
0x1df2   :  { %v6364_v33 = vmul.f32 0.5, %v6360_v1  ;;  %v6692_v1 = vld [vmem:[%s11949_s10 + $0x38] sm:$0xff]  ;;  %v6827_v15 = vld [vmem:[%s11951_s12 + $0x30] sm:$0xff] }
0x1df3   :  { %v6368_v52 = vmul.f32 0.5, %v6361_v21  ;;  %v6373_v24 = vmul.f32 0.5, %v6363_v31  ;;  %v9354_v35 = vpack.c.bf16 %v6692_v1, %v6691_v3  ;;  %v6693_v21 = vld [vmem:[%s11949_s10 + $0x40] sm:$0xff]  ;;  %v6828_v3 = vld [vmem:[%s11951_s12 + $0x38] sm:$0xff] }
0x1df4   :  { %9704 = vtanh.f32 %v6364_v33  ;;  %v6694_v33 = vld [vmem:[%s11949_s10 + $0x48] sm:$0xff]  ;;  %v9386_v1 = vpack.c.bf16 %v6828_v3, %v6827_v15 }
0x1df5   :  { %9706 = vtanh.f32 %v6368_v52  ;;  %v9358_v52 = vpack.c.bf16 %v6694_v33, %v6693_v21 }
0x1df6   :  { %9708 = vtanh.f32 %v6362_v44  ;;  %v6695_v44 = vld [vmem:[%s11949_s10 + $0x50] sm:$0xff] }
0x1df7   :  { %9710 = vtanh.f32 %v6373_v24  ;;  %v9362_v31 = vpack.c.bf16 %v6696_v40, %v6695_v44  ;;  %v6697_v24 = vld [vmem:[%s11949_s10 + $0x60] sm:$0xff] }
0x1dfe   :  { %v9705_v22 = vpop.eup %9704 }
0x1dff   :  { %v9707_v26 = vpop.eup %9706  ;;  %v6366_v60 = vadd.f32 1.0, %v9705_v22  ;;  %v6698_v22 = vld [vmem:[%s11949_s10 + $0x68] sm:$0xff] }
0x1e00   :  { %v6370_v48 = vadd.f32 1.0, %v9707_v26  ;;  %v9709_v5 = vpop.eup %9708  ;;  %v9366_v26 = vpack.c.bf16 %v6698_v22, %v6697_v24 }
0x1e01   :  { %v6367_v49 = vmul.f32 0.5, %v6366_v60  ;;  %v9711_v34 = vpop.eup %9710  ;;  %v6699_v60 = vld [vmem:[%s11949_s10 + $0x70] sm:$0xff] }
0x1e02   :  { %v6371_v53 = vmul.f32 0.5, %v6370_v48  ;;  %v6375_v50 = vadd.f32 1.0, %v9711_v34  ;;  %v6700_v48 = vld [vmem:[%s11949_s10 + $0x78] sm:$0xff] }
0x1e03   :  { %v6381_v11 = vmul.f32 %v9709_v5, %v6367_v49  ;;  %v9370_v49 = vpack.c.bf16 %v6700_v48, %v6699_v60 }
0x1e04   :  { %v6380_v19 = vmul.f32 %v6378_v51, %v6371_v53  ;;  %v6376_v2 = vmul.f32 0.5, %v6375_v50 }
0x1e06   :  { %v11771_v30 = vadd.f32 %v6381_v11, %v6380_v19 }
0x1e08   :  { %9712 = vtanh.f32 %v11771_v30 }
0x1e12   :  { %v9713_v9 = vpop.eup %9712 }
0x1e13   :  { %v6384_v4 = vmul.f32 %v9713_v9, %v6376_v2 }
0x1e15   :  { %6385 = vst [vmem:[#allocation3 + $0x18] sm:$0x30] %v6384_v4  ;;  %v6387_v47 = vrot.slane %v6384_v4, 4 }
0x1e17   :  { %6454 = vmatmul.mubr.f32.vlgmr.msra.gmra.mrb[78].mxu0 %v6387_v47  ;;  %6525 = vmatmul.mubr.f32.vlgmr.msra.gmra.mrb[78].mxu1 %v6387_v47 }
0x1e18   :  { %9313 = vmatpush3.bf16.msra.mxu0 %v9310_v41  ;;  %7060 = vmatprep.mubr.f32.mxu0 %v6569_v17  ;;  %v6687_v41 = vld [vmem:[%s11949_s10 + $0x10] sm:$0xff] }
0x1e19   :  { %9315 = vmatprep.subr.bf16.mxu0 %v9314_v7  ;;  %9345 = vmatpush3.bf16.msra.mxu1 %v9342_v59  ;;  %v9346_v6 = vpack.c.bf16 %v6688_v13, %v6687_v41  ;;  %v6823_v59 = vld [vmem:[%s11951_s12 + $0x10] sm:$0xff]  ;;  %v6824_v41 = vld [vmem:[%s11951_s12 + $0x18] sm:$0xff] }
0x1e1a   :  { %v9378_v13 = vpack.c.bf16 %v6824_v41, %v6823_v59 }
0x1e1b   :  { %9347 = vmatprep.subr.bf16.mxu1 %v9346_v6 }
0x1e1c   :  { %9317 = vmatpush3.bf16.msra.mxu0 %v9314_v7 }
0x1e1d   :  { %9319 = vmatprep.subr.bf16.mxu0 %v9318_v36  ;;  %9349 = vmatpush3.bf16.msra.mxu1 %v9346_v6  ;;  %v6825_v6 = vld [vmem:[%s11951_s12 + $0x20] sm:$0xff] }
0x1e1e   :  { %9351 = vmatprep.subr.bf16.mxu1 %v9350_v37 }
0x1e20   :  { %9321 = vmatpush3.bf16.msra.mxu0 %v9318_v36 }
0x1e21   :  { %9323 = vmatprep.subr.bf16.mxu0 %v9322_v38  ;;  %9353 = vmatpush3.bf16.msra.mxu1 %v9350_v37  ;;  %v9382_v37 = vpack.c.bf16 %v6826_v32, %v6825_v6 }
0x1e22   :  { %9355 = vmatprep.subr.bf16.mxu1 %v9354_v35 }
0x1e24   :  { %9325 = vmatpush3.bf16.msra.mxu0 %v9322_v38 }
0x1e25   :  { %9327 = vmatprep.subr.bf16.mxu0 %v9326_v55  ;;  %9357 = vmatpush3.bf16.msra.mxu1 %v9354_v35  ;;  %v6970_v35 = vld [vmem:[%s11950_s11] ss:$0 sm:$0xff] }
0x1e26   :  { %9359 = vmatprep.subr.bf16.mxu1 %v9358_v52 }
0x1e28   :  { %9329 = vmatpush3.bf16.msra.mxu0 %v9326_v55 }
0x1e29   :  { %9331 = vmatprep.subr.bf16.mxu0 %v9330_v54  ;;  %9361 = vmatpush3.bf16.msra.mxu1 %v9358_v52 }
0x1e2a   :  { %9363 = vmatprep.subr.bf16.mxu1 %v9362_v31 }
0x1e2c   :  { %9333 = vmatpush3.bf16.msra.mxu0 %v9330_v54 }
0x1e2d   :  { %9335 = vmatprep.subr.bf16.mxu0 %v9334_v16  ;;  %9365 = vmatpush3.bf16.msra.mxu1 %v9362_v31 }
0x1e2e   :  { %9367 = vmatprep.subr.bf16.mxu1 %v9366_v26 }
0x1e30   :  { %9337 = vmatpush3.bf16.msra.mxu0 %v9334_v16 }
0x1e31   :  { %9339 = vmatprep.subr.bf16.mxu0 %v9338_v42  ;;  %9369 = vmatpush3.bf16.msra.mxu1 %v9366_v26  ;;  %v12340_v26 = vld [vmem:[#allocation12_spill] sm:$0xff] }
0x1e32   :  { %9371 = vmatprep.subr.bf16.mxu1 %v9370_v49  ;;  %v6797_v60 = vrot.slane %v12340_v26, 4  ;;  %v6799_v48 = vrot.slane %v12340_v26, 2 }
0x1e34   :  { %9341 = vmatpush3.bf16.msra.mxu0 %v9338_v42 }
0x1e35   :  { %9373 = vmatpush3.bf16.msra.mxu1 %v9370_v49  ;;  %v12341_v49 = vld [vmem:[#allocation13_spill] sm:$0xff] }
0x1e37   :  { %7061 = vmatmul.mubr.f32.vlgmr.msra.gmra.mrb[80].mxu0 %v6570_v46 }
0x1e38   :  { %7063 = vmatprep.mubr.f32.mxu0 %v6571_v20  ;;  %v6821_v20 = vld [vmem:[%s11951_s12] sm:$0xff] }
0x1e39   :  { %v9374_v28 = vpack.c.bf16 %v6822_v45, %v6821_v20 }
0x1e3b   :  { %9375 = vmatprep.subr.bf16.mxu0 %v9374_v28  ;;  %9390 = vmatprep.subr.bf16.mxu1 %v9374_v28 }
0x1e3c   :  { %9377 = vmatpush3.bf16.msra.mxu0 %v9374_v28 }
0x1e3d   :  { %9379 = vmatprep.subr.bf16.mxu0 %v9378_v13 }
0x1e40   :  { %9381 = vmatpush3.bf16.msra.mxu0 %v9378_v13 }
0x1e41   :  { %9383 = vmatprep.subr.bf16.mxu0 %v9382_v37 }
0x1e44   :  { %9385 = vmatpush3.bf16.msra.mxu0 %v9382_v37 }
0x1e45   :  { %9387 = vmatprep.subr.bf16.mxu0 %v9386_v1 }
0x1e48   :  { %9389 = vmatpush3.bf16.msra.mxu0 %v9386_v1 }
0x1eea   :  { %v6455_v5 = vpop.f32.mrb[78].mxu0  ;;  %v6526_v53 = vpop.f32.mrb[78].mxu1 }
0x1eeb   :  { %v6535_v51 = vrot.slane %v6455_v5, 2  ;;  %v6457_v11 = vpop.f32.mrb[79].mxu0  ;;  %v6528_v19 = vpop.f32.mrb[79].mxu1  ;;  %v6537_v2 = vrot.slane %v6526_v53, 2  ;;  %v6809_v5 = vsel %vm6808_vm1, %v12341_v49, %v6797_v60 }
0x1eec   :  { %v6536_v34 = vrot.slane %v6457_v11, 2  ;;  %v6538_v47 = vrot.slane %v6528_v19, 2  ;;  %v6811_v53 = vsel %vm6810_vm2, %v6809_v5, %v6799_v48 }
0x1eed   :  { %v6543_v50 = vadd.f32 %v6535_v51, %v11664_v62  ;;  %v6545_v4 = vadd.f32 %v6537_v2, %v11674_v43  ;;  %v6813_v11 = vsel %vm6812_vm3, %v6811_v53, %v12340_v26 }
0x1eee   :  { %v6544_v9 = vadd.f32 %v6536_v34, %v11668_v27  ;;  %v6546_v7 = vadd.f32 %v6538_v47, %v11679_v10  ;;  %v6561_v27 = vrot.slane %v11771_v30, 6  ;;  %v6969_v10 = vld [vmem:[%s11948_s9] ss:$0 sm:$0xff] }
0x1eef   :  { %v6547_v61 = vmul.f32 0.5, %v6543_v50 }
0x1ef0   :  { %v6551_v29 = vmul.f32 0.5, %v6544_v9  ;;  %v6556_v39 = vmul.f32 0.5, %v6546_v7 }
0x1ef1   :  { %9714 = vtanh.f32 %v6547_v61  ;;  %v6971_v61 = vld [vmem:[%s11952_s13] ss:$0 sm:$0xff] }
0x1ef2   :  { %9716 = vtanh.f32 %v6551_v29 }
0x1ef3   :  { %9718 = vtanh.f32 %v6545_v4 }
0x1ef4   :  { %9720 = vtanh.f32 %v6556_v39 }
0x1efb   :  { %v9715_v8 = vpop.eup %9714 }
0x1efc   :  { %v9717_v17 = vpop.eup %9716  ;;  %v6549_v36 = vadd.f32 1.0, %v9715_v8 }
0x1efd   :  { %v6553_v63 = vadd.f32 1.0, %v9717_v17  ;;  %v9719_v58 = vpop.eup %9718 }
0x1efe   :  { %v6550_v62 = vmul.f32 0.5, %v6549_v36  ;;  %v9721_v43 = vpop.eup %9720 }
0x1eff   :  { %v6554_v38 = vmul.f32 0.5, %v6553_v63  ;;  %v6558_v25 = vadd.f32 1.0, %v9721_v43 }
0x1f00   :  { %v6564_v57 = vmul.f32 %v9719_v58, %v6550_v62 }
0x1f01   :  { %v6563_v12 = vmul.f32 %v6561_v27, %v6554_v38  ;;  %v6559_v16 = vmul.f32 0.5, %v6558_v25 }
0x1f03   :  { %v6565_v55 = vadd.f32 %v6564_v57, %v6563_v12 }
0x1f05   :  { %9722 = vtanh.f32 %v6565_v55 }
0x1f0a   :  { %v7062_v18 = vpop.f32.mrb[80].mxu0 }
0x1f0b   :  { %v6668_v54 = vadd.f32 %v7062_v18, %v6969_v10  ;;  %v6662_v23 = vpop.f32.mrb[81].mxu0 }
0x1f0c   :  { %v6663_v14 = vadd.f32 %v6969_v10, %v6662_v23 }
0x1f0e   :  { %9724 = vtanh.f32 %v6663_v14 }
0x1f0f   :  { %v9723_v56 = vpop.eup %9722  ;;  %9726 = vtanh.f32 %v6668_v54 }
0x1f10   :  { %v11872_v0 = vmul.f32 %v9723_v56, %v6559_v16 }
0x1f12   :  { %6568 = vst [vmem:[#allocation3 + $0x18] sm:$0xc0] %v11872_v0  ;;  %v6802_v63 = vrot.slane %v11872_v0, 6  ;;  %v6804_v62 = vrot.slane %v11872_v0, 4  ;;  %v6806_v27 = vrot.slane %v11872_v0, 2 }
0x1f14   :  { %v6814_v57 = vsel %vm6808_vm1, %v6802_v63, %v6804_v62 }
0x1f15   :  { %v6815_v12 = vsel %vm6810_vm2, %v6814_v57, %v6806_v27 }
0x1f16   :  { %v6816_v43 = vsel %vm6812_vm3, %v6815_v12, %v11872_v0 }
0x1f18   :  { %v9725_v30 = vpop.eup %9724 }
0x1f19   :  { %v9727_v42 = vpop.eup %9726  ;;  %7098 = vmatprep.mubr.f32.mxu1 %v9725_v30  ;;  %v6572_v46 = vld [vmem:[#allocation3 + $0x18] sm:$0xff] }
0x1f1a   :  { %7099 = vmatmul.mubr.f32.vlgmr.msra.gmra.mrb[80].mxu1 %v9727_v42  ;;  %7064 = vmatmul.mubr.f32.gmra.mrb[82].mxu0 %v6572_v46 }
0x1f1b   :  { %9394 = vmatpush3.bf16.msra.mxu1 %v9374_v28 }
0x1f1c   :  { %9391 = vmatprep.subr.bf16.mxu1 %v9378_v13 }
0x1f1f   :  { %9395 = vmatpush3.bf16.msra.mxu1 %v9378_v13 }
0x1f20   :  { %9392 = vmatprep.subr.bf16.mxu1 %v9382_v37 }
0x1f23   :  { %9396 = vmatpush3.bf16.msra.mxu1 %v9382_v37 }
0x1f24   :  { %9393 = vmatprep.subr.bf16.mxu1 %v9386_v1 }
0x1f27   :  { %9397 = vmatpush3.bf16.msra.mxu1 %v9386_v1 }
0x1fed   :  { %v7100_v21 = vpop.f32.mrb[80].mxu1  ;;  %v7065_v33 = vpop.f32.mrb[82].mxu0 }
0x1fee   :  { %v6780_v52 = vadd.f32 %v7100_v21, %v6970_v35  ;;  %v6774_v44 = vpop.f32.mrb[81].mxu1  ;;  %v6672_v40 = vpop.f32.mrb[83].mxu0  ;;  %v6678_v22 = vadd.f32 %v7065_v33, %v6969_v10 }
0x1fef   :  { %v6775_v31 = vadd.f32 %v6970_v35, %v6774_v44  ;;  %v6673_v24 = vadd.f32 %v6969_v10, %v6672_v40 }
0x1ff0   :  { %9728 = vtanh.f32 %v6780_v52 }
0x1ff1   :  { %9730 = vtanh.f32 %v6775_v31 }
0x1ff2   :  { %9732 = vtanh.f32 %v6673_v24 }
0x1ff3   :  { %9734 = vtanh.f32 %v6678_v22 }
0x1ffa   :  { %v9729_v51 = vpop.eup %9728 }
0x1ffb   :  { %v6818_v19 = vadd.f32 %v9729_v51, %v6813_v11  ;;  %v9731_v34 = vpop.eup %9730 }
0x1ffc   :  { %v9733_v50 = vpop.eup %9732  ;;  %v6817_v2 = vadd.f32 %v9731_v34, %v6813_v11 }
0x1ffd   :  { %v9735_v9 = vpop.eup %9734  ;;  %7101 = vmatprep.mubr.f32.mxu1 %v9733_v50 }
0x1ffe   :  { %7102 = vmatmul.mubr.f32.gmra.mrb[82].mxu1 %v9735_v9  ;;  %7120 = vmatprep.mubr.msk.f32.mxu0 %vm6836_vm4, %v6817_v2 }
0x1fff   :  { %7121 = vmatmul.mubr.msk.f32.vlgmr.msra.gmra.mrb[84].mxu0 %vm6836_vm4, %v6818_v19 }
0x20d1   :  { %v7103_v29 = vpop.f32.mrb[82].mxu1 }
0x20d2   :  { %v6790_v4 = vadd.f32 %v7103_v29, %v6970_v35  ;;  %v6784_v47 = vpop.f32.mrb[83].mxu1  ;;  %v7122_v7 = vpop.f32.mrb[84].mxu0 }
0x20d3   :  { %v6785_v39 = vadd.f32 %v6970_v35, %v6784_v47  ;;  %v6921_v8 = vadd.f32 %v7122_v7, %v6971_v61  ;;  %v6915_v17 = vpop.f32.mrb[85].mxu0 }
0x20d4   :  { %9736 = vtanh.f32 %v6790_v4  ;;  %v6916_v36 = vadd.f32 %v6971_v61, %v6915_v17 }
0x20d5   :  { %9738 = vtanh.f32 %v6785_v39  ;;  %v6935_v58 = vmul.f32 0.5, %v6921_v8 }
0x20d6   :  { %v6934_v38 = vmul.f32 0.5, %v6916_v36 }
0x20d7   :  { %9740 = vtanh.f32 %v6935_v58 }
0x20d8   :  { %9742 = vtanh.f32 %v6934_v38 }
0x20de   :  { %v9737_v55 = vpop.eup %9736 }
0x20df   :  { %v9739_v10 = vpop.eup %9738  ;;  %v6820_v25 = vadd.f32 %v9737_v55, %v6816_v43 }
0x20e0   :  { %v6819_v18 = vadd.f32 %v9739_v10, %v6816_v43 }
0x20e1   :  { %v9741_v54 = vpop.eup %9740 }
0x20e2   :  { %v9743_v23 = vpop.eup %9742  ;;  %v6943_v14 = vadd.f32 1.0, %v9741_v54  ;;  %7123 = vmatprep.mubr.msk.f32.mxu1 %vm6836_vm4, %v6819_v18 }
0x20e3   :  { %v6942_v16 = vadd.f32 1.0, %v9743_v23  ;;  %7124 = vmatmul.mubr.msk.f32.vlgmr.msra.gmra.mrb[84].mxu1 %vm6836_vm4, %v6820_v25 }
0x20e4   :  { %v6947_v56 = vmul.f32 0.5, %v6943_v14 }
0x20e5   :  { %v6946_v30 = vmul.f32 0.5, %v6942_v16 }
0x20e6   :  { %6952 = vst.msk [vmem:[%s11953_s14 + $0x8] sm:$0xff] %vm6950_vm5, %v6947_v56 }
0x20e7   :  { %6951 = vst.msk [vmem:[%s11953_s14] sm:$0xff] %vm6950_vm5, %v6946_v30 }
0x21b6   :  { %v7125_v0 = vpop.f32.mrb[84].mxu1 }
0x21b7   :  { %v6931_v42 = vadd.f32 %v7125_v0, %v6971_v61  ;;  %v6925_v46 = vpop.f32.mrb[85].mxu1 }
0x21b8   :  { %v6926_v20 = vadd.f32 %v6971_v61, %v6925_v46 }
0x21b9   :  { %v6937_v45 = vmul.f32 0.5, %v6931_v42 }
0x21ba   :  { %v6936_v28 = vmul.f32 0.5, %v6926_v20 }
0x21bb   :  { %9744 = vtanh.f32 %v6937_v45 }
0x21bc   :  { %9746 = vtanh.f32 %v6936_v28 }
0x21c5   :  { %v9745_v59 = vpop.eup %9744 }
0x21c6   :  { %v9747_v41 = vpop.eup %9746  ;;  %v6945_v13 = vadd.f32 1.0, %v9745_v59 }
0x21c7   :  { %v6944_v6 = vadd.f32 1.0, %v9747_v41 }
0x21c8   :  { %v6949_v32 = vmul.f32 0.5, %v6945_v13 }
0x21c9   :  { %v6948_v15 = vmul.f32 0.5, %v6944_v6 }
0x21ca   :  { %6954 = vst.msk [vmem:[%s11953_s14 + $0x18] sm:$0xff] %vm6950_vm5, %v6949_v32 }
0x21cb   :  { %6953 = vst.msk [vmem:[%s11953_s14 + $0x10] sm:$0xff] %vm6950_vm5, %v6948_v15 }
0x21cc   :  { %6959 = vsyncpa [#allocation5], 1 }
0x21cd   :  { %6960 = vsyncpa [#allocation7], 1 }

</bundles_post_ra>
